<compile_context>
chip_gen: v7x
topology: tpu7x:2x2x1
jax: 0.10.0
libtpu: 0.0.40
codegen_flags: <defaults>
</compile_context>

<pallas_src>
import functools

import jax
import jax.numpy as jnp
from jax.experimental import pallas as pl
from jax.experimental.pallas import tpu as pltpu

LATENT_DIM = 3


# ----------------------------------------------------------------------------
# Pallas kernels
# ----------------------------------------------------------------------------
def _linear_kernel_acc(x_ref, w_ref, b_ref, o_ref, acc_ref, *, apply_relu):
    """(B, tk) x (tk, tn) MXU step of y = [relu](x @ W + b); grid = (N tiles, K tiles)."""
    k = pl.program_id(1)

    @pl.when(k == 0)
    def _():
        acc_ref[...] = jnp.zeros_like(acc_ref)

    acc_ref[...] += jnp.dot(
        x_ref[...].astype(jnp.bfloat16), w_ref[...],
        preferred_element_type=jnp.float32)

    @pl.when(k == pl.num_programs(1) - 1)
    def _():
        out = acc_ref[...] + b_ref[...]
        if apply_relu:
            out = jnp.maximum(out, 0.0)
        o_ref[...] = out.astype(o_ref.dtype)


def _linear_kernel_noacc(x_ref, w_ref, b_ref, o_ref, *, apply_relu):
    """Single-K-block matmul: no scratch accumulator, write straight to output."""
    out = jnp.dot(
        x_ref[...].astype(jnp.bfloat16), w_ref[...],
        preferred_element_type=jnp.float32) + b_ref[...]
    if apply_relu:
        out = jnp.maximum(out, 0.0)
    o_ref[...] = out.astype(o_ref.dtype)


def _fused_middle_kernel(h1_ref, w2_ref, b2_ref, w3_ref, b3_ref,
                         wm_ref, bm_ref, wv_ref, bv_ref, eps_ref,
                         wdp_ref, bdp_ref, wd1_ref, bd1_ref, wd2_ref, bd2_ref,
                         mu_ref, logvar_ref, h_ref):
    """elinear2 -> elinear3 -> eplinear1/2 -> reparameterize -> dplinear1
       -> dlinear1 -> dlinear2, all resident in VMEM (single launch)."""

    def mm(a, w_ref, b_ref):
        return jnp.dot(a.astype(jnp.bfloat16), w_ref[...],
                       preferred_element_type=jnp.float32) + b_ref[...]

    h2 = jnp.maximum(mm(h1_ref[...], w2_ref, b2_ref), 0.0)   # elinear2 + relu
    h3 = jnp.maximum(mm(h2, w3_ref, b3_ref), 0.0)            # elinear3 + relu

    mu = mm(h3, wm_ref, bm_ref)                               # eplinear1
    logvar = mm(h3, wv_ref, bv_ref)                           # eplinear2
    mu_ref[...] = mu
    logvar_ref[...] = logvar

    z = mu + eps_ref[...] * jnp.exp(0.5 * logvar)             # reparameterize

    hd = mm(z, wdp_ref, bdp_ref)                              # dplinear1 (no relu)
    hd = jnp.maximum(mm(hd, wd1_ref, bd1_ref), 0.0)           # dlinear1 + relu
    hd = jnp.maximum(mm(hd, wd2_ref, bd2_ref), 0.0)           # dlinear2 + relu
    h_ref[...] = hd


# ----------------------------------------------------------------------------
# Wrappers
# ----------------------------------------------------------------------------
def _pick_tile(d, max_tile=1024):
    """Largest multiple of 128 that divides d and is <= max_tile, else the full dim."""
    if d <= max_tile:
        return d
    for t in range(max_tile - max_tile % 128, 0, -128):
        if d % t == 0:
            return t
    return d


def linear(x, w, b, *, relu):
    """y = x @ w + b (optionally relu). x: [B, K] f32, w: [K, N] bf16, b: [1, N] f32."""
    B, K = x.shape
    K2, N = w.shape
    assert K == K2 and b.shape == (1, N)

    tn = _pick_tile(N)
    tk = _pick_tile(K)
    nn, nk = N // tn, K // tk

    if nk == 1:
        kernel = functools.partial(_linear_kernel_noacc, apply_relu=relu)
        scratch = ()
    else:
        kernel = functools.partial(_linear_kernel_acc, apply_relu=relu)
        scratch = (pltpu.VMEM((B, tn), jnp.float32),)

    return pl.pallas_call(
        kernel,
        out_shape=jax.ShapeDtypeStruct((B, N), jnp.float32),
        grid_spec=pltpu.PrefetchScalarGridSpec(
            num_scalar_prefetch=0,
            grid=(nn, nk),
            in_specs=[
                pl.BlockSpec((B, tk), lambda n, k: (0, k)),
                pl.BlockSpec((tk, tn), lambda n, k: (k, n)),
                pl.BlockSpec((1, tn), lambda n, k: (0, n)),
            ],
            out_specs=pl.BlockSpec((B, tn), lambda n, k: (0, n)),
            scratch_shapes=scratch,
        ),
        compiler_params=pltpu.CompilerParams(
            dimension_semantics=("parallel", "arbitrary"),
            vmem_limit_bytes=48 << 20,
        ),
    )(x, w, b)


def fused_middle(h1, p_e2, p_e3, p_ep1, p_ep2, eps, p_dp1, p_d1, p_d2):
    """Single pallas_call covering elinear2 ... dlinear2 (+ reparameterize)."""
    B = h1.shape[0]
    w2, b2 = p_e2
    w3, b3 = p_e3
    wm, bm = p_ep1
    wv, bv = p_ep2
    wdp, bdp = p_dp1
    wd1, bd1 = p_d1
    wd2, bd2 = p_d2
    H_OUT = wd2.shape[1]

    def spec2(shape):
        return pl.BlockSpec(shape, lambda: (0, 0))

    args = (h1, w2, b2, w3, b3, wm, bm, wv, bv, eps, wdp, bdp, wd1, bd1, wd2, bd2)
    return pl.pallas_call(
        _fused_middle_kernel,
        out_shape=(
            jax.ShapeDtypeStruct((B, LATENT_DIM), jnp.float32),
            jax.ShapeDtypeStruct((B, LATENT_DIM), jnp.float32),
            jax.ShapeDtypeStruct((B, H_OUT), jnp.float32),
        ),
        in_specs=[spec2(a.shape) for a in args],
        out_specs=(
            spec2((B, LATENT_DIM)),
            spec2((B, LATENT_DIM)),
            spec2((B, H_OUT)),
        ),
        compiler_params=pltpu.CompilerParams(vmem_limit_bytes=48 << 20),
    )(*args)


# ----------------------------------------------------------------------------
# Parameter init (deterministic, PyTorch-Linear-like uniform(-1/sqrt(fan_in), ...))
# ----------------------------------------------------------------------------
def init_linear_params(key, fan_in, fan_out):
    kw, kb = jax.random.split(key)
    bound = 1.0 / jnp.sqrt(jnp.float32(fan_in))
    w = jax.random.uniform(kw, (fan_in, fan_out), jnp.float32, -bound, bound)
    b = jax.random.uniform(kb, (1, fan_out), jnp.float32, -bound, bound)
    return w.astype(jnp.bfloat16), b  # weights streamed as bf16, bias stays f32


def init_vae_params(key):
    layer_dims = {
        "elinear1": (3840, 1000),
        "elinear2": (1000, 1000),
        "elinear3": (1000, 100),
        "eplinear1": (100, LATENT_DIM),
        "eplinear2": (100, LATENT_DIM),
        "dplinear1": (LATENT_DIM, 100),
        "dlinear1": (100, 1000),
        "dlinear2": (1000, 1000),
        "dlinear3": (1000, 3840),
    }
    params = {}
    keys = jax.random.split(key, len(layer_dims))
    for k, (name, (fi, fo)) in zip(keys, layer_dims.items()):
        params[name] = init_linear_params(k, fi, fo)
    return params


# ----------------------------------------------------------------------------
# VAE forward (3 pallas_calls)
# ----------------------------------------------------------------------------
def vae_forward(params, x, eps):
    # elinear1 (3840 -> 1000) + relu: K-tiled, f32 accumulator.
    h1 = linear(x, *params["elinear1"], relu=True)
    # elinear2 .. dlinear2 + reparameterize, fused in one kernel.
    mu, logvar, hdec = fused_middle(
        h1,
        params["elinear2"], params["elinear3"],
        params["eplinear1"], params["eplinear2"], eps,
        params["dplinear1"], params["dlinear1"], params["dlinear2"])
    # dlinear3 (1000 -> 3840) + relu: N-tiled, weight DMA pipelined.
    recon_x = linear(hdec, *params["dlinear3"], relu=True)
    return recon_x, mu, logvar


# ----------------------------------------------------------------------------
# Pure-JAX reference (same bf16 weight / bf16 activation-cast numerics)
# ----------------------------------------------------------------------------
def _ref_forward(params, x, eps):
    def lin(h, w, b, relu):
        y = jnp.dot(h.astype(jnp.bfloat16), w,
                    preferred_element_type=jnp.float32) + b
        return jnp.maximum(y, 0.0) if relu else y

    h = lin(x, *params["elinear1"], True)
    h = lin(h, *params["elinear2"], True)
    h = lin(h, *params["elinear3"], True)
    mu = lin(h, *params["eplinear1"], False)
    logvar = lin(h, *params["eplinear2"], False)
    z = mu + eps * jnp.exp(0.5 * logvar)
    h = lin(z, *params["dplinear1"], False)
    h = lin(h, *params["dlinear1"], True)
    h = lin(h, *params["dlinear2"], True)
    return lin(h, *params["dlinear3"], True), mu, logvar


if __name__ == "__main__":
    key = jax.random.PRNGKey(0)
    k_params, k_x, k_eps = jax.random.split(key, 3)

    B = 8  # small batch; feature dims are fixed by the module (3840 -> ... -> 3)
    params = init_vae_params(k_params)
    x = jax.random.normal(k_x, (B, 3840), jnp.float32)
    # torch.randn_like(std) -> supplied externally as eps for determinism.
    eps = jax.random.normal(k_eps, (B, LATENT_DIM), jnp.float32)

    recon_x, mu, logvar = jax.jit(vae_forward)(params, x, eps)
    jax.block_until_ready((recon_x, mu, logvar))

    assert recon_x.shape == (B, 3840)
    assert mu.shape == (B, LATENT_DIM)
    assert logvar.shape == (B, LATENT_DIM)

    # Loose numerical check vs a pure-JAX reference using the same bf16 numerics.
    r_ref, mu_ref, lv_ref = jax.jit(_ref_forward)(params, x, eps)
    err = max(float(jnp.max(jnp.abs(recon_x - r_ref))),
              float(jnp.max(jnp.abs(mu - mu_ref))),
              float(jnp.max(jnp.abs(logvar - lv_ref))))
    assert err < 0.1, f"max abs error vs reference: {err}"

    print("KERNEL_OK")
</pallas_src>

<mosaic_0001>
module attributes {stable_mosaic.version = 11 : i64} {
  func.func @_linear_kernel_acc(%arg0: i32, %arg1: i32, %arg2: memref<8x768xf32, #tpu.memory_space<vmem>>, %arg3: memref<768x1000xbf16, #tpu.memory_space<vmem>>, %arg4: memref<1x1000xf32, #tpu.memory_space<vmem>>, %arg5: memref<8x1000xf32, #tpu.memory_space<vmem>>, %arg6: memref<8x1000xf32, #tpu.memory_space<vmem>>) attributes {dimension_semantics = [#tpu.dimension_semantics<parallel>, #tpu.dimension_semantics<arbitrary>], iteration_bounds = array<i64: 1, 5>, scalar_prefetch = 0 : i64, scratch_operands = 1 : i64, tpu.core_type = #tpu.core_type<tc>, window_params = [{transform_indices = @transform_0, window_bounds = array<i64: 8, 768>}, {transform_indices = @transform_1, window_bounds = array<i64: 768, 1000>}, {transform_indices = @transform_2, window_bounds = array<i64: 1, 1000>}, {transform_indices = @transform_3, window_bounds = array<i64: 8, 1000>}]} {
    %c0_i32 = arith.constant 0 : i32
    %0 = arith.cmpi eq, %arg1, %c0_i32 : i32
    %1 = arith.extui %0 : i1 to i32
    %c0_i32_0 = arith.constant 0 : i32
    %2 = arith.cmpi ne, %1, %c0_i32_0 : i32
    scf.if %2 {
      %cst_9 = arith.constant 0.000000e+00 : f32
      %13 = vector.broadcast %cst_9 : f32 to vector<8x1000xf32>
      %c0_10 = arith.constant 0 : index
      %c0_11 = arith.constant 0 : index
      %14 = vector.load %arg6[%c0_10, %c0_11] : memref<8x1000xf32, #tpu.memory_space<vmem>>, vector<8x1000xf32>
      tpu.vector_store %arg6[%c0_10, %c0_11], %13 {strides = array<i32>} : memref<8x1000xf32, #tpu.memory_space<vmem>>, vector<8x1000xf32>,
    } else {
    }
    %c0 = arith.constant 0 : index
    %c0_1 = arith.constant 0 : index
    %3 = vector.load %arg6[%c0, %c0_1] : memref<8x1000xf32, #tpu.memory_space<vmem>>, vector<8x1000xf32>
    %c0_2 = arith.constant 0 : index
    %c0_3 = arith.constant 0 : index
    %4 = vector.load %arg2[%c0_2, %c0_3] : memref<8x768xf32, #tpu.memory_space<vmem>>, vector<8x768xf32>
    %5 = arith.truncf %4 : vector<8x768xf32> to vector<8x768xbf16>
    %c0_4 = arith.constant 0 : index
    %c0_5 = arith.constant 0 : index
    %6 = vector.load %arg3[%c0_4, %c0_5] : memref<768x1000xbf16, #tpu.memory_space<vmem>>, vector<768x1000xbf16>
    %cst = arith.constant dense<0.000000e+00> : vector<8x1000xf32>
    %7 = tpu.matmul %5, %6, %cst {dimension_numbers = #tpu.dot_dimension_numbers<[1], [0], [0], [1], [0, 0, 1, 1], [], []>} : vector<8x768xbf16>, vector<768x1000xbf16>, vector<8x1000xf32> -> vector<8x1000xf32>
    %8 = arith.addf %3, %7 : vector<8x1000xf32>
    %c0_6 = arith.constant 0 : index
    %c0_7 = arith.constant 0 : index
    %9 = vector.load %arg6[%c0_6, %c0_7] : memref<8x1000xf32, #tpu.memory_space<vmem>>, vector<8x1000xf32>
    tpu.vector_store %arg6[%c0_6, %c0_7], %8 {strides = array<i32>} : memref<8x1000xf32, #tpu.memory_space<vmem>>, vector<8x1000xf32>,
    %c4_i32 = arith.constant 4 : i32
    %10 = arith.cmpi eq, %arg1, %c4_i32 : i32
    %11 = arith.extui %10 : i1 to i32
    %c0_i32_8 = arith.constant 0 : i32
    %12 = arith.cmpi ne, %11, %c0_i32_8 : i32
    scf.if %12 {
      %c0_9 = arith.constant 0 : index
      %c0_10 = arith.constant 0 : index
      %13 = vector.load %arg6[%c0_9, %c0_10] : memref<8x1000xf32, #tpu.memory_space<vmem>>, vector<8x1000xf32>
      %c0_11 = arith.constant 0 : index
      %c0_12 = arith.constant 0 : index
      %14 = vector.load %arg4[%c0_11, %c0_12] : memref<1x1000xf32, #tpu.memory_space<vmem>>, vector<1x1000xf32>
      %15 = vector.broadcast %14 : vector<1x1000xf32> to vector<8x1000xf32>
      %16 = arith.addf %13, %15 : vector<8x1000xf32>
      %cst_13 = arith.constant 0.000000e+00 : f32
      %17 = vector.broadcast %cst_13 : f32 to vector<8x1000xf32>
      %18 = arith.maximumf %16, %17 : vector<8x1000xf32>
      %c0_14 = arith.constant 0 : index
      %c0_15 = arith.constant 0 : index
      %19 = vector.load %arg5[%c0_14, %c0_15] : memref<8x1000xf32, #tpu.memory_space<vmem>>, vector<8x1000xf32>
      tpu.vector_store %arg5[%c0_14, %c0_15], %18 {strides = array<i32>} : memref<8x1000xf32, #tpu.memory_space<vmem>>, vector<8x1000xf32>,
    } else {
    }
    return
  }
  func.func @transform_0(%arg0: i32, %arg1: i32) -> (i32, i32) {
    %c0_i32 = arith.constant 0 : i32
    %c0_i32_0 = arith.constant 0 : i32
    return %c0_i32, %arg1 : i32, i32
  }
  func.func @transform_1(%arg0: i32, %arg1: i32) -> (i32, i32) {
    %c0_i32 = arith.constant 0 : i32
    return %arg1, %arg0 : i32, i32
  }
  func.func @transform_2(%arg0: i32, %arg1: i32) -> (i32, i32) {
    %c0_i32 = arith.constant 0 : i32
    %c0_i32_0 = arith.constant 0 : i32
    return %c0_i32, %arg0 : i32, i32
  }
  func.func @transform_3(%arg0: i32, %arg1: i32) -> (i32, i32) {
    %c0_i32 = arith.constant 0 : i32
    %c0_i32_0 = arith.constant 0 : i32
    return %c0_i32, %arg0 : i32, i32
  }
}

module attributes {stable_mosaic.version = 11 : i64} {
  func.func @_linear_kernel_noacc(%arg0: i32, %arg1: i32, %arg2: memref<8x1000xf32, #tpu.memory_space<vmem>>, %arg3: memref<1000x768xbf16, #tpu.memory_space<vmem>>, %arg4: memref<1x768xf32, #tpu.memory_space<vmem>>, %arg5: memref<8x768xf32, #tpu.memory_space<vmem>>) attributes {dimension_semantics = [#tpu.dimension_semantics<parallel>, #tpu.dimension_semantics<arbitrary>], iteration_bounds = array<i64: 5, 1>, scalar_prefetch = 0 : i64, scratch_operands = 0 : i64, tpu.core_type = #tpu.core_type<tc>, window_params = [{transform_indices = @transform_0, window_bounds = array<i64: 8, 1000>}, {transform_indices = @transform_1, window_bounds = array<i64: 1000, 768>}, {transform_indices = @transform_2, window_bounds = array<i64: 1, 768>}, {transform_indices = @transform_3, window_bounds = array<i64: 8, 768>}]} {
    %c0 = arith.constant 0 : index
    %c0_0 = arith.constant 0 : index
    %0 = vector.load %arg2[%c0, %c0_0] : memref<8x1000xf32, #tpu.memory_space<vmem>>, vector<8x1000xf32>
    %1 = arith.truncf %0 : vector<8x1000xf32> to vector<8x1000xbf16>
    %c0_1 = arith.constant 0 : index
    %c0_2 = arith.constant 0 : index
    %2 = vector.load %arg3[%c0_1, %c0_2] : memref<1000x768xbf16, #tpu.memory_space<vmem>>, vector<1000x768xbf16>
    %cst = arith.constant dense<0.000000e+00> : vector<8x768xf32>
    %3 = tpu.matmul %1, %2, %cst {dimension_numbers = #tpu.dot_dimension_numbers<[1], [0], [0], [1], [0, 0, 1, 1], [], []>} : vector<8x1000xbf16>, vector<1000x768xbf16>, vector<8x768xf32> -> vector<8x768xf32>
    %c0_3 = arith.constant 0 : index
    %c0_4 = arith.constant 0 : index
    %4 = vector.load %arg4[%c0_3, %c0_4] : memref<1x768xf32, #tpu.memory_space<vmem>>, vector<1x768xf32>
    %5 = vector.broadcast %4 : vector<1x768xf32> to vector<8x768xf32>
    %6 = arith.addf %3, %5 : vector<8x768xf32>
    %cst_5 = arith.constant 0.000000e+00 : f32
    %7 = vector.broadcast %cst_5 : f32 to vector<8x768xf32>
    %8 = arith.maximumf %6, %7 : vector<8x768xf32>
    %c0_6 = arith.constant 0 : index
    %c0_7 = arith.constant 0 : index
    %9 = vector.load %arg5[%c0_6, %c0_7] : memref<8x768xf32, #tpu.memory_space<vmem>>, vector<8x768xf32>
    tpu.vector_store %arg5[%c0_6, %c0_7], %8 {strides = array<i32>} : memref<8x768xf32, #tpu.memory_space<vmem>>, vector<8x768xf32>,
    return
  }
  func.func @transform_0(%arg0: i32, %arg1: i32) -> (i32, i32) {
    %c0_i32 = arith.constant 0 : i32
    %c0_i32_0 = arith.constant 0 : i32
    return %c0_i32, %arg1 : i32, i32
  }
  func.func @transform_1(%arg0: i32, %arg1: i32) -> (i32, i32) {
    %c0_i32 = arith.constant 0 : i32
    return %arg1, %arg0 : i32, i32
  }
  func.func @transform_2(%arg0: i32, %arg1: i32) -> (i32, i32) {
    %c0_i32 = arith.constant 0 : i32
    %c0_i32_0 = arith.constant 0 : i32
    return %c0_i32, %arg0 : i32, i32
  }
  func.func @transform_3(%arg0: i32, %arg1: i32) -> (i32, i32) {
    %c0_i32 = arith.constant 0 : i32
    %c0_i32_0 = arith.constant 0 : i32
    return %c0_i32, %arg0 : i32, i32
  }
}

module attributes {stable_mosaic.version = 11 : i64} {
  func.func @_fused_middle_kernel(%arg0: memref<8x1000xf32, #tpu.memory_space<vmem>>, %arg1: memref<1000x1000xbf16, #tpu.memory_space<vmem>>, %arg2: memref<1x1000xf32, #tpu.memory_space<vmem>>, %arg3: memref<1000x100xbf16, #tpu.memory_space<vmem>>, %arg4: memref<1x100xf32, #tpu.memory_space<vmem>>, %arg5: memref<100x3xbf16, #tpu.memory_space<vmem>>, %arg6: memref<1x3xf32, #tpu.memory_space<vmem>>, %arg7: memref<100x3xbf16, #tpu.memory_space<vmem>>, %arg8: memref<1x3xf32, #tpu.memory_space<vmem>>, %arg9: memref<8x3xf32, #tpu.memory_space<vmem>>, %arg10: memref<3x100xbf16, #tpu.memory_space<vmem>>, %arg11: memref<1x100xf32, #tpu.memory_space<vmem>>, %arg12: memref<100x1000xbf16, #tpu.memory_space<vmem>>, %arg13: memref<1x1000xf32, #tpu.memory_space<vmem>>, %arg14: memref<1000x1000xbf16, #tpu.memory_space<vmem>>, %arg15: memref<1x1000xf32, #tpu.memory_space<vmem>>, %arg16: memref<8x3xf32, #tpu.memory_space<vmem>>, %arg17: memref<8x3xf32, #tpu.memory_space<vmem>>, %arg18: memref<8x1000xf32, #tpu.memory_space<vmem>>) attributes {dimension_semantics = [], scalar_prefetch = 0 : i64, scratch_operands = 0 : i64, tpu.core_type = #tpu.core_type<tc>} {
    %c0 = arith.constant 0 : index
    %c0_0 = arith.constant 0 : index
    %0 = vector.load %arg0[%c0, %c0_0] : memref<8x1000xf32, #tpu.memory_space<vmem>>, vector<8x1000xf32>
    %1 = arith.truncf %0 : vector<8x1000xf32> to vector<8x1000xbf16>
    %c0_1 = arith.constant 0 : index
    %c0_2 = arith.constant 0 : index
    %2 = vector.load %arg1[%c0_1, %c0_2] : memref<1000x1000xbf16, #tpu.memory_space<vmem>>, vector<1000x1000xbf16>
    %cst = arith.constant dense<0.000000e+00> : vector<8x1000xf32>
    %3 = tpu.matmul %1, %2, %cst {dimension_numbers = #tpu.dot_dimension_numbers<[1], [0], [0], [1], [0, 0, 1, 1], [], []>} : vector<8x1000xbf16>, vector<1000x1000xbf16>, vector<8x1000xf32> -> vector<8x1000xf32>
    %c0_3 = arith.constant 0 : index
    %c0_4 = arith.constant 0 : index
    %4 = vector.load %arg2[%c0_3, %c0_4] : memref<1x1000xf32, #tpu.memory_space<vmem>>, vector<1x1000xf32>
    %5 = vector.broadcast %4 : vector<1x1000xf32> to vector<8x1000xf32>
    %6 = arith.addf %3, %5 : vector<8x1000xf32>
    %cst_5 = arith.constant 0.000000e+00 : f32
    %7 = vector.broadcast %cst_5 : f32 to vector<8x1000xf32>
    %8 = arith.maximumf %6, %7 : vector<8x1000xf32>
    %9 = arith.truncf %8 : vector<8x1000xf32> to vector<8x1000xbf16>
    %c0_6 = arith.constant 0 : index
    %c0_7 = arith.constant 0 : index
    %10 = vector.load %arg3[%c0_6, %c0_7] : memref<1000x100xbf16, #tpu.memory_space<vmem>>, vector<1000x100xbf16>
    %cst_8 = arith.constant dense<0.000000e+00> : vector<8x100xf32>
    %11 = tpu.matmul %9, %10, %cst_8 {dimension_numbers = #tpu.dot_dimension_numbers<[1], [0], [0], [1], [0, 0, 1, 1], [], []>} : vector<8x1000xbf16>, vector<1000x100xbf16>, vector<8x100xf32> -> vector<8x100xf32>
    %c0_9 = arith.constant 0 : index
    %c0_10 = arith.constant 0 : index
    %12 = vector.load %arg4[%c0_9, %c0_10] : memref<1x100xf32, #tpu.memory_space<vmem>>, vector<1x100xf32>
    %13 = vector.broadcast %12 : vector<1x100xf32> to vector<8x100xf32>
    %14 = arith.addf %11, %13 : vector<8x100xf32>
    %cst_11 = arith.constant 0.000000e+00 : f32
    %15 = vector.broadcast %cst_11 : f32 to vector<8x100xf32>
    %16 = arith.maximumf %14, %15 : vector<8x100xf32>
    %17 = arith.truncf %16 : vector<8x100xf32> to vector<8x100xbf16>
    %c0_12 = arith.constant 0 : index
    %c0_13 = arith.constant 0 : index
    %18 = vector.load %arg5[%c0_12, %c0_13] : memref<100x3xbf16, #tpu.memory_space<vmem>>, vector<100x3xbf16>
    %cst_14 = arith.constant dense<0.000000e+00> : vector<8x3xf32>
    %19 = tpu.matmul %17, %18, %cst_14 {dimension_numbers = #tpu.dot_dimension_numbers<[1], [0], [0], [1], [0, 0, 1, 1], [], []>} : vector<8x100xbf16>, vector<100x3xbf16>, vector<8x3xf32> -> vector<8x3xf32>
    %c0_15 = arith.constant 0 : index
    %c0_16 = arith.constant 0 : index
    %20 = vector.load %arg6[%c0_15, %c0_16] : memref<1x3xf32, #tpu.memory_space<vmem>>, vector<1x3xf32>
    %21 = vector.broadcast %20 : vector<1x3xf32> to vector<8x3xf32>
    %22 = arith.addf %19, %21 : vector<8x3xf32>
    %23 = arith.truncf %16 : vector<8x100xf32> to vector<8x100xbf16>
    %c0_17 = arith.constant 0 : index
    %c0_18 = arith.constant 0 : index
    %24 = vector.load %arg7[%c0_17, %c0_18] : memref<100x3xbf16, #tpu.memory_space<vmem>>, vector<100x3xbf16>
    %cst_19 = arith.constant dense<0.000000e+00> : vector<8x3xf32>
    %25 = tpu.matmul %23, %24, %cst_19 {dimension_numbers = #tpu.dot_dimension_numbers<[1], [0], [0], [1], [0, 0, 1, 1], [], []>} : vector<8x100xbf16>, vector<100x3xbf16>, vector<8x3xf32> -> vector<8x3xf32>
    %c0_20 = arith.constant 0 : index
    %c0_21 = arith.constant 0 : index
    %26 = vector.load %arg8[%c0_20, %c0_21] : memref<1x3xf32, #tpu.memory_space<vmem>>, vector<1x3xf32>
    %27 = vector.broadcast %26 : vector<1x3xf32> to vector<8x3xf32>
    %28 = arith.addf %25, %27 : vector<8x3xf32>
    %c0_22 = arith.constant 0 : index
    %c0_23 = arith.constant 0 : index
    %29 = vector.load %arg16[%c0_22, %c0_23] : memref<8x3xf32, #tpu.memory_space<vmem>>, vector<8x3xf32>
    tpu.vector_store %arg16[%c0_22, %c0_23], %22 {strides = array<i32>} : memref<8x3xf32, #tpu.memory_space<vmem>>, vector<8x3xf32>,
    %c0_24 = arith.constant 0 : index
    %c0_25 = arith.constant 0 : index
    %30 = vector.load %arg17[%c0_24, %c0_25] : memref<8x3xf32, #tpu.memory_space<vmem>>, vector<8x3xf32>
    tpu.vector_store %arg17[%c0_24, %c0_25], %28 {strides = array<i32>} : memref<8x3xf32, #tpu.memory_space<vmem>>, vector<8x3xf32>,
    %c0_26 = arith.constant 0 : index
    %c0_27 = arith.constant 0 : index
    %31 = vector.load %arg9[%c0_26, %c0_27] : memref<8x3xf32, #tpu.memory_space<vmem>>, vector<8x3xf32>
    %cst_28 = arith.constant 5.000000e-01 : f32
    %32 = vector.broadcast %cst_28 : f32 to vector<8x3xf32>
    %33 = arith.mulf %32, %28 : vector<8x3xf32>
    %34 = math.exp %33 : vector<8x3xf32>
    %35 = arith.mulf %31, %34 : vector<8x3xf32>
    %36 = arith.addf %22, %35 : vector<8x3xf32>
    %37 = arith.truncf %36 : vector<8x3xf32> to vector<8x3xbf16>
    %c0_29 = arith.constant 0 : index
    %c0_30 = arith.constant 0 : index
    %38 = vector.load %arg10[%c0_29, %c0_30] : memref<3x100xbf16, #tpu.memory_space<vmem>>, vector<3x100xbf16>
    %cst_31 = arith.constant dense<0.000000e+00> : vector<8x100xf32>
    %39 = tpu.matmul %37, %38, %cst_31 {dimension_numbers = #tpu.dot_dimension_numbers<[1], [0], [0], [1], [0, 0, 1, 1], [], []>} : vector<8x3xbf16>, vector<3x100xbf16>, vector<8x100xf32> -> vector<8x100xf32>
    %c0_32 = arith.constant 0 : index
    %c0_33 = arith.constant 0 : index
    %40 = vector.load %arg11[%c0_32, %c0_33] : memref<1x100xf32, #tpu.memory_space<vmem>>, vector<1x100xf32>
    %41 = vector.broadcast %40 : vector<1x100xf32> to vector<8x100xf32>
    %42 = arith.addf %39, %41 : vector<8x100xf32>
    %43 = arith.truncf %42 : vector<8x100xf32> to vector<8x100xbf16>
    %c0_34 = arith.constant 0 : index
    %c0_35 = arith.constant 0 : index
    %44 = vector.load %arg12[%c0_34, %c0_35] : memref<100x1000xbf16, #tpu.memory_space<vmem>>, vector<100x1000xbf16>
    %cst_36 = arith.constant dense<0.000000e+00> : vector<8x1000xf32>
    %45 = tpu.matmul %43, %44, %cst_36 {dimension_numbers = #tpu.dot_dimension_numbers<[1], [0], [0], [1], [0, 0, 1, 1], [], []>} : vector<8x100xbf16>, vector<100x1000xbf16>, vector<8x1000xf32> -> vector<8x1000xf32>
    %c0_37 = arith.constant 0 : index
    %c0_38 = arith.constant 0 : index
    %46 = vector.load %arg13[%c0_37, %c0_38] : memref<1x1000xf32, #tpu.memory_space<vmem>>, vector<1x1000xf32>
    %47 = vector.broadcast %46 : vector<1x1000xf32> to vector<8x1000xf32>
    %48 = arith.addf %45, %47 : vector<8x1000xf32>
    %cst_39 = arith.constant 0.000000e+00 : f32
    %49 = vector.broadcast %cst_39 : f32 to vector<8x1000xf32>
    %50 = arith.maximumf %48, %49 : vector<8x1000xf32>
    %51 = arith.truncf %50 : vector<8x1000xf32> to vector<8x1000xbf16>
    %c0_40 = arith.constant 0 : index
    %c0_41 = arith.constant 0 : index
    %52 = vector.load %arg14[%c0_40, %c0_41] : memref<1000x1000xbf16, #tpu.memory_space<vmem>>, vector<1000x1000xbf16>
    %cst_42 = arith.constant dense<0.000000e+00> : vector<8x1000xf32>
    %53 = tpu.matmul %51, %52, %cst_42 {dimension_numbers = #tpu.dot_dimension_numbers<[1], [0], [0], [1], [0, 0, 1, 1], [], []>} : vector<8x1000xbf16>, vector<1000x1000xbf16>, vector<8x1000xf32> -> vector<8x1000xf32>
    %c0_43 = arith.constant 0 : index
    %c0_44 = arith.constant 0 : index
    %54 = vector.load %arg15[%c0_43, %c0_44] : memref<1x1000xf32, #tpu.memory_space<vmem>>, vector<1x1000xf32>
    %55 = vector.broadcast %54 : vector<1x1000xf32> to vector<8x1000xf32>
    %56 = arith.addf %53, %55 : vector<8x1000xf32>
    %cst_45 = arith.constant 0.000000e+00 : f32
    %57 = vector.broadcast %cst_45 : f32 to vector<8x1000xf32>
    %58 = arith.maximumf %56, %57 : vector<8x1000xf32>
    %c0_46 = arith.constant 0 : index
    %c0_47 = arith.constant 0 : index
    %59 = vector.load %arg18[%c0_46, %c0_47] : memref<8x1000xf32, #tpu.memory_space<vmem>>, vector<8x1000xf32>
    tpu.vector_store %arg18[%c0_46, %c0_47], %58 {strides = array<i32>} : memref<8x1000xf32, #tpu.memory_space<vmem>>, vector<8x1000xf32>,
    return
  }
}

</mosaic_0001>

<bundles_post_ra>
// kernel: vae_forward.3
= control target key start
LH: loop header
LB: loop body
LE: loop exit
PB: predicated region body
PF: predicated region fallthrough
CT: control target
= control target key end

     0   :  { %s3731_s12 = smov 0   ;;  %s3733_s13 = smov 0   ;;  %s4241_s0 = inlined_call_operand.vmem [shape: f32[8,3840], index: 0, kind: input, shape index: {}]   ;;  %s4242_s1 = inlined_call_operand.vmem [shape: bf16[3840,1000], index: 1, kind: input, shape index: {}]   ;;  %s4243_s2 = inlined_call_operand.vmem [shape: f32[1,1000], index: 2, kind: input, shape index: {}]   ;;  %s4244_s3 = inlined_call_operand.vmem [shape: f32[8,1000], index: 3, kind: output, shape index: {}]  }
   0x1   :  { %s3735_s14 = smov 0  }
   0x2 LB: > { %s22_s15 = sadd.s32 1, %s3704_s13  ;;  %p3266_p0 = scmp.ge.s32.totalorder %s3708_s14, 1  ;;  %s3708_s14 = sphi %s3735_s14, %s13_s14   ;;  %s3704_s13 = sphi %s3733_s13, %s4246_s13   ;;  %s3700_s12 = sphi %s3731_s12, %s4245_s12  }
   0x3   : > { %p23_p1 = scmp.ge.s32.totalorder %s22_s15, 5  ;;  %p179_p2 = scmp.lt.s32.totalorder %s3708_s14, 6 }
   0x5   : > { %s4248_s15 = smov (%p23_p1, %s22_s15), 0  ;;  %p180_p3 = pnand %p3266_p0, %p179_p2 }
   0x6   : > { %s217_s16 = smul.u32 (!%p180_p3), 6, %s3700_s12  ;;  %p3270_p6 = scmp.ne.s32.totalorder (!%p180_p3), %s3700_s12, 0 }
   0x7   : > { %183 = sbr.rel (%p180_p3) target bundleno = 645 (0x285), region = 32 }
   0x8   : > { %s223_s17 = smul.u32 (!%p180_p3), 96, %s3700_s12  ;;  %p218_p4 = scmp.lt.s32.totalorder (!%p180_p3), %s217_s16, 29 }
   0xa   : > { %p225_p5 = scmp.lt.s32.totalorder (!%p180_p3), %s223_s17, 479 }
   0xe   : > { %s4250_s16 = smov (!%p218_p4, %s217_s16), 29  ;;  %s4252_s17 = smov (!%p225_p5, %s223_s17), 479 }
   0xf   : > { %s3267_s18 = sshll.u32 %s4250_s16, 3  ;;  %s3660_s22 = sshll.u32 %s4252_s17, 5  ;;  %vm257_vm0 = vcmask (!%p3270_p6), 850944   ;;  %v3710_v0 = vmov (!%p3270_p6), 0.0  }
  0x10   : > { %s3756_s21 = scalar_lea.vmem %s4241_s0, %s3267_s18  ;;  %s3761_s25 = scalar_lea.vmem %s4242_s1, %s3660_s22  ;;  %250 = vst [vmem:[#allocation2] sm:$0xff] (!%p3270_p6), %v3710_v0  ;;  %251 = vst [vmem:[#allocation2 + $0x8] sm:$0xff] (!%p3270_p6), %v3710_v0 }
  0x11   : > { %249 = sbr.rel (%p3270_p6) target bundleno = 24 (0x18), region = 36  ;;  %252 = vst [vmem:[#allocation2 + $0x10] sm:$0xff] (!%p3270_p6), %v3710_v0  ;;  %253 = vst [vmem:[#allocation2 + $0x18] sm:$0xff] (!%p3270_p6), %v3710_v0 }
  0x12   : > { %254 = vst [vmem:[#allocation2 + $0x20] sm:$0xff] (!%p3270_p6), %v3710_v0  ;;  %255 = vst [vmem:[#allocation2 + $0x28] sm:$0xff] (!%p3270_p6), %v3710_v0 }
  0x13   : > { %256 = vst [vmem:[#allocation2 + $0x30] sm:$0xff] (!%p3270_p6), %v3710_v0  ;;  %258 = vst.msk [vmem:[#allocation2 + $0x38] sm:$0xff] (!%p3270_p6), %vm257_vm0, %v3710_v0 }
  0x18 PF: > { %v279_v1 = vld [vmem:[%s3761_s25] sm:$0xff]  ;;  %v268_v54 = vld [vmem:[%s3756_s21 + $0x8] sm:$0xff]  ;;  %v270_v55 = vld [vmem:[%s3756_s21 + $0x18] sm:$0xff]  ;;  %vm3090_vm1 = vcmask 850944   ;;  %p3655_p7 = scmp.ne.s32.totalorder %s3700_s12, 4 }
  0x19   : > { %v283_v2 = vld [vmem:[%s3761_s25 + $0x20] sm:$0xff]  ;;  %v3796_v59 = vpack.c.bf16 %v268_v54, %v268_v54  ;;  %v3798_v60 = vpack.c.bf16 %v270_v55, %v270_v55 }
  0x1a   : > { %v407_v3 = vld [vmem:[%s3761_s25 + $0x400] sm:$0xff]  ;;  %v3272_v4 = vcombine.high %v279_v1, %v283_v2  ;;  %v3271_v6 = vcombine.low %v279_v1, %v283_v2 }
  0x1b   : > { %v411_v5 = vld [vmem:[%s3761_s25 + $0x420] sm:$0xff]  ;;  %2615 = vmatprep.mubr.bf16.mxu0 %v3796_v59  ;;  %2656 = vmatprep.mubr.bf16.mxu1 %v3798_v60 }
  0x1c   : > { %v287_v7 = vld [vmem:[%s3761_s25 + $0x40] sm:$0xff]  ;;  %v3400_v9 = vcombine.high %v407_v3, %v411_v5  ;;  %v3399_v10 = vcombine.low %v407_v3, %v411_v5  ;;  %2583 = vmatprep.subr.bf16.mxu0 %v3272_v4 }
  0x1d   : > { %v291_v8 = vld [vmem:[%s3761_s25 + $0x60] sm:$0xff]  ;;  %2584 = vmatpush1.bf16.msra.mxu0 %v3271_v6 }
  0x1e   : > { %v3280_v11 = vcombine.high %v287_v7, %v291_v8  ;;  %v415_v12 = vld [vmem:[%s3761_s25 + $0x440] sm:$0xff]  ;;  %2624 = vmatprep.subr.bf16.mxu1 %v3400_v9  ;;  %v3279_v19 = vcombine.low %v287_v7, %v291_v8 }
  0x1f   : > { %v419_v13 = vld [vmem:[%s3761_s25 + $0x460] sm:$0xff]  ;;  %2625 = vmatpush1.bf16.msra.mxu1 %v3399_v10 }
  0x20   : > { %v295_v14 = vld [vmem:[%s3761_s25 + $0x80] sm:$0xff]  ;;  %v3408_v15 = vcombine.high %v415_v12, %v419_v13  ;;  %2585 = vmatprep.subr.bf16.mxu0 %v3280_v11  ;;  %v3407_v20 = vcombine.low %v415_v12, %v419_v13 }
  0x21   : > { %v299_v16 = vld [vmem:[%s3761_s25 + $0xa0] sm:$0xff]  ;;  %2586 = vmatpush1.bf16.msra.mxu0 %v3279_v19 }
  0x22   : > { %v423_v17 = vld [vmem:[%s3761_s25 + $0x480] sm:$0xff]  ;;  %v3288_v21 = vcombine.high %v295_v14, %v299_v16  ;;  %2626 = vmatprep.subr.bf16.mxu1 %v3408_v15  ;;  %v3287_v27 = vcombine.low %v295_v14, %v299_v16 }
  0x23   : > { %v427_v18 = vld [vmem:[%s3761_s25 + $0x4a0] sm:$0xff]  ;;  %2627 = vmatpush1.bf16.msra.mxu1 %v3407_v20 }
  0x24   : > { %v3416_v22 = vcombine.high %v423_v17, %v427_v18  ;;  %v303_v23 = vld [vmem:[%s3761_s25 + $0xc0] sm:$0xff]  ;;  %2587 = vmatprep.subr.bf16.mxu0 %v3288_v21  ;;  %v3415_v28 = vcombine.low %v423_v17, %v427_v18 }
  0x25   : > { %v307_v24 = vld [vmem:[%s3761_s25 + $0xe0] sm:$0xff]  ;;  %2588 = vmatpush1.bf16.msra.mxu0 %v3287_v27 }
  0x26   : > { %v431_v25 = vld [vmem:[%s3761_s25 + $0x4c0] sm:$0xff]  ;;  %v3296_v29 = vcombine.high %v303_v23, %v307_v24  ;;  %2628 = vmatprep.subr.bf16.mxu1 %v3416_v22  ;;  %v3295_v35 = vcombine.low %v303_v23, %v307_v24 }
  0x27   : > { %v435_v26 = vld [vmem:[%s3761_s25 + $0x4e0] sm:$0xff]  ;;  %2629 = vmatpush1.bf16.msra.mxu1 %v3415_v28 }
  0x28   : > { %v3424_v30 = vcombine.high %v431_v25, %v435_v26  ;;  %v311_v31 = vld [vmem:[%s3761_s25 + $0x100] sm:$0xff]  ;;  %2589 = vmatprep.subr.bf16.mxu0 %v3296_v29  ;;  %v3423_v36 = vcombine.low %v431_v25, %v435_v26 }
  0x29   : > { %v315_v32 = vld [vmem:[%s3761_s25 + $0x120] sm:$0xff]  ;;  %2590 = vmatpush1.bf16.msra.mxu0 %v3295_v35 }
  0x2a   : > { %v439_v33 = vld [vmem:[%s3761_s25 + $0x500] sm:$0xff]  ;;  %v3304_v37 = vcombine.high %v311_v31, %v315_v32  ;;  %2630 = vmatprep.subr.bf16.mxu1 %v3424_v30  ;;  %v3303_v43 = vcombine.low %v311_v31, %v315_v32 }
  0x2b   : > { %v443_v34 = vld [vmem:[%s3761_s25 + $0x520] sm:$0xff]  ;;  %2631 = vmatpush1.bf16.msra.mxu1 %v3423_v36 }
  0x2c   : > { %v3432_v38 = vcombine.high %v439_v33, %v443_v34  ;;  %v319_v39 = vld [vmem:[%s3761_s25 + $0x140] sm:$0xff]  ;;  %2591 = vmatprep.subr.bf16.mxu0 %v3304_v37  ;;  %v3431_v44 = vcombine.low %v439_v33, %v443_v34 }
  0x2d   : > { %v323_v40 = vld [vmem:[%s3761_s25 + $0x160] sm:$0xff]  ;;  %2592 = vmatpush1.bf16.msra.mxu0 %v3303_v43 }
  0x2e   : > { %v447_v41 = vld [vmem:[%s3761_s25 + $0x540] sm:$0xff]  ;;  %v3312_v45 = vcombine.high %v319_v39, %v323_v40  ;;  %2632 = vmatprep.subr.bf16.mxu1 %v3432_v38  ;;  %v3311_v51 = vcombine.low %v319_v39, %v323_v40 }
  0x2f   : > { %v451_v42 = vld [vmem:[%s3761_s25 + $0x560] sm:$0xff]  ;;  %2633 = vmatpush1.bf16.msra.mxu1 %v3431_v44 }
  0x30   : > { %v3440_v46 = vcombine.high %v447_v41, %v451_v42  ;;  %v327_v47 = vld [vmem:[%s3761_s25 + $0x180] sm:$0xff]  ;;  %2593 = vmatprep.subr.bf16.mxu0 %v3312_v45  ;;  %v3439_v52 = vcombine.low %v447_v41, %v451_v42 }
  0x31   : > { %v331_v48 = vld [vmem:[%s3761_s25 + $0x1a0] sm:$0xff]  ;;  %2594 = vmatpush1.bf16.msra.mxu0 %v3311_v51 }
  0x32   : > { %v455_v49 = vld [vmem:[%s3761_s25 + $0x580] sm:$0xff]  ;;  %v3320_v53 = vcombine.high %v327_v47, %v331_v48  ;;  %2634 = vmatprep.subr.bf16.mxu1 %v3440_v46  ;;  %v3319_v63 = vcombine.low %v327_v47, %v331_v48 }
  0x33   : > { %v459_v50 = vld [vmem:[%s3761_s25 + $0x5a0] sm:$0xff]  ;;  %2635 = vmatpush1.bf16.msra.mxu1 %v3439_v52 }
  0x34   : > { %v3448_v56 = vcombine.high %v455_v49, %v459_v50  ;;  %v335_v57 = vld [vmem:[%s3761_s25 + $0x1c0] sm:$0xff]  ;;  %2595 = vmatprep.subr.bf16.mxu0 %v3320_v53  ;;  %v3447_v0 = vcombine.low %v455_v49, %v459_v50 }
  0x35   : > { %v339_v58 = vld [vmem:[%s3761_s25 + $0x1e0] sm:$0xff]  ;;  %2596 = vmatpush1.bf16.msra.mxu0 %v3319_v63 }
  0x36   : > { %v463_v61 = vld [vmem:[%s3761_s25 + $0x5c0] sm:$0xff]  ;;  %v3328_v1 = vcombine.high %v335_v57, %v339_v58  ;;  %2636 = vmatprep.subr.bf16.mxu1 %v3448_v56  ;;  %v3327_v7 = vcombine.low %v335_v57, %v339_v58 }
  0x37   : > { %v467_v62 = vld [vmem:[%s3761_s25 + $0x5e0] sm:$0xff]  ;;  %2637 = vmatpush1.bf16.msra.mxu1 %v3447_v0 }
  0x38   : > { %v3456_v2 = vcombine.high %v463_v61, %v467_v62  ;;  %v343_v3 = vld [vmem:[%s3761_s25 + $0x200] sm:$0xff]  ;;  %2597 = vmatprep.subr.bf16.mxu0 %v3328_v1  ;;  %v3455_v8 = vcombine.low %v463_v61, %v467_v62 }
  0x39   : > { %v347_v4 = vld [vmem:[%s3761_s25 + $0x220] sm:$0xff]  ;;  %2598 = vmatpush1.bf16.msra.mxu0 %v3327_v7  ;;  %v280_v7 = vld [vmem:[%s3761_s25 + $0x8] sm:$0xff] }
  0x3a   : > { %v471_v5 = vld [vmem:[%s3761_s25 + $0x600] sm:$0xff]  ;;  %v3336_v9 = vcombine.high %v343_v3, %v347_v4  ;;  %2638 = vmatprep.subr.bf16.mxu1 %v3456_v2  ;;  %v3335_v15 = vcombine.low %v343_v3, %v347_v4 }
  0x3b   : > { %v475_v6 = vld [vmem:[%s3761_s25 + $0x620] sm:$0xff]  ;;  %2639 = vmatpush1.bf16.msra.mxu1 %v3455_v8  ;;  %v284_v8 = vld [vmem:[%s3761_s25 + $0x28] sm:$0xff] }
  0x3c   : > { %v3464_v10 = vcombine.high %v471_v5, %v475_v6  ;;  %v351_v11 = vld [vmem:[%s3761_s25 + $0x240] sm:$0xff]  ;;  %2599 = vmatprep.subr.bf16.mxu0 %v3336_v9  ;;  %v3463_v16 = vcombine.low %v471_v5, %v475_v6 }
  0x3d   : > { %v355_v12 = vld [vmem:[%s3761_s25 + $0x260] sm:$0xff]  ;;  %2600 = vmatpush1.bf16.msra.mxu0 %v3335_v15 }
  0x3e   : > { %v479_v13 = vld [vmem:[%s3761_s25 + $0x640] sm:$0xff]  ;;  %v3344_v17 = vcombine.high %v351_v11, %v355_v12  ;;  %2640 = vmatprep.subr.bf16.mxu1 %v3464_v10  ;;  %v3343_v23 = vcombine.low %v351_v11, %v355_v12  ;;  %v269_v12 = vld [vmem:[%s3756_s21 + $0x10] sm:$0xff] }
  0x3f   : > { %v483_v14 = vld [vmem:[%s3761_s25 + $0x660] sm:$0xff]  ;;  %2641 = vmatpush1.bf16.msra.mxu1 %v3463_v16 }
  0x40   : > { %v3472_v18 = vcombine.high %v479_v13, %v483_v14  ;;  %v359_v19 = vld [vmem:[%s3761_s25 + $0x280] sm:$0xff]  ;;  %2601 = vmatprep.subr.bf16.mxu0 %v3344_v17  ;;  %v3471_v24 = vcombine.low %v479_v13, %v483_v14  ;;  %v3274_v14 = vcombine.high %v280_v7, %v284_v8 }
  0x41   : > { %v363_v20 = vld [vmem:[%s3761_s25 + $0x2a0] sm:$0xff]  ;;  %2602 = vmatpush1.bf16.msra.mxu0 %v3343_v23  ;;  %v3273_v23 = vcombine.low %v280_v7, %v284_v8  ;;  %v336_v7 = vld [vmem:[%s3761_s25 + $0x1c8] sm:$0xff] }
  0x42   : > { %v487_v21 = vld [vmem:[%s3761_s25 + $0x680] sm:$0xff]  ;;  %v3352_v25 = vcombine.high %v359_v19, %v363_v20  ;;  %2642 = vmatprep.subr.bf16.mxu1 %v3472_v18  ;;  %v3351_v31 = vcombine.low %v359_v19, %v363_v20  ;;  %v288_v18 = vld [vmem:[%s3761_s25 + $0x48] sm:$0xff] }
  0x43   : > { %v491_v22 = vld [vmem:[%s3761_s25 + $0x6a0] sm:$0xff]  ;;  %2643 = vmatpush1.bf16.msra.mxu1 %v3471_v24  ;;  %v292_v19 = vld [vmem:[%s3761_s25 + $0x68] sm:$0xff] }
  0x44   : > { %v3480_v26 = vcombine.high %v487_v21, %v491_v22  ;;  %v367_v27 = vld [vmem:[%s3761_s25 + $0x2c0] sm:$0xff]  ;;  %2603 = vmatprep.subr.bf16.mxu0 %v3352_v25  ;;  %v3479_v32 = vcombine.low %v487_v21, %v491_v22  ;;  %v272_v20 = vld [vmem:[%s3756_s21 + $0x28] sm:$0xff]  ;;  %v3849_v21 = vpack.c.bf16 %v269_v12, %v269_v12  ;;  %v3282_v25 = vcombine.high %v288_v18, %v292_v19 }
  0x45   : > { %v371_v28 = vld [vmem:[%s3761_s25 + $0x2e0] sm:$0xff]  ;;  %2604 = vmatpush1.bf16.msra.mxu0 %v3351_v31  ;;  %v340_v8 = vld [vmem:[%s3761_s25 + $0x1e8] sm:$0xff] }
  0x46   : > { %v495_v29 = vld [vmem:[%s3761_s25 + $0x6c0] sm:$0xff]  ;;  %v3360_v33 = vcombine.high %v367_v27, %v371_v28  ;;  %2644 = vmatprep.subr.bf16.mxu1 %v3480_v26  ;;  %v3359_v39 = vcombine.low %v367_v27, %v371_v28  ;;  %v3853_v28 = vpack.c.bf16 %v272_v20, %v272_v20  ;;  %v3330_v12 = vcombine.high %v336_v7, %v340_v8 }
  0x47   : > { %v499_v30 = vld [vmem:[%s3761_s25 + $0x6e0] sm:$0xff]  ;;  %2645 = vmatpush1.bf16.msra.mxu1 %v3479_v32  ;;  %v3281_v32 = vcombine.low %v288_v18, %v292_v19  ;;  %v3329_v19 = vcombine.low %v336_v7, %v340_v8 }
  0x48   : > { %v3488_v34 = vcombine.high %v495_v29, %v499_v30  ;;  %v375_v35 = vld [vmem:[%s3761_s25 + $0x300] sm:$0xff]  ;;  %2605 = vmatprep.subr.bf16.mxu0 %v3360_v33  ;;  %v3487_v40 = vcombine.low %v495_v29, %v499_v30  ;;  %v296_v29 = vld [vmem:[%s3761_s25 + $0x88] sm:$0xff] }
  0x49   : > { %v379_v36 = vld [vmem:[%s3761_s25 + $0x320] sm:$0xff]  ;;  %2606 = vmatpush1.bf16.msra.mxu0 %v3359_v39  ;;  %v300_v30 = vld [vmem:[%s3761_s25 + $0xa8] sm:$0xff] }
  0x4a   : > { %v503_v37 = vld [vmem:[%s3761_s25 + $0x700] sm:$0xff]  ;;  %v3368_v41 = vcombine.high %v375_v35, %v379_v36  ;;  %2646 = vmatprep.subr.bf16.mxu1 %v3488_v34  ;;  %v3367_v47 = vcombine.low %v375_v35, %v379_v36  ;;  %v3290_v34 = vcombine.high %v296_v29, %v300_v30 }
  0x4b   : > { %v507_v38 = vld [vmem:[%s3761_s25 + $0x720] sm:$0xff]  ;;  %2647 = vmatpush1.bf16.msra.mxu1 %v3487_v40  ;;  %v3289_v40 = vcombine.low %v296_v29, %v300_v30 }
  0x4c   : > { %v3496_v42 = vcombine.high %v503_v37, %v507_v38  ;;  %v383_v43 = vld [vmem:[%s3761_s25 + $0x340] sm:$0xff]  ;;  %2607 = vmatprep.subr.bf16.mxu0 %v3368_v41  ;;  %v3495_v48 = vcombine.low %v503_v37, %v507_v38  ;;  %v304_v37 = vld [vmem:[%s3761_s25 + $0xc8] sm:$0xff] }
  0x4d   : > { %v387_v44 = vld [vmem:[%s3761_s25 + $0x360] sm:$0xff]  ;;  %2608 = vmatpush1.bf16.msra.mxu0 %v3367_v47  ;;  %v308_v38 = vld [vmem:[%s3761_s25 + $0xe8] sm:$0xff] }
  0x4e   : > { %v511_v45 = vld [vmem:[%s3761_s25 + $0x740] sm:$0xff]  ;;  %v3376_v49 = vcombine.high %v383_v43, %v387_v44  ;;  %2648 = vmatprep.subr.bf16.mxu1 %v3496_v42  ;;  %v3375_v55 = vcombine.low %v383_v43, %v387_v44  ;;  %v3298_v42 = vcombine.high %v304_v37, %v308_v38 }
  0x4f   : > { %v515_v46 = vld [vmem:[%s3761_s25 + $0x760] sm:$0xff]  ;;  %2649 = vmatpush1.bf16.msra.mxu1 %v3495_v48  ;;  %v3297_v48 = vcombine.low %v304_v37, %v308_v38 }
  0x50   : > { %v3504_v50 = vcombine.high %v511_v45, %v515_v46  ;;  %v391_v51 = vld [vmem:[%s3761_s25 + $0x380] sm:$0xff]  ;;  %2609 = vmatprep.subr.bf16.mxu0 %v3376_v49  ;;  %v3503_v56 = vcombine.low %v511_v45, %v515_v46  ;;  %v312_v45 = vld [vmem:[%s3761_s25 + $0x108] sm:$0xff] }
  0x51   : > { %v395_v52 = vld [vmem:[%s3761_s25 + $0x3a0] sm:$0xff]  ;;  %2610 = vmatpush1.bf16.msra.mxu0 %v3375_v55  ;;  %v316_v46 = vld [vmem:[%s3761_s25 + $0x128] sm:$0xff] }
  0x52   : > { %v519_v53 = vld [vmem:[%s3761_s25 + $0x780] sm:$0xff]  ;;  %v3384_v57 = vcombine.high %v391_v51, %v395_v52  ;;  %2650 = vmatprep.subr.bf16.mxu1 %v3504_v50  ;;  %v3383_v1 = vcombine.low %v391_v51, %v395_v52  ;;  %v3306_v50 = vcombine.high %v312_v45, %v316_v46 }
  0x53   : > { %v523_v54 = vld [vmem:[%s3761_s25 + $0x7a0] sm:$0xff]  ;;  %2651 = vmatpush1.bf16.msra.mxu1 %v3503_v56  ;;  %v3305_v56 = vcombine.low %v312_v45, %v316_v46 }
  0x54   : > { %v3512_v58 = vcombine.high %v519_v53, %v523_v54  ;;  %v399_v61 = vld [vmem:[%s3761_s25 + $0x3c0] sm:$0xff]  ;;  %2611 = vmatprep.subr.bf16.mxu0 %v3384_v57  ;;  %v3511_v2 = vcombine.low %v519_v53, %v523_v54  ;;  %v320_v53 = vld [vmem:[%s3761_s25 + $0x148] sm:$0xff] }
  0x55   : > { %v403_v62 = vld [vmem:[%s3761_s25 + $0x3e0] sm:$0xff]  ;;  %2612 = vmatpush1.bf16.msra.mxu0 %v3383_v1  ;;  %v324_v54 = vld [vmem:[%s3761_s25 + $0x168] sm:$0xff] }
  0x56   : > { %v527_v63 = vld [vmem:[%s3761_s25 + $0x7c0] sm:$0xff]  ;;  %v3392_v3 = vcombine.high %v399_v61, %v403_v62  ;;  %2652 = vmatprep.subr.bf16.mxu1 %v3512_v58  ;;  %v3391_v9 = vcombine.low %v399_v61, %v403_v62  ;;  %v3314_v58 = vcombine.high %v320_v53, %v324_v54 }
  0x57   : > { %v531_v0 = vld [vmem:[%s3761_s25 + $0x7e0] sm:$0xff]  ;;  %2653 = vmatpush1.bf16.msra.mxu1 %v3511_v2  ;;  %v3313_v2 = vcombine.low %v320_v53, %v324_v54 }
  0x58   : > { %v3520_v4 = vcombine.high %v527_v63, %v531_v0  ;;  %v535_v5 = vld [vmem:[%s3761_s25 + $0x800] sm:$0xff]  ;;  %2613 = vmatprep.subr.bf16.mxu0 %v3392_v3  ;;  %v3519_v11 = vcombine.low %v527_v63, %v531_v0  ;;  %v328_v63 = vld [vmem:[%s3761_s25 + $0x188] sm:$0xff] }
  0x59   : > { %v539_v6 = vld [vmem:[%s3761_s25 + $0x820] sm:$0xff]  ;;  %2614 = vmatpush1.bf16.msra.mxu0 %v3391_v9  ;;  %v332_v0 = vld [vmem:[%s3761_s25 + $0x1a8] sm:$0xff] }
  0x5a   : > { %v267_v10 = vld [vmem:[%s3756_s21] sm:$0xff]  ;;  %v3528_v13 = vcombine.high %v535_v5, %v539_v6  ;;  %2654 = vmatprep.subr.bf16.mxu1 %v3520_v4  ;;  %v3527_v22 = vcombine.low %v535_v5, %v539_v6  ;;  %v3322_v4 = vcombine.high %v328_v63, %v332_v0 }
  0x5b   : > { %v543_v15 = vld [vmem:[%s3761_s25 + $0x840] sm:$0xff]  ;;  %v3844_v17 = vpack.c.bf16 %v267_v10, %v267_v10  ;;  %2655 = vmatpush1.bf16.msra.mxu1 %v3519_v11  ;;  %v3321_v10 = vcombine.low %v328_v63, %v332_v0 }
  0x5c   : > { %v547_v16 = vld [vmem:[%s3761_s25 + $0x860] sm:$0xff]  ;;  %2665 = vmatprep.subr.bf16.mxu0 %v3528_v13  ;;  %2706 = vmatprep.subr.bf16.mxu1 %v3274_v14 }
  0x5d   : > { %v3536_v24 = vcombine.high %v543_v15, %v547_v16  ;;  %v551_v26 = vld [vmem:[%s3761_s25 + $0x880] sm:$0xff]  ;;  %2616 = vmatmul.mubr.bf16.vlgmr.msra.gmra.mrb[0].mxu0 %v3844_v17  ;;  %v3535_v31 = vcombine.low %v543_v15, %v547_v16  ;;  %v344_v15 = vld [vmem:[%s3761_s25 + $0x208] sm:$0xff] }
  0x5e   : > { %v555_v27 = vld [vmem:[%s3761_s25 + $0x8a0] sm:$0xff]  ;;  %2657 = vmatmul.mubr.bf16.vlgmr.msra.gmra.mrb[0].mxu1 %v3849_v21  ;;  %2666 = vmatpush1.bf16.msra.mxu0 %v3527_v22  ;;  %v348_v16 = vld [vmem:[%s3761_s25 + $0x228] sm:$0xff] }
  0x5f   : > { %2707 = vmatpush1.bf16.msra.mxu1 %v3273_v23  ;;  %2667 = vmatprep.subr.bf16.mxu0 %v3536_v24  ;;  %v3544_v33 = vcombine.high %v551_v26, %v555_v27  ;;  %v559_v35 = vld [vmem:[%s3761_s25 + $0x8c0] sm:$0xff]  ;;  %v3543_v39 = vcombine.low %v551_v26, %v555_v27  ;;  %v3338_v22 = vcombine.high %v344_v15, %v348_v16  ;;  %v356_v26 = vld [vmem:[%s3761_s25 + $0x268] sm:$0xff] }
  0x60   : > { %2708 = vmatprep.subr.bf16.mxu1 %v3282_v25  ;;  %v563_v36 = vld [vmem:[%s3761_s25 + $0x8e0] sm:$0xff]  ;;  %2697 = vmatprep.mubr.bf16.mxu0 %v3853_v28  ;;  %v352_v25 = vld [vmem:[%s3761_s25 + $0x248] sm:$0xff]  ;;  %v3337_v29 = vcombine.low %v344_v15, %v348_v16 }
  0x61   : > { %2738 = vmatprep.mubr.bf16.mxu1 %v3796_v59  ;;  %v3552_v41 = vcombine.high %v559_v35, %v563_v36  ;;  %v567_v43 = vld [vmem:[%s3761_s25 + $0x900] sm:$0xff]  ;;  %v3551_v47 = vcombine.low %v559_v35, %v563_v36  ;;  %v364_v35 = vld [vmem:[%s3761_s25 + $0x2a8] sm:$0xff]  ;;  %v3345_v37 = vcombine.low %v352_v25, %v356_v26 }
  0x62   : > { %2668 = vmatpush1.bf16.msra.mxu0 %v3535_v31  ;;  %v571_v44 = vld [vmem:[%s3761_s25 + $0x920] sm:$0xff]  ;;  %v3346_v31 = vcombine.high %v352_v25, %v356_v26 }
  0x63   : > { %2709 = vmatpush1.bf16.msra.mxu1 %v3281_v32  ;;  %2669 = vmatprep.subr.bf16.mxu0 %v3544_v33  ;;  %v3560_v49 = vcombine.high %v567_v43, %v571_v44  ;;  %v575_v51 = vld [vmem:[%s3761_s25 + $0x940] sm:$0xff]  ;;  %v3559_v55 = vcombine.low %v567_v43, %v571_v44  ;;  %v372_v43 = vld [vmem:[%s3761_s25 + $0x2e8] sm:$0xff] }
  0x64   : > { %2710 = vmatprep.subr.bf16.mxu1 %v3290_v34  ;;  %v579_v52 = vld [vmem:[%s3761_s25 + $0x960] sm:$0xff]  ;;  %v360_v34 = vld [vmem:[%s3761_s25 + $0x288] sm:$0xff] }
  0x65   : > { %v3568_v57 = vcombine.high %v575_v51, %v579_v52  ;;  %v583_v61 = vld [vmem:[%s3761_s25 + $0x980] sm:$0xff]  ;;  %v3567_v1 = vcombine.low %v575_v51, %v579_v52  ;;  %v3353_v45 = vcombine.low %v360_v34, %v364_v35  ;;  %v380_v51 = vld [vmem:[%s3761_s25 + $0x328] sm:$0xff] }
  0x66   : > { %2670 = vmatpush1.bf16.msra.mxu0 %v3543_v39  ;;  %v587_v62 = vld [vmem:[%s3761_s25 + $0x9a0] sm:$0xff]  ;;  %v3354_v39 = vcombine.high %v360_v34, %v364_v35  ;;  %v548_v34 = vld [vmem:[%s3761_s25 + $0x868] sm:$0xff] }
  0x67   : > { %2711 = vmatpush1.bf16.msra.mxu1 %v3289_v40  ;;  %2671 = vmatprep.subr.bf16.mxu0 %v3552_v41  ;;  %v3576_v3 = vcombine.high %v583_v61, %v587_v62  ;;  %v591_v5 = vld [vmem:[%s3761_s25 + $0x9c0] sm:$0xff]  ;;  %v3575_v9 = vcombine.low %v583_v61, %v587_v62  ;;  %v388_v61 = vld [vmem:[%s3761_s25 + $0x368] sm:$0xff] }
  0x68   : > { %2712 = vmatprep.subr.bf16.mxu1 %v3298_v42  ;;  %v595_v6 = vld [vmem:[%s3761_s25 + $0x9e0] sm:$0xff]  ;;  %v368_v42 = vld [vmem:[%s3761_s25 + $0x2c8] sm:$0xff] }
  0x69   : > { %v3584_v11 = vcombine.high %v591_v5, %v595_v6  ;;  %v599_v13 = vld [vmem:[%s3761_s25 + $0xa00] sm:$0xff]  ;;  %v3583_v18 = vcombine.low %v591_v5, %v595_v6  ;;  %v3361_v53 = vcombine.low %v368_v42, %v372_v43  ;;  %v396_v5 = vld [vmem:[%s3761_s25 + $0x3a8] sm:$0xff] }
  0x6a   : > { %2672 = vmatpush1.bf16.msra.mxu0 %v3551_v47  ;;  %v603_v14 = vld [vmem:[%s3761_s25 + $0xa20] sm:$0xff]  ;;  %v3362_v47 = vcombine.high %v368_v42, %v372_v43  ;;  %v556_v42 = vld [vmem:[%s3761_s25 + $0x8a8] sm:$0xff] }
  0x6b   : > { %2713 = vmatpush1.bf16.msra.mxu1 %v3297_v48  ;;  %2673 = vmatprep.subr.bf16.mxu0 %v3560_v49  ;;  %v3592_v20 = vcombine.high %v599_v13, %v603_v14  ;;  %v607_v23 = vld [vmem:[%s3761_s25 + $0xa40] sm:$0xff]  ;;  %v3591_v27 = vcombine.low %v599_v13, %v603_v14  ;;  %v404_v13 = vld [vmem:[%s3761_s25 + $0x3e8] sm:$0xff] }
  0x6c   : > { %2714 = vmatprep.subr.bf16.mxu1 %v3306_v50  ;;  %v611_v24 = vld [vmem:[%s3761_s25 + $0xa60] sm:$0xff]  ;;  %v376_v50 = vld [vmem:[%s3761_s25 + $0x308] sm:$0xff] }
  0x6d   : > { %v3600_v30 = vcombine.high %v607_v23, %v611_v24  ;;  %v615_v32 = vld [vmem:[%s3761_s25 + $0xa80] sm:$0xff]  ;;  %v3599_v36 = vcombine.low %v607_v23, %v611_v24  ;;  %v3369_v63 = vcombine.low %v376_v50, %v380_v51  ;;  %v540_v23 = vld [vmem:[%s3761_s25 + $0x828] sm:$0xff] }
  0x6e   : > { %2674 = vmatpush1.bf16.msra.mxu0 %v3559_v55  ;;  %v619_v33 = vld [vmem:[%s3761_s25 + $0xaa0] sm:$0xff]  ;;  %v3370_v55 = vcombine.high %v376_v50, %v380_v51  ;;  %v564_v50 = vld [vmem:[%s3761_s25 + $0x8e8] sm:$0xff] }
  0x6f   : > { %2715 = vmatpush1.bf16.msra.mxu1 %v3305_v56  ;;  %2675 = vmatprep.subr.bf16.mxu0 %v3568_v57  ;;  %v3608_v38 = vcombine.high %v615_v32, %v619_v33  ;;  %v623_v40 = vld [vmem:[%s3761_s25 + $0xac0] sm:$0xff]  ;;  %v3607_v44 = vcombine.low %v615_v32, %v619_v33  ;;  %v544_v33 = vld [vmem:[%s3761_s25 + $0x848] sm:$0xff] }
  0x70   : > { %2716 = vmatprep.subr.bf16.mxu1 %v3314_v58  ;;  %v627_v41 = vld [vmem:[%s3761_s25 + $0xae0] sm:$0xff]  ;;  %v384_v58 = vld [vmem:[%s3761_s25 + $0x348] sm:$0xff] }
  0x71   : > { %v3616_v46 = vcombine.high %v623_v40, %v627_v41  ;;  %v631_v48 = vld [vmem:[%s3761_s25 + $0xb00] sm:$0xff]  ;;  %v3615_v52 = vcombine.low %v623_v40, %v627_v41  ;;  %v3377_v7 = vcombine.low %v384_v58, %v388_v61  ;;  %v428_v40 = vld [vmem:[%s3761_s25 + $0x4a8] sm:$0xff] }
  0x72   : > { %2676 = vmatpush1.bf16.msra.mxu0 %v3567_v1  ;;  %v635_v49 = vld [vmem:[%s3761_s25 + $0xb20] sm:$0xff]  ;;  %v3378_v1 = vcombine.high %v384_v58, %v388_v61  ;;  %v552_v41 = vld [vmem:[%s3761_s25 + $0x888] sm:$0xff] }
  0x73   : > { %2717 = vmatpush1.bf16.msra.mxu1 %v3313_v2  ;;  %2677 = vmatprep.subr.bf16.mxu0 %v3576_v3  ;;  %v3624_v54 = vcombine.high %v631_v48, %v635_v49  ;;  %v639_v56 = vld [vmem:[%s3761_s25 + $0xb40] sm:$0xff]  ;;  %v3623_v62 = vcombine.low %v631_v48, %v635_v49  ;;  %v436_v48 = vld [vmem:[%s3761_s25 + $0x4e8] sm:$0xff] }
  0x74   : > { %2718 = vmatprep.subr.bf16.mxu1 %v3322_v4  ;;  %v643_v57 = vld [vmem:[%s3761_s25 + $0xb60] sm:$0xff]  ;;  %v392_v4 = vld [vmem:[%s3761_s25 + $0x388] sm:$0xff] }
  0x75   : > { %v3632_v0 = vcombine.high %v639_v56, %v643_v57  ;;  %v647_v2 = vld [vmem:[%s3761_s25 + $0xb80] sm:$0xff]  ;;  %v3631_v6 = vcombine.low %v639_v56, %v643_v57  ;;  %v3385_v15 = vcombine.low %v392_v4, %v396_v5  ;;  %v560_v49 = vld [vmem:[%s3761_s25 + $0x8c8] sm:$0xff] }
  0x76   : > { %2678 = vmatpush1.bf16.msra.mxu0 %v3575_v9  ;;  %v651_v3 = vld [vmem:[%s3761_s25 + $0xba0] sm:$0xff]  ;;  %v3386_v9 = vcombine.high %v392_v4, %v396_v5  ;;  %v444_v56 = vld [vmem:[%s3761_s25 + $0x528] sm:$0xff] }
  0x77   : > { %2719 = vmatpush1.bf16.msra.mxu1 %v3321_v10  ;;  %2679 = vmatprep.subr.bf16.mxu0 %v3584_v11  ;;  %v3640_v8 = vcombine.high %v647_v2, %v651_v3  ;;  %v655_v10 = vld [vmem:[%s3761_s25 + $0xbc0] sm:$0xff]  ;;  %v3639_v14 = vcombine.low %v647_v2, %v651_v3  ;;  %v568_v57 = vld [vmem:[%s3761_s25 + $0x908] sm:$0xff] }
  0x78   : > { %2720 = vmatprep.subr.bf16.mxu1 %v3330_v12  ;;  %v659_v11 = vld [vmem:[%s3761_s25 + $0xbe0] sm:$0xff]  ;;  %v400_v12 = vld [vmem:[%s3761_s25 + $0x3c8] sm:$0xff] }
  0x79   : > { %v3648_v16 = vcombine.high %v655_v10, %v659_v11  ;;  %v3647_v24 = vcombine.low %v655_v10, %v659_v11  ;;  %v271_v25 = vld [vmem:[%s3756_s21 + $0x20] sm:$0xff]  ;;  %v3393_v26 = vcombine.low %v400_v12, %v404_v13  ;;  %v572_v58 = vld [vmem:[%s3761_s25 + $0x928] sm:$0xff] }
  0x7a   : > { %2680 = vmatpush1.bf16.msra.mxu0 %v3583_v18  ;;  %v3394_v18 = vcombine.high %v400_v12, %v404_v13  ;;  %v3920_v32 = vpack.c.bf16 %v271_v25, %v271_v25  ;;  %v452_v2 = vld [vmem:[%s3761_s25 + $0x568] sm:$0xff] }
  0x7b   : > { %2721 = vmatpush1.bf16.msra.mxu1 %v3329_v19  ;;  %2681 = vmatprep.subr.bf16.mxu0 %v3592_v20  ;;  %v408_v19 = vld [vmem:[%s3761_s25 + $0x408] sm:$0xff] }
  0x7c   : > { %2722 = vmatprep.subr.bf16.mxu1 %v3338_v22  ;;  %v412_v20 = vld [vmem:[%s3761_s25 + $0x428] sm:$0xff] }
  0x7d   : > { %v536_v22 = vld [vmem:[%s3761_s25 + $0x808] sm:$0xff]  ;;  %v3401_v35 = vcombine.low %v408_v19, %v412_v20 }
  0x7e   : > { %2682 = vmatpush1.bf16.msra.mxu0 %v3591_v27  ;;  %v3402_v27 = vcombine.high %v408_v19, %v412_v20  ;;  %v576_v3 = vld [vmem:[%s3761_s25 + $0x948] sm:$0xff] }
  0x7f   : > { %2723 = vmatpush1.bf16.msra.mxu1 %v3337_v29  ;;  %2683 = vmatprep.subr.bf16.mxu0 %v3600_v30  ;;  %v3530_v29 = vcombine.high %v536_v22, %v540_v23  ;;  %v416_v30 = vld [vmem:[%s3761_s25 + $0x448] sm:$0xff] }
  0x80   : > { %2724 = vmatprep.subr.bf16.mxu1 %v3346_v31  ;;  %v420_v31 = vld [vmem:[%s3761_s25 + $0x468] sm:$0xff] }
  0x81   : > { %v3409_v43 = vcombine.low %v416_v30, %v420_v31  ;;  %v580_v4 = vld [vmem:[%s3761_s25 + $0x968] sm:$0xff] }
  0x82   : > { %2684 = vmatpush1.bf16.msra.mxu0 %v3599_v36  ;;  %v3529_v36 = vcombine.low %v536_v22, %v540_v23  ;;  %v460_v10 = vld [vmem:[%s3761_s25 + $0x5a8] sm:$0xff] }
  0x83   : > { %2725 = vmatpush1.bf16.msra.mxu1 %v3345_v37  ;;  %2685 = vmatprep.subr.bf16.mxu0 %v3608_v38  ;;  %v3410_v37 = vcombine.high %v416_v30, %v420_v31  ;;  %v3538_v38 = vcombine.high %v544_v33, %v548_v34  ;;  %v584_v11 = vld [vmem:[%s3761_s25 + $0x988] sm:$0xff] }
  0x84   : > { %2726 = vmatprep.subr.bf16.mxu1 %v3354_v39  ;;  %v424_v39 = vld [vmem:[%s3761_s25 + $0x488] sm:$0xff] }
  0x85   : > { %v3417_v51 = vcombine.low %v424_v39, %v428_v40  ;;  %v588_v12 = vld [vmem:[%s3761_s25 + $0x9a8] sm:$0xff] }
  0x86   : > { %2686 = vmatpush1.bf16.msra.mxu0 %v3607_v44  ;;  %v3537_v44 = vcombine.low %v544_v33, %v548_v34  ;;  %v468_v19 = vld [vmem:[%s3761_s25 + $0x5e8] sm:$0xff] }
  0x87   : > { %2727 = vmatpush1.bf16.msra.mxu1 %v3353_v45  ;;  %2687 = vmatprep.subr.bf16.mxu0 %v3616_v46  ;;  %v3418_v45 = vcombine.high %v424_v39, %v428_v40  ;;  %v3546_v46 = vcombine.high %v552_v41, %v556_v42  ;;  %v592_v20 = vld [vmem:[%s3761_s25 + $0x9c8] sm:$0xff] }
  0x88   : > { %2728 = vmatprep.subr.bf16.mxu1 %v3362_v47  ;;  %v432_v47 = vld [vmem:[%s3761_s25 + $0x4c8] sm:$0xff] }
  0x89   : > { %v3425_v61 = vcombine.low %v432_v47, %v436_v48  ;;  %v596_v22 = vld [vmem:[%s3761_s25 + $0x9e8] sm:$0xff] }
  0x8a   : > { %2688 = vmatpush1.bf16.msra.mxu0 %v3615_v52  ;;  %v3545_v52 = vcombine.low %v552_v41, %v556_v42  ;;  %v600_v30 = vld [vmem:[%s3761_s25 + $0xa08] sm:$0xff]  ;;  %v3585_v34 = vcombine.low %v592_v20, %v596_v22 }
  0x8b   : > { %2729 = vmatpush1.bf16.msra.mxu1 %v3361_v53  ;;  %2689 = vmatprep.subr.bf16.mxu0 %v3624_v54  ;;  %v3426_v53 = vcombine.high %v432_v47, %v436_v48  ;;  %v3554_v54 = vcombine.high %v560_v49, %v564_v50  ;;  %v604_v31 = vld [vmem:[%s3761_s25 + $0xa28] sm:$0xff] }
  0x8c   : > { %2730 = vmatprep.subr.bf16.mxu1 %v3370_v55  ;;  %v440_v55 = vld [vmem:[%s3761_s25 + $0x508] sm:$0xff]  ;;  %v3593_v42 = vcombine.low %v600_v30, %v604_v31 }
  0x8d   : > { %v3433_v5 = vcombine.low %v440_v55, %v444_v56  ;;  %v608_v39 = vld [vmem:[%s3761_s25 + $0xa48] sm:$0xff] }
  0x8e   : > { %2690 = vmatpush1.bf16.msra.mxu0 %v3623_v62  ;;  %v3553_v62 = vcombine.low %v560_v49, %v564_v50  ;;  %v612_v40 = vld [vmem:[%s3761_s25 + $0xa68] sm:$0xff] }
  0x8f   : > { %2731 = vmatpush1.bf16.msra.mxu1 %v3369_v63  ;;  %2691 = vmatprep.subr.bf16.mxu0 %v3632_v0  ;;  %v3434_v63 = vcombine.high %v440_v55, %v444_v56  ;;  %v3562_v0 = vcombine.high %v568_v57, %v572_v58  ;;  %v616_v47 = vld [vmem:[%s3761_s25 + $0xa88] sm:$0xff]  ;;  %v3601_v50 = vcombine.low %v608_v39, %v612_v40 }
  0x90   : > { %2732 = vmatprep.subr.bf16.mxu1 %v3378_v1  ;;  %v448_v1 = vld [vmem:[%s3761_s25 + $0x548] sm:$0xff] }
  0x91   : > { %v3441_v13 = vcombine.low %v448_v1, %v452_v2  ;;  %v620_v48 = vld [vmem:[%s3761_s25 + $0xaa8] sm:$0xff] }
  0x92   : > { %2692 = vmatpush1.bf16.msra.mxu0 %v3631_v6  ;;  %v3561_v6 = vcombine.low %v568_v57, %v572_v58  ;;  %v624_v55 = vld [vmem:[%s3761_s25 + $0xac8] sm:$0xff]  ;;  %v3609_v58 = vcombine.low %v616_v47, %v620_v48 }
  0x93   : > { %2733 = vmatpush1.bf16.msra.mxu1 %v3377_v7  ;;  %2693 = vmatprep.subr.bf16.mxu0 %v3640_v8  ;;  %v3442_v7 = vcombine.high %v448_v1, %v452_v2  ;;  %v3570_v8 = vcombine.high %v576_v3, %v580_v4  ;;  %v628_v56 = vld [vmem:[%s3761_s25 + $0xae8] sm:$0xff] }
  0x94   : > { %2734 = vmatprep.subr.bf16.mxu1 %v3386_v9  ;;  %v456_v9 = vld [vmem:[%s3761_s25 + $0x588] sm:$0xff] }
  0x95   : > { %v3449_v23 = vcombine.low %v456_v9, %v460_v10  ;;  %v632_v1 = vld [vmem:[%s3761_s25 + $0xb08] sm:$0xff] }
  0x96   : > { %2694 = vmatpush1.bf16.msra.mxu0 %v3639_v14  ;;  %v3569_v14 = vcombine.low %v576_v3, %v580_v4  ;;  %v636_v2 = vld [vmem:[%s3761_s25 + $0xb28] sm:$0xff]  ;;  %v3617_v4 = vcombine.low %v624_v55, %v628_v56 }
  0x97   : > { %2735 = vmatpush1.bf16.msra.mxu1 %v3385_v15  ;;  %2695 = vmatprep.subr.bf16.mxu0 %v3648_v16  ;;  %v3450_v15 = vcombine.high %v456_v9, %v460_v10  ;;  %v3578_v16 = vcombine.high %v584_v11, %v588_v12  ;;  %v640_v9 = vld [vmem:[%s3761_s25 + $0xb48] sm:$0xff] }
  0x98   : > { %2736 = vmatprep.subr.bf16.mxu1 %v3394_v18  ;;  %v464_v18 = vld [vmem:[%s3761_s25 + $0x5c8] sm:$0xff] }
  0x99   : > { %v3458_v25 = vcombine.high %v464_v18, %v468_v19  ;;  %v3457_v33 = vcombine.low %v464_v18, %v468_v19  ;;  %v644_v10 = vld [vmem:[%s3761_s25 + $0xb68] sm:$0xff] }
  0x9a   : > { %2696 = vmatpush1.bf16.msra.mxu0 %v3647_v24  ;;  %v3577_v24 = vcombine.low %v584_v11, %v588_v12  ;;  %v3625_v12 = vcombine.low %v632_v1, %v636_v2  ;;  %v648_v18 = vld [vmem:[%s3761_s25 + $0xb88] sm:$0xff] }
  0x9b   : > { %2737 = vmatpush1.bf16.msra.mxu1 %v3393_v26  ;;  %2747 = vmatprep.subr.bf16.mxu0 %v3402_v27  ;;  %v3586_v26 = vcombine.high %v592_v20, %v596_v22  ;;  %v472_v27 = vld [vmem:[%s3761_s25 + $0x608] sm:$0xff]  ;;  %v3633_v22 = vcombine.low %v640_v9, %v644_v10 }
  0x9c   : > { %2788 = vmatprep.subr.bf16.mxu1 %v3530_v29  ;;  %v476_v29 = vld [vmem:[%s3761_s25 + $0x628] sm:$0xff] }
  0x9d   : > { %2698 = vmatmul.mubr.bf16.vlgmr.msra.gmra.mrb[4].mxu0 %v3920_v32  ;;  %v3465_v41 = vcombine.low %v472_v27, %v476_v29  ;;  %v652_v19 = vld [vmem:[%s3761_s25 + $0xba8] sm:$0xff] }
  0x9e   : > { %2739 = vmatmul.mubr.bf16.vlgmr.msra.gmra.mrb[4].mxu1 %v3844_v17  ;;  %2748 = vmatpush1.bf16.msra.mxu0 %v3401_v35  ;;  %v3466_v35 = vcombine.high %v472_v27, %v476_v29  ;;  %v656_v27 = vld [vmem:[%s3761_s25 + $0xbc8] sm:$0xff] }
  0x9f   : > { %2789 = vmatpush1.bf16.msra.mxu1 %v3529_v36  ;;  %2749 = vmatprep.subr.bf16.mxu0 %v3410_v37  ;;  %v3594_v36 = vcombine.high %v600_v30, %v604_v31  ;;  %v480_v37 = vld [vmem:[%s3761_s25 + $0x648] sm:$0xff]  ;;  %v3641_v31 = vcombine.low %v648_v18, %v652_v19 }
  0xa0   : > { %2790 = vmatprep.subr.bf16.mxu1 %v3538_v38  ;;  %2779 = vmatprep.mubr.bf16.mxu0 %v3798_v60  ;;  %v484_v38 = vld [vmem:[%s3761_s25 + $0x668] sm:$0xff] }
  0xa1   : > { %2820 = vmatprep.mubr.bf16.mxu1 %v3853_v28  ;;  %v3473_v49 = vcombine.low %v480_v37, %v484_v38  ;;  %v660_v29 = vld [vmem:[%s3761_s25 + $0xbe8] sm:$0xff] }
  0xa2   : > { %2750 = vmatpush1.bf16.msra.mxu0 %v3409_v43  ;;  %v3474_v43 = vcombine.high %v480_v37, %v484_v38  ;;  %v409_v37 = vld [vmem:[%s3761_s25 + $0x410] sm:$0xff] }
  0xa3   : > { %2791 = vmatpush1.bf16.msra.mxu1 %v3537_v44  ;;  %2751 = vmatprep.subr.bf16.mxu0 %v3418_v45  ;;  %v3602_v44 = vcombine.high %v608_v39, %v612_v40  ;;  %v488_v45 = vld [vmem:[%s3761_s25 + $0x688] sm:$0xff]  ;;  %v413_v38 = vld [vmem:[%s3761_s25 + $0x430] sm:$0xff]  ;;  %v3649_v40 = vcombine.low %v656_v27, %v660_v29 }
  0xa4   : > { %2792 = vmatprep.subr.bf16.mxu1 %v3546_v46  ;;  %v492_v46 = vld [vmem:[%s3761_s25 + $0x6a8] sm:$0xff] }
  0xa5   : > { %v3481_v57 = vcombine.low %v488_v45, %v492_v46 }
  0xa6   : > { %2752 = vmatpush1.bf16.msra.mxu0 %v3417_v51  ;;  %v3482_v51 = vcombine.high %v488_v45, %v492_v46  ;;  %v417_v45 = vld [vmem:[%s3761_s25 + $0x450] sm:$0xff] }
  0xa7   : > { %2793 = vmatpush1.bf16.msra.mxu1 %v3545_v52  ;;  %2753 = vmatprep.subr.bf16.mxu0 %v3426_v53  ;;  %v3610_v52 = vcombine.high %v616_v47, %v620_v48  ;;  %v496_v53 = vld [vmem:[%s3761_s25 + $0x6c8] sm:$0xff]  ;;  %v421_v46 = vld [vmem:[%s3761_s25 + $0x470] sm:$0xff]  ;;  %v3403_v48 = vcombine.low %v409_v37, %v413_v38 }
  0xa8   : > { %2794 = vmatprep.subr.bf16.mxu1 %v3554_v54  ;;  %v500_v54 = vld [vmem:[%s3761_s25 + $0x6e8] sm:$0xff] }
  0xa9   : > { %v3489_v3 = vcombine.low %v496_v53, %v500_v54 }
  0xaa   : > { %2754 = vmatpush1.bf16.msra.mxu0 %v3425_v61  ;;  %v3490_v61 = vcombine.high %v496_v53, %v500_v54  ;;  %v425_v53 = vld [vmem:[%s3761_s25 + $0x490] sm:$0xff] }
  0xab   : > { %2795 = vmatpush1.bf16.msra.mxu1 %v3553_v62  ;;  %2755 = vmatprep.subr.bf16.mxu0 %v3434_v63  ;;  %v3618_v62 = vcombine.high %v624_v55, %v628_v56  ;;  %v504_v63 = vld [vmem:[%s3761_s25 + $0x708] sm:$0xff]  ;;  %v429_v54 = vld [vmem:[%s3761_s25 + $0x4b0] sm:$0xff]  ;;  %v3411_v56 = vcombine.low %v417_v45, %v421_v46 }
  0xac   : > { %2796 = vmatprep.subr.bf16.mxu1 %v3562_v0  ;;  %v508_v0 = vld [vmem:[%s3761_s25 + $0x728] sm:$0xff] }
  0xad   : > { %v3497_v11 = vcombine.low %v504_v63, %v508_v0 }
  0xae   : > { %2756 = vmatpush1.bf16.msra.mxu0 %v3433_v5  ;;  %v3498_v5 = vcombine.high %v504_v63, %v508_v0  ;;  %v433_v63 = vld [vmem:[%s3761_s25 + $0x4d0] sm:$0xff] }
  0xaf   : > { %2797 = vmatpush1.bf16.msra.mxu1 %v3561_v6  ;;  %2757 = vmatprep.subr.bf16.mxu0 %v3442_v7  ;;  %v3626_v6 = vcombine.high %v632_v1, %v636_v2  ;;  %v512_v7 = vld [vmem:[%s3761_s25 + $0x748] sm:$0xff]  ;;  %v437_v0 = vld [vmem:[%s3761_s25 + $0x4f0] sm:$0xff]  ;;  %v3419_v2 = vcombine.low %v425_v53, %v429_v54 }
  0xb0   : > { %2798 = vmatprep.subr.bf16.mxu1 %v3570_v8  ;;  %v516_v8 = vld [vmem:[%s3761_s25 + $0x768] sm:$0xff] }
  0xb1   : > { %v3505_v20 = vcombine.low %v512_v7, %v516_v8 }
  0xb2   : > { %2758 = vmatpush1.bf16.msra.mxu0 %v3441_v13  ;;  %v3506_v13 = vcombine.high %v512_v7, %v516_v8  ;;  %v441_v7 = vld [vmem:[%s3761_s25 + $0x510] sm:$0xff] }
  0xb3   : > { %2799 = vmatpush1.bf16.msra.mxu1 %v3569_v14  ;;  %2759 = vmatprep.subr.bf16.mxu0 %v3450_v15  ;;  %v3634_v14 = vcombine.high %v640_v9, %v644_v10  ;;  %v520_v15 = vld [vmem:[%s3761_s25 + $0x788] sm:$0xff]  ;;  %v445_v8 = vld [vmem:[%s3761_s25 + $0x530] sm:$0xff]  ;;  %v3427_v10 = vcombine.low %v433_v63, %v437_v0 }
  0xb4   : > { %2800 = vmatprep.subr.bf16.mxu1 %v3578_v16  ;;  %v524_v16 = vld [vmem:[%s3761_s25 + $0x7a8] sm:$0xff] }
  0xb5   : > { %v3513_v30 = vcombine.low %v520_v15, %v524_v16 }
  0xb6   : > { %2760 = vmatpush1.bf16.msra.mxu0 %v3449_v23  ;;  %v3514_v23 = vcombine.high %v520_v15, %v524_v16  ;;  %v449_v15 = vld [vmem:[%s3761_s25 + $0x550] sm:$0xff] }
  0xb7   : > { %2801 = vmatpush1.bf16.msra.mxu1 %v3577_v24  ;;  %2761 = vmatprep.subr.bf16.mxu0 %v3458_v25  ;;  %v3642_v24 = vcombine.high %v648_v18, %v652_v19  ;;  %v528_v25 = vld [vmem:[%s3761_s25 + $0x7c8] sm:$0xff]  ;;  %v453_v16 = vld [vmem:[%s3761_s25 + $0x570] sm:$0xff]  ;;  %v3435_v19 = vcombine.low %v441_v7, %v445_v8 }
  0xb8   : > { %2802 = vmatprep.subr.bf16.mxu1 %v3586_v26  ;;  %v532_v26 = vld [vmem:[%s3761_s25 + $0x7e8] sm:$0xff] }
  0xb9   : > { %v3521_v39 = vcombine.low %v528_v25, %v532_v26 }
  0xba   : > { %2762 = vmatpush1.bf16.msra.mxu0 %v3457_v33  ;;  %v3522_v33 = vcombine.high %v528_v25, %v532_v26  ;;  %v457_v25 = vld [vmem:[%s3761_s25 + $0x590] sm:$0xff] }
  0xbb   : > { %2803 = vmatpush1.bf16.msra.mxu1 %v3585_v34  ;;  %2763 = vmatprep.subr.bf16.mxu0 %v3466_v35  ;;  %v3650_v34 = vcombine.high %v656_v27, %v660_v29  ;;  %v281_v35 = vld [vmem:[%s3761_s25 + $0x10] sm:$0xff]  ;;  %v3443_v29 = vcombine.low %v449_v15, %v453_v16 }
  0xbc   : > { %2804 = vmatprep.subr.bf16.mxu1 %v3594_v36  ;;  %v285_v36 = vld [vmem:[%s3761_s25 + $0x30] sm:$0xff] }
  0xbd   : > { %v3275_v47 = vcombine.low %v281_v35, %v285_v36  ;;  %v461_v26 = vld [vmem:[%s3761_s25 + $0x5b0] sm:$0xff] }
  0xbe   : > { %2764 = vmatpush1.bf16.msra.mxu0 %v3465_v41  ;;  %v3276_v41 = vcombine.high %v281_v35, %v285_v36  ;;  %v465_v35 = vld [vmem:[%s3761_s25 + $0x5d0] sm:$0xff] }
  0xbf   : > { %2805 = vmatpush1.bf16.msra.mxu1 %v3593_v42  ;;  %2765 = vmatprep.subr.bf16.mxu0 %v3474_v43  ;;  %v3404_v42 = vcombine.high %v409_v37, %v413_v38  ;;  %v289_v43 = vld [vmem:[%s3761_s25 + $0x50] sm:$0xff]  ;;  %v3451_v38 = vcombine.low %v457_v25, %v461_v26 }
  0xc0   : > { %2806 = vmatprep.subr.bf16.mxu1 %v3602_v44  ;;  %v293_v44 = vld [vmem:[%s3761_s25 + $0x70] sm:$0xff] }
  0xc1   : > { %v3283_v55 = vcombine.low %v289_v43, %v293_v44  ;;  %v469_v36 = vld [vmem:[%s3761_s25 + $0x5f0] sm:$0xff] }
  0xc2   : > { %2766 = vmatpush1.bf16.msra.mxu0 %v3473_v49  ;;  %v3284_v49 = vcombine.high %v289_v43, %v293_v44  ;;  %v473_v43 = vld [vmem:[%s3761_s25 + $0x610] sm:$0xff] }
  0xc3   : > { %2807 = vmatpush1.bf16.msra.mxu1 %v3601_v50  ;;  %2767 = vmatprep.subr.bf16.mxu0 %v3482_v51  ;;  %v3412_v50 = vcombine.high %v417_v45, %v421_v46  ;;  %v297_v51 = vld [vmem:[%s3761_s25 + $0x90] sm:$0xff]  ;;  %v3459_v46 = vcombine.low %v465_v35, %v469_v36 }
  0xc4   : > { %2808 = vmatprep.subr.bf16.mxu1 %v3610_v52  ;;  %v301_v52 = vld [vmem:[%s3761_s25 + $0xb0] sm:$0xff] }
  0xc5   : > { %v3291_v1 = vcombine.low %v297_v51, %v301_v52  ;;  %v477_v44 = vld [vmem:[%s3761_s25 + $0x630] sm:$0xff] }
  0xc6   : > { %2768 = vmatpush1.bf16.msra.mxu0 %v3481_v57  ;;  %v3292_v57 = vcombine.high %v297_v51, %v301_v52  ;;  %v481_v51 = vld [vmem:[%s3761_s25 + $0x650] sm:$0xff] }
  0xc7   : > { %2809 = vmatpush1.bf16.msra.mxu1 %v3609_v58  ;;  %2769 = vmatprep.subr.bf16.mxu0 %v3490_v61  ;;  %v3420_v58 = vcombine.high %v425_v53, %v429_v54  ;;  %v305_v61 = vld [vmem:[%s3761_s25 + $0xd0] sm:$0xff]  ;;  %v3467_v54 = vcombine.low %v473_v43, %v477_v44 }
  0xc8   : > { %2810 = vmatprep.subr.bf16.mxu1 %v3618_v62  ;;  %v309_v62 = vld [vmem:[%s3761_s25 + $0xf0] sm:$0xff] }
  0xc9   : > { %v3299_v9 = vcombine.low %v305_v61, %v309_v62  ;;  %v485_v52 = vld [vmem:[%s3761_s25 + $0x670] sm:$0xff] }
  0xca   : > { %2770 = vmatpush1.bf16.msra.mxu0 %v3489_v3  ;;  %v3300_v3 = vcombine.high %v305_v61, %v309_v62  ;;  %v489_v61 = vld [vmem:[%s3761_s25 + $0x690] sm:$0xff] }
  0xcb   : > { %2811 = vmatpush1.bf16.msra.mxu1 %v3617_v4  ;;  %2771 = vmatprep.subr.bf16.mxu0 %v3498_v5  ;;  %v3428_v4 = vcombine.high %v433_v63, %v437_v0  ;;  %v313_v5 = vld [vmem:[%s3761_s25 + $0x110] sm:$0xff]  ;;  %v3475_v0 = vcombine.low %v481_v51, %v485_v52 }
  0xcc   : > { %2812 = vmatprep.subr.bf16.mxu1 %v3626_v6  ;;  %v317_v6 = vld [vmem:[%s3761_s25 + $0x130] sm:$0xff] }
  0xcd   : > { %v3307_v18 = vcombine.low %v313_v5, %v317_v6  ;;  %v493_v62 = vld [vmem:[%s3761_s25 + $0x6b0] sm:$0xff] }
  0xce   : > { %2772 = vmatpush1.bf16.msra.mxu0 %v3497_v11  ;;  %v3308_v11 = vcombine.high %v313_v5, %v317_v6  ;;  %v497_v5 = vld [vmem:[%s3761_s25 + $0x6d0] sm:$0xff] }
  0xcf   : > { %2813 = vmatpush1.bf16.msra.mxu1 %v3625_v12  ;;  %2773 = vmatprep.subr.bf16.mxu0 %v3506_v13  ;;  %v3436_v12 = vcombine.high %v441_v7, %v445_v8  ;;  %v321_v13 = vld [vmem:[%s3761_s25 + $0x150] sm:$0xff]  ;;  %v3483_v8 = vcombine.low %v489_v61, %v493_v62 }
  0xd0   : > { %2814 = vmatprep.subr.bf16.mxu1 %v3634_v14  ;;  %v325_v14 = vld [vmem:[%s3761_s25 + $0x170] sm:$0xff] }
  0xd1   : > { %v3315_v27 = vcombine.low %v321_v13, %v325_v14  ;;  %v501_v6 = vld [vmem:[%s3761_s25 + $0x6f0] sm:$0xff] }
  0xd2   : > { %2774 = vmatpush1.bf16.msra.mxu0 %v3505_v20  ;;  %v3316_v20 = vcombine.high %v321_v13, %v325_v14  ;;  %v505_v13 = vld [vmem:[%s3761_s25 + $0x710] sm:$0xff] }
  0xd3   : > { %2815 = vmatpush1.bf16.msra.mxu1 %v3633_v22  ;;  %2775 = vmatprep.subr.bf16.mxu0 %v3514_v23  ;;  %v3444_v22 = vcombine.high %v449_v15, %v453_v16  ;;  %v329_v23 = vld [vmem:[%s3761_s25 + $0x190] sm:$0xff]  ;;  %v3491_v16 = vcombine.low %v497_v5, %v501_v6 }
  0xd4   : > { %2816 = vmatprep.subr.bf16.mxu1 %v3642_v24  ;;  %v333_v24 = vld [vmem:[%s3761_s25 + $0x1b0] sm:$0xff] }
  0xd5   : > { %v3323_v37 = vcombine.low %v329_v23, %v333_v24  ;;  %v509_v14 = vld [vmem:[%s3761_s25 + $0x730] sm:$0xff] }
  0xd6   : > { %2776 = vmatpush1.bf16.msra.mxu0 %v3513_v30  ;;  %v3324_v30 = vcombine.high %v329_v23, %v333_v24  ;;  %v513_v23 = vld [vmem:[%s3761_s25 + $0x750] sm:$0xff] }
  0xd7   : > { %2817 = vmatpush1.bf16.msra.mxu1 %v3641_v31  ;;  %2777 = vmatprep.subr.bf16.mxu0 %v3522_v33  ;;  %v3452_v31 = vcombine.high %v457_v25, %v461_v26  ;;  %v337_v33 = vld [vmem:[%s3761_s25 + $0x1d0] sm:$0xff]  ;;  %v3499_v26 = vcombine.low %v505_v13, %v509_v14 }
  0xd8   : > { %2818 = vmatprep.subr.bf16.mxu1 %v3650_v34  ;;  %v341_v34 = vld [vmem:[%s3761_s25 + $0x1f0] sm:$0xff] }
  0xd9   : > { %v3331_v45 = vcombine.low %v337_v33, %v341_v34  ;;  %v517_v24 = vld [vmem:[%s3761_s25 + $0x770] sm:$0xff] }
  0xda   : > { %2778 = vmatpush1.bf16.msra.mxu0 %v3521_v39  ;;  %v3332_v39 = vcombine.high %v337_v33, %v341_v34  ;;  %v521_v33 = vld [vmem:[%s3761_s25 + $0x790] sm:$0xff] }
  0xdb   : > { %2819 = vmatpush1.bf16.msra.mxu1 %v3649_v40  ;;  %2829 = vmatprep.subr.bf16.mxu0 %v3276_v41  ;;  %v3460_v40 = vcombine.high %v465_v35, %v469_v36  ;;  %v345_v41 = vld [vmem:[%s3761_s25 + $0x210] sm:$0xff]  ;;  %v3507_v36 = vcombine.low %v513_v23, %v517_v24 }
  0xdc   : > { %2870 = vmatprep.subr.bf16.mxu1 %v3404_v42  ;;  %v349_v42 = vld [vmem:[%s3761_s25 + $0x230] sm:$0xff] }
  0xdd   : > { %2780 = vmatmul.mubr.bf16.vlgmr.msra.gmra.mrb[8].mxu0 %v3849_v21  ;;  %v3339_v53 = vcombine.low %v345_v41, %v349_v42  ;;  %v525_v34 = vld [vmem:[%s3761_s25 + $0x7b0] sm:$0xff] }
  0xde   : > { %2821 = vmatmul.mubr.bf16.vlgmr.msra.gmra.mrb[8].mxu1 %v3920_v32  ;;  %2830 = vmatpush1.bf16.msra.mxu0 %v3275_v47  ;;  %v3340_v47 = vcombine.high %v345_v41, %v349_v42  ;;  %v529_v41 = vld [vmem:[%s3761_s25 + $0x7d0] sm:$0xff] }
  0xdf   : > { %2871 = vmatpush1.bf16.msra.mxu1 %v3403_v48  ;;  %2831 = vmatprep.subr.bf16.mxu0 %v3284_v49  ;;  %v3468_v48 = vcombine.high %v473_v43, %v477_v44  ;;  %v353_v49 = vld [vmem:[%s3761_s25 + $0x250] sm:$0xff]  ;;  %v3515_v44 = vcombine.low %v521_v33, %v525_v34 }
  0xe0   : > { %2872 = vmatprep.subr.bf16.mxu1 %v3412_v50  ;;  %2861 = vmatprep.mubr.bf16.mxu0 %v3796_v59  ;;  %v357_v50 = vld [vmem:[%s3761_s25 + $0x270] sm:$0xff] }
  0xe1   : > { %2902 = vmatprep.mubr.bf16.mxu1 %v3798_v60  ;;  %v3347_v63 = vcombine.low %v353_v49, %v357_v50  ;;  %v533_v42 = vld [vmem:[%s3761_s25 + $0x7f0] sm:$0xff] }
  0xe2   : > { %2832 = vmatpush1.bf16.msra.mxu0 %v3283_v55  ;;  %v3348_v55 = vcombine.high %v353_v49, %v357_v50  ;;  %v282_v49 = vld [vmem:[%s3761_s25 + $0x18] sm:$0xff] }
  0xe3   : > { %2873 = vmatpush1.bf16.msra.mxu1 %v3411_v56  ;;  %2833 = vmatprep.subr.bf16.mxu0 %v3292_v57  ;;  %v3476_v56 = vcombine.high %v481_v51, %v485_v52  ;;  %v361_v57 = vld [vmem:[%s3761_s25 + $0x290] sm:$0xff]  ;;  %v286_v50 = vld [vmem:[%s3761_s25 + $0x38] sm:$0xff]  ;;  %v3523_v52 = vcombine.low %v529_v41, %v533_v42 }
  0xe4   : > { %2874 = vmatprep.subr.bf16.mxu1 %v3420_v58  ;;  %v365_v58 = vld [vmem:[%s3761_s25 + $0x2b0] sm:$0xff] }
  0xe5   : > { %v3355_v7 = vcombine.low %v361_v57, %v365_v58 }
  0xe6   : > { %2834 = vmatpush1.bf16.msra.mxu0 %v3291_v1  ;;  %v3356_v1 = vcombine.high %v361_v57, %v365_v58  ;;  %v290_v57 = vld [vmem:[%s3761_s25 + $0x58] sm:$0xff] }
  0xe7   : > { %2875 = vmatpush1.bf16.msra.mxu1 %v3419_v2  ;;  %2835 = vmatprep.subr.bf16.mxu0 %v3300_v3  ;;  %v3484_v2 = vcombine.high %v489_v61, %v493_v62  ;;  %v369_v3 = vld [vmem:[%s3761_s25 + $0x2d0] sm:$0xff]  ;;  %v294_v58 = vld [vmem:[%s3761_s25 + $0x78] sm:$0xff]  ;;  %v3277_v62 = vcombine.low %v282_v49, %v286_v50 }
  0xe8   : > { %2876 = vmatprep.subr.bf16.mxu1 %v3428_v4  ;;  %v373_v4 = vld [vmem:[%s3761_s25 + $0x2f0] sm:$0xff] }
  0xe9   : > { %v3363_v15 = vcombine.low %v369_v3, %v373_v4 }
  0xea   : > { %2836 = vmatpush1.bf16.msra.mxu0 %v3299_v9  ;;  %v3364_v9 = vcombine.high %v369_v3, %v373_v4  ;;  %v298_v3 = vld [vmem:[%s3761_s25 + $0x98] sm:$0xff] }
  0xeb   : > { %2877 = vmatpush1.bf16.msra.mxu1 %v3427_v10  ;;  %2837 = vmatprep.subr.bf16.mxu0 %v3308_v11  ;;  %v3492_v10 = vcombine.high %v497_v5, %v501_v6  ;;  %v377_v11 = vld [vmem:[%s3761_s25 + $0x310] sm:$0xff]  ;;  %v302_v4 = vld [vmem:[%s3761_s25 + $0xb8] sm:$0xff]  ;;  %v3285_v6 = vcombine.low %v290_v57, %v294_v58 }
  0xec   : > { %2878 = vmatprep.subr.bf16.mxu1 %v3436_v12  ;;  %v381_v12 = vld [vmem:[%s3761_s25 + $0x330] sm:$0xff] }
  0xed   : > { %v3371_v25 = vcombine.low %v377_v11, %v381_v12 }
  0xee   : > { %2838 = vmatpush1.bf16.msra.mxu0 %v3307_v18  ;;  %v3372_v18 = vcombine.high %v377_v11, %v381_v12  ;;  %v306_v11 = vld [vmem:[%s3761_s25 + $0xd8] sm:$0xff] }
  0xef   : > { %2879 = vmatpush1.bf16.msra.mxu1 %v3435_v19  ;;  %2839 = vmatprep.subr.bf16.mxu0 %v3316_v20  ;;  %v3500_v19 = vcombine.high %v505_v13, %v509_v14  ;;  %v385_v20 = vld [vmem:[%s3761_s25 + $0x350] sm:$0xff]  ;;  %v310_v12 = vld [vmem:[%s3761_s25 + $0xf8] sm:$0xff]  ;;  %v3293_v14 = vcombine.low %v298_v3, %v302_v4 }
  0xf0   : > { %2880 = vmatprep.subr.bf16.mxu1 %v3444_v22  ;;  %v389_v22 = vld [vmem:[%s3761_s25 + $0x370] sm:$0xff] }
  0xf1   : > { %v3379_v35 = vcombine.low %v385_v20, %v389_v22 }
  0xf2   : > { %2840 = vmatpush1.bf16.msra.mxu0 %v3315_v27  ;;  %v3380_v27 = vcombine.high %v385_v20, %v389_v22  ;;  %v314_v20 = vld [vmem:[%s3761_s25 + $0x118] sm:$0xff] }
  0xf3   : > { %2881 = vmatpush1.bf16.msra.mxu1 %v3443_v29  ;;  %2841 = vmatprep.subr.bf16.mxu0 %v3324_v30  ;;  %v3508_v29 = vcombine.high %v513_v23, %v517_v24  ;;  %v393_v30 = vld [vmem:[%s3761_s25 + $0x390] sm:$0xff]  ;;  %v318_v22 = vld [vmem:[%s3761_s25 + $0x138] sm:$0xff] }
  0xf4   : > { %2882 = vmatprep.subr.bf16.mxu1 %v3452_v31  ;;  %v397_v31 = vld [vmem:[%s3761_s25 + $0x3b0] sm:$0xff] }
  0xf5   : > { %v3387_v43 = vcombine.low %v393_v30, %v397_v31 }
  0xf6   : > { %2842 = vmatpush1.bf16.msra.mxu0 %v3323_v37  ;;  %v3388_v37 = vcombine.high %v393_v30, %v397_v31  ;;  %v326_v30 = vld [vmem:[%s3761_s25 + $0x178] sm:$0xff] }
  0xf7   : > { %2883 = vmatpush1.bf16.msra.mxu1 %v3451_v38  ;;  %2843 = vmatprep.subr.bf16.mxu0 %v3332_v39  ;;  %v3516_v38 = vcombine.high %v521_v33, %v525_v34  ;;  %v401_v39 = vld [vmem:[%s3761_s25 + $0x3d0] sm:$0xff]  ;;  %v3309_v33 = vcombine.low %v314_v20, %v318_v22 }
  0xf8   : > { %2884 = vmatprep.subr.bf16.mxu1 %v3460_v40  ;;  %v405_v40 = vld [vmem:[%s3761_s25 + $0x3f0] sm:$0xff] }
  0xf9   : > { %v3395_v51 = vcombine.low %v401_v39, %v405_v40 }
  0xfa   : > { %2844 = vmatpush1.bf16.msra.mxu0 %v3331_v45  ;;  %v3396_v45 = vcombine.high %v401_v39, %v405_v40  ;;  %v334_v39 = vld [vmem:[%s3761_s25 + $0x1b8] sm:$0xff] }
  0xfb   : > { %2885 = vmatpush1.bf16.msra.mxu1 %v3459_v46  ;;  %2845 = vmatprep.subr.bf16.mxu0 %v3340_v47  ;;  %v3524_v46 = vcombine.high %v529_v41, %v533_v42  ;;  %v537_v47 = vld [vmem:[%s3761_s25 + $0x810] sm:$0xff] }
  0xfc   : > { %2886 = vmatprep.subr.bf16.mxu1 %v3468_v48  ;;  %v541_v48 = vld [vmem:[%s3761_s25 + $0x830] sm:$0xff] }
  0xfd   : > { %v3531_v61 = vcombine.low %v537_v47, %v541_v48 }
  0xfe   : > { %2846 = vmatpush1.bf16.msra.mxu0 %v3339_v53  ;;  %v3532_v53 = vcombine.high %v537_v47, %v541_v48 }
  0xff   : > { %2887 = vmatpush1.bf16.msra.mxu1 %v3467_v54  ;;  %2847 = vmatprep.subr.bf16.mxu0 %v3348_v55  ;;  %v3278_v54 = vcombine.high %v282_v49, %v286_v50  ;;  %v545_v55 = vld [vmem:[%s3761_s25 + $0x850] sm:$0xff]  ;;  %v338_v49 = vld [vmem:[%s3761_s25 + $0x1d8] sm:$0xff] }
 0x100   : > { %2888 = vmatprep.subr.bf16.mxu1 %v3476_v56  ;;  %v549_v56 = vld [vmem:[%s3761_s25 + $0x870] sm:$0xff]  ;;  %v342_v50 = vld [vmem:[%s3761_s25 + $0x1f8] sm:$0xff] }
 0x101   : > { %v3539_v5 = vcombine.low %v545_v55, %v549_v56 }
 0x102   : > { %2848 = vmatpush1.bf16.msra.mxu0 %v3347_v63  ;;  %v3540_v63 = vcombine.high %v545_v55, %v549_v56 }
 0x103   : > { %2889 = vmatpush1.bf16.msra.mxu1 %v3475_v0  ;;  %2849 = vmatprep.subr.bf16.mxu0 %v3356_v1  ;;  %v3286_v0 = vcombine.high %v290_v57, %v294_v58  ;;  %v553_v1 = vld [vmem:[%s3761_s25 + $0x890] sm:$0xff] }
 0x104   : > { %2890 = vmatprep.subr.bf16.mxu1 %v3484_v2  ;;  %v557_v2 = vld [vmem:[%s3761_s25 + $0x8b0] sm:$0xff] }
 0x105   : > { %v3547_v13 = vcombine.low %v553_v1, %v557_v2 }
 0x106   : > { %2850 = vmatpush1.bf16.msra.mxu0 %v3355_v7  ;;  %v3548_v7 = vcombine.high %v553_v1, %v557_v2  ;;  %v605_v1 = vld [vmem:[%s3761_s25 + $0xa30] sm:$0xff]  ;;  %v346_v2 = vld [vmem:[%s3761_s25 + $0x218] sm:$0xff] }
 0x107   : > { %2891 = vmatpush1.bf16.msra.mxu1 %v3483_v8  ;;  %2851 = vmatprep.subr.bf16.mxu0 %v3364_v9  ;;  %v3294_v8 = vcombine.high %v298_v3, %v302_v4  ;;  %v561_v9 = vld [vmem:[%s3761_s25 + $0x8d0] sm:$0xff]  ;;  %v350_v3 = vld [vmem:[%s3761_s25 + $0x238] sm:$0xff] }
 0x108   : > { %2892 = vmatprep.subr.bf16.mxu1 %v3492_v10  ;;  %v565_v10 = vld [vmem:[%s3761_s25 + $0x8f0] sm:$0xff] }
 0x109   : > { %v3555_v23 = vcombine.low %v561_v9, %v565_v10 }
 0x10a   : > { %2852 = vmatpush1.bf16.msra.mxu0 %v3363_v15  ;;  %v3556_v15 = vcombine.high %v561_v9, %v565_v10  ;;  %v613_v9 = vld [vmem:[%s3761_s25 + $0xa70] sm:$0xff]  ;;  %v354_v10 = vld [vmem:[%s3761_s25 + $0x258] sm:$0xff] }
 0x10b   : > { %2893 = vmatpush1.bf16.msra.mxu1 %v3491_v16  ;;  %2853 = vmatprep.subr.bf16.mxu0 %v3372_v18  ;;  %v3302_v16 = vcombine.high %v306_v11, %v310_v12  ;;  %v569_v18 = vld [vmem:[%s3761_s25 + $0x910] sm:$0xff] }
 0x10c   : > { %2894 = vmatprep.subr.bf16.mxu1 %v3500_v19  ;;  %v573_v19 = vld [vmem:[%s3761_s25 + $0x930] sm:$0xff] }
 0x10d   : > { %v3564_v24 = vcombine.high %v569_v18, %v573_v19  ;;  %v3563_v31 = vcombine.low %v569_v18, %v573_v19  ;;  %v621_v18 = vld [vmem:[%s3761_s25 + $0xab0] sm:$0xff]  ;;  %v362_v19 = vld [vmem:[%s3761_s25 + $0x298] sm:$0xff] }
 0x10e   : > { %2854 = vmatpush1.bf16.msra.mxu0 %v3371_v25  ;;  %v3310_v25 = vcombine.high %v314_v20, %v318_v22  ;;  %v366_v20 = vld [vmem:[%s3761_s25 + $0x2b8] sm:$0xff] }
 0x10f   : > { %2895 = vmatpush1.bf16.msra.mxu1 %v3499_v26  ;;  %2855 = vmatprep.subr.bf16.mxu0 %v3380_v27  ;;  %v577_v26 = vld [vmem:[%s3761_s25 + $0x950] sm:$0xff] }
 0x110   : > { %2896 = vmatprep.subr.bf16.mxu1 %v3508_v29  ;;  %v581_v27 = vld [vmem:[%s3761_s25 + $0x970] sm:$0xff]  ;;  %v322_v29 = vld [vmem:[%s3761_s25 + $0x158] sm:$0xff] }
 0x111   : > { %v3572_v34 = vcombine.high %v577_v26, %v581_v27  ;;  %v3571_v40 = vcombine.low %v577_v26, %v581_v27  ;;  %v3317_v41 = vcombine.low %v322_v29, %v326_v30  ;;  %v629_v26 = vld [vmem:[%s3761_s25 + $0xaf0] sm:$0xff]  ;;  %v370_v27 = vld [vmem:[%s3761_s25 + $0x2d8] sm:$0xff] }
 0x112   : > { %2856 = vmatpush1.bf16.msra.mxu0 %v3379_v35  ;;  %v3318_v35 = vcombine.high %v322_v29, %v326_v30  ;;  %v374_v29 = vld [vmem:[%s3761_s25 + $0x2f8] sm:$0xff] }
 0x113   : > { %2897 = vmatpush1.bf16.msra.mxu1 %v3507_v36  ;;  %2857 = vmatprep.subr.bf16.mxu0 %v3388_v37  ;;  %v585_v36 = vld [vmem:[%s3761_s25 + $0x990] sm:$0xff] }
 0x114   : > { %2898 = vmatprep.subr.bf16.mxu1 %v3516_v38  ;;  %v589_v37 = vld [vmem:[%s3761_s25 + $0x9b0] sm:$0xff]  ;;  %v330_v38 = vld [vmem:[%s3761_s25 + $0x198] sm:$0xff] }
 0x115   : > { %v3580_v42 = vcombine.high %v585_v36, %v589_v37  ;;  %v3325_v58 = vcombine.low %v330_v38, %v334_v39 }
 0x116   : > { %2858 = vmatpush1.bf16.msra.mxu0 %v3387_v43 }
 0x117   : > { %2899 = vmatpush1.bf16.msra.mxu1 %v3515_v44  ;;  %2859 = vmatprep.subr.bf16.mxu0 %v3396_v45  ;;  %v3326_v44 = vcombine.high %v330_v38, %v334_v39  ;;  %v593_v45 = vld [vmem:[%s3761_s25 + $0x9d0] sm:$0xff]  ;;  %v382_v38 = vld [vmem:[%s3761_s25 + $0x338] sm:$0xff] }
 0x118   : > { %2900 = vmatprep.subr.bf16.mxu1 %v3524_v46  ;;  %v597_v46 = vld [vmem:[%s3761_s25 + $0x9f0] sm:$0xff] }
 0x119   : > { %v3587_v4 = vcombine.low %v593_v45, %v597_v46 }
 0x11a   : > { %2860 = vmatpush1.bf16.msra.mxu0 %v3395_v51 }
 0x11b   : > { %2901 = vmatpush1.bf16.msra.mxu1 %v3523_v52  ;;  %2911 = vmatprep.subr.bf16.mxu0 %v3532_v53 }
 0x11c   : > { %2952 = vmatprep.subr.bf16.mxu1 %v3278_v54  ;;  %v3579_v54 = vcombine.low %v585_v36, %v589_v37  ;;  %v637_v36 = vld [vmem:[%s3761_s25 + $0xb30] sm:$0xff]  ;;  %v378_v37 = vld [vmem:[%s3761_s25 + $0x318] sm:$0xff] }
 0x11d   : > { %2862 = vmatmul.mubr.bf16.vlgmr.msra.gmra.mrb[12].mxu0 %v3844_v17 }
 0x11e   : > { %2903 = vmatmul.mubr.bf16.vlgmr.msra.gmra.mrb[12].mxu1 %v3849_v21  ;;  %2912 = vmatpush1.bf16.msra.mxu0 %v3531_v61  ;;  %v3588_v61 = vcombine.high %v593_v45, %v597_v46  ;;  %v386_v45 = vld [vmem:[%s3761_s25 + $0x358] sm:$0xff] }
 0x11f   : > { %2953 = vmatpush1.bf16.msra.mxu1 %v3277_v62  ;;  %2913 = vmatprep.subr.bf16.mxu0 %v3540_v63  ;;  %v3334_v63 = vcombine.high %v338_v49, %v342_v50  ;;  %v390_v46 = vld [vmem:[%s3761_s25 + $0x378] sm:$0xff] }
 0x120   : > { %2954 = vmatprep.subr.bf16.mxu1 %v3286_v0  ;;  %2943 = vmatprep.mubr.bf16.mxu0 %v3853_v28  ;;  %v601_v0 = vld [vmem:[%s3761_s25 + $0xa10] sm:$0xff] }
 0x121   : > { %2984 = vmatprep.mubr.bf16.mxu1 %v3796_v59  ;;  %v3301_v59 = vcombine.low %v306_v11, %v310_v12  ;;  %v358_v11 = vld [vmem:[%s3761_s25 + $0x278] sm:$0xff]  ;;  %v3595_v12 = vcombine.low %v601_v0, %v605_v1 }
 0x122   : > { %2914 = vmatpush1.bf16.msra.mxu0 %v3539_v5  ;;  %v3333_v5 = vcombine.low %v338_v49, %v342_v50  ;;  %v3382_v50 = vcombine.high %v386_v45, %v390_v46 }
 0x123   : > { %2955 = vmatpush1.bf16.msra.mxu1 %v3285_v6  ;;  %2915 = vmatprep.subr.bf16.mxu0 %v3548_v7  ;;  %v3596_v6 = vcombine.high %v601_v0, %v605_v1  ;;  %v3342_v7 = vcombine.high %v346_v2, %v350_v3  ;;  %v661_v0 = vld [vmem:[%s3761_s25 + $0xbf0] sm:$0xff]  ;;  %v402_v1 = vld [vmem:[%s3761_s25 + $0x3d8] sm:$0xff] }
 0x124   : > { %2956 = vmatprep.subr.bf16.mxu1 %v3294_v8  ;;  %v609_v8 = vld [vmem:[%s3761_s25 + $0xa50] sm:$0xff] }
 0x125   : > { %v3603_v22 = vcombine.low %v609_v8, %v613_v9 }
 0x126   : > { %2916 = vmatpush1.bf16.msra.mxu0 %v3547_v13  ;;  %v3341_v13 = vcombine.low %v346_v2, %v350_v3  ;;  %v406_v2 = vld [vmem:[%s3761_s25 + $0x3f8] sm:$0xff] }
 0x127   : > { %2957 = vmatpush1.bf16.msra.mxu1 %v3293_v14  ;;  %2917 = vmatprep.subr.bf16.mxu0 %v3556_v15  ;;  %v3604_v14 = vcombine.high %v609_v8, %v613_v9  ;;  %v3350_v15 = vcombine.high %v354_v10, %v358_v11  ;;  %v414_v8 = vld [vmem:[%s3761_s25 + $0x438] sm:$0xff] }
 0x128   : > { %2958 = vmatprep.subr.bf16.mxu1 %v3302_v16  ;;  %v617_v16 = vld [vmem:[%s3761_s25 + $0xa90] sm:$0xff]  ;;  %v538_v9 = vld [vmem:[%s3761_s25 + $0x818] sm:$0xff] }
 0x129   : > { %v3611_v30 = vcombine.low %v617_v16, %v621_v18 }
 0x12a   : > { %2918 = vmatpush1.bf16.msra.mxu0 %v3555_v23  ;;  %v3349_v23 = vcombine.low %v354_v10, %v358_v11  ;;  %v542_v10 = vld [vmem:[%s3761_s25 + $0x838] sm:$0xff] }
 0x12b   : > { %2959 = vmatpush1.bf16.msra.mxu1 %v3301_v59  ;;  %2919 = vmatprep.subr.bf16.mxu0 %v3564_v24  ;;  %v3612_v59 = vcombine.high %v617_v16, %v621_v18  ;;  %v3358_v24 = vcombine.high %v362_v19, %v366_v20  ;;  %v422_v16 = vld [vmem:[%s3761_s25 + $0x478] sm:$0xff] }
 0x12c   : > { %2960 = vmatprep.subr.bf16.mxu1 %v3310_v25  ;;  %v625_v25 = vld [vmem:[%s3761_s25 + $0xad0] sm:$0xff]  ;;  %v546_v18 = vld [vmem:[%s3761_s25 + $0x858] sm:$0xff] }
 0x12d   : > { %v3619_v39 = vcombine.low %v625_v25, %v629_v26 }
 0x12e   : > { %2920 = vmatpush1.bf16.msra.mxu0 %v3563_v31  ;;  %v3357_v31 = vcombine.low %v362_v19, %v366_v20  ;;  %v550_v19 = vld [vmem:[%s3761_s25 + $0x878] sm:$0xff] }
 0x12f   : > { %2961 = vmatpush1.bf16.msra.mxu1 %v3309_v33  ;;  %2921 = vmatprep.subr.bf16.mxu0 %v3572_v34  ;;  %v3620_v33 = vcombine.high %v625_v25, %v629_v26  ;;  %v3366_v34 = vcombine.high %v370_v27, %v374_v29  ;;  %v430_v25 = vld [vmem:[%s3761_s25 + $0x4b8] sm:$0xff] }
 0x130   : > { %v2617_v43 = vpop.f32.mrb[0].mxu0  ;;  %2962 = vmatprep.subr.bf16.mxu1 %v3318_v35  ;;  %v633_v35 = vld [vmem:[%s3761_s25 + $0xb10] sm:$0xff]  ;;  %v554_v26 = vld [vmem:[%s3761_s25 + $0x898] sm:$0xff] }
 0x131   : > { %v2658_v47 = vpop.f32.mrb[0].mxu1  ;;  %v2619_v48 = vpop.f32.mrb[1].mxu0 }
 0x132   : > { %v4088_v51 = vadd.f32 %v2658_v47, %v2617_v43  ;;  %v2660_v52 = vpop.f32.mrb[1].mxu1  ;;  %v2621_v53 = vpop.f32.mrb[2].mxu0  ;;  %2922 = vmatpush1.bf16.msra.mxu0 %v3571_v40  ;;  %v3365_v40 = vcombine.low %v370_v27, %v374_v29  ;;  %v641_v43 = vld [vmem:[%s3761_s25 + $0xb50] sm:$0xff]  ;;  %v3627_v47 = vcombine.low %v633_v35, %v637_v36  ;;  %v558_v27 = vld [vmem:[%s3761_s25 + $0x8b8] sm:$0xff] }
 0x133   : > { %v4090_v55 = vadd.f32 %v2660_v52, %v2619_v48  ;;  %v2662_v56 = vpop.f32.mrb[2].mxu1  ;;  %2963 = vmatpush1.bf16.msra.mxu1 %v3317_v41  ;;  %v2622_v57 = vpop.f32.mrb[3].mxu0  ;;  %2923 = vmatprep.subr.bf16.mxu0 %v3580_v42  ;;  %v3628_v41 = vcombine.high %v633_v35, %v637_v36  ;;  %v3374_v42 = vcombine.high %v378_v37, %v382_v38  ;;  %v649_v52 = vld [vmem:[%s3761_s25 + $0xb90] sm:$0xff]  ;;  %v438_v35 = vld [vmem:[%s3761_s25 + $0x4f8] sm:$0xff] }
 0x134   : > { %v2663_v62 = vpop.f32.mrb[3].mxu1  ;;  %2964 = vmatprep.subr.bf16.mxu1 %v3326_v44  ;;  %v645_v44 = vld [vmem:[%s3761_s25 + $0xb70] sm:$0xff]  ;;  %v3373_v48 = vcombine.low %v378_v37, %v382_v38  ;;  %v398_v56 = vld [vmem:[%s3761_s25 + $0x3b8] sm:$0xff]  ;;  %v3549_v38 = vcombine.low %v554_v26, %v558_v27 }
 0x135   : > { %v3636_v49 = vcombine.high %v641_v43, %v645_v44  ;;  %v653_v53 = vld [vmem:[%s3761_s25 + $0xbb0] sm:$0xff]  ;;  %v3635_v57 = vcombine.low %v641_v43, %v645_v44  ;;  %v562_v36 = vld [vmem:[%s3761_s25 + $0x8d8] sm:$0xff] }
 0x136   : > { %2924 = vmatpush1.bf16.msra.mxu0 %v3579_v54  ;;  %v394_v54 = vld [vmem:[%s3761_s25 + $0x398] sm:$0xff]  ;;  %v3643_v3 = vcombine.low %v649_v52, %v653_v53 }
 0x137   : > { %2965 = vmatpush1.bf16.msra.mxu1 %v3325_v58  ;;  %2925 = vmatprep.subr.bf16.mxu0 %v3588_v61  ;;  %v3381_v58 = vcombine.low %v386_v45, %v390_v46  ;;  %v3644_v61 = vcombine.high %v649_v52, %v653_v53  ;;  %v3390_v62 = vcombine.high %v394_v54, %v398_v56  ;;  %v566_v37 = vld [vmem:[%s3761_s25 + $0x8f8] sm:$0xff] }
 0x138   : > { %2966 = vmatprep.subr.bf16.mxu1 %v3334_v63  ;;  %v657_v63 = vld [vmem:[%s3761_s25 + $0xbd0] sm:$0xff]  ;;  %v570_v43 = vld [vmem:[%s3761_s25 + $0x918] sm:$0xff] }
 0x139   : > { %v3651_v11 = vcombine.low %v657_v63, %v661_v0 }
 0x13a   : > { %2926 = vmatpush1.bf16.msra.mxu0 %v3587_v4  ;;  %v3389_v4 = vcombine.low %v394_v54, %v398_v56 }
 0x13b   : > { %2967 = vmatpush1.bf16.msra.mxu1 %v3333_v5  ;;  %2927 = vmatprep.subr.bf16.mxu0 %v3596_v6  ;;  %v3652_v5 = vcombine.high %v657_v63, %v661_v0  ;;  %v3398_v6 = vcombine.high %v402_v1, %v406_v2 }
 0x13c   : > { %2968 = vmatprep.subr.bf16.mxu1 %v3342_v7  ;;  %v410_v7 = vld [vmem:[%s3761_s25 + $0x418] sm:$0xff] }
 0x13d   : > { %v3405_v20 = vcombine.low %v410_v7, %v414_v8 }
 0x13e   : > { %2928 = vmatpush1.bf16.msra.mxu0 %v3595_v12  ;;  %v3397_v12 = vcombine.low %v402_v1, %v406_v2  ;;  %v259_v2 = vld [vmem:[#allocation2] sm:$0xff] }
 0x13f   : > { %2969 = vmatpush1.bf16.msra.mxu1 %v3341_v13  ;;  %2929 = vmatprep.subr.bf16.mxu0 %v3604_v14  ;;  %v3406_v13 = vcombine.high %v410_v7, %v414_v8  ;;  %v3534_v14 = vcombine.high %v538_v9, %v542_v10 }
 0x140   : > { %2970 = vmatprep.subr.bf16.mxu1 %v3350_v15  ;;  %v418_v15 = vld [vmem:[%s3761_s25 + $0x458] sm:$0xff] }
 0x141   : > { %v3413_v29 = vcombine.low %v418_v15, %v422_v16 }
 0x142   : > { %2930 = vmatpush1.bf16.msra.mxu0 %v3603_v22  ;;  %v3533_v22 = vcombine.low %v538_v9, %v542_v10  ;;  %v260_v9 = vld [vmem:[#allocation2 + $0x8] sm:$0xff] }
 0x143   : > { %2971 = vmatpush1.bf16.msra.mxu1 %v3349_v23  ;;  %2931 = vmatprep.subr.bf16.mxu0 %v3612_v59  ;;  %v3414_v23 = vcombine.high %v418_v15, %v422_v16  ;;  %v3542_v59 = vcombine.high %v546_v18, %v550_v19 }
 0x144   : > { %2972 = vmatprep.subr.bf16.mxu1 %v3358_v24  ;;  %v426_v24 = vld [vmem:[%s3761_s25 + $0x498] sm:$0xff] }
 0x146   : > { %2932 = vmatpush1.bf16.msra.mxu0 %v3611_v30  ;;  %v3541_v30 = vcombine.low %v546_v18, %v550_v19 }
 0x147   : > { %2973 = vmatpush1.bf16.msra.mxu1 %v3357_v31  ;;  %2933 = vmatprep.subr.bf16.mxu0 %v3620_v33  ;;  %v3422_v31 = vcombine.high %v426_v24, %v430_v25  ;;  %v3550_v33 = vcombine.high %v554_v26, %v558_v27  ;;  %v602_v26 = vld [vmem:[%s3761_s25 + $0xa18] sm:$0xff] }
 0x148   : > { %2974 = vmatprep.subr.bf16.mxu1 %v3366_v34  ;;  %v434_v34 = vld [vmem:[%s3761_s25 + $0x4d8] sm:$0xff] }
 0x149   : > { %v3429_v44 = vcombine.low %v434_v34, %v438_v35  ;;  %v606_v27 = vld [vmem:[%s3761_s25 + $0xa38] sm:$0xff] }
 0x14a   : > { %2934 = vmatpush1.bf16.msra.mxu0 %v3619_v39  ;;  %v3430_v39 = vcombine.high %v434_v34, %v438_v35  ;;  %v482_v34 = vld [vmem:[%s3761_s25 + $0x658] sm:$0xff] }
 0x14b   : > { %2975 = vmatpush1.bf16.msra.mxu1 %v3365_v40  ;;  %2935 = vmatprep.subr.bf16.mxu0 %v3628_v41  ;;  %v3558_v40 = vcombine.high %v562_v36, %v566_v37  ;;  %v442_v41 = vld [vmem:[%s3761_s25 + $0x518] sm:$0xff] }
 0x14c   : > { %2976 = vmatprep.subr.bf16.mxu1 %v3374_v42  ;;  %v446_v42 = vld [vmem:[%s3761_s25 + $0x538] sm:$0xff] }
 0x14d   : > { %v3438_v45 = vcombine.high %v442_v41, %v446_v42  ;;  %v3437_v52 = vcombine.low %v442_v41, %v446_v42  ;;  %v486_v35 = vld [vmem:[%s3761_s25 + $0x678] sm:$0xff] }
 0x14e   : > { %2936 = vmatpush1.bf16.msra.mxu0 %v3627_v47  ;;  %v450_v47 = vld [vmem:[%s3761_s25 + $0x558] sm:$0xff] }
 0x14f   : > { %2977 = vmatpush1.bf16.msra.mxu1 %v3373_v48  ;;  %2937 = vmatprep.subr.bf16.mxu0 %v3636_v49  ;;  %v454_v48 = vld [vmem:[%s3761_s25 + $0x578] sm:$0xff] }
 0x150   : > { %2978 = vmatprep.subr.bf16.mxu1 %v3382_v50  ;;  %v578_v49 = vld [vmem:[%s3761_s25 + $0x958] sm:$0xff]  ;;  %v3446_v54 = vcombine.high %v450_v47, %v454_v48  ;;  %v3445_v63 = vcombine.low %v450_v47, %v454_v48 }
 0x151   : > { %v582_v50 = vld [vmem:[%s3761_s25 + $0x978] sm:$0xff] }
 0x152   : > { %2938 = vmatpush1.bf16.msra.mxu0 %v3635_v57  ;;  %v3574_v56 = vcombine.high %v578_v49, %v582_v50  ;;  %v458_v57 = vld [vmem:[%s3761_s25 + $0x598] sm:$0xff]  ;;  %v3573_v0 = vcombine.low %v578_v49, %v582_v50 }
 0x153   : > { %2979 = vmatpush1.bf16.msra.mxu1 %v3381_v58  ;;  %2939 = vmatprep.subr.bf16.mxu0 %v3644_v61  ;;  %v462_v58 = vld [vmem:[%s3761_s25 + $0x5b8] sm:$0xff] }
 0x154   : > { %2980 = vmatprep.subr.bf16.mxu1 %v3390_v62  ;;  %v586_v61 = vld [vmem:[%s3761_s25 + $0x998] sm:$0xff]  ;;  %v3454_v1 = vcombine.high %v458_v57, %v462_v58  ;;  %v3453_v16 = vcombine.low %v458_v57, %v462_v58 }
 0x155   : > { %v590_v62 = vld [vmem:[%s3761_s25 + $0x9b8] sm:$0xff] }
 0x156   : > { %2940 = vmatpush1.bf16.msra.mxu0 %v3643_v3  ;;  %v490_v41 = vld [vmem:[%s3761_s25 + $0x698] sm:$0xff] }
 0x157   : > { %2981 = vmatpush1.bf16.msra.mxu1 %v3389_v4  ;;  %2941 = vmatprep.subr.bf16.mxu0 %v3652_v5  ;;  %v3582_v4 = vcombine.high %v586_v61, %v590_v62  ;;  %v466_v5 = vld [vmem:[%s3761_s25 + $0x5d8] sm:$0xff] }
 0x158   : > { %2982 = vmatprep.subr.bf16.mxu1 %v3398_v6  ;;  %v470_v6 = vld [vmem:[%s3761_s25 + $0x5f8] sm:$0xff] }
 0x159   : > { %v494_v42 = vld [vmem:[%s3761_s25 + $0x6b8] sm:$0xff] }
 0x15a   : > { %2942 = vmatpush1.bf16.msra.mxu0 %v3651_v11  ;;  %v594_v11 = vld [vmem:[%s3761_s25 + $0x9d8] sm:$0xff] }
 0x15b   : > { %2983 = vmatpush1.bf16.msra.mxu1 %v3397_v12  ;;  %2993 = vmatprep.subr.bf16.mxu0 %v3406_v13  ;;  %v598_v12 = vld [vmem:[%s3761_s25 + $0x9f8] sm:$0xff] }
 0x15c   : > { %3034 = vmatprep.subr.bf16.mxu1 %v3534_v14  ;;  %v498_v47 = vld [vmem:[%s3761_s25 + $0x6d8] sm:$0xff] }
 0x15d   : > { %2944 = vmatmul.mubr.bf16.vlgmr.msra.gmra.mrb[16].mxu0 %v3920_v32  ;;  %v502_v48 = vld [vmem:[%s3761_s25 + $0x6f8] sm:$0xff] }
 0x15e   : > { %2985 = vmatmul.mubr.bf16.vlgmr.msra.gmra.mrb[16].mxu1 %v3844_v17  ;;  %2994 = vmatpush1.bf16.msra.mxu0 %v3405_v20  ;;  %v3421_v17 = vcombine.low %v426_v24, %v430_v25  ;;  %v3581_v20 = vcombine.low %v586_v61, %v590_v62  ;;  %v474_v24 = vld [vmem:[%s3761_s25 + $0x618] sm:$0xff] }
 0x15f   : > { %3035 = vmatpush1.bf16.msra.mxu1 %v3533_v22  ;;  %2995 = vmatprep.subr.bf16.mxu0 %v3414_v23  ;;  %v3462_v22 = vcombine.high %v466_v5, %v470_v6  ;;  %v478_v25 = vld [vmem:[%s3761_s25 + $0x638] sm:$0xff] }
 0x160   : > { %3036 = vmatprep.subr.bf16.mxu1 %v3542_v59  ;;  %3025 = vmatprep.mubr.bf16.mxu0 %v3798_v60  ;;  %v574_v60 = vld [vmem:[%s3761_s25 + $0x938] sm:$0xff] }
 0x161   : > { %3066 = vmatprep.mubr.bf16.mxu1 %v3853_v28  ;;  %v3557_v28 = vcombine.low %v562_v36, %v566_v37  ;;  %v3566_v46 = vcombine.high %v570_v43, %v574_v60  ;;  %v3565_v53 = vcombine.low %v570_v43, %v574_v60  ;;  %v610_v36 = vld [vmem:[%s3761_s25 + $0xa58] sm:$0xff] }
 0x162   : > { %2996 = vmatpush1.bf16.msra.mxu0 %v3413_v29  ;;  %v3461_v29 = vcombine.low %v466_v5, %v470_v6  ;;  %v614_v37 = vld [vmem:[%s3761_s25 + $0xa78] sm:$0xff] }
 0x163   : > { %3037 = vmatpush1.bf16.msra.mxu1 %v3541_v30  ;;  %2997 = vmatprep.subr.bf16.mxu0 %v3422_v31  ;;  %v3589_v30 = vcombine.low %v594_v11, %v598_v12  ;;  %v3470_v31 = vcombine.high %v474_v24, %v478_v25  ;;  %v618_v43 = vld [vmem:[%s3761_s25 + $0xa98] sm:$0xff] }
 0x164   : > { %3038 = vmatprep.subr.bf16.mxu1 %v3550_v33  ;;  %v3598_v33 = vcombine.high %v602_v26, %v606_v27  ;;  %v622_v60 = vld [vmem:[%s3761_s25 + $0xab8] sm:$0xff] }
 0x165   : > { %v626_v49 = vld [vmem:[%s3761_s25 + $0xad8] sm:$0xff] }
 0x166   : > { %2998 = vmatpush1.bf16.msra.mxu0 %v3421_v17  ;;  %v3469_v17 = vcombine.low %v474_v24, %v478_v25  ;;  %v630_v50 = vld [vmem:[%s3761_s25 + $0xaf8] sm:$0xff] }
 0x167   : > { %3039 = vmatpush1.bf16.msra.mxu1 %v3549_v38  ;;  %2999 = vmatprep.subr.bf16.mxu0 %v3430_v39  ;;  %v3597_v38 = vcombine.low %v602_v26, %v606_v27  ;;  %v3478_v39 = vcombine.high %v482_v34, %v486_v35  ;;  %v506_v57 = vld [vmem:[%s3761_s25 + $0x718] sm:$0xff] }
 0x168   : > { %3040 = vmatprep.subr.bf16.mxu1 %v3558_v40  ;;  %v3606_v40 = vcombine.high %v610_v36, %v614_v37  ;;  %v510_v58 = vld [vmem:[%s3761_s25 + $0x738] sm:$0xff] }
 0x169   : > { %v634_v61 = vld [vmem:[%s3761_s25 + $0xb18] sm:$0xff] }
 0x16a   : > { %3000 = vmatpush1.bf16.msra.mxu0 %v3429_v44  ;;  %v3477_v44 = vcombine.low %v482_v34, %v486_v35  ;;  %v638_v62 = vld [vmem:[%s3761_s25 + $0xb38] sm:$0xff] }
 0x16b   : > { %3041 = vmatpush1.bf16.msra.mxu1 %v3557_v28  ;;  %3001 = vmatprep.subr.bf16.mxu0 %v3438_v45  ;;  %v3605_v28 = vcombine.low %v610_v36, %v614_v37  ;;  %v3486_v45 = vcombine.high %v490_v41, %v494_v42  ;;  %v642_v5 = vld [vmem:[%s3761_s25 + $0xb58] sm:$0xff]  ;;  %v261_v36 = vld [vmem:[#allocation2 + $0x10] sm:$0xff] }
 0x16c   : > { %3042 = vmatprep.subr.bf16.mxu1 %v3566_v46  ;;  %v3614_v46 = vcombine.high %v618_v43, %v622_v60  ;;  %v646_v6 = vld [vmem:[%s3761_s25 + $0xb78] sm:$0xff] }
 0x16e   : > { %3002 = vmatpush1.bf16.msra.mxu0 %v3437_v52  ;;  %v3485_v52 = vcombine.low %v490_v41, %v494_v42 }
 0x16f   : > { %3043 = vmatpush1.bf16.msra.mxu1 %v3565_v53  ;;  %3003 = vmatprep.subr.bf16.mxu0 %v3446_v54  ;;  %v3613_v53 = vcombine.low %v618_v43, %v622_v60  ;;  %v3494_v54 = vcombine.high %v498_v47, %v502_v48 }
 0x170   : > { %v2699_v3 = vpop.f32.mrb[4].mxu0  ;;  %3044 = vmatprep.subr.bf16.mxu1 %v3574_v56  ;;  %v3622_v56 = vcombine.high %v626_v49, %v630_v50 }
 0x171   : > { %v2700_v7 = vadd.f32 %v2699_v3, %v4088_v51  ;;  %v4159_v8 = vpop.f32.mrb[4].mxu1  ;;  %v2701_v10 = vpop.f32.mrb[5].mxu0  ;;  %v514_v3 = vld [vmem:[%s3761_s25 + $0x758] sm:$0xff] }
 0x172   : > { %v2702_v13 = vadd.f32 %v2701_v10, %v4090_v55  ;;  %v4164_v14 = vpop.f32.mrb[5].mxu1  ;;  %v2703_v15 = vpop.f32.mrb[6].mxu0  ;;  %3004 = vmatpush1.bf16.msra.mxu0 %v3445_v63  ;;  %v3590_v55 = vcombine.high %v594_v11, %v598_v12  ;;  %v3493_v63 = vcombine.low %v498_v47, %v502_v48  ;;  %v3638_v11 = vcombine.high %v642_v5, %v646_v6  ;;  %v522_v12 = vld [vmem:[%s3761_s25 + $0x798] sm:$0xff] }
 0x173   : > { %v3075_v18 = vadd.f32 %v2700_v7, %v259_v2  ;;  %v2744_v19 = vpop.f32.mrb[6].mxu1  ;;  %3045 = vmatpush1.bf16.msra.mxu1 %v3573_v0  ;;  %v2704_v51 = vpop.f32.mrb[7].mxu0  ;;  %3005 = vmatprep.subr.bf16.mxu0 %v3454_v1  ;;  %v3621_v0 = vcombine.low %v626_v49, %v630_v50  ;;  %v3502_v1 = vcombine.high %v506_v57, %v510_v58  ;;  %v650_v15 = vld [vmem:[%s3761_s25 + $0xb98] sm:$0xff] }
 0x174   : > { %v3076_v23 = vadd.f32 %v2702_v13, %v260_v9  ;;  %v2745_v59 = vpop.f32.mrb[7].mxu1  ;;  %3046 = vmatprep.subr.bf16.mxu1 %v3582_v4  ;;  %v3630_v2 = vcombine.high %v634_v61, %v638_v62  ;;  %v518_v4 = vld [vmem:[%s3761_s25 + $0x778] sm:$0xff]  ;;  %v3501_v7 = vcombine.low %v506_v57, %v510_v58  ;;  %v3629_v9 = vcombine.low %v634_v61, %v638_v62  ;;  %v264_v57 = vld [vmem:[#allocation2 + $0x28] sm:$0xff] }
 0x175   : > { %3083 = vst [vmem:[#allocation2] sm:$0xff] %v3075_v18  ;;  %v3510_v10 = vcombine.high %v514_v3, %v518_v4  ;;  %v526_v13 = vld [vmem:[%s3761_s25 + $0x7b8] sm:$0xff]  ;;  %v3509_v18 = vcombine.low %v514_v3, %v518_v4  ;;  %v3637_v19 = vcombine.low %v642_v5, %v646_v6 }
 0x176   : > { %3084 = vst [vmem:[#allocation2 + $0x8] sm:$0xff] %v3076_v23  ;;  %3006 = vmatpush1.bf16.msra.mxu0 %v3453_v16  ;;  %v654_v16 = vld [vmem:[%s3761_s25 + $0xbb8] sm:$0xff]  ;;  %v3518_v51 = vcombine.high %v522_v12, %v526_v13  ;;  %v3517_v24 = vcombine.low %v522_v12, %v526_v13 }
 0x177   : > { %3047 = vmatpush1.bf16.msra.mxu1 %v3581_v20  ;;  %3007 = vmatprep.subr.bf16.mxu0 %v3462_v22  ;;  %v3646_v20 = vcombine.high %v650_v15, %v654_v16  ;;  %v530_v22 = vld [vmem:[%s3761_s25 + $0x7d8] sm:$0xff]  ;;  %v3645_v25 = vcombine.low %v650_v15, %v654_v16  ;;  %v266_v16 = vld [vmem:[#allocation2 + $0x38] sm:$0xff] }
 0x178   : > { %3048 = vmatprep.subr.bf16.mxu1 %v3590_v55  ;;  %v534_v23 = vld [vmem:[%s3761_s25 + $0x7f8] sm:$0xff] }
 0x179   : > { %v658_v59 = vld [vmem:[%s3761_s25 + $0xbd8] sm:$0xff]  ;;  %v3526_v26 = vcombine.high %v530_v22, %v534_v23 }
 0x17a   : > { %3008 = vmatpush1.bf16.msra.mxu0 %v3461_v29  ;;  %v662_v55 = vld [vmem:[%s3761_s25 + $0xbf8] sm:$0xff]  ;;  %v3525_v29 = vcombine.low %v530_v22, %v534_v23 }
 0x17b   : > { %3049 = vmatpush1.bf16.msra.mxu1 %v3589_v30  ;;  %3009 = vmatprep.subr.bf16.mxu0 %v3470_v31  ;;  %v3654_v27 = vcombine.high %v658_v59, %v662_v55  ;;  %v3653_v30 = vcombine.low %v658_v59, %v662_v55  ;;  %v3106_v59 = vlaneseq (!%p3655_p7) }
 0x17c   : > { %3050 = vmatprep.subr.bf16.mxu1 %v3598_v33 }
 0x17d   : > { %v3107_v55 = vshrl.u32 (!%p3655_p7), %v3106_v59, 7 }
 0x17e   : > { %3010 = vmatpush1.bf16.msra.mxu0 %v3469_v17 }
 0x17f   : > { %3051 = vmatpush1.bf16.msra.mxu1 %v3597_v38  ;;  %3011 = vmatprep.subr.bf16.mxu0 %v3478_v39 }
 0x180   : > { %3052 = vmatprep.subr.bf16.mxu1 %v3606_v40  ;;  %v262_v40 = vld [vmem:[#allocation2 + $0x18] sm:$0xff] }
 0x182   : > { %3012 = vmatpush1.bf16.msra.mxu0 %v3477_v44 }
 0x183   : > { %3053 = vmatpush1.bf16.msra.mxu1 %v3605_v28  ;;  %3013 = vmatprep.subr.bf16.mxu0 %v3486_v45 }
 0x184   : > { %3054 = vmatprep.subr.bf16.mxu1 %v3614_v46 }
 0x186   : > { %3014 = vmatpush1.bf16.msra.mxu0 %v3485_v52  ;;  %v263_v52 = vld [vmem:[#allocation2 + $0x20] sm:$0xff] }
 0x187   : > { %3055 = vmatpush1.bf16.msra.mxu1 %v3613_v53  ;;  %3015 = vmatprep.subr.bf16.mxu0 %v3494_v54 }
 0x188   : > { %3056 = vmatprep.subr.bf16.mxu1 %v3622_v56 }
 0x18a   : > { %3016 = vmatpush1.bf16.msra.mxu0 %v3493_v63 }
 0x18b   : > { %3057 = vmatpush1.bf16.msra.mxu1 %v3621_v0  ;;  %3017 = vmatprep.subr.bf16.mxu0 %v3502_v1 }
 0x18c   : > { %3058 = vmatprep.subr.bf16.mxu1 %v3630_v2 }
 0x18e   : > { %3018 = vmatpush1.bf16.msra.mxu0 %v3501_v7 }
 0x18f   : > { %3059 = vmatpush1.bf16.msra.mxu1 %v3629_v9  ;;  %3019 = vmatprep.subr.bf16.mxu0 %v3510_v10  ;;  %v265_v10 = vld [vmem:[#allocation2 + $0x30] sm:$0xff] }
 0x190   : > { %3060 = vmatprep.subr.bf16.mxu1 %v3638_v11 }
 0x192   : > { %3020 = vmatpush1.bf16.msra.mxu0 %v3509_v18 }
 0x193   : > { %3061 = vmatpush1.bf16.msra.mxu1 %v3637_v19  ;;  %3021 = vmatprep.subr.bf16.mxu0 %v3518_v51 }
 0x194   : > { %3062 = vmatprep.subr.bf16.mxu1 %v3646_v20 }
 0x196   : > { %3022 = vmatpush1.bf16.msra.mxu0 %v3517_v24  ;;  %v3096_v24 = vld [vmem:[#allocation2] sm:$0xff] (!%p3655_p7) }
 0x197   : > { %3063 = vmatpush1.bf16.msra.mxu1 %v3645_v25  ;;  %3023 = vmatprep.subr.bf16.mxu0 %v3526_v26  ;;  %v3104_v25 = vld [vmem:[%s4243_s2] sm:$0xff] (!%p3655_p7)  ;;  %v3108_v26 = vsub.s32 (!%p3655_p7), 0, %v3107_v55 }
 0x198   : > { %3064 = vmatprep.subr.bf16.mxu1 %v3654_v27  ;;  %v3097_v27 = vld [vmem:[#allocation2 + $0x8] sm:$0xff] (!%p3655_p7) }
 0x19a   : > { %3024 = vmatpush1.bf16.msra.mxu0 %v3525_v29  ;;  %v3112_v29 = vsub.s32 (!%p3655_p7), 1, %v3107_v55 }
 0x19b   : > { %3065 = vmatpush1.bf16.msra.mxu1 %v3653_v30 }
 0x19d   : > { %3026 = vmatmul.mubr.bf16.vlgmr.msra.gmra.mrb[20].mxu0 %v3849_v21 }
 0x19e   : > { %3067 = vmatmul.mubr.bf16.vlgmr.msra.gmra.mrb[20].mxu1 %v3920_v32 }
 0x1b0   : > { %v2781_v31 = vpop.f32.mrb[8].mxu0 }
 0x1b1   : > { %v2782_v33 = vadd.f32 %v2781_v31, %v4159_v8  ;;  %v2822_v34 = vpop.f32.mrb[8].mxu1  ;;  %v2783_v35 = vpop.f32.mrb[9].mxu0  ;;  %v3116_v31 = vsub.s32 (!%p3655_p7), 2, %v3107_v55 }
 0x1b2   : > { %v2784_v37 = vadd.f32 %v2783_v35, %v4164_v14  ;;  %v2824_v17 = vpop.f32.mrb[9].mxu1  ;;  %v2785_v38 = vpop.f32.mrb[10].mxu0 }
 0x1b3   : > { %v2823_v39 = vadd.f32 %v2822_v34, %v2782_v33  ;;  %v2826_v41 = vpop.f32.mrb[10].mxu1  ;;  %v2786_v42 = vpop.f32.mrb[11].mxu0  ;;  %v3120_v33 = vsub.s32 (!%p3655_p7), 3, %v3107_v55  ;;  %v3136_v38 = vsub.s32 (!%p3655_p7), 7, %v3107_v55 }
 0x1b4   : > { %v2825_v43 = vadd.f32 %v2824_v17, %v2784_v37  ;;  %v2827_v60 = vpop.f32.mrb[11].mxu1  ;;  %v3128_v37 = vsub.s32 (!%p3655_p7), 5, %v3107_v55  ;;  %v3132_v17 = vsub.s32 (!%p3655_p7), 6, %v3107_v55  ;;  %v3117_v41 = vrot.slane (!%p3655_p7), %v3104_v25, %v3116_v31 }
 0x1b5   : > { %v3077_v44 = vadd.f32 %v2823_v39, %v261_v36  ;;  %v3124_v36 = vsub.s32 (!%p3655_p7), 4, %v3107_v55  ;;  %v3109_v39 = vrot.slane (!%p3655_p7), %v3104_v25, %v3108_v26  ;;  %v3121_v42 = vrot.slane (!%p3655_p7), %v3104_v25, %v3120_v33 }
 0x1b6   : > { %v3078_v21 = vadd.f32 %v2825_v43, %v262_v40  ;;  %v3113_v40 = vrot.slane (!%p3655_p7), %v3104_v25, %v3112_v29 }
 0x1b7   : > { %3085 = vst [vmem:[#allocation2 + $0x10] sm:$0xff] %v3077_v44 }
 0x1b8   : > { %3086 = vst [vmem:[#allocation2 + $0x18] sm:$0xff] %v3078_v21  ;;  %v3125_v21 = vrot.slane (!%p3655_p7), %v3104_v25, %v3124_v36 }
 0x1be   : > { %v3098_v30 = vld [vmem:[#allocation2 + $0x10] sm:$0xff] (!%p3655_p7) }
 0x1bf   : > { %v3099_v34 = vld [vmem:[#allocation2 + $0x18] sm:$0xff] (!%p3655_p7) }
 0x1f0   : > { %v2863_v32 = vpop.f32.mrb[12].mxu0 }
 0x1f1   : > { %v2904_v28 = vpop.f32.mrb[12].mxu1  ;;  %v2865_v8 = vpop.f32.mrb[13].mxu0 }
 0x1f2   : > { %v2905_v45 = vadd.f32 %v2904_v28, %v2863_v32  ;;  %v2906_v46 = vpop.f32.mrb[13].mxu1  ;;  %v2867_v47 = vpop.f32.mrb[14].mxu0  ;;  %v3129_v32 = vrot.slane (!%p3655_p7), %v3104_v25, %v3128_v37  ;;  %v3133_v28 = vrot.slane (!%p3655_p7), %v3104_v25, %v3132_v17 }
 0x1f3   : > { %v2907_v48 = vadd.f32 %v2906_v46, %v2865_v8  ;;  %v2908_v14 = vpop.f32.mrb[14].mxu1  ;;  %v2868_v49 = vpop.f32.mrb[15].mxu0  ;;  %v3137_v8 = vrot.slane (!%p3655_p7), %v3104_v25, %v3136_v38  ;;  %v3147_v46 = vadd.f32 (!%p3655_p7), %v3113_v40, %v3097_v27  ;;  %v3148_v47 = vadd.f32 (!%p3655_p7), %v3117_v41, %v3098_v30 }
 0x1f4   : > { %v2909_v50 = vpop.f32.mrb[15].mxu1 }
 0x230   : > { %v2945_v53 = vpop.f32.mrb[16].mxu0 }
 0x231   : > { %v2946_v54 = vadd.f32 %v2945_v53, %v2905_v45  ;;  %v2986_v56 = vpop.f32.mrb[16].mxu1  ;;  %v2947_v58 = vpop.f32.mrb[17].mxu0  ;;  %v3146_v45 = vadd.f32 (!%p3655_p7), %v3109_v39, %v3096_v24 }
 0x232   : > { %v2948_v61 = vadd.f32 %v2947_v58, %v2907_v48  ;;  %v2988_v62 = vpop.f32.mrb[17].mxu1  ;;  %v2949_v63 = vpop.f32.mrb[18].mxu0  ;;  %v3149_v48 = vadd.f32 (!%p3655_p7), %v3121_v42, %v3099_v34 }
 0x233   : > { %v3079_v0 = vadd.f32 %v2946_v54, %v263_v52  ;;  %v2990_v1 = vpop.f32.mrb[18].mxu1  ;;  %v2950_v2 = vpop.f32.mrb[19].mxu0  ;;  %v3154_v53 = vmax.f32 (!%p3655_p7), %v3146_v45, 0.0  ;;  %v3155_v54 = vmax.f32 (!%p3655_p7), %v3147_v46, 0.0 }
 0x234   : > { %v3080_v3 = vadd.f32 %v2948_v61, %v264_v57  ;;  %v2991_v4 = vpop.f32.mrb[19].mxu1  ;;  %v3157_v57 = vmax.f32 (!%p3655_p7), %v3149_v48, 0.0 }
 0x235   : > { %3087 = vst [vmem:[#allocation2 + $0x20] sm:$0xff] %v3079_v0  ;;  %3162 = vst [vmem:[%s4244_s3] sm:$0xff] (!%p3655_p7), %v3154_v53 }
 0x236   : > { %3088 = vst [vmem:[#allocation2 + $0x28] sm:$0xff] %v3080_v3  ;;  %3163 = vst [vmem:[%s4244_s3 + $0x8] sm:$0xff] (!%p3655_p7), %v3155_v54 }
 0x237   : > { %3165 = vst [vmem:[%s4244_s3 + $0x18] sm:$0xff] (!%p3655_p7), %v3157_v57 }
 0x23c   : > { %v3100_v35 = vld [vmem:[#allocation2 + $0x20] sm:$0xff] (!%p3655_p7) }
 0x23d   : > { %v3101_v43 = vld [vmem:[#allocation2 + $0x28] sm:$0xff] (!%p3655_p7)  ;;  %v3150_v14 = vadd.f32 (!%p3655_p7), %v3125_v21, %v3100_v35 }
 0x23e   : > { %v3151_v49 = vadd.f32 (!%p3655_p7), %v3129_v32, %v3101_v43 }
 0x23f   : > { %v3158_v58 = vmax.f32 (!%p3655_p7), %v3150_v14, 0.0 }
 0x240   : > { %v3159_v61 = vmax.f32 (!%p3655_p7), %v3151_v49, 0.0 }
 0x241   : > { %3166 = vst [vmem:[%s4244_s3 + $0x20] sm:$0xff] (!%p3655_p7), %v3158_v58 }
 0x242   : > { %3167 = vst [vmem:[%s4244_s3 + $0x28] sm:$0xff] (!%p3655_p7), %v3159_v61 }
 0x270   : > { %v3027_v5 = vpop.f32.mrb[20].mxu0 }
 0x271   : > { %v3028_v6 = vadd.f32 %v3027_v5, %v2986_v56  ;;  %v3068_v7 = vpop.f32.mrb[20].mxu1  ;;  %v3029_v9 = vpop.f32.mrb[21].mxu0  ;;  %v3156_v56 = vmax.f32 (!%p3655_p7), %v3148_v47, 0.0 }
 0x272   : > { %v3030_v11 = vadd.f32 %v3029_v9, %v2988_v62  ;;  %v3070_v12 = vpop.f32.mrb[21].mxu1  ;;  %v3031_v13 = vpop.f32.mrb[22].mxu0  ;;  %3095 = sbr.rel (%p3655_p7) target bundleno = 645 (0x285), region = 40 }
 0x273   : > { %v3069_v15 = vadd.f32 %v3068_v7, %v3028_v6  ;;  %v3072_v18 = vpop.f32.mrb[22].mxu1  ;;  %v3032_v19 = vpop.f32.mrb[23].mxu0  ;;  %3164 = vst [vmem:[%s4244_s3 + $0x10] sm:$0xff] (!%p3655_p7), %v3156_v56 }
 0x274   : > { %v3071_v51 = vadd.f32 %v3070_v12, %v3030_v11  ;;  %v3073_v20 = vpop.f32.mrb[23].mxu1 }
 0x275   : > { %v3081_v22 = vadd.f32 %v3069_v15, %v265_v10 }
 0x276   : > { %v3082_v23 = vadd.f32 %v3071_v51, %v266_v16 }
 0x277   : > { %3089 = vst [vmem:[#allocation2 + $0x30] sm:$0xff] %v3081_v22 }
 0x278   : > { %3091 = vst.msk [vmem:[#allocation2 + $0x38] sm:$0xff] %vm3090_vm1, %v3082_v23 }
 0x27e   : > { %v3102_v60 = vld [vmem:[#allocation2 + $0x30] sm:$0xff] }
 0x27f   : > { %v3103_v44 = vld [vmem:[#allocation2 + $0x38] sm:$0xff]  ;;  %v3152_v50 = vadd.f32 %v3133_v28, %v3102_v60 }
 0x280   : > { %v3153_v52 = vadd.f32 %v3137_v8, %v3103_v44 }
 0x281   : > { %v3160_v62 = vmax.f32 %v3152_v50, 0.0 }
 0x282   : > { %v3161_v63 = vmax.f32 %v3153_v52, 0.0 }
 0x283   : > { %3168 = vst [vmem:[%s4244_s3 + $0x30] sm:$0xff] %v3160_v62 }
 0x284   : > { %3169 = vst.msk [vmem:[%s4244_s3 + $0x38] sm:$0xff] %vm3090_vm1, %v3161_v63 }
 0x285 PF: > { %s13_s14 = sadd.s32 1, %s3708_s14   ;;  %s4245_s12 = smov %s3704_s13 }
 0x286   : > { %p10_p8 = scmp.ge.s32.totalorder %s13_s14, 7   ;;  %s4246_s13 = smov %s4248_s15 }
 0x288   :  { %12 = sbr.rel (!%p10_p8) target bundleno = 2 (0x2), region = 76 }

// kernel: vae_forward.5
= control target key start
LH: loop header
LB: loop body
LE: loop exit
PB: predicated region body
PF: predicated region fallthrough
CT: control target
= control target key end

     0   :  { %8 = vsyncpa [#allocation4], 0  ;;  %s6450_s0 = inlined_call_operand.vmem [shape: f32[8,1000], index: 0, kind: input, shape index: {}]   ;;  %s6451_s1 = inlined_call_operand.vmem [shape: bf16[1000,3840], index: 1, kind: input, shape index: {}]   ;;  %s6452_s2 = inlined_call_operand.vmem [shape: f32[1,3840], index: 2, kind: input, shape index: {}]   ;;  %s6453_s3 = inlined_call_operand.hbm [shape: f32[8,3840], index: 3, kind: output, shape index: {}]  }
   0x1   :  { %10 = vsyncpa [#allocation4 + $0x1], 0  ;;  %s5098_s12 = smov 0   ;;  %s5100_s13 = smov 0  }
   0x2   :  { %s5102_s14 = smov 0   ;;  %s5104_s15 = smov 0  }
   0x3   :  { %s5106_s16 = smov 0   ;;  %s5108_s17 = smov 0  }
   0x4 LB: > { %s3939_s18 = sadd.s32 4294967295, %s5075_s17   ;;  %s3940_s19 = sadd.s32 4294967294, %s5075_s17   ;;  %s5075_s17 = sphi %s5108_s17, %s16_s17   ;;  %s5071_s16 = sphi %s5106_s16, %s6460_s16   ;;  %s5067_s15 = sphi %s5104_s15, %s6459_s15   ;;  %s5063_s14 = sphi %s5102_s14, %s6458_s14   ;;  %s5059_s13 = sphi %s5100_s13, %s6457_s13   ;;  %s5055_s12 = sphi %s5098_s12, %s6456_s12  }
   0x5   : > { %s28_s20 = sadd.s32 1, %s5071_s16  ;;  %s63_s21 = sadd.s32 1, %s5063_s14 }
   0x6   : > { %p30_p0 = scmp.ge.s32.totalorder %s28_s20, 5  ;;  %p70_p1 = scmp.ne.s32.totalorder %s5063_s14, %s5059_s13 }
   0x7   : > { %p71_p2 = scmp.eq.s32.totalorder %s5075_s17, 0  ;;  %p126_p3 = scmp.eq.s32.totalorder %s3939_s18, 4 }
   0x8   : > { %s6462_s20 = smov (%p30_p0, %s28_s20), 0  ;;  %p131_p6 = scmp.ne.s32.totalorder %s5059_s13, %s5055_s12 }
   0x9   : > { %p72_p4 = por %p71_p2, %p70_p1  ;;  %p5137_p5 = por %p126_p3, %p70_p1 }
   0xa   : > { %s59_s23 = ssub.s32 %s5071_s16, %s6462_s20  ;;  %p132_p8 = scmp.eq.s32.totalorder %s3940_s19, 4 }
   0xb   : > { %p61_p7 = scmp.eq.s32.totalorder %s59_s23, 0  ;;  %p3943_p10 = scmp.ge.s32.totalorder %s5075_s17, 5 }
   0xc   : > { %p5148_p9 = por %p132_p8, %p131_p6 }
   0xd   : > { %s5146_s24 = scalar_select %p61_p7, %s5063_s14, %s63_s21  }
   0xe   : > { %157 = sbr.rel (%p3943_p10) target bundleno = 214 (0xd6), region = 20 }
  0x15   : > { %160 = sbr.rel (!%p72_p4) target bundleno = 214 (0xd6), region = 24  ;;  %s162_s26 = sand.u32 (%p72_p4), 1, %s5063_s14  }
  0x16   : > { %s4333_s27 = smul.u32 (%p72_p4), 24, %s5071_s16 }
  0x17   : > { %s4375_s28 = smul.u32 (%p72_p4), 3000, %s162_s26 }
  0x18   : > { %s5158_s4 = scalar_lea.vmem (%p72_p4), %s6451_s1, %s4333_s27 }
  0x19   : > { %v183_v0 = vld [vmem:[%s5158_s4] sm:$0xff] (%p72_p4)  ;;  %v185_v1 = vld [vmem:[%s5158_s4 + $0x8] sm:$0xff] (%p72_p4)  ;;  %v187_v2 = vld [vmem:[%s5158_s4 + $0x10] sm:$0xff] (%p72_p4)  ;;  %s5163_s5 = scalar_lea.vmem (%p72_p4), [#allocation2], %s4375_s28 }
  0x1a   : > { %184 = vst [vmem:[%s5163_s5] sm:$0xff] (%p72_p4), %v183_v0  ;;  %186 = vst [vmem:[%s5163_s5 + $0x8] sm:$0xff] (%p72_p4), %v185_v1  ;;  %v189_v3 = vld [vmem:[%s5158_s4 + $0x78] sm:$0xff] (%p72_p4)  ;;  %v191_v4 = vld [vmem:[%s5158_s4 + $0x80] sm:$0xff] (%p72_p4) }
  0x1b   : > { %188 = vst [vmem:[%s5163_s5 + $0x10] sm:$0xff] (%p72_p4), %v187_v2  ;;  %v193_v5 = vld [vmem:[%s5158_s4 + $0x88] sm:$0xff] (%p72_p4)  ;;  %190 = vst [vmem:[%s5163_s5 + $0x18] sm:$0xff] (%p72_p4), %v189_v3  ;;  %v195_v6 = vld [vmem:[%s5158_s4 + $0xf0] sm:$0xff] (%p72_p4) }
  0x1c   : > { %192 = vst [vmem:[%s5163_s5 + $0x20] sm:$0xff] %v191_v4  ;;  %194 = vst [vmem:[%s5163_s5 + $0x28] sm:$0xff] %v193_v5  ;;  %v197_v7 = vld [vmem:[%s5158_s4 + $0xf8] sm:$0xff]  ;;  %v199_v8 = vld [vmem:[%s5158_s4 + $0x100] sm:$0xff] }
  0x1d   : > { %196 = vst [vmem:[%s5163_s5 + $0x30] sm:$0xff] %v195_v6  ;;  %198 = vst [vmem:[%s5163_s5 + $0x38] sm:$0xff] %v197_v7  ;;  %v201_v9 = vld [vmem:[%s5158_s4 + $0x168] sm:$0xff]  ;;  %v203_v10 = vld [vmem:[%s5158_s4 + $0x170] sm:$0xff] }
  0x1e   : > { %200 = vst [vmem:[%s5163_s5 + $0x40] sm:$0xff] %v199_v8  ;;  %v205_v11 = vld [vmem:[%s5158_s4 + $0x178] sm:$0xff]  ;;  %202 = vst [vmem:[%s5163_s5 + $0x48] sm:$0xff] %v201_v9  ;;  %v207_v12 = vld [vmem:[%s5158_s4 + $0x1e0] sm:$0xff] }
  0x1f   : > { %204 = vst [vmem:[%s5163_s5 + $0x50] sm:$0xff] %v203_v10  ;;  %206 = vst [vmem:[%s5163_s5 + $0x58] sm:$0xff] %v205_v11  ;;  %v209_v13 = vld [vmem:[%s5158_s4 + $0x1e8] sm:$0xff]  ;;  %v211_v14 = vld [vmem:[%s5158_s4 + $0x1f0] sm:$0xff] }
  0x20   : > { %208 = vst [vmem:[%s5163_s5 + $0x60] sm:$0xff] %v207_v12  ;;  %210 = vst [vmem:[%s5163_s5 + $0x68] sm:$0xff] %v209_v13  ;;  %v213_v15 = vld [vmem:[%s5158_s4 + $0x258] sm:$0xff]  ;;  %v215_v16 = vld [vmem:[%s5158_s4 + $0x260] sm:$0xff] }
  0x21   : > { %212 = vst [vmem:[%s5163_s5 + $0x70] sm:$0xff] %v211_v14  ;;  %v217_v17 = vld [vmem:[%s5158_s4 + $0x268] sm:$0xff]  ;;  %214 = vst [vmem:[%s5163_s5 + $0x78] sm:$0xff] %v213_v15  ;;  %v219_v18 = vld [vmem:[%s5158_s4 + $0x2d0] sm:$0xff] }
  0x22   : > { %216 = vst [vmem:[%s5163_s5 + $0x80] sm:$0xff] %v215_v16  ;;  %218 = vst [vmem:[%s5163_s5 + $0x88] sm:$0xff] %v217_v17  ;;  %v221_v19 = vld [vmem:[%s5158_s4 + $0x2d8] sm:$0xff]  ;;  %v223_v20 = vld [vmem:[%s5158_s4 + $0x2e0] sm:$0xff] }
  0x23   : > { %220 = vst [vmem:[%s5163_s5 + $0x90] sm:$0xff] %v219_v18  ;;  %222 = vst [vmem:[%s5163_s5 + $0x98] sm:$0xff] %v221_v19  ;;  %v225_v21 = vld [vmem:[%s5158_s4 + $0x348] sm:$0xff]  ;;  %v227_v22 = vld [vmem:[%s5158_s4 + $0x350] sm:$0xff] }
  0x24   : > { %224 = vst [vmem:[%s5163_s5 + $0xa0] sm:$0xff] %v223_v20  ;;  %v229_v23 = vld [vmem:[%s5158_s4 + $0x358] sm:$0xff]  ;;  %226 = vst [vmem:[%s5163_s5 + $0xa8] sm:$0xff] %v225_v21  ;;  %v231_v24 = vld [vmem:[%s5158_s4 + $0x3c0] sm:$0xff] }
  0x25   : > { %228 = vst [vmem:[%s5163_s5 + $0xb0] sm:$0xff] %v227_v22  ;;  %230 = vst [vmem:[%s5163_s5 + $0xb8] sm:$0xff] %v229_v23  ;;  %v233_v25 = vld [vmem:[%s5158_s4 + $0x3c8] sm:$0xff]  ;;  %v235_v26 = vld [vmem:[%s5158_s4 + $0x3d0] sm:$0xff] }
  0x26   : > { %232 = vst [vmem:[%s5163_s5 + $0xc0] sm:$0xff] %v231_v24  ;;  %234 = vst [vmem:[%s5163_s5 + $0xc8] sm:$0xff] %v233_v25  ;;  %v237_v27 = vld [vmem:[%s5158_s4 + $0x438] sm:$0xff]  ;;  %v239_v28 = vld [vmem:[%s5158_s4 + $0x440] sm:$0xff] }
  0x27   : > { %236 = vst [vmem:[%s5163_s5 + $0xd0] sm:$0xff] %v235_v26  ;;  %v241_v29 = vld [vmem:[%s5158_s4 + $0x448] sm:$0xff]  ;;  %238 = vst [vmem:[%s5163_s5 + $0xd8] sm:$0xff] %v237_v27  ;;  %v243_v30 = vld [vmem:[%s5158_s4 + $0x4b0] sm:$0xff] }
  0x28   : > { %240 = vst [vmem:[%s5163_s5 + $0xe0] sm:$0xff] %v239_v28  ;;  %242 = vst [vmem:[%s5163_s5 + $0xe8] sm:$0xff] %v241_v29  ;;  %v245_v31 = vld [vmem:[%s5158_s4 + $0x4b8] sm:$0xff]  ;;  %v247_v32 = vld [vmem:[%s5158_s4 + $0x4c0] sm:$0xff] }
  0x29   : > { %244 = vst [vmem:[%s5163_s5 + $0xf0] sm:$0xff] %v243_v30  ;;  %246 = vst [vmem:[%s5163_s5 + $0xf8] sm:$0xff] %v245_v31  ;;  %v249_v33 = vld [vmem:[%s5158_s4 + $0x528] sm:$0xff]  ;;  %v251_v34 = vld [vmem:[%s5158_s4 + $0x530] sm:$0xff] }
  0x2a   : > { %248 = vst [vmem:[%s5163_s5 + $0x100] sm:$0xff] %v247_v32  ;;  %v253_v35 = vld [vmem:[%s5158_s4 + $0x538] sm:$0xff]  ;;  %250 = vst [vmem:[%s5163_s5 + $0x108] sm:$0xff] %v249_v33  ;;  %v255_v36 = vld [vmem:[%s5158_s4 + $0x5a0] sm:$0xff] }
  0x2b   : > { %252 = vst [vmem:[%s5163_s5 + $0x110] sm:$0xff] %v251_v34  ;;  %254 = vst [vmem:[%s5163_s5 + $0x118] sm:$0xff] %v253_v35  ;;  %v257_v37 = vld [vmem:[%s5158_s4 + $0x5a8] sm:$0xff]  ;;  %v259_v38 = vld [vmem:[%s5158_s4 + $0x5b0] sm:$0xff] }
  0x2c   : > { %256 = vst [vmem:[%s5163_s5 + $0x120] sm:$0xff] %v255_v36  ;;  %258 = vst [vmem:[%s5163_s5 + $0x128] sm:$0xff] %v257_v37  ;;  %v261_v39 = vld [vmem:[%s5158_s4 + $0x618] sm:$0xff]  ;;  %v263_v40 = vld [vmem:[%s5158_s4 + $0x620] sm:$0xff] }
  0x2d   : > { %260 = vst [vmem:[%s5163_s5 + $0x130] sm:$0xff] %v259_v38  ;;  %v265_v41 = vld [vmem:[%s5158_s4 + $0x628] sm:$0xff]  ;;  %262 = vst [vmem:[%s5163_s5 + $0x138] sm:$0xff] %v261_v39  ;;  %v267_v42 = vld [vmem:[%s5158_s4 + $0x690] sm:$0xff] }
  0x2e   : > { %264 = vst [vmem:[%s5163_s5 + $0x140] sm:$0xff] %v263_v40  ;;  %266 = vst [vmem:[%s5163_s5 + $0x148] sm:$0xff] %v265_v41  ;;  %v269_v43 = vld [vmem:[%s5158_s4 + $0x698] sm:$0xff]  ;;  %v271_v44 = vld [vmem:[%s5158_s4 + $0x6a0] sm:$0xff] }
  0x2f   : > { %268 = vst [vmem:[%s5163_s5 + $0x150] sm:$0xff] %v267_v42  ;;  %270 = vst [vmem:[%s5163_s5 + $0x158] sm:$0xff] %v269_v43  ;;  %v273_v45 = vld [vmem:[%s5158_s4 + $0x708] sm:$0xff]  ;;  %v275_v46 = vld [vmem:[%s5158_s4 + $0x710] sm:$0xff] }
  0x30   : > { %272 = vst [vmem:[%s5163_s5 + $0x160] sm:$0xff] %v271_v44  ;;  %v277_v47 = vld [vmem:[%s5158_s4 + $0x718] sm:$0xff]  ;;  %274 = vst [vmem:[%s5163_s5 + $0x168] sm:$0xff] %v273_v45  ;;  %v279_v48 = vld [vmem:[%s5158_s4 + $0x780] sm:$0xff] }
  0x31   : > { %276 = vst [vmem:[%s5163_s5 + $0x170] sm:$0xff] %v275_v46  ;;  %278 = vst [vmem:[%s5163_s5 + $0x178] sm:$0xff] %v277_v47  ;;  %v281_v49 = vld [vmem:[%s5158_s4 + $0x788] sm:$0xff]  ;;  %v283_v50 = vld [vmem:[%s5158_s4 + $0x790] sm:$0xff] }
  0x32   : > { %280 = vst [vmem:[%s5163_s5 + $0x180] sm:$0xff] %v279_v48  ;;  %282 = vst [vmem:[%s5163_s5 + $0x188] sm:$0xff] %v281_v49  ;;  %v285_v51 = vld [vmem:[%s5158_s4 + $0x7f8] sm:$0xff]  ;;  %v287_v52 = vld [vmem:[%s5158_s4 + $0x800] sm:$0xff] }
  0x33   : > { %284 = vst [vmem:[%s5163_s5 + $0x190] sm:$0xff] %v283_v50  ;;  %v289_v53 = vld [vmem:[%s5158_s4 + $0x808] sm:$0xff]  ;;  %286 = vst [vmem:[%s5163_s5 + $0x198] sm:$0xff] %v285_v51  ;;  %v291_v54 = vld [vmem:[%s5158_s4 + $0x870] sm:$0xff] }
  0x34   : > { %288 = vst [vmem:[%s5163_s5 + $0x1a0] sm:$0xff] %v287_v52  ;;  %290 = vst [vmem:[%s5163_s5 + $0x1a8] sm:$0xff] %v289_v53  ;;  %v293_v55 = vld [vmem:[%s5158_s4 + $0x878] sm:$0xff]  ;;  %v295_v56 = vld [vmem:[%s5158_s4 + $0x880] sm:$0xff] }
  0x35   : > { %292 = vst [vmem:[%s5163_s5 + $0x1b0] sm:$0xff] %v291_v54  ;;  %294 = vst [vmem:[%s5163_s5 + $0x1b8] sm:$0xff] %v293_v55  ;;  %v297_v57 = vld [vmem:[%s5158_s4 + $0x8e8] sm:$0xff]  ;;  %v299_v58 = vld [vmem:[%s5158_s4 + $0x8f0] sm:$0xff] }
  0x36   : > { %296 = vst [vmem:[%s5163_s5 + $0x1c0] sm:$0xff] %v295_v56  ;;  %v301_v59 = vld [vmem:[%s5158_s4 + $0x8f8] sm:$0xff]  ;;  %298 = vst [vmem:[%s5163_s5 + $0x1c8] sm:$0xff] %v297_v57  ;;  %v303_v60 = vld [vmem:[%s5158_s4 + $0x960] sm:$0xff] }
  0x37   : > { %300 = vst [vmem:[%s5163_s5 + $0x1d0] sm:$0xff] %v299_v58  ;;  %302 = vst [vmem:[%s5163_s5 + $0x1d8] sm:$0xff] %v301_v59  ;;  %v305_v61 = vld [vmem:[%s5158_s4 + $0x968] sm:$0xff]  ;;  %v307_v62 = vld [vmem:[%s5158_s4 + $0x970] sm:$0xff] }
  0x38   : > { %304 = vst [vmem:[%s5163_s5 + $0x1e0] sm:$0xff] %v303_v60  ;;  %306 = vst [vmem:[%s5163_s5 + $0x1e8] sm:$0xff] %v305_v61  ;;  %v309_v63 = vld [vmem:[%s5158_s4 + $0x9d8] sm:$0xff]  ;;  %v311_v0 = vld [vmem:[%s5158_s4 + $0x9e0] sm:$0xff] }
  0x39   : > { %308 = vst [vmem:[%s5163_s5 + $0x1f0] sm:$0xff] %v307_v62  ;;  %v313_v1 = vld [vmem:[%s5158_s4 + $0x9e8] sm:$0xff]  ;;  %310 = vst [vmem:[%s5163_s5 + $0x1f8] sm:$0xff] %v309_v63  ;;  %v315_v2 = vld [vmem:[%s5158_s4 + $0xa50] sm:$0xff] }
  0x3a   : > { %312 = vst [vmem:[%s5163_s5 + $0x200] sm:$0xff] %v311_v0  ;;  %314 = vst [vmem:[%s5163_s5 + $0x208] sm:$0xff] %v313_v1  ;;  %v317_v3 = vld [vmem:[%s5158_s4 + $0xa58] sm:$0xff]  ;;  %v319_v4 = vld [vmem:[%s5158_s4 + $0xa60] sm:$0xff] }
  0x3b   : > { %316 = vst [vmem:[%s5163_s5 + $0x210] sm:$0xff] %v315_v2  ;;  %318 = vst [vmem:[%s5163_s5 + $0x218] sm:$0xff] %v317_v3  ;;  %v321_v5 = vld [vmem:[%s5158_s4 + $0xac8] sm:$0xff]  ;;  %v323_v6 = vld [vmem:[%s5158_s4 + $0xad0] sm:$0xff] }
  0x3c   : > { %320 = vst [vmem:[%s5163_s5 + $0x220] sm:$0xff] %v319_v4  ;;  %v325_v7 = vld [vmem:[%s5158_s4 + $0xad8] sm:$0xff]  ;;  %322 = vst [vmem:[%s5163_s5 + $0x228] sm:$0xff] %v321_v5  ;;  %v327_v8 = vld [vmem:[%s5158_s4 + $0xb40] sm:$0xff] }
  0x3d   : > { %324 = vst [vmem:[%s5163_s5 + $0x230] sm:$0xff] %v323_v6  ;;  %326 = vst [vmem:[%s5163_s5 + $0x238] sm:$0xff] %v325_v7  ;;  %v329_v9 = vld [vmem:[%s5158_s4 + $0xb48] sm:$0xff]  ;;  %v331_v10 = vld [vmem:[%s5158_s4 + $0xb50] sm:$0xff] }
  0x3e   : > { %328 = vst [vmem:[%s5163_s5 + $0x240] sm:$0xff] %v327_v8  ;;  %330 = vst [vmem:[%s5163_s5 + $0x248] sm:$0xff] %v329_v9  ;;  %v333_v11 = vld [vmem:[%s5158_s4 + $0xbb8] sm:$0xff]  ;;  %v335_v12 = vld [vmem:[%s5158_s4 + $0xbc0] sm:$0xff] }
  0x3f   : > { %332 = vst [vmem:[%s5163_s5 + $0x250] sm:$0xff] %v331_v10  ;;  %v337_v13 = vld [vmem:[%s5158_s4 + $0xbc8] sm:$0xff]  ;;  %334 = vst [vmem:[%s5163_s5 + $0x258] sm:$0xff] %v333_v11  ;;  %v339_v14 = vld [vmem:[%s5158_s4 + $0xc30] sm:$0xff] }
  0x40   : > { %336 = vst [vmem:[%s5163_s5 + $0x260] sm:$0xff] %v335_v12  ;;  %338 = vst [vmem:[%s5163_s5 + $0x268] sm:$0xff] %v337_v13  ;;  %v341_v15 = vld [vmem:[%s5158_s4 + $0xc38] sm:$0xff]  ;;  %v343_v16 = vld [vmem:[%s5158_s4 + $0xc40] sm:$0xff] }
  0x41   : > { %340 = vst [vmem:[%s5163_s5 + $0x270] sm:$0xff] %v339_v14  ;;  %342 = vst [vmem:[%s5163_s5 + $0x278] sm:$0xff] %v341_v15  ;;  %v345_v17 = vld [vmem:[%s5158_s4 + $0xca8] sm:$0xff]  ;;  %v347_v18 = vld [vmem:[%s5158_s4 + $0xcb0] sm:$0xff] }
  0x42   : > { %344 = vst [vmem:[%s5163_s5 + $0x280] sm:$0xff] %v343_v16  ;;  %v349_v19 = vld [vmem:[%s5158_s4 + $0xcb8] sm:$0xff]  ;;  %346 = vst [vmem:[%s5163_s5 + $0x288] sm:$0xff] %v345_v17  ;;  %v351_v20 = vld [vmem:[%s5158_s4 + $0xd20] sm:$0xff] }
  0x43   : > { %348 = vst [vmem:[%s5163_s5 + $0x290] sm:$0xff] %v347_v18  ;;  %350 = vst [vmem:[%s5163_s5 + $0x298] sm:$0xff] %v349_v19  ;;  %v353_v21 = vld [vmem:[%s5158_s4 + $0xd28] sm:$0xff]  ;;  %v355_v22 = vld [vmem:[%s5158_s4 + $0xd30] sm:$0xff] }
  0x44   : > { %352 = vst [vmem:[%s5163_s5 + $0x2a0] sm:$0xff] %v351_v20  ;;  %354 = vst [vmem:[%s5163_s5 + $0x2a8] sm:$0xff] %v353_v21  ;;  %v357_v23 = vld [vmem:[%s5158_s4 + $0xd98] sm:$0xff]  ;;  %v359_v24 = vld [vmem:[%s5158_s4 + $0xda0] sm:$0xff] }
  0x45   : > { %356 = vst [vmem:[%s5163_s5 + $0x2b0] sm:$0xff] %v355_v22  ;;  %v361_v25 = vld [vmem:[%s5158_s4 + $0xda8] sm:$0xff]  ;;  %358 = vst [vmem:[%s5163_s5 + $0x2b8] sm:$0xff] %v357_v23  ;;  %v363_v26 = vld [vmem:[%s5158_s4 + $0xe10] sm:$0xff] }
  0x46   : > { %360 = vst [vmem:[%s5163_s5 + $0x2c0] sm:$0xff] %v359_v24  ;;  %362 = vst [vmem:[%s5163_s5 + $0x2c8] sm:$0xff] %v361_v25  ;;  %v365_v27 = vld [vmem:[%s5158_s4 + $0xe18] sm:$0xff]  ;;  %v367_v28 = vld [vmem:[%s5158_s4 + $0xe20] sm:$0xff] }
  0x47   : > { %364 = vst [vmem:[%s5163_s5 + $0x2d0] sm:$0xff] %v363_v26  ;;  %366 = vst [vmem:[%s5163_s5 + $0x2d8] sm:$0xff] %v365_v27  ;;  %v369_v29 = vld [vmem:[%s5158_s4 + $0xe88] sm:$0xff]  ;;  %v371_v30 = vld [vmem:[%s5158_s4 + $0xe90] sm:$0xff] }
  0x48   : > { %368 = vst [vmem:[%s5163_s5 + $0x2e0] sm:$0xff] %v367_v28  ;;  %v373_v31 = vld [vmem:[%s5158_s4 + $0xe98] sm:$0xff]  ;;  %370 = vst [vmem:[%s5163_s5 + $0x2e8] sm:$0xff] %v369_v29  ;;  %v375_v32 = vld [vmem:[%s5158_s4 + $0xf00] sm:$0xff] }
  0x49   : > { %372 = vst [vmem:[%s5163_s5 + $0x2f0] sm:$0xff] %v371_v30  ;;  %374 = vst [vmem:[%s5163_s5 + $0x2f8] sm:$0xff] %v373_v31  ;;  %v377_v33 = vld [vmem:[%s5158_s4 + $0xf08] sm:$0xff]  ;;  %v379_v34 = vld [vmem:[%s5158_s4 + $0xf10] sm:$0xff] }
  0x4a   : > { %376 = vst [vmem:[%s5163_s5 + $0x300] sm:$0xff] %v375_v32  ;;  %378 = vst [vmem:[%s5163_s5 + $0x308] sm:$0xff] %v377_v33  ;;  %v381_v35 = vld [vmem:[%s5158_s4 + $0xf78] sm:$0xff]  ;;  %v383_v36 = vld [vmem:[%s5158_s4 + $0xf80] sm:$0xff] }
  0x4b   : > { %380 = vst [vmem:[%s5163_s5 + $0x310] sm:$0xff] %v379_v34  ;;  %v385_v37 = vld [vmem:[%s5158_s4 + $0xf88] sm:$0xff]  ;;  %382 = vst [vmem:[%s5163_s5 + $0x318] sm:$0xff] %v381_v35  ;;  %v387_v38 = vld [vmem:[%s5158_s4 + $0xff0] sm:$0xff] }
  0x4c   : > { %384 = vst [vmem:[%s5163_s5 + $0x320] sm:$0xff] %v383_v36  ;;  %386 = vst [vmem:[%s5163_s5 + $0x328] sm:$0xff] %v385_v37  ;;  %v389_v39 = vld [vmem:[%s5158_s4 + $0xff8] sm:$0xff]  ;;  %v391_v40 = vld [vmem:[%s5158_s4 + $0x1000] sm:$0xff] }
  0x4d   : > { %388 = vst [vmem:[%s5163_s5 + $0x330] sm:$0xff] %v387_v38  ;;  %390 = vst [vmem:[%s5163_s5 + $0x338] sm:$0xff] %v389_v39  ;;  %v393_v41 = vld [vmem:[%s5158_s4 + $0x1068] sm:$0xff]  ;;  %v395_v42 = vld [vmem:[%s5158_s4 + $0x1070] sm:$0xff] }
  0x4e   : > { %392 = vst [vmem:[%s5163_s5 + $0x340] sm:$0xff] %v391_v40  ;;  %v397_v43 = vld [vmem:[%s5158_s4 + $0x1078] sm:$0xff]  ;;  %394 = vst [vmem:[%s5163_s5 + $0x348] sm:$0xff] %v393_v41  ;;  %v399_v44 = vld [vmem:[%s5158_s4 + $0x10e0] sm:$0xff] }
  0x4f   : > { %396 = vst [vmem:[%s5163_s5 + $0x350] sm:$0xff] %v395_v42  ;;  %398 = vst [vmem:[%s5163_s5 + $0x358] sm:$0xff] %v397_v43  ;;  %v401_v45 = vld [vmem:[%s5158_s4 + $0x10e8] sm:$0xff]  ;;  %v403_v46 = vld [vmem:[%s5158_s4 + $0x10f0] sm:$0xff] }
  0x50   : > { %400 = vst [vmem:[%s5163_s5 + $0x360] sm:$0xff] %v399_v44  ;;  %402 = vst [vmem:[%s5163_s5 + $0x368] sm:$0xff] %v401_v45  ;;  %v405_v47 = vld [vmem:[%s5158_s4 + $0x1158] sm:$0xff]  ;;  %v407_v48 = vld [vmem:[%s5158_s4 + $0x1160] sm:$0xff] }
  0x51   : > { %404 = vst [vmem:[%s5163_s5 + $0x370] sm:$0xff] %v403_v46  ;;  %v409_v49 = vld [vmem:[%s5158_s4 + $0x1168] sm:$0xff]  ;;  %406 = vst [vmem:[%s5163_s5 + $0x378] sm:$0xff] %v405_v47  ;;  %v411_v50 = vld [vmem:[%s5158_s4 + $0x11d0] sm:$0xff] }
  0x52   : > { %408 = vst [vmem:[%s5163_s5 + $0x380] sm:$0xff] %v407_v48  ;;  %410 = vst [vmem:[%s5163_s5 + $0x388] sm:$0xff] %v409_v49  ;;  %v413_v51 = vld [vmem:[%s5158_s4 + $0x11d8] sm:$0xff]  ;;  %v415_v52 = vld [vmem:[%s5158_s4 + $0x11e0] sm:$0xff] }
  0x53   : > { %412 = vst [vmem:[%s5163_s5 + $0x390] sm:$0xff] %v411_v50  ;;  %414 = vst [vmem:[%s5163_s5 + $0x398] sm:$0xff] %v413_v51  ;;  %v417_v53 = vld [vmem:[%s5158_s4 + $0x1248] sm:$0xff]  ;;  %v419_v54 = vld [vmem:[%s5158_s4 + $0x1250] sm:$0xff] }
  0x54   : > { %416 = vst [vmem:[%s5163_s5 + $0x3a0] sm:$0xff] %v415_v52  ;;  %v421_v55 = vld [vmem:[%s5158_s4 + $0x1258] sm:$0xff]  ;;  %418 = vst [vmem:[%s5163_s5 + $0x3a8] sm:$0xff] %v417_v53  ;;  %v423_v56 = vld [vmem:[%s5158_s4 + $0x12c0] sm:$0xff] }
  0x55   : > { %420 = vst [vmem:[%s5163_s5 + $0x3b0] sm:$0xff] %v419_v54  ;;  %422 = vst [vmem:[%s5163_s5 + $0x3b8] sm:$0xff] %v421_v55  ;;  %v425_v57 = vld [vmem:[%s5158_s4 + $0x12c8] sm:$0xff]  ;;  %v427_v58 = vld [vmem:[%s5158_s4 + $0x12d0] sm:$0xff] }
  0x56   : > { %424 = vst [vmem:[%s5163_s5 + $0x3c0] sm:$0xff] %v423_v56  ;;  %426 = vst [vmem:[%s5163_s5 + $0x3c8] sm:$0xff] %v425_v57  ;;  %v429_v59 = vld [vmem:[%s5158_s4 + $0x1338] sm:$0xff]  ;;  %v431_v60 = vld [vmem:[%s5158_s4 + $0x1340] sm:$0xff] }
  0x57   : > { %428 = vst [vmem:[%s5163_s5 + $0x3d0] sm:$0xff] %v427_v58  ;;  %v433_v61 = vld [vmem:[%s5158_s4 + $0x1348] sm:$0xff]  ;;  %430 = vst [vmem:[%s5163_s5 + $0x3d8] sm:$0xff] %v429_v59  ;;  %v435_v62 = vld [vmem:[%s5158_s4 + $0x13b0] sm:$0xff] }
  0x58   : > { %432 = vst [vmem:[%s5163_s5 + $0x3e0] sm:$0xff] %v431_v60  ;;  %434 = vst [vmem:[%s5163_s5 + $0x3e8] sm:$0xff] %v433_v61  ;;  %v437_v63 = vld [vmem:[%s5158_s4 + $0x13b8] sm:$0xff]  ;;  %v439_v0 = vld [vmem:[%s5158_s4 + $0x13c0] sm:$0xff] }
  0x59   : > { %436 = vst [vmem:[%s5163_s5 + $0x3f0] sm:$0xff] %v435_v62  ;;  %438 = vst [vmem:[%s5163_s5 + $0x3f8] sm:$0xff] %v437_v63  ;;  %v441_v1 = vld [vmem:[%s5158_s4 + $0x1428] sm:$0xff]  ;;  %v443_v2 = vld [vmem:[%s5158_s4 + $0x1430] sm:$0xff] }
  0x5a   : > { %440 = vst [vmem:[%s5163_s5 + $0x400] sm:$0xff] %v439_v0  ;;  %v445_v3 = vld [vmem:[%s5158_s4 + $0x1438] sm:$0xff]  ;;  %442 = vst [vmem:[%s5163_s5 + $0x408] sm:$0xff] %v441_v1  ;;  %v447_v4 = vld [vmem:[%s5158_s4 + $0x14a0] sm:$0xff] }
  0x5b   : > { %444 = vst [vmem:[%s5163_s5 + $0x410] sm:$0xff] %v443_v2  ;;  %446 = vst [vmem:[%s5163_s5 + $0x418] sm:$0xff] %v445_v3  ;;  %v449_v5 = vld [vmem:[%s5158_s4 + $0x14a8] sm:$0xff]  ;;  %v451_v6 = vld [vmem:[%s5158_s4 + $0x14b0] sm:$0xff] }
  0x5c   : > { %448 = vst [vmem:[%s5163_s5 + $0x420] sm:$0xff] %v447_v4  ;;  %450 = vst [vmem:[%s5163_s5 + $0x428] sm:$0xff] %v449_v5  ;;  %v453_v7 = vld [vmem:[%s5158_s4 + $0x1518] sm:$0xff]  ;;  %v455_v8 = vld [vmem:[%s5158_s4 + $0x1520] sm:$0xff] }
  0x5d   : > { %452 = vst [vmem:[%s5163_s5 + $0x430] sm:$0xff] %v451_v6  ;;  %v457_v9 = vld [vmem:[%s5158_s4 + $0x1528] sm:$0xff]  ;;  %454 = vst [vmem:[%s5163_s5 + $0x438] sm:$0xff] %v453_v7  ;;  %v459_v10 = vld [vmem:[%s5158_s4 + $0x1590] sm:$0xff] }
  0x5e   : > { %456 = vst [vmem:[%s5163_s5 + $0x440] sm:$0xff] %v455_v8  ;;  %458 = vst [vmem:[%s5163_s5 + $0x448] sm:$0xff] %v457_v9  ;;  %v461_v11 = vld [vmem:[%s5158_s4 + $0x1598] sm:$0xff]  ;;  %v463_v12 = vld [vmem:[%s5158_s4 + $0x15a0] sm:$0xff] }
  0x5f   : > { %460 = vst [vmem:[%s5163_s5 + $0x450] sm:$0xff] %v459_v10  ;;  %462 = vst [vmem:[%s5163_s5 + $0x458] sm:$0xff] %v461_v11  ;;  %v465_v13 = vld [vmem:[%s5158_s4 + $0x1608] sm:$0xff]  ;;  %v467_v14 = vld [vmem:[%s5158_s4 + $0x1610] sm:$0xff] }
  0x60   : > { %464 = vst [vmem:[%s5163_s5 + $0x460] sm:$0xff] %v463_v12  ;;  %v469_v15 = vld [vmem:[%s5158_s4 + $0x1618] sm:$0xff]  ;;  %466 = vst [vmem:[%s5163_s5 + $0x468] sm:$0xff] %v465_v13  ;;  %v471_v16 = vld [vmem:[%s5158_s4 + $0x1680] sm:$0xff] }
  0x61   : > { %468 = vst [vmem:[%s5163_s5 + $0x470] sm:$0xff] %v467_v14  ;;  %470 = vst [vmem:[%s5163_s5 + $0x478] sm:$0xff] %v469_v15  ;;  %v473_v17 = vld [vmem:[%s5158_s4 + $0x1688] sm:$0xff]  ;;  %v475_v18 = vld [vmem:[%s5158_s4 + $0x1690] sm:$0xff] }
  0x62   : > { %472 = vst [vmem:[%s5163_s5 + $0x480] sm:$0xff] %v471_v16  ;;  %474 = vst [vmem:[%s5163_s5 + $0x488] sm:$0xff] %v473_v17  ;;  %v477_v19 = vld [vmem:[%s5158_s4 + $0x16f8] sm:$0xff]  ;;  %v479_v20 = vld [vmem:[%s5158_s4 + $0x1700] sm:$0xff] }
  0x63   : > { %476 = vst [vmem:[%s5163_s5 + $0x490] sm:$0xff] %v475_v18  ;;  %v481_v21 = vld [vmem:[%s5158_s4 + $0x1708] sm:$0xff]  ;;  %478 = vst [vmem:[%s5163_s5 + $0x498] sm:$0xff] %v477_v19  ;;  %v483_v22 = vld [vmem:[%s5158_s4 + $0x1770] sm:$0xff] }
  0x64   : > { %480 = vst [vmem:[%s5163_s5 + $0x4a0] sm:$0xff] %v479_v20  ;;  %482 = vst [vmem:[%s5163_s5 + $0x4a8] sm:$0xff] %v481_v21  ;;  %v485_v23 = vld [vmem:[%s5158_s4 + $0x1778] sm:$0xff]  ;;  %v487_v24 = vld [vmem:[%s5158_s4 + $0x1780] sm:$0xff] }
  0x65   : > { %484 = vst [vmem:[%s5163_s5 + $0x4b0] sm:$0xff] %v483_v22  ;;  %486 = vst [vmem:[%s5163_s5 + $0x4b8] sm:$0xff] %v485_v23  ;;  %v489_v25 = vld [vmem:[%s5158_s4 + $0x17e8] sm:$0xff]  ;;  %v491_v26 = vld [vmem:[%s5158_s4 + $0x17f0] sm:$0xff] }
  0x66   : > { %488 = vst [vmem:[%s5163_s5 + $0x4c0] sm:$0xff] %v487_v24  ;;  %v493_v27 = vld [vmem:[%s5158_s4 + $0x17f8] sm:$0xff]  ;;  %490 = vst [vmem:[%s5163_s5 + $0x4c8] sm:$0xff] %v489_v25  ;;  %v495_v28 = vld [vmem:[%s5158_s4 + $0x1860] sm:$0xff] }
  0x67   : > { %492 = vst [vmem:[%s5163_s5 + $0x4d0] sm:$0xff] %v491_v26  ;;  %494 = vst [vmem:[%s5163_s5 + $0x4d8] sm:$0xff] %v493_v27  ;;  %v497_v29 = vld [vmem:[%s5158_s4 + $0x1868] sm:$0xff]  ;;  %v499_v30 = vld [vmem:[%s5158_s4 + $0x1870] sm:$0xff] }
  0x68   : > { %496 = vst [vmem:[%s5163_s5 + $0x4e0] sm:$0xff] %v495_v28  ;;  %498 = vst [vmem:[%s5163_s5 + $0x4e8] sm:$0xff] %v497_v29  ;;  %v501_v31 = vld [vmem:[%s5158_s4 + $0x18d8] sm:$0xff]  ;;  %v503_v32 = vld [vmem:[%s5158_s4 + $0x18e0] sm:$0xff] }
  0x69   : > { %500 = vst [vmem:[%s5163_s5 + $0x4f0] sm:$0xff] %v499_v30  ;;  %v505_v33 = vld [vmem:[%s5158_s4 + $0x18e8] sm:$0xff]  ;;  %502 = vst [vmem:[%s5163_s5 + $0x4f8] sm:$0xff] %v501_v31  ;;  %v507_v34 = vld [vmem:[%s5158_s4 + $0x1950] sm:$0xff] }
  0x6a   : > { %504 = vst [vmem:[%s5163_s5 + $0x500] sm:$0xff] %v503_v32  ;;  %506 = vst [vmem:[%s5163_s5 + $0x508] sm:$0xff] %v505_v33  ;;  %v509_v35 = vld [vmem:[%s5158_s4 + $0x1958] sm:$0xff]  ;;  %v511_v36 = vld [vmem:[%s5158_s4 + $0x1960] sm:$0xff] }
  0x6b   : > { %508 = vst [vmem:[%s5163_s5 + $0x510] sm:$0xff] %v507_v34  ;;  %510 = vst [vmem:[%s5163_s5 + $0x518] sm:$0xff] %v509_v35  ;;  %v513_v37 = vld [vmem:[%s5158_s4 + $0x19c8] sm:$0xff]  ;;  %v515_v38 = vld [vmem:[%s5158_s4 + $0x19d0] sm:$0xff] }
  0x6c   : > { %512 = vst [vmem:[%s5163_s5 + $0x520] sm:$0xff] %v511_v36  ;;  %v517_v39 = vld [vmem:[%s5158_s4 + $0x19d8] sm:$0xff]  ;;  %514 = vst [vmem:[%s5163_s5 + $0x528] sm:$0xff] %v513_v37  ;;  %v519_v40 = vld [vmem:[%s5158_s4 + $0x1a40] sm:$0xff] }
  0x6d   : > { %516 = vst [vmem:[%s5163_s5 + $0x530] sm:$0xff] %v515_v38  ;;  %518 = vst [vmem:[%s5163_s5 + $0x538] sm:$0xff] %v517_v39  ;;  %v521_v41 = vld [vmem:[%s5158_s4 + $0x1a48] sm:$0xff]  ;;  %v523_v42 = vld [vmem:[%s5158_s4 + $0x1a50] sm:$0xff] }
  0x6e   : > { %520 = vst [vmem:[%s5163_s5 + $0x540] sm:$0xff] %v519_v40  ;;  %522 = vst [vmem:[%s5163_s5 + $0x548] sm:$0xff] %v521_v41  ;;  %v525_v43 = vld [vmem:[%s5158_s4 + $0x1ab8] sm:$0xff]  ;;  %v527_v44 = vld [vmem:[%s5158_s4 + $0x1ac0] sm:$0xff] }
  0x6f   : > { %524 = vst [vmem:[%s5163_s5 + $0x550] sm:$0xff] %v523_v42  ;;  %v529_v45 = vld [vmem:[%s5158_s4 + $0x1ac8] sm:$0xff]  ;;  %526 = vst [vmem:[%s5163_s5 + $0x558] sm:$0xff] %v525_v43  ;;  %v531_v46 = vld [vmem:[%s5158_s4 + $0x1b30] sm:$0xff] }
  0x70   : > { %528 = vst [vmem:[%s5163_s5 + $0x560] sm:$0xff] %v527_v44  ;;  %530 = vst [vmem:[%s5163_s5 + $0x568] sm:$0xff] %v529_v45  ;;  %v533_v47 = vld [vmem:[%s5158_s4 + $0x1b38] sm:$0xff]  ;;  %v535_v48 = vld [vmem:[%s5158_s4 + $0x1b40] sm:$0xff] }
  0x71   : > { %532 = vst [vmem:[%s5163_s5 + $0x570] sm:$0xff] %v531_v46  ;;  %534 = vst [vmem:[%s5163_s5 + $0x578] sm:$0xff] %v533_v47  ;;  %v537_v49 = vld [vmem:[%s5158_s4 + $0x1ba8] sm:$0xff]  ;;  %v539_v50 = vld [vmem:[%s5158_s4 + $0x1bb0] sm:$0xff] }
  0x72   : > { %536 = vst [vmem:[%s5163_s5 + $0x580] sm:$0xff] %v535_v48  ;;  %v541_v51 = vld [vmem:[%s5158_s4 + $0x1bb8] sm:$0xff]  ;;  %538 = vst [vmem:[%s5163_s5 + $0x588] sm:$0xff] %v537_v49  ;;  %v543_v52 = vld [vmem:[%s5158_s4 + $0x1c20] sm:$0xff] }
  0x73   : > { %540 = vst [vmem:[%s5163_s5 + $0x590] sm:$0xff] %v539_v50  ;;  %542 = vst [vmem:[%s5163_s5 + $0x598] sm:$0xff] %v541_v51  ;;  %v545_v53 = vld [vmem:[%s5158_s4 + $0x1c28] sm:$0xff]  ;;  %v547_v54 = vld [vmem:[%s5158_s4 + $0x1c30] sm:$0xff] }
  0x74   : > { %544 = vst [vmem:[%s5163_s5 + $0x5a0] sm:$0xff] %v543_v52  ;;  %546 = vst [vmem:[%s5163_s5 + $0x5a8] sm:$0xff] %v545_v53  ;;  %v549_v55 = vld [vmem:[%s5158_s4 + $0x1c98] sm:$0xff]  ;;  %v551_v56 = vld [vmem:[%s5158_s4 + $0x1ca0] sm:$0xff] }
  0x75   : > { %548 = vst [vmem:[%s5163_s5 + $0x5b0] sm:$0xff] %v547_v54  ;;  %v553_v57 = vld [vmem:[%s5158_s4 + $0x1ca8] sm:$0xff]  ;;  %550 = vst [vmem:[%s5163_s5 + $0x5b8] sm:$0xff] %v549_v55  ;;  %v555_v58 = vld [vmem:[%s5158_s4 + $0x1d10] sm:$0xff] }
  0x76   : > { %552 = vst [vmem:[%s5163_s5 + $0x5c0] sm:$0xff] %v551_v56  ;;  %554 = vst [vmem:[%s5163_s5 + $0x5c8] sm:$0xff] %v553_v57  ;;  %v557_v59 = vld [vmem:[%s5158_s4 + $0x1d18] sm:$0xff]  ;;  %v559_v60 = vld [vmem:[%s5158_s4 + $0x1d20] sm:$0xff] }
  0x77   : > { %556 = vst [vmem:[%s5163_s5 + $0x5d0] sm:$0xff] %v555_v58  ;;  %558 = vst [vmem:[%s5163_s5 + $0x5d8] sm:$0xff] %v557_v59  ;;  %v561_v61 = vld [vmem:[%s5158_s4 + $0x1d88] sm:$0xff]  ;;  %v563_v62 = vld [vmem:[%s5158_s4 + $0x1d90] sm:$0xff] }
  0x78   : > { %560 = vst [vmem:[%s5163_s5 + $0x5e0] sm:$0xff] %v559_v60  ;;  %v565_v63 = vld [vmem:[%s5158_s4 + $0x1d98] sm:$0xff]  ;;  %562 = vst [vmem:[%s5163_s5 + $0x5e8] sm:$0xff] %v561_v61  ;;  %v567_v0 = vld [vmem:[%s5158_s4 + $0x1e00] sm:$0xff] }
  0x79   : > { %564 = vst [vmem:[%s5163_s5 + $0x5f0] sm:$0xff] %v563_v62  ;;  %566 = vst [vmem:[%s5163_s5 + $0x5f8] sm:$0xff] %v565_v63  ;;  %v569_v1 = vld [vmem:[%s5158_s4 + $0x1e08] sm:$0xff]  ;;  %v571_v2 = vld [vmem:[%s5158_s4 + $0x1e10] sm:$0xff] }
  0x7a   : > { %568 = vst [vmem:[%s5163_s5 + $0x600] sm:$0xff] %v567_v0  ;;  %570 = vst [vmem:[%s5163_s5 + $0x608] sm:$0xff] %v569_v1  ;;  %v573_v3 = vld [vmem:[%s5158_s4 + $0x1e78] sm:$0xff]  ;;  %v575_v4 = vld [vmem:[%s5158_s4 + $0x1e80] sm:$0xff] }
  0x7b   : > { %572 = vst [vmem:[%s5163_s5 + $0x610] sm:$0xff] %v571_v2  ;;  %v577_v5 = vld [vmem:[%s5158_s4 + $0x1e88] sm:$0xff]  ;;  %574 = vst [vmem:[%s5163_s5 + $0x618] sm:$0xff] %v573_v3  ;;  %v579_v6 = vld [vmem:[%s5158_s4 + $0x1ef0] sm:$0xff] }
  0x7c   : > { %576 = vst [vmem:[%s5163_s5 + $0x620] sm:$0xff] %v575_v4  ;;  %578 = vst [vmem:[%s5163_s5 + $0x628] sm:$0xff] %v577_v5  ;;  %v581_v7 = vld [vmem:[%s5158_s4 + $0x1ef8] sm:$0xff]  ;;  %v583_v8 = vld [vmem:[%s5158_s4 + $0x1f00] sm:$0xff] }
  0x7d   : > { %580 = vst [vmem:[%s5163_s5 + $0x630] sm:$0xff] %v579_v6  ;;  %582 = vst [vmem:[%s5163_s5 + $0x638] sm:$0xff] %v581_v7  ;;  %v585_v9 = vld [vmem:[%s5158_s4 + $0x1f68] sm:$0xff]  ;;  %v587_v10 = vld [vmem:[%s5158_s4 + $0x1f70] sm:$0xff] }
  0x7e   : > { %584 = vst [vmem:[%s5163_s5 + $0x640] sm:$0xff] %v583_v8  ;;  %v589_v11 = vld [vmem:[%s5158_s4 + $0x1f78] sm:$0xff]  ;;  %586 = vst [vmem:[%s5163_s5 + $0x648] sm:$0xff] %v585_v9  ;;  %v591_v12 = vld [vmem:[%s5158_s4 + $0x1fe0] sm:$0xff] }
  0x7f   : > { %588 = vst [vmem:[%s5163_s5 + $0x650] sm:$0xff] %v587_v10  ;;  %590 = vst [vmem:[%s5163_s5 + $0x658] sm:$0xff] %v589_v11  ;;  %v593_v13 = vld [vmem:[%s5158_s4 + $0x1fe8] sm:$0xff]  ;;  %v595_v14 = vld [vmem:[%s5158_s4 + $0x1ff0] sm:$0xff] }
  0x80   : > { %592 = vst [vmem:[%s5163_s5 + $0x660] sm:$0xff] %v591_v12  ;;  %594 = vst [vmem:[%s5163_s5 + $0x668] sm:$0xff] %v593_v13  ;;  %v597_v15 = vld [vmem:[%s5158_s4 + $0x2058] sm:$0xff]  ;;  %v599_v16 = vld [vmem:[%s5158_s4 + $0x2060] sm:$0xff] }
  0x81   : > { %596 = vst [vmem:[%s5163_s5 + $0x670] sm:$0xff] %v595_v14  ;;  %v601_v17 = vld [vmem:[%s5158_s4 + $0x2068] sm:$0xff]  ;;  %598 = vst [vmem:[%s5163_s5 + $0x678] sm:$0xff] %v597_v15  ;;  %v603_v18 = vld [vmem:[%s5158_s4 + $0x20d0] sm:$0xff] }
  0x82   : > { %600 = vst [vmem:[%s5163_s5 + $0x680] sm:$0xff] %v599_v16  ;;  %602 = vst [vmem:[%s5163_s5 + $0x688] sm:$0xff] %v601_v17  ;;  %v605_v19 = vld [vmem:[%s5158_s4 + $0x20d8] sm:$0xff]  ;;  %v607_v20 = vld [vmem:[%s5158_s4 + $0x20e0] sm:$0xff] }
  0x83   : > { %604 = vst [vmem:[%s5163_s5 + $0x690] sm:$0xff] %v603_v18  ;;  %606 = vst [vmem:[%s5163_s5 + $0x698] sm:$0xff] %v605_v19  ;;  %v609_v21 = vld [vmem:[%s5158_s4 + $0x2148] sm:$0xff]  ;;  %v611_v22 = vld [vmem:[%s5158_s4 + $0x2150] sm:$0xff] }
  0x84   : > { %608 = vst [vmem:[%s5163_s5 + $0x6a0] sm:$0xff] %v607_v20  ;;  %v613_v23 = vld [vmem:[%s5158_s4 + $0x2158] sm:$0xff]  ;;  %610 = vst [vmem:[%s5163_s5 + $0x6a8] sm:$0xff] %v609_v21  ;;  %v615_v24 = vld [vmem:[%s5158_s4 + $0x21c0] sm:$0xff] }
  0x85   : > { %612 = vst [vmem:[%s5163_s5 + $0x6b0] sm:$0xff] %v611_v22  ;;  %614 = vst [vmem:[%s5163_s5 + $0x6b8] sm:$0xff] %v613_v23  ;;  %v617_v25 = vld [vmem:[%s5158_s4 + $0x21c8] sm:$0xff]  ;;  %v619_v26 = vld [vmem:[%s5158_s4 + $0x21d0] sm:$0xff] }
  0x86   : > { %616 = vst [vmem:[%s5163_s5 + $0x6c0] sm:$0xff] %v615_v24  ;;  %618 = vst [vmem:[%s5163_s5 + $0x6c8] sm:$0xff] %v617_v25  ;;  %v621_v27 = vld [vmem:[%s5158_s4 + $0x2238] sm:$0xff]  ;;  %v623_v28 = vld [vmem:[%s5158_s4 + $0x2240] sm:$0xff] }
  0x87   : > { %620 = vst [vmem:[%s5163_s5 + $0x6d0] sm:$0xff] %v619_v26  ;;  %v625_v29 = vld [vmem:[%s5158_s4 + $0x2248] sm:$0xff]  ;;  %622 = vst [vmem:[%s5163_s5 + $0x6d8] sm:$0xff] %v621_v27  ;;  %v627_v30 = vld [vmem:[%s5158_s4 + $0x22b0] sm:$0xff] }
  0x88   : > { %624 = vst [vmem:[%s5163_s5 + $0x6e0] sm:$0xff] %v623_v28  ;;  %626 = vst [vmem:[%s5163_s5 + $0x6e8] sm:$0xff] %v625_v29  ;;  %v629_v31 = vld [vmem:[%s5158_s4 + $0x22b8] sm:$0xff]  ;;  %v631_v32 = vld [vmem:[%s5158_s4 + $0x22c0] sm:$0xff] }
  0x89   : > { %628 = vst [vmem:[%s5163_s5 + $0x6f0] sm:$0xff] %v627_v30  ;;  %630 = vst [vmem:[%s5163_s5 + $0x6f8] sm:$0xff] %v629_v31  ;;  %v633_v33 = vld [vmem:[%s5158_s4 + $0x2328] sm:$0xff]  ;;  %v635_v34 = vld [vmem:[%s5158_s4 + $0x2330] sm:$0xff] }
  0x8a   : > { %632 = vst [vmem:[%s5163_s5 + $0x700] sm:$0xff] %v631_v32  ;;  %v637_v35 = vld [vmem:[%s5158_s4 + $0x2338] sm:$0xff]  ;;  %634 = vst [vmem:[%s5163_s5 + $0x708] sm:$0xff] %v633_v33  ;;  %v639_v36 = vld [vmem:[%s5158_s4 + $0x23a0] sm:$0xff] }
  0x8b   : > { %636 = vst [vmem:[%s5163_s5 + $0x710] sm:$0xff] %v635_v34  ;;  %638 = vst [vmem:[%s5163_s5 + $0x718] sm:$0xff] %v637_v35  ;;  %v641_v37 = vld [vmem:[%s5158_s4 + $0x23a8] sm:$0xff]  ;;  %v643_v38 = vld [vmem:[%s5158_s4 + $0x23b0] sm:$0xff] }
  0x8c   : > { %640 = vst [vmem:[%s5163_s5 + $0x720] sm:$0xff] %v639_v36  ;;  %642 = vst [vmem:[%s5163_s5 + $0x728] sm:$0xff] %v641_v37  ;;  %v645_v39 = vld [vmem:[%s5158_s4 + $0x2418] sm:$0xff]  ;;  %v647_v40 = vld [vmem:[%s5158_s4 + $0x2420] sm:$0xff] }
  0x8d   : > { %644 = vst [vmem:[%s5163_s5 + $0x730] sm:$0xff] %v643_v38  ;;  %v649_v41 = vld [vmem:[%s5158_s4 + $0x2428] sm:$0xff]  ;;  %646 = vst [vmem:[%s5163_s5 + $0x738] sm:$0xff] %v645_v39  ;;  %v651_v42 = vld [vmem:[%s5158_s4 + $0x2490] sm:$0xff] }
  0x8e   : > { %648 = vst [vmem:[%s5163_s5 + $0x740] sm:$0xff] %v647_v40  ;;  %650 = vst [vmem:[%s5163_s5 + $0x748] sm:$0xff] %v649_v41  ;;  %v653_v43 = vld [vmem:[%s5158_s4 + $0x2498] sm:$0xff]  ;;  %v655_v44 = vld [vmem:[%s5158_s4 + $0x24a0] sm:$0xff] }
  0x8f   : > { %652 = vst [vmem:[%s5163_s5 + $0x750] sm:$0xff] %v651_v42  ;;  %654 = vst [vmem:[%s5163_s5 + $0x758] sm:$0xff] %v653_v43  ;;  %v657_v45 = vld [vmem:[%s5158_s4 + $0x2508] sm:$0xff]  ;;  %v659_v46 = vld [vmem:[%s5158_s4 + $0x2510] sm:$0xff] }
  0x90   : > { %656 = vst [vmem:[%s5163_s5 + $0x760] sm:$0xff] %v655_v44  ;;  %v661_v47 = vld [vmem:[%s5158_s4 + $0x2518] sm:$0xff]  ;;  %658 = vst [vmem:[%s5163_s5 + $0x768] sm:$0xff] %v657_v45  ;;  %v663_v48 = vld [vmem:[%s5158_s4 + $0x2580] sm:$0xff] }
  0x91   : > { %660 = vst [vmem:[%s5163_s5 + $0x770] sm:$0xff] %v659_v46  ;;  %662 = vst [vmem:[%s5163_s5 + $0x778] sm:$0xff] %v661_v47  ;;  %v665_v49 = vld [vmem:[%s5158_s4 + $0x2588] sm:$0xff]  ;;  %v667_v50 = vld [vmem:[%s5158_s4 + $0x2590] sm:$0xff] }
  0x92   : > { %664 = vst [vmem:[%s5163_s5 + $0x780] sm:$0xff] %v663_v48  ;;  %666 = vst [vmem:[%s5163_s5 + $0x788] sm:$0xff] %v665_v49  ;;  %v669_v51 = vld [vmem:[%s5158_s4 + $0x25f8] sm:$0xff]  ;;  %v671_v52 = vld [vmem:[%s5158_s4 + $0x2600] sm:$0xff] }
  0x93   : > { %668 = vst [vmem:[%s5163_s5 + $0x790] sm:$0xff] %v667_v50  ;;  %v673_v53 = vld [vmem:[%s5158_s4 + $0x2608] sm:$0xff]  ;;  %670 = vst [vmem:[%s5163_s5 + $0x798] sm:$0xff] %v669_v51  ;;  %v675_v54 = vld [vmem:[%s5158_s4 + $0x2670] sm:$0xff] }
  0x94   : > { %672 = vst [vmem:[%s5163_s5 + $0x7a0] sm:$0xff] %v671_v52  ;;  %674 = vst [vmem:[%s5163_s5 + $0x7a8] sm:$0xff] %v673_v53  ;;  %v677_v55 = vld [vmem:[%s5158_s4 + $0x2678] sm:$0xff]  ;;  %v679_v56 = vld [vmem:[%s5158_s4 + $0x2680] sm:$0xff] }
  0x95   : > { %676 = vst [vmem:[%s5163_s5 + $0x7b0] sm:$0xff] %v675_v54  ;;  %678 = vst [vmem:[%s5163_s5 + $0x7b8] sm:$0xff] %v677_v55  ;;  %v681_v57 = vld [vmem:[%s5158_s4 + $0x26e8] sm:$0xff]  ;;  %v683_v58 = vld [vmem:[%s5158_s4 + $0x26f0] sm:$0xff] }
  0x96   : > { %680 = vst [vmem:[%s5163_s5 + $0x7c0] sm:$0xff] %v679_v56  ;;  %v685_v59 = vld [vmem:[%s5158_s4 + $0x26f8] sm:$0xff]  ;;  %682 = vst [vmem:[%s5163_s5 + $0x7c8] sm:$0xff] %v681_v57  ;;  %v687_v60 = vld [vmem:[%s5158_s4 + $0x2760] sm:$0xff] }
  0x97   : > { %684 = vst [vmem:[%s5163_s5 + $0x7d0] sm:$0xff] %v683_v58  ;;  %686 = vst [vmem:[%s5163_s5 + $0x7d8] sm:$0xff] %v685_v59  ;;  %v689_v61 = vld [vmem:[%s5158_s4 + $0x2768] sm:$0xff]  ;;  %v691_v62 = vld [vmem:[%s5158_s4 + $0x2770] sm:$0xff] }
  0x98   : > { %688 = vst [vmem:[%s5163_s5 + $0x7e0] sm:$0xff] %v687_v60  ;;  %690 = vst [vmem:[%s5163_s5 + $0x7e8] sm:$0xff] %v689_v61  ;;  %v693_v63 = vld [vmem:[%s5158_s4 + $0x27d8] sm:$0xff]  ;;  %v695_v0 = vld [vmem:[%s5158_s4 + $0x27e0] sm:$0xff] }
  0x99   : > { %692 = vst [vmem:[%s5163_s5 + $0x7f0] sm:$0xff] %v691_v62  ;;  %v697_v1 = vld [vmem:[%s5158_s4 + $0x27e8] sm:$0xff]  ;;  %694 = vst [vmem:[%s5163_s5 + $0x7f8] sm:$0xff] %v693_v63  ;;  %v699_v2 = vld [vmem:[%s5158_s4 + $0x2850] sm:$0xff] }
  0x9a   : > { %696 = vst [vmem:[%s5163_s5 + $0x800] sm:$0xff] %v695_v0  ;;  %698 = vst [vmem:[%s5163_s5 + $0x808] sm:$0xff] %v697_v1  ;;  %v701_v3 = vld [vmem:[%s5158_s4 + $0x2858] sm:$0xff]  ;;  %v703_v4 = vld [vmem:[%s5158_s4 + $0x2860] sm:$0xff] }
  0x9b   : > { %700 = vst [vmem:[%s5163_s5 + $0x810] sm:$0xff] %v699_v2  ;;  %702 = vst [vmem:[%s5163_s5 + $0x818] sm:$0xff] %v701_v3  ;;  %v705_v5 = vld [vmem:[%s5158_s4 + $0x28c8] sm:$0xff]  ;;  %v707_v6 = vld [vmem:[%s5158_s4 + $0x28d0] sm:$0xff] }
  0x9c   : > { %704 = vst [vmem:[%s5163_s5 + $0x820] sm:$0xff] %v703_v4  ;;  %v709_v7 = vld [vmem:[%s5158_s4 + $0x28d8] sm:$0xff]  ;;  %706 = vst [vmem:[%s5163_s5 + $0x828] sm:$0xff] %v705_v5  ;;  %v711_v8 = vld [vmem:[%s5158_s4 + $0x2940] sm:$0xff] }
  0x9d   : > { %708 = vst [vmem:[%s5163_s5 + $0x830] sm:$0xff] %v707_v6  ;;  %710 = vst [vmem:[%s5163_s5 + $0x838] sm:$0xff] %v709_v7  ;;  %v713_v9 = vld [vmem:[%s5158_s4 + $0x2948] sm:$0xff]  ;;  %v715_v10 = vld [vmem:[%s5158_s4 + $0x2950] sm:$0xff] }
  0x9e   : > { %712 = vst [vmem:[%s5163_s5 + $0x840] sm:$0xff] %v711_v8  ;;  %714 = vst [vmem:[%s5163_s5 + $0x848] sm:$0xff] %v713_v9  ;;  %v717_v11 = vld [vmem:[%s5158_s4 + $0x29b8] sm:$0xff]  ;;  %v719_v12 = vld [vmem:[%s5158_s4 + $0x29c0] sm:$0xff] }
  0x9f   : > { %716 = vst [vmem:[%s5163_s5 + $0x850] sm:$0xff] %v715_v10  ;;  %v721_v13 = vld [vmem:[%s5158_s4 + $0x29c8] sm:$0xff]  ;;  %718 = vst [vmem:[%s5163_s5 + $0x858] sm:$0xff] %v717_v11  ;;  %v723_v14 = vld [vmem:[%s5158_s4 + $0x2a30] sm:$0xff] }
  0xa0   : > { %720 = vst [vmem:[%s5163_s5 + $0x860] sm:$0xff] %v719_v12  ;;  %722 = vst [vmem:[%s5163_s5 + $0x868] sm:$0xff] %v721_v13  ;;  %v725_v15 = vld [vmem:[%s5158_s4 + $0x2a38] sm:$0xff]  ;;  %v727_v16 = vld [vmem:[%s5158_s4 + $0x2a40] sm:$0xff] }
  0xa1   : > { %724 = vst [vmem:[%s5163_s5 + $0x870] sm:$0xff] %v723_v14  ;;  %726 = vst [vmem:[%s5163_s5 + $0x878] sm:$0xff] %v725_v15  ;;  %v729_v17 = vld [vmem:[%s5158_s4 + $0x2aa8] sm:$0xff]  ;;  %v731_v18 = vld [vmem:[%s5158_s4 + $0x2ab0] sm:$0xff] }
  0xa2   : > { %728 = vst [vmem:[%s5163_s5 + $0x880] sm:$0xff] %v727_v16  ;;  %v733_v19 = vld [vmem:[%s5158_s4 + $0x2ab8] sm:$0xff]  ;;  %730 = vst [vmem:[%s5163_s5 + $0x888] sm:$0xff] %v729_v17  ;;  %v735_v20 = vld [vmem:[%s5158_s4 + $0x2b20] sm:$0xff] }
  0xa3   : > { %732 = vst [vmem:[%s5163_s5 + $0x890] sm:$0xff] %v731_v18  ;;  %734 = vst [vmem:[%s5163_s5 + $0x898] sm:$0xff] %v733_v19  ;;  %v737_v21 = vld [vmem:[%s5158_s4 + $0x2b28] sm:$0xff]  ;;  %v739_v22 = vld [vmem:[%s5158_s4 + $0x2b30] sm:$0xff] }
  0xa4   : > { %736 = vst [vmem:[%s5163_s5 + $0x8a0] sm:$0xff] %v735_v20  ;;  %738 = vst [vmem:[%s5163_s5 + $0x8a8] sm:$0xff] %v737_v21  ;;  %v741_v23 = vld [vmem:[%s5158_s4 + $0x2b98] sm:$0xff]  ;;  %v743_v24 = vld [vmem:[%s5158_s4 + $0x2ba0] sm:$0xff] }
  0xa5   : > { %740 = vst [vmem:[%s5163_s5 + $0x8b0] sm:$0xff] %v739_v22  ;;  %v745_v25 = vld [vmem:[%s5158_s4 + $0x2ba8] sm:$0xff]  ;;  %742 = vst [vmem:[%s5163_s5 + $0x8b8] sm:$0xff] %v741_v23  ;;  %v747_v26 = vld [vmem:[%s5158_s4 + $0x2c10] sm:$0xff] }
  0xa6   : > { %744 = vst [vmem:[%s5163_s5 + $0x8c0] sm:$0xff] %v743_v24  ;;  %746 = vst [vmem:[%s5163_s5 + $0x8c8] sm:$0xff] %v745_v25  ;;  %v749_v27 = vld [vmem:[%s5158_s4 + $0x2c18] sm:$0xff]  ;;  %v751_v28 = vld [vmem:[%s5158_s4 + $0x2c20] sm:$0xff] }
  0xa7   : > { %748 = vst [vmem:[%s5163_s5 + $0x8d0] sm:$0xff] %v747_v26  ;;  %750 = vst [vmem:[%s5163_s5 + $0x8d8] sm:$0xff] %v749_v27  ;;  %v753_v29 = vld [vmem:[%s5158_s4 + $0x2c88] sm:$0xff]  ;;  %v755_v30 = vld [vmem:[%s5158_s4 + $0x2c90] sm:$0xff] }
  0xa8   : > { %752 = vst [vmem:[%s5163_s5 + $0x8e0] sm:$0xff] %v751_v28  ;;  %v757_v31 = vld [vmem:[%s5158_s4 + $0x2c98] sm:$0xff]  ;;  %754 = vst [vmem:[%s5163_s5 + $0x8e8] sm:$0xff] %v753_v29  ;;  %v759_v32 = vld [vmem:[%s5158_s4 + $0x2d00] sm:$0xff] }
  0xa9   : > { %756 = vst [vmem:[%s5163_s5 + $0x8f0] sm:$0xff] %v755_v30  ;;  %758 = vst [vmem:[%s5163_s5 + $0x8f8] sm:$0xff] %v757_v31  ;;  %v761_v33 = vld [vmem:[%s5158_s4 + $0x2d08] sm:$0xff]  ;;  %v763_v34 = vld [vmem:[%s5158_s4 + $0x2d10] sm:$0xff] }
  0xaa   : > { %760 = vst [vmem:[%s5163_s5 + $0x900] sm:$0xff] %v759_v32  ;;  %762 = vst [vmem:[%s5163_s5 + $0x908] sm:$0xff] %v761_v33  ;;  %v765_v35 = vld [vmem:[%s5158_s4 + $0x2d78] sm:$0xff]  ;;  %v767_v36 = vld [vmem:[%s5158_s4 + $0x2d80] sm:$0xff] }
  0xab   : > { %764 = vst [vmem:[%s5163_s5 + $0x910] sm:$0xff] %v763_v34  ;;  %v769_v37 = vld [vmem:[%s5158_s4 + $0x2d88] sm:$0xff]  ;;  %766 = vst [vmem:[%s5163_s5 + $0x918] sm:$0xff] %v765_v35  ;;  %v771_v38 = vld [vmem:[%s5158_s4 + $0x2df0] sm:$0xff] }
  0xac   : > { %768 = vst [vmem:[%s5163_s5 + $0x920] sm:$0xff] %v767_v36  ;;  %770 = vst [vmem:[%s5163_s5 + $0x928] sm:$0xff] %v769_v37  ;;  %v773_v39 = vld [vmem:[%s5158_s4 + $0x2df8] sm:$0xff]  ;;  %v775_v40 = vld [vmem:[%s5158_s4 + $0x2e00] sm:$0xff] }
  0xad   : > { %772 = vst [vmem:[%s5163_s5 + $0x930] sm:$0xff] %v771_v38  ;;  %774 = vst [vmem:[%s5163_s5 + $0x938] sm:$0xff] %v773_v39  ;;  %v777_v41 = vld [vmem:[%s5158_s4 + $0x2e68] sm:$0xff]  ;;  %v779_v42 = vld [vmem:[%s5158_s4 + $0x2e70] sm:$0xff] }
  0xae   : > { %776 = vst [vmem:[%s5163_s5 + $0x940] sm:$0xff] %v775_v40  ;;  %v781_v43 = vld [vmem:[%s5158_s4 + $0x2e78] sm:$0xff]  ;;  %778 = vst [vmem:[%s5163_s5 + $0x948] sm:$0xff] %v777_v41  ;;  %v783_v44 = vld [vmem:[%s5158_s4 + $0x2ee0] sm:$0xff] }
  0xaf   : > { %780 = vst [vmem:[%s5163_s5 + $0x950] sm:$0xff] %v779_v42  ;;  %782 = vst [vmem:[%s5163_s5 + $0x958] sm:$0xff] %v781_v43  ;;  %v785_v45 = vld [vmem:[%s5158_s4 + $0x2ee8] sm:$0xff]  ;;  %v787_v46 = vld [vmem:[%s5158_s4 + $0x2ef0] sm:$0xff] }
  0xb0   : > { %784 = vst [vmem:[%s5163_s5 + $0x960] sm:$0xff] %v783_v44  ;;  %786 = vst [vmem:[%s5163_s5 + $0x968] sm:$0xff] %v785_v45  ;;  %v789_v47 = vld [vmem:[%s5158_s4 + $0x2f58] sm:$0xff]  ;;  %v791_v48 = vld [vmem:[%s5158_s4 + $0x2f60] sm:$0xff] }
  0xb1   : > { %788 = vst [vmem:[%s5163_s5 + $0x970] sm:$0xff] %v787_v46  ;;  %v793_v49 = vld [vmem:[%s5158_s4 + $0x2f68] sm:$0xff]  ;;  %790 = vst [vmem:[%s5163_s5 + $0x978] sm:$0xff] %v789_v47  ;;  %v795_v50 = vld [vmem:[%s5158_s4 + $0x2fd0] sm:$0xff] }
  0xb2   : > { %792 = vst [vmem:[%s5163_s5 + $0x980] sm:$0xff] %v791_v48  ;;  %794 = vst [vmem:[%s5163_s5 + $0x988] sm:$0xff] %v793_v49  ;;  %v797_v51 = vld [vmem:[%s5158_s4 + $0x2fd8] sm:$0xff]  ;;  %v799_v52 = vld [vmem:[%s5158_s4 + $0x2fe0] sm:$0xff] }
  0xb3   : > { %796 = vst [vmem:[%s5163_s5 + $0x990] sm:$0xff] %v795_v50  ;;  %798 = vst [vmem:[%s5163_s5 + $0x998] sm:$0xff] %v797_v51  ;;  %v801_v53 = vld [vmem:[%s5158_s4 + $0x3048] sm:$0xff]  ;;  %v803_v54 = vld [vmem:[%s5158_s4 + $0x3050] sm:$0xff] }
  0xb4   : > { %800 = vst [vmem:[%s5163_s5 + $0x9a0] sm:$0xff] %v799_v52  ;;  %v805_v55 = vld [vmem:[%s5158_s4 + $0x3058] sm:$0xff]  ;;  %802 = vst [vmem:[%s5163_s5 + $0x9a8] sm:$0xff] %v801_v53  ;;  %v807_v56 = vld [vmem:[%s5158_s4 + $0x30c0] sm:$0xff] }
  0xb5   : > { %804 = vst [vmem:[%s5163_s5 + $0x9b0] sm:$0xff] %v803_v54  ;;  %806 = vst [vmem:[%s5163_s5 + $0x9b8] sm:$0xff] %v805_v55  ;;  %v809_v57 = vld [vmem:[%s5158_s4 + $0x30c8] sm:$0xff]  ;;  %v811_v58 = vld [vmem:[%s5158_s4 + $0x30d0] sm:$0xff] }
  0xb6   : > { %808 = vst [vmem:[%s5163_s5 + $0x9c0] sm:$0xff] %v807_v56  ;;  %810 = vst [vmem:[%s5163_s5 + $0x9c8] sm:$0xff] %v809_v57  ;;  %v813_v59 = vld [vmem:[%s5158_s4 + $0x3138] sm:$0xff]  ;;  %v815_v60 = vld [vmem:[%s5158_s4 + $0x3140] sm:$0xff] }
  0xb7   : > { %812 = vst [vmem:[%s5163_s5 + $0x9d0] sm:$0xff] %v811_v58  ;;  %v817_v61 = vld [vmem:[%s5158_s4 + $0x3148] sm:$0xff]  ;;  %814 = vst [vmem:[%s5163_s5 + $0x9d8] sm:$0xff] %v813_v59  ;;  %v819_v62 = vld [vmem:[%s5158_s4 + $0x31b0] sm:$0xff] }
  0xb8   : > { %816 = vst [vmem:[%s5163_s5 + $0x9e0] sm:$0xff] %v815_v60  ;;  %818 = vst [vmem:[%s5163_s5 + $0x9e8] sm:$0xff] %v817_v61  ;;  %v821_v63 = vld [vmem:[%s5158_s4 + $0x31b8] sm:$0xff]  ;;  %v823_v0 = vld [vmem:[%s5158_s4 + $0x31c0] sm:$0xff] }
  0xb9   : > { %820 = vst [vmem:[%s5163_s5 + $0x9f0] sm:$0xff] %v819_v62  ;;  %822 = vst [vmem:[%s5163_s5 + $0x9f8] sm:$0xff] %v821_v63  ;;  %v825_v1 = vld [vmem:[%s5158_s4 + $0x3228] sm:$0xff]  ;;  %v827_v2 = vld [vmem:[%s5158_s4 + $0x3230] sm:$0xff] }
  0xba   : > { %824 = vst [vmem:[%s5163_s5 + $0xa00] sm:$0xff] %v823_v0  ;;  %v829_v3 = vld [vmem:[%s5158_s4 + $0x3238] sm:$0xff]  ;;  %826 = vst [vmem:[%s5163_s5 + $0xa08] sm:$0xff] %v825_v1  ;;  %v831_v4 = vld [vmem:[%s5158_s4 + $0x32a0] sm:$0xff] }
  0xbb   : > { %828 = vst [vmem:[%s5163_s5 + $0xa10] sm:$0xff] %v827_v2  ;;  %830 = vst [vmem:[%s5163_s5 + $0xa18] sm:$0xff] %v829_v3  ;;  %v833_v5 = vld [vmem:[%s5158_s4 + $0x32a8] sm:$0xff]  ;;  %v835_v6 = vld [vmem:[%s5158_s4 + $0x32b0] sm:$0xff] }
  0xbc   : > { %832 = vst [vmem:[%s5163_s5 + $0xa20] sm:$0xff] %v831_v4  ;;  %834 = vst [vmem:[%s5163_s5 + $0xa28] sm:$0xff] %v833_v5  ;;  %v837_v7 = vld [vmem:[%s5158_s4 + $0x3318] sm:$0xff]  ;;  %v839_v8 = vld [vmem:[%s5158_s4 + $0x3320] sm:$0xff] }
  0xbd   : > { %836 = vst [vmem:[%s5163_s5 + $0xa30] sm:$0xff] %v835_v6  ;;  %v841_v9 = vld [vmem:[%s5158_s4 + $0x3328] sm:$0xff]  ;;  %838 = vst [vmem:[%s5163_s5 + $0xa38] sm:$0xff] %v837_v7  ;;  %v843_v10 = vld [vmem:[%s5158_s4 + $0x3390] sm:$0xff] }
  0xbe   : > { %840 = vst [vmem:[%s5163_s5 + $0xa40] sm:$0xff] %v839_v8  ;;  %842 = vst [vmem:[%s5163_s5 + $0xa48] sm:$0xff] %v841_v9  ;;  %v845_v11 = vld [vmem:[%s5158_s4 + $0x3398] sm:$0xff]  ;;  %v847_v12 = vld [vmem:[%s5158_s4 + $0x33a0] sm:$0xff] }
  0xbf   : > { %844 = vst [vmem:[%s5163_s5 + $0xa50] sm:$0xff] %v843_v10  ;;  %846 = vst [vmem:[%s5163_s5 + $0xa58] sm:$0xff] %v845_v11  ;;  %v849_v13 = vld [vmem:[%s5158_s4 + $0x3408] sm:$0xff]  ;;  %v851_v14 = vld [vmem:[%s5158_s4 + $0x3410] sm:$0xff] }
  0xc0   : > { %848 = vst [vmem:[%s5163_s5 + $0xa60] sm:$0xff] %v847_v12  ;;  %v853_v15 = vld [vmem:[%s5158_s4 + $0x3418] sm:$0xff]  ;;  %850 = vst [vmem:[%s5163_s5 + $0xa68] sm:$0xff] %v849_v13  ;;  %v855_v16 = vld [vmem:[%s5158_s4 + $0x3480] sm:$0xff] }
  0xc1   : > { %852 = vst [vmem:[%s5163_s5 + $0xa70] sm:$0xff] %v851_v14  ;;  %854 = vst [vmem:[%s5163_s5 + $0xa78] sm:$0xff] %v853_v15  ;;  %v857_v17 = vld [vmem:[%s5158_s4 + $0x3488] sm:$0xff]  ;;  %v859_v18 = vld [vmem:[%s5158_s4 + $0x3490] sm:$0xff] }
  0xc2   : > { %856 = vst [vmem:[%s5163_s5 + $0xa80] sm:$0xff] %v855_v16  ;;  %858 = vst [vmem:[%s5163_s5 + $0xa88] sm:$0xff] %v857_v17  ;;  %v861_v19 = vld [vmem:[%s5158_s4 + $0x34f8] sm:$0xff]  ;;  %v863_v20 = vld [vmem:[%s5158_s4 + $0x3500] sm:$0xff] }
  0xc3   : > { %860 = vst [vmem:[%s5163_s5 + $0xa90] sm:$0xff] %v859_v18  ;;  %v865_v21 = vld [vmem:[%s5158_s4 + $0x3508] sm:$0xff]  ;;  %862 = vst [vmem:[%s5163_s5 + $0xa98] sm:$0xff] %v861_v19  ;;  %v867_v22 = vld [vmem:[%s5158_s4 + $0x3570] sm:$0xff] }
  0xc4   : > { %864 = vst [vmem:[%s5163_s5 + $0xaa0] sm:$0xff] %v863_v20  ;;  %866 = vst [vmem:[%s5163_s5 + $0xaa8] sm:$0xff] %v865_v21  ;;  %v869_v23 = vld [vmem:[%s5158_s4 + $0x3578] sm:$0xff]  ;;  %v871_v24 = vld [vmem:[%s5158_s4 + $0x3580] sm:$0xff] }
  0xc5   : > { %868 = vst [vmem:[%s5163_s5 + $0xab0] sm:$0xff] %v867_v22  ;;  %870 = vst [vmem:[%s5163_s5 + $0xab8] sm:$0xff] %v869_v23  ;;  %v873_v25 = vld [vmem:[%s5158_s4 + $0x35e8] sm:$0xff]  ;;  %v875_v26 = vld [vmem:[%s5158_s4 + $0x35f0] sm:$0xff] }
  0xc6   : > { %872 = vst [vmem:[%s5163_s5 + $0xac0] sm:$0xff] %v871_v24  ;;  %v877_v27 = vld [vmem:[%s5158_s4 + $0x35f8] sm:$0xff]  ;;  %874 = vst [vmem:[%s5163_s5 + $0xac8] sm:$0xff] %v873_v25  ;;  %v879_v28 = vld [vmem:[%s5158_s4 + $0x3660] sm:$0xff] }
  0xc7   : > { %876 = vst [vmem:[%s5163_s5 + $0xad0] sm:$0xff] %v875_v26  ;;  %878 = vst [vmem:[%s5163_s5 + $0xad8] sm:$0xff] %v877_v27  ;;  %v881_v29 = vld [vmem:[%s5158_s4 + $0x3668] sm:$0xff]  ;;  %v883_v30 = vld [vmem:[%s5158_s4 + $0x3670] sm:$0xff] }
  0xc8   : > { %880 = vst [vmem:[%s5163_s5 + $0xae0] sm:$0xff] %v879_v28  ;;  %882 = vst [vmem:[%s5163_s5 + $0xae8] sm:$0xff] %v881_v29  ;;  %v885_v31 = vld [vmem:[%s5158_s4 + $0x36d8] sm:$0xff]  ;;  %v887_v32 = vld [vmem:[%s5158_s4 + $0x36e0] sm:$0xff] }
  0xc9   : > { %884 = vst [vmem:[%s5163_s5 + $0xaf0] sm:$0xff] %v883_v30  ;;  %v889_v33 = vld [vmem:[%s5158_s4 + $0x36e8] sm:$0xff]  ;;  %886 = vst [vmem:[%s5163_s5 + $0xaf8] sm:$0xff] %v885_v31  ;;  %v891_v34 = vld [vmem:[%s5158_s4 + $0x3750] sm:$0xff] }
  0xca   : > { %888 = vst [vmem:[%s5163_s5 + $0xb00] sm:$0xff] %v887_v32  ;;  %890 = vst [vmem:[%s5163_s5 + $0xb08] sm:$0xff] %v889_v33  ;;  %v893_v35 = vld [vmem:[%s5158_s4 + $0x3758] sm:$0xff]  ;;  %v895_v36 = vld [vmem:[%s5158_s4 + $0x3760] sm:$0xff] }
  0xcb   : > { %892 = vst [vmem:[%s5163_s5 + $0xb10] sm:$0xff] %v891_v34  ;;  %894 = vst [vmem:[%s5163_s5 + $0xb18] sm:$0xff] %v893_v35  ;;  %v897_v37 = vld [vmem:[%s5158_s4 + $0x37c8] sm:$0xff]  ;;  %v899_v38 = vld [vmem:[%s5158_s4 + $0x37d0] sm:$0xff] }
  0xcc   : > { %896 = vst [vmem:[%s5163_s5 + $0xb20] sm:$0xff] %v895_v36  ;;  %v901_v39 = vld [vmem:[%s5158_s4 + $0x37d8] sm:$0xff]  ;;  %898 = vst [vmem:[%s5163_s5 + $0xb28] sm:$0xff] %v897_v37  ;;  %v903_v40 = vld [vmem:[%s5158_s4 + $0x3840] sm:$0xff] }
  0xcd   : > { %900 = vst [vmem:[%s5163_s5 + $0xb30] sm:$0xff] %v899_v38  ;;  %902 = vst [vmem:[%s5163_s5 + $0xb38] sm:$0xff] %v901_v39  ;;  %v905_v41 = vld [vmem:[%s5158_s4 + $0x3848] sm:$0xff]  ;;  %v907_v42 = vld [vmem:[%s5158_s4 + $0x3850] sm:$0xff] }
  0xce   : > { %904 = vst [vmem:[%s5163_s5 + $0xb40] sm:$0xff] %v903_v40  ;;  %906 = vst [vmem:[%s5163_s5 + $0xb48] sm:$0xff] %v905_v41  ;;  %v909_v43 = vld [vmem:[%s5158_s4 + $0x38b8] sm:$0xff]  ;;  %v911_v44 = vld [vmem:[%s5158_s4 + $0x38c0] sm:$0xff] }
  0xcf   : > { %908 = vst [vmem:[%s5163_s5 + $0xb50] sm:$0xff] %v907_v42  ;;  %v913_v45 = vld [vmem:[%s5158_s4 + $0x38c8] sm:$0xff]  ;;  %910 = vst [vmem:[%s5163_s5 + $0xb58] sm:$0xff] %v909_v43  ;;  %v915_v46 = vld [vmem:[%s5158_s4 + $0x3930] sm:$0xff] }
  0xd0   : > { %912 = vst [vmem:[%s5163_s5 + $0xb60] sm:$0xff] %v911_v44  ;;  %914 = vst [vmem:[%s5163_s5 + $0xb68] sm:$0xff] %v913_v45  ;;  %v917_v47 = vld [vmem:[%s5158_s4 + $0x3938] sm:$0xff]  ;;  %v919_v48 = vld [vmem:[%s5158_s4 + $0x3940] sm:$0xff] }
  0xd1   : > { %916 = vst [vmem:[%s5163_s5 + $0xb70] sm:$0xff] %v915_v46  ;;  %918 = vst [vmem:[%s5163_s5 + $0xb78] sm:$0xff] %v917_v47  ;;  %v921_v49 = vld [vmem:[%s5158_s4 + $0x39a8] sm:$0xff]  ;;  %v923_v50 = vld [vmem:[%s5158_s4 + $0x39b0] sm:$0xff] }
  0xd2   : > { %920 = vst [vmem:[%s5163_s5 + $0xb80] sm:$0xff] %v919_v48  ;;  %v925_v51 = vld [vmem:[%s5158_s4 + $0x39b8] sm:$0xff]  ;;  %922 = vst [vmem:[%s5163_s5 + $0xb88] sm:$0xff] %v921_v49  ;;  %v927_v52 = vld [vmem:[%s5158_s4 + $0x3a20] sm:$0xff] }
  0xd3   : > { %924 = vst [vmem:[%s5163_s5 + $0xb90] sm:$0xff] %v923_v50  ;;  %926 = vst [vmem:[%s5163_s5 + $0xb98] sm:$0xff] %v925_v51  ;;  %v929_v53 = vld [vmem:[%s5158_s4 + $0x3a28] sm:$0xff]  ;;  %v931_v54 = vld [vmem:[%s5158_s4 + $0x3a30] sm:$0xff] }
  0xd4   : > { %928 = vst [vmem:[%s5163_s5 + $0xba0] sm:$0xff] %v927_v52  ;;  %930 = vst [vmem:[%s5163_s5 + $0xba8] sm:$0xff] %v929_v53 }
  0xd5   : > { %932 = vst [vmem:[%s5163_s5 + $0xbb0] sm:$0xff] %v931_v54 }
  0xd6 PF: > { %p3945_p11 = scmp.ge.s32.totalorder %s5075_s17, 1  ;;  %p945_p12 = scmp.lt.s32.totalorder %s5075_s17, 6 }
  0xd8   : > { %p946_p13 = pnand %p3945_p11, %p945_p12 }
  0xd9   : > { %s5915_s6 = sand.u32 (!%p946_p13), 1, %s5059_s13   ;;  %v1000_v55 = vld [vmem:[%s6450_s0 + $0x8] sm:$0xff] (!%p946_p13)  ;;  %vm3297_vm0 = vcmask (!%p946_p13), 850944   ;;  %vm3301_vm1 = vcmask (!%p946_p13), 1043456   ;;  %s992_s9 = smul.u32 (!%p946_p13), 6, %s5067_s15 }
  0xda   : > { %949 = sbr.rel (%p946_p13) target bundleno = 834 (0x342), region = 51  ;;  %v1004_v56 = vld [vmem:[%s6450_s0 + $0x28] sm:$0xff] (!%p946_p13)  ;;  %v5924_v57 = vpack.c.bf16 (!%p946_p13), %v1000_v55, %v1000_v55  ;;  %s5077_s4 = smov (!%p946_p13), [#allocation3]  }
  0xdb   : > { %s4376_s11 = smul.u32 (!%p946_p13), 3000, %s5915_s6  ;;  %v5926_v58 = vpack.c.bf16 (!%p946_p13), %v1004_v56, %v1004_v56  ;;  %p993_p0 = scmp.lt.s32.totalorder (!%p946_p13), %s992_s9, 29 }
  0xdc   : > { %3352 = vmatprep.mubr.bf16.mxu1 (!%p946_p13), %v5924_v57  ;;  %s4377_s21 = smul.u32 (!%p946_p13), 48, %s5915_s6  ;;  %s5001_s5 = sshll.u32 (!%p946_p13), %s5077_s4, 4  ;;  %s5002_s5 = int_to_ptr.vmem [resolvable:$false] %s5001_s5 }
  0xdd   : > { %3434 = vmatprep.mubr.bf16.mxu0 (!%p946_p13), %v5926_v58  ;;  %s5930_s18 = scalar_lea.vmem (!%p946_p13), [#allocation2], %s4376_s11  ;;  %s5003_s7 = scalar_lea.vmem (!%p946_p13), %s5002_s5, 1536 }
  0xde   : > { %v4433_v59 = vld [vmem:[%s5930_s18 + $0x4] ss:$24 sps:$4 sm:$0xff] (!%p946_p13)   ;;  %v4437_v61 = vld [vmem:[%s5930_s18] ss:$24 sps:$4 sm:$0xff] (!%p946_p13)   ;;  %v4439_v63 = vld [vmem:[%s5930_s18 + $0x34] ss:$24 sps:$4 sm:$0xff] (!%p946_p13)  }
  0xdf   : > { %v4435_v60 = vld [vmem:[%s5930_s18 + $0x604] ss:$24 sps:$4 sm:$0xff] (!%p946_p13)   ;;  %3320 = vmatprep.subr.bf16.mxu1 (!%p946_p13), %v4433_v59  ;;  %v4438_v62 = vld [vmem:[%s5930_s18 + $0x600] ss:$24 sps:$4 sm:$0xff] (!%p946_p13)   ;;  %v4441_v0 = vld [vmem:[%s5930_s18 + $0x634] ss:$24 sps:$4 sm:$0xff] (!%p946_p13)  }
  0xe0   : > { %3402 = vmatprep.subr.bf16.mxu0 (!%p946_p13), %v4435_v60  ;;  %3321 = vmatpush1.bf16.msra.mxu1 (!%p946_p13), %v4437_v61  ;;  %v4443_v1 = vld [vmem:[%s5930_s18 + $0x30] ss:$24 sps:$4 sm:$0xff] (!%p946_p13)   ;;  %v4445_v3 = vld [vmem:[%s5930_s18 + $0x64] ss:$24 sps:$4 sm:$0xff] (!%p946_p13)   ;;  %v4449_v5 = vld [vmem:[%s5930_s18 + $0x60] ss:$24 sps:$4 sm:$0xff] (!%p946_p13)  }
  0xe1   : > { %3403 = vmatpush1.bf16.msra.mxu0 %v4438_v62  ;;  %3322 = vmatprep.subr.bf16.mxu1 %v4439_v63  ;;  %v4444_v2 = vld [vmem:[%s5930_s18 + $0x630] ss:$24 sps:$4 sm:$0xff]   ;;  %v4447_v4 = vld [vmem:[%s5930_s18 + $0x664] ss:$24 sps:$4 sm:$0xff]   ;;  %v4450_v6 = vld [vmem:[%s5930_s18 + $0x660] ss:$24 sps:$4 sm:$0xff]  }
  0xe2   : > { %3404 = vmatprep.subr.bf16.mxu0 %v4441_v0  ;;  %v4451_v7 = vld [vmem:[%s5930_s18 + $0x94] ss:$24 sps:$4 sm:$0xff]   ;;  %v4455_v9 = vld [vmem:[%s5930_s18 + $0x90] ss:$24 sps:$4 sm:$0xff]   ;;  %v4457_v11 = vld [vmem:[%s5930_s18 + $0xc4] ss:$24 sps:$4 sm:$0xff]  }
  0xe3   : > { %v4453_v8 = vld [vmem:[%s5930_s18 + $0x694] ss:$24 sps:$4 sm:$0xff]   ;;  %v4456_v10 = vld [vmem:[%s5930_s18 + $0x690] ss:$24 sps:$4 sm:$0xff]   ;;  %v4459_v12 = vld [vmem:[%s5930_s18 + $0x6c4] ss:$24 sps:$4 sm:$0xff]  }
  0xe4   : > { %3323 = vmatpush1.bf16.msra.mxu1 %v4443_v1  ;;  %v4461_v13 = vld [vmem:[%s5930_s18 + $0xc0] ss:$24 sps:$4 sm:$0xff]   ;;  %v4463_v15 = vld [vmem:[%s5930_s18 + $0xf4] ss:$24 sps:$4 sm:$0xff]   ;;  %v4467_v17 = vld [vmem:[%s5930_s18 + $0xf0] ss:$24 sps:$4 sm:$0xff]  }
  0xe5   : > { %3405 = vmatpush1.bf16.msra.mxu0 %v4444_v2  ;;  %3324 = vmatprep.subr.bf16.mxu1 %v4445_v3  ;;  %v4462_v14 = vld [vmem:[%s5930_s18 + $0x6c0] ss:$24 sps:$4 sm:$0xff]   ;;  %v4465_v16 = vld [vmem:[%s5930_s18 + $0x6f4] ss:$24 sps:$4 sm:$0xff]   ;;  %v4468_v18 = vld [vmem:[%s5930_s18 + $0x6f0] ss:$24 sps:$4 sm:$0xff]  }
  0xe6   : > { %3406 = vmatprep.subr.bf16.mxu0 %v4447_v4  ;;  %v4469_v19 = vld [vmem:[%s5930_s18 + $0x124] ss:$24 sps:$4 sm:$0xff]   ;;  %v4473_v21 = vld [vmem:[%s5930_s18 + $0x120] ss:$24 sps:$4 sm:$0xff]   ;;  %v4475_v23 = vld [vmem:[%s5930_s18 + $0x154] ss:$24 sps:$4 sm:$0xff]  }
  0xe7   : > { %v4471_v20 = vld [vmem:[%s5930_s18 + $0x724] ss:$24 sps:$4 sm:$0xff]   ;;  %v4474_v22 = vld [vmem:[%s5930_s18 + $0x720] ss:$24 sps:$4 sm:$0xff]   ;;  %v4477_v24 = vld [vmem:[%s5930_s18 + $0x754] ss:$24 sps:$4 sm:$0xff]  }
  0xe8   : > { %3325 = vmatpush1.bf16.msra.mxu1 %v4449_v5  ;;  %v4479_v25 = vld [vmem:[%s5930_s18 + $0x150] ss:$24 sps:$4 sm:$0xff]   ;;  %v4481_v27 = vld [vmem:[%s5930_s18 + $0x184] ss:$24 sps:$4 sm:$0xff]   ;;  %v4485_v29 = vld [vmem:[%s5930_s18 + $0x180] ss:$24 sps:$4 sm:$0xff]  }
  0xe9   : > { %3407 = vmatpush1.bf16.msra.mxu0 %v4450_v6  ;;  %3326 = vmatprep.subr.bf16.mxu1 %v4451_v7  ;;  %v4480_v26 = vld [vmem:[%s5930_s18 + $0x750] ss:$24 sps:$4 sm:$0xff]   ;;  %v4483_v28 = vld [vmem:[%s5930_s18 + $0x784] ss:$24 sps:$4 sm:$0xff]   ;;  %v4486_v30 = vld [vmem:[%s5930_s18 + $0x780] ss:$24 sps:$4 sm:$0xff]  }
  0xea   : > { %3408 = vmatprep.subr.bf16.mxu0 %v4453_v8  ;;  %v4487_v31 = vld [vmem:[%s5930_s18 + $0x1b4] ss:$24 sps:$4 sm:$0xff]   ;;  %v4491_v33 = vld [vmem:[%s5930_s18 + $0x1b0] ss:$24 sps:$4 sm:$0xff]   ;;  %v4493_v35 = vld [vmem:[%s5930_s18 + $0x1e4] ss:$24 sps:$4 sm:$0xff]  }
  0xeb   : > { %v4489_v32 = vld [vmem:[%s5930_s18 + $0x7b4] ss:$24 sps:$4 sm:$0xff]   ;;  %v4492_v34 = vld [vmem:[%s5930_s18 + $0x7b0] ss:$24 sps:$4 sm:$0xff]   ;;  %v4495_v36 = vld [vmem:[%s5930_s18 + $0x7e4] ss:$24 sps:$4 sm:$0xff]  }
  0xec   : > { %3327 = vmatpush1.bf16.msra.mxu1 %v4455_v9  ;;  %v4497_v37 = vld [vmem:[%s5930_s18 + $0x1e0] ss:$24 sps:$4 sm:$0xff]   ;;  %v4499_v39 = vld [vmem:[%s5930_s18 + $0x214] ss:$24 sps:$4 sm:$0xff]   ;;  %v4503_v41 = vld [vmem:[%s5930_s18 + $0x210] ss:$24 sps:$4 sm:$0xff]  }
  0xed   : > { %3409 = vmatpush1.bf16.msra.mxu0 %v4456_v10  ;;  %3328 = vmatprep.subr.bf16.mxu1 %v4457_v11  ;;  %v4498_v38 = vld [vmem:[%s5930_s18 + $0x7e0] ss:$24 sps:$4 sm:$0xff]   ;;  %v4501_v40 = vld [vmem:[%s5930_s18 + $0x814] ss:$24 sps:$4 sm:$0xff]   ;;  %v4504_v42 = vld [vmem:[%s5930_s18 + $0x810] ss:$24 sps:$4 sm:$0xff]  }
  0xee   : > { %3410 = vmatprep.subr.bf16.mxu0 %v4459_v12  ;;  %v4505_v43 = vld [vmem:[%s5930_s18 + $0x244] ss:$24 sps:$4 sm:$0xff]   ;;  %v4509_v45 = vld [vmem:[%s5930_s18 + $0x240] ss:$24 sps:$4 sm:$0xff]   ;;  %v4511_v47 = vld [vmem:[%s5930_s18 + $0x274] ss:$24 sps:$4 sm:$0xff]  }
  0xef   : > { %v4507_v44 = vld [vmem:[%s5930_s18 + $0x844] ss:$24 sps:$4 sm:$0xff]   ;;  %v4510_v46 = vld [vmem:[%s5930_s18 + $0x840] ss:$24 sps:$4 sm:$0xff]   ;;  %v4513_v48 = vld [vmem:[%s5930_s18 + $0x874] ss:$24 sps:$4 sm:$0xff]  }
  0xf0   : > { %3329 = vmatpush1.bf16.msra.mxu1 %v4461_v13  ;;  %v4515_v49 = vld [vmem:[%s5930_s18 + $0x270] ss:$24 sps:$4 sm:$0xff]   ;;  %v4517_v51 = vld [vmem:[%s5930_s18 + $0x2a4] ss:$24 sps:$4 sm:$0xff]   ;;  %v4521_v53 = vld [vmem:[%s5930_s18 + $0x2a0] ss:$24 sps:$4 sm:$0xff]  }
  0xf1   : > { %3411 = vmatpush1.bf16.msra.mxu0 %v4462_v14  ;;  %3330 = vmatprep.subr.bf16.mxu1 %v4463_v15  ;;  %v4516_v50 = vld [vmem:[%s5930_s18 + $0x870] ss:$24 sps:$4 sm:$0xff]   ;;  %v4519_v52 = vld [vmem:[%s5930_s18 + $0x8a4] ss:$24 sps:$4 sm:$0xff]   ;;  %v4522_v54 = vld [vmem:[%s5930_s18 + $0x8a0] ss:$24 sps:$4 sm:$0xff]  }
  0xf2   : > { %3412 = vmatprep.subr.bf16.mxu0 %v4465_v16  ;;  %v4523_v55 = vld [vmem:[%s5930_s18 + $0x2d4] ss:$24 sps:$4 sm:$0xff]   ;;  %v4527_v61 = vld [vmem:[%s5930_s18 + $0x2d0] ss:$24 sps:$4 sm:$0xff]   ;;  %v4531_v63 = vld [vmem:[%s5930_s18 + $0x304] ss:$24 sps:$4 sm:$0xff]  }
  0xf3   : > { %v4525_v56 = vld [vmem:[%s5930_s18 + $0x8d4] ss:$24 sps:$4 sm:$0xff]   ;;  %v4528_v62 = vld [vmem:[%s5930_s18 + $0x8d0] ss:$24 sps:$4 sm:$0xff]   ;;  %v4534_v0 = vld [vmem:[%s5930_s18 + $0x904] ss:$24 sps:$4 sm:$0xff]  }
  0xf4   : > { %3331 = vmatpush1.bf16.msra.mxu1 %v4467_v17  ;;  %v999_v59 = vld [vmem:[%s6450_s0] sm:$0xff]  ;;  %v1006_v1 = vld [vmem:[%s6450_s0 + $0x38] sm:$0xff]  ;;  %s6464_s9 = smov (!%p993_p0, %s992_s9), 29  ;;  %s6351_s23 = scalar_lea.vmem [#allocation3], %s4377_s21 }
  0xf5   : > { %3413 = vmatpush1.bf16.msra.mxu0 %v4468_v18  ;;  %3332 = vmatprep.subr.bf16.mxu1 %v4469_v19  ;;  %v1003_v60 = vld [vmem:[%s6450_s0 + $0x20] sm:$0xff]  ;;  %v1002_v2 = vld [vmem:[%s6450_s0 + $0x18] sm:$0xff]  ;;  %v6012_v5 = vpack.c.bf16 %v999_v59, %v999_v59  ;;  %v6018_v9 = vpack.c.bf16 %v1006_v1, %v1006_v1  ;;  %s995_s19 = scalar_lea.vmem %s6452_s2, %s6464_s9  ;;  %s3839_s26 = sshll.u32 %s6351_s23, 4  ;;  %s6402_s26 = int_to_ptr.vmem [resolvable:$true] %s3839_s26 }
  0xf6   : > { %3414 = vmatprep.subr.bf16.mxu0 %v4471_v20  ;;  %v4529_v3 = vld [vmem:[%s5930_s18 + $0x300] ss:$24 sps:$4 sm:$0xff]   ;;  %v6014_v6 = vpack.c.bf16 %v1003_v60, %v1003_v60  ;;  %v4537_v7 = vld [vmem:[%s5930_s18 + $0x334] ss:$24 sps:$4 sm:$0xff]   ;;  %v6020_v10 = vpack.c.bf16 %v1002_v2, %v1002_v2  ;;  %v4535_v11 = vld [vmem:[%s5930_s18 + $0x330] ss:$24 sps:$4 sm:$0xff]   ;;  %p5004_p4 = scmp.lt.s32.totalorder %s6402_s26, %s5002_s5 }
  0xf7   : > { %v4532_v4 = vld [vmem:[%s5930_s18 + $0x900] ss:$24 sps:$4 sm:$0xff]   ;;  %v4540_v8 = vld [vmem:[%s5930_s18 + $0x934] ss:$24 sps:$4 sm:$0xff]   ;;  %v4538_v12 = vld [vmem:[%s5930_s18 + $0x930] ss:$24 sps:$4 sm:$0xff]  }
  0xf8   : > { %3333 = vmatpush1.bf16.msra.mxu1 %v4473_v21  ;;  %v4543_v13 = vld [vmem:[%s5930_s18 + $0x364] ss:$24 sps:$4 sm:$0xff]   ;;  %v4541_v15 = vld [vmem:[%s5930_s18 + $0x360] ss:$24 sps:$4 sm:$0xff]   ;;  %v4549_v17 = vld [vmem:[%s5930_s18 + $0x394] ss:$24 sps:$4 sm:$0xff]  }
  0xf9   : > { %3415 = vmatpush1.bf16.msra.mxu0 %v4474_v22  ;;  %3334 = vmatprep.subr.bf16.mxu1 %v4475_v23  ;;  %v4546_v14 = vld [vmem:[%s5930_s18 + $0x964] ss:$24 sps:$4 sm:$0xff]   ;;  %v4544_v16 = vld [vmem:[%s5930_s18 + $0x960] ss:$24 sps:$4 sm:$0xff]   ;;  %v4552_v18 = vld [vmem:[%s5930_s18 + $0x994] ss:$24 sps:$4 sm:$0xff]  }
  0xfa   : > { %3416 = vmatprep.subr.bf16.mxu0 %v4477_v24  ;;  %v4547_v19 = vld [vmem:[%s5930_s18 + $0x390] ss:$24 sps:$4 sm:$0xff]   ;;  %v4555_v21 = vld [vmem:[%s5930_s18 + $0x3c4] ss:$24 sps:$4 sm:$0xff]   ;;  %v4553_v23 = vld [vmem:[%s5930_s18 + $0x3c0] ss:$24 sps:$4 sm:$0xff]  }
  0xfb   : > { %v4550_v20 = vld [vmem:[%s5930_s18 + $0x990] ss:$24 sps:$4 sm:$0xff]   ;;  %v4558_v22 = vld [vmem:[%s5930_s18 + $0x9c4] ss:$24 sps:$4 sm:$0xff]   ;;  %v4556_v24 = vld [vmem:[%s5930_s18 + $0x9c0] ss:$24 sps:$4 sm:$0xff]  }
  0xfc   : > { %3335 = vmatpush1.bf16.msra.mxu1 %v4479_v25  ;;  %v4561_v25 = vld [vmem:[%s5930_s18 + $0x3f4] ss:$24 sps:$4 sm:$0xff]   ;;  %s4997_s30 = scalar_lea.vmem %s6402_s26, 768 }
  0xfd   : > { %3417 = vmatpush1.bf16.msra.mxu0 %v4480_v26  ;;  %3336 = vmatprep.subr.bf16.mxu1 %v4481_v27  ;;  %v4564_v26 = vld [vmem:[%s5930_s18 + $0x9f4] ss:$24 sps:$4 sm:$0xff]   ;;  %v4559_v27 = vld [vmem:[%s5930_s18 + $0x3f0] ss:$24 sps:$4 sm:$0xff]   ;;  %p4998_p1 = scmp.ne.s32.totalorder %s6402_s26, %s4997_s30  ;;  %p5005_p6 = scmp.lt.s32.totalorder %s5003_s7, %s4997_s30 }
  0xfe   : > { %3418 = vmatprep.subr.bf16.mxu0 %v4483_v28  ;;  %v4562_v28 = vld [vmem:[%s5930_s18 + $0x9f0] ss:$24 sps:$4 sm:$0xff]   ;;  %v4609_v59 = vld [vmem:[%s5930_s18 + $0x574] ss:$24 sps:$4 sm:$0xff]  }
  0xff   : > { %v4612_v60 = vld [vmem:[%s5930_s18 + $0xb74] ss:$24 sps:$4 sm:$0xff]   ;;  %p4999_p2 = pnand %p4998_p1, %p5137_p5  ;;  %p5006_p7 = por %p5005_p6, %p5004_p4 }
 0x100   : > { %3337 = vmatpush1.bf16.msra.mxu1 %v4485_v29  ;;  %v4567_v29 = vld [vmem:[%s5930_s18 + $0x424] ss:$24 sps:$4 sm:$0xff]  }
 0x101   : > { %3419 = vmatpush1.bf16.msra.mxu0 %v4486_v30  ;;  %3338 = vmatprep.subr.bf16.mxu1 %v4487_v31  ;;  %v4570_v30 = vld [vmem:[%s5930_s18 + $0xa24] ss:$24 sps:$4 sm:$0xff]   ;;  %v4565_v31 = vld [vmem:[%s5930_s18 + $0x420] ss:$24 sps:$4 sm:$0xff]   ;;  %p5000_p3 = pneg %p4999_p2 }
 0x102   : > { %3420 = vmatprep.subr.bf16.mxu0 %v4489_v32  ;;  %v4568_v32 = vld [vmem:[%s5930_s18 + $0xa20] ss:$24 sps:$4 sm:$0xff]  }
 0x103   : > { %p5007_p8 = pnand %p5006_p7, %p5000_p3 }
 0x104   : > { %3339 = vmatpush1.bf16.msra.mxu1 %v4491_v33  ;;  %v4573_v33 = vld [vmem:[%s5930_s18 + $0x454] ss:$24 sps:$4 sm:$0xff]  }
 0x105   : > { %3421 = vmatpush1.bf16.msra.mxu0 %v4492_v34  ;;  %3340 = vmatprep.subr.bf16.mxu1 %v4493_v35  ;;  %v4576_v34 = vld [vmem:[%s5930_s18 + $0xa54] ss:$24 sps:$4 sm:$0xff]   ;;  %v4571_v35 = vld [vmem:[%s5930_s18 + $0x450] ss:$24 sps:$4 sm:$0xff]  }
 0x106   : > { %3422 = vmatprep.subr.bf16.mxu0 %v4495_v36  ;;  %v4574_v36 = vld [vmem:[%s5930_s18 + $0xa50] ss:$24 sps:$4 sm:$0xff]  }
 0x108   : > { %3341 = vmatpush1.bf16.msra.mxu1 %v4497_v37  ;;  %v4579_v37 = vld [vmem:[%s5930_s18 + $0x484] ss:$24 sps:$4 sm:$0xff]  }
 0x109   : > { %3423 = vmatpush1.bf16.msra.mxu0 %v4498_v38  ;;  %3342 = vmatprep.subr.bf16.mxu1 %v4499_v39  ;;  %v4582_v38 = vld [vmem:[%s5930_s18 + $0xa84] ss:$24 sps:$4 sm:$0xff]   ;;  %v4577_v39 = vld [vmem:[%s5930_s18 + $0x480] ss:$24 sps:$4 sm:$0xff]  }
 0x10a   : > { %3424 = vmatprep.subr.bf16.mxu0 %v4501_v40  ;;  %v4580_v40 = vld [vmem:[%s5930_s18 + $0xa80] ss:$24 sps:$4 sm:$0xff]  }
 0x10c   : > { %3343 = vmatpush1.bf16.msra.mxu1 %v4503_v41  ;;  %v4585_v41 = vld [vmem:[%s5930_s18 + $0x4b4] ss:$24 sps:$4 sm:$0xff]  }
 0x10d   : > { %3425 = vmatpush1.bf16.msra.mxu0 %v4504_v42  ;;  %3344 = vmatprep.subr.bf16.mxu1 %v4505_v43  ;;  %v4588_v42 = vld [vmem:[%s5930_s18 + $0xab4] ss:$24 sps:$4 sm:$0xff]   ;;  %v4583_v43 = vld [vmem:[%s5930_s18 + $0x4b0] ss:$24 sps:$4 sm:$0xff]  }
 0x10e   : > { %3426 = vmatprep.subr.bf16.mxu0 %v4507_v44  ;;  %v4586_v44 = vld [vmem:[%s5930_s18 + $0xab0] ss:$24 sps:$4 sm:$0xff]  }
 0x110   : > { %3345 = vmatpush1.bf16.msra.mxu1 %v4509_v45  ;;  %v4591_v45 = vld [vmem:[%s5930_s18 + $0x4e4] ss:$24 sps:$4 sm:$0xff]  }
 0x111   : > { %3427 = vmatpush1.bf16.msra.mxu0 %v4510_v46  ;;  %3346 = vmatprep.subr.bf16.mxu1 %v4511_v47  ;;  %v4594_v46 = vld [vmem:[%s5930_s18 + $0xae4] ss:$24 sps:$4 sm:$0xff]   ;;  %v4589_v47 = vld [vmem:[%s5930_s18 + $0x4e0] ss:$24 sps:$4 sm:$0xff]  }
 0x112   : > { %3428 = vmatprep.subr.bf16.mxu0 %v4513_v48  ;;  %v4592_v48 = vld [vmem:[%s5930_s18 + $0xae0] ss:$24 sps:$4 sm:$0xff]  }
 0x114   : > { %3347 = vmatpush1.bf16.msra.mxu1 %v4515_v49  ;;  %v4597_v49 = vld [vmem:[%s5930_s18 + $0x514] ss:$24 sps:$4 sm:$0xff]  }
 0x115   : > { %3429 = vmatpush1.bf16.msra.mxu0 %v4516_v50  ;;  %3348 = vmatprep.subr.bf16.mxu1 %v4517_v51  ;;  %v4600_v50 = vld [vmem:[%s5930_s18 + $0xb14] ss:$24 sps:$4 sm:$0xff]   ;;  %v4595_v51 = vld [vmem:[%s5930_s18 + $0x510] ss:$24 sps:$4 sm:$0xff]  }
 0x116   : > { %3430 = vmatprep.subr.bf16.mxu0 %v4519_v52  ;;  %v4598_v52 = vld [vmem:[%s5930_s18 + $0xb10] ss:$24 sps:$4 sm:$0xff]  }
 0x118   : > { %3349 = vmatpush1.bf16.msra.mxu1 %v4521_v53  ;;  %v4603_v53 = vld [vmem:[%s5930_s18 + $0x544] ss:$24 sps:$4 sm:$0xff]  }
 0x119   : > { %3431 = vmatpush1.bf16.msra.mxu0 %v4522_v54  ;;  %3350 = vmatprep.subr.bf16.mxu1 %v4523_v55  ;;  %v4606_v54 = vld [vmem:[%s5930_s18 + $0xb44] ss:$24 sps:$4 sm:$0xff]   ;;  %v4601_v55 = vld [vmem:[%s5930_s18 + $0x540] ss:$24 sps:$4 sm:$0xff]  }
 0x11a   : > { %3432 = vmatprep.subr.bf16.mxu0 %v4525_v56  ;;  %v4604_v56 = vld [vmem:[%s5930_s18 + $0xb40] ss:$24 sps:$4 sm:$0xff]  }
 0x11c   : > { %3351 = vmatpush1.bf16.msra.mxu1 %v4527_v61  ;;  %v1387_v61 = vld [vmem:[%s5930_s18 + $0xba0] sm:$0xff] }
 0x11d   : > { %3433 = vmatpush1.bf16.msra.mxu0 %v4528_v62  ;;  %3361 = vmatprep.subr.bf16.mxu1 %v4531_v63  ;;  %v4607_v62 = vld [vmem:[%s5930_s18 + $0x570] ss:$24 sps:$4 sm:$0xff]   ;;  %v4319_v1 = vcombine.high %v1387_v61, %v1387_v61  ;;  %v4318_v2 = vcombine.low %v1387_v61, %v1387_v61  ;;  %v4687_v61 = vld [vmem:[%s5930_s18 + $0x220] ss:$24 sps:$4 sm:$0xff]  }
 0x11e   : > { %3443 = vmatprep.subr.bf16.mxu0 %v4534_v0  ;;  %v4610_v63 = vld [vmem:[%s5930_s18 + $0xb70] ss:$24 sps:$4 sm:$0xff]   ;;  %v4615_v0 = vld [vmem:[%s5930_s18 + $0x5a4] ss:$24 sps:$4 sm:$0xff]  }
 0x11f   : > { %3353 = vmatmul.mubr.bf16.vlgmr.msra.gmra.mrb[0].mxu1 %v6012_v5 }
 0x120   : > { %3435 = vmatmul.mubr.bf16.vlgmr.msra.gmra.mrb[0].mxu0 %v6014_v6  ;;  %3362 = vmatpush1.bf16.msra.mxu1 %v4529_v3  ;;  %v4613_v3 = vld [vmem:[%s5930_s18 + $0x5a0] ss:$24 sps:$4 sm:$0xff]  }
 0x121   : > { %3444 = vmatpush1.bf16.msra.mxu0 %v4532_v4  ;;  %3363 = vmatprep.subr.bf16.mxu1 %v4537_v7  ;;  %v1005_v4 = vld [vmem:[%s6450_s0 + $0x30] sm:$0xff]  ;;  %v3303_v7 = vsel %vm3301_vm1, %v4318_v2, 0 }
 0x122   : > { %3445 = vmatprep.subr.bf16.mxu0 %v4540_v8  ;;  %4325 = vmatprep.mubr.msk.bf16.mxu0 %vm3297_vm0, %v6018_v9  ;;  %v4620_v8 = vld [vmem:[%s5930_s18 + $0x5d4] ss:$24 sps:$4 sm:$0xff]  }
 0x123   : > { %3393 = vmatprep.mubr.bf16.mxu1 %v6020_v10  ;;  %v4698_v2 = vld [vmem:[%s5930_s18 + $0x24c] ss:$24 sps:$4 sm:$0xff]  }
 0x124   : > { %3364 = vmatpush1.bf16.msra.mxu1 %v4535_v11  ;;  %v4623_v11 = vld [vmem:[%s5930_s18 + $0x14] ss:$24 sps:$4 sm:$0xff]  }
 0x125   : > { %3446 = vmatpush1.bf16.msra.mxu0 %v4538_v12  ;;  %3365 = vmatprep.subr.bf16.mxu1 %v4543_v13  ;;  %v4618_v12 = vld [vmem:[%s5930_s18 + $0x5d0] ss:$24 sps:$4 sm:$0xff]   ;;  %v6088_v13 = vpack.c.bf16 %v1005_v4, %v1005_v4 }
 0x126   : > { %3447 = vmatprep.subr.bf16.mxu0 %v4546_v14  ;;  %v4621_v14 = vld [vmem:[%s5930_s18 + $0x10] ss:$24 sps:$4 sm:$0xff]  }
 0x127   : > { %v4696_v4 = vld [vmem:[%s5930_s18 + $0x248] ss:$24 sps:$4 sm:$0xff]  }
 0x128   : > { %3366 = vmatpush1.bf16.msra.mxu1 %v4541_v15  ;;  %v1001_v15 = vld [vmem:[%s6450_s0 + $0x10] sm:$0xff] }
 0x129   : > { %3448 = vmatpush1.bf16.msra.mxu0 %v4544_v16  ;;  %3367 = vmatprep.subr.bf16.mxu1 %v4549_v17  ;;  %v4626_v16 = vld [vmem:[%s5930_s18 + $0xc] ss:$24 sps:$4 sm:$0xff]  }
 0x12a   : > { %3449 = vmatprep.subr.bf16.mxu0 %v4552_v18  ;;  %v4629_v17 = vld [vmem:[%s5930_s18 + $0x44] ss:$24 sps:$4 sm:$0xff]   ;;  %v6097_v18 = vpack.c.bf16 %v1001_v15, %v1001_v15 }
 0x12b   : > { %v4710_v15 = vld [vmem:[%s5930_s18 + $0x2ac] ss:$24 sps:$4 sm:$0xff]  }
 0x12c   : > { %3368 = vmatpush1.bf16.msra.mxu1 %v4547_v19  ;;  %v4624_v19 = vld [vmem:[%s5930_s18 + $0x8] ss:$24 sps:$4 sm:$0xff]  }
 0x12d   : > { %3450 = vmatpush1.bf16.msra.mxu0 %v4550_v20  ;;  %3369 = vmatprep.subr.bf16.mxu1 %v4555_v21  ;;  %v4627_v20 = vld [vmem:[%s5930_s18 + $0x40] ss:$24 sps:$4 sm:$0xff]   ;;  %v4632_v21 = vld [vmem:[%s5930_s18 + $0x3c] ss:$24 sps:$4 sm:$0xff]  }
 0x12e   : > { %3451 = vmatprep.subr.bf16.mxu0 %v4558_v22  ;;  %v4635_v22 = vld [vmem:[%s5930_s18 + $0x74] ss:$24 sps:$4 sm:$0xff]  }
 0x130   : > { %3370 = vmatpush1.bf16.msra.mxu1 %v4553_v23  ;;  %v4630_v23 = vld [vmem:[%s5930_s18 + $0x38] ss:$24 sps:$4 sm:$0xff]  }
 0x131   : > { %3452 = vmatpush1.bf16.msra.mxu0 %v4556_v24  ;;  %3371 = vmatprep.subr.bf16.mxu1 %v4561_v25  ;;  %v4633_v24 = vld [vmem:[%s5930_s18 + $0x70] ss:$24 sps:$4 sm:$0xff]   ;;  %v4638_v25 = vld [vmem:[%s5930_s18 + $0x6c] ss:$24 sps:$4 sm:$0xff]  }
 0x132   : > { %3453 = vmatprep.subr.bf16.mxu0 %v4564_v26  ;;  %v4641_v26 = vld [vmem:[%s5930_s18 + $0xa4] ss:$24 sps:$4 sm:$0xff]  }
 0x134   : > { %3372 = vmatpush1.bf16.msra.mxu1 %v4559_v27  ;;  %v4636_v27 = vld [vmem:[%s5930_s18 + $0x68] ss:$24 sps:$4 sm:$0xff]  }
 0x135   : > { %3454 = vmatpush1.bf16.msra.mxu0 %v4562_v28  ;;  %3373 = vmatprep.subr.bf16.mxu1 %v4567_v29  ;;  %v4639_v28 = vld [vmem:[%s5930_s18 + $0xa0] ss:$24 sps:$4 sm:$0xff]   ;;  %v4644_v29 = vld [vmem:[%s5930_s18 + $0x9c] ss:$24 sps:$4 sm:$0xff]  }
 0x136   : > { %3455 = vmatprep.subr.bf16.mxu0 %v4570_v30  ;;  %v4647_v30 = vld [vmem:[%s5930_s18 + $0xd4] ss:$24 sps:$4 sm:$0xff]  }
 0x138   : > { %3374 = vmatpush1.bf16.msra.mxu1 %v4565_v31  ;;  %v4642_v31 = vld [vmem:[%s5930_s18 + $0x98] ss:$24 sps:$4 sm:$0xff]  }
 0x139   : > { %3456 = vmatpush1.bf16.msra.mxu0 %v4568_v32  ;;  %3375 = vmatprep.subr.bf16.mxu1 %v4573_v33  ;;  %v4645_v32 = vld [vmem:[%s5930_s18 + $0xd0] ss:$24 sps:$4 sm:$0xff]   ;;  %v4653_v33 = vld [vmem:[%s5930_s18 + $0x104] ss:$24 sps:$4 sm:$0xff]  }
 0x13a   : > { %3457 = vmatprep.subr.bf16.mxu0 %v4576_v34  ;;  %v4648_v34 = vld [vmem:[%s5930_s18 + $0xc8] ss:$24 sps:$4 sm:$0xff]  }
 0x13c   : > { %3376 = vmatpush1.bf16.msra.mxu1 %v4571_v35  ;;  %v4651_v35 = vld [vmem:[%s5930_s18 + $0x100] ss:$24 sps:$4 sm:$0xff]  }
 0x13d   : > { %3458 = vmatpush1.bf16.msra.mxu0 %v4574_v36  ;;  %3377 = vmatprep.subr.bf16.mxu1 %v4579_v37  ;;  %v4656_v36 = vld [vmem:[%s5930_s18 + $0xfc] ss:$24 sps:$4 sm:$0xff]  }
 0x13e   : > { %3459 = vmatprep.subr.bf16.mxu0 %v4582_v38  ;;  %v4659_v37 = vld [vmem:[%s5930_s18 + $0x134] ss:$24 sps:$4 sm:$0xff]   ;;  %v4654_v38 = vld [vmem:[%s5930_s18 + $0xf8] ss:$24 sps:$4 sm:$0xff]  }
 0x140   : > { %3378 = vmatpush1.bf16.msra.mxu1 %v4577_v39  ;;  %v4657_v39 = vld [vmem:[%s5930_s18 + $0x130] ss:$24 sps:$4 sm:$0xff]  }
 0x141   : > { %3460 = vmatpush1.bf16.msra.mxu0 %v4580_v40  ;;  %3379 = vmatprep.subr.bf16.mxu1 %v4585_v41  ;;  %v4662_v40 = vld [vmem:[%s5930_s18 + $0x12c] ss:$24 sps:$4 sm:$0xff]  }
 0x142   : > { %3461 = vmatprep.subr.bf16.mxu0 %v4588_v42  ;;  %v4665_v41 = vld [vmem:[%s5930_s18 + $0x164] ss:$24 sps:$4 sm:$0xff]   ;;  %v4660_v42 = vld [vmem:[%s5930_s18 + $0x128] ss:$24 sps:$4 sm:$0xff]  }
 0x144   : > { %3380 = vmatpush1.bf16.msra.mxu1 %v4583_v43  ;;  %v4663_v43 = vld [vmem:[%s5930_s18 + $0x160] ss:$24 sps:$4 sm:$0xff]  }
 0x145   : > { %3462 = vmatpush1.bf16.msra.mxu0 %v4586_v44  ;;  %3381 = vmatprep.subr.bf16.mxu1 %v4591_v45  ;;  %v4668_v44 = vld [vmem:[%s5930_s18 + $0x15c] ss:$24 sps:$4 sm:$0xff]  }
 0x146   : > { %3463 = vmatprep.subr.bf16.mxu0 %v4594_v46  ;;  %v4671_v45 = vld [vmem:[%s5930_s18 + $0x194] ss:$24 sps:$4 sm:$0xff]   ;;  %v4666_v46 = vld [vmem:[%s5930_s18 + $0x158] ss:$24 sps:$4 sm:$0xff]  }
 0x148   : > { %3382 = vmatpush1.bf16.msra.mxu1 %v4589_v47  ;;  %v4669_v47 = vld [vmem:[%s5930_s18 + $0x190] ss:$24 sps:$4 sm:$0xff]  }
 0x149   : > { %3464 = vmatpush1.bf16.msra.mxu0 %v4592_v48  ;;  %3383 = vmatprep.subr.bf16.mxu1 %v4597_v49  ;;  %v4674_v48 = vld [vmem:[%s5930_s18 + $0x18c] ss:$24 sps:$4 sm:$0xff]  }
 0x14a   : > { %3465 = vmatprep.subr.bf16.mxu0 %v4600_v50  ;;  %v4677_v49 = vld [vmem:[%s5930_s18 + $0x1c4] ss:$24 sps:$4 sm:$0xff]   ;;  %v4672_v50 = vld [vmem:[%s5930_s18 + $0x188] ss:$24 sps:$4 sm:$0xff]  }
 0x14c   : > { %3384 = vmatpush1.bf16.msra.mxu1 %v4595_v51  ;;  %v4675_v51 = vld [vmem:[%s5930_s18 + $0x1c0] ss:$24 sps:$4 sm:$0xff]  }
 0x14d   : > { %3466 = vmatpush1.bf16.msra.mxu0 %v4598_v52  ;;  %3385 = vmatprep.subr.bf16.mxu1 %v4603_v53  ;;  %v4680_v52 = vld [vmem:[%s5930_s18 + $0x1bc] ss:$24 sps:$4 sm:$0xff]  }
 0x14e   : > { %3467 = vmatprep.subr.bf16.mxu0 %v4606_v54  ;;  %v4683_v53 = vld [vmem:[%s5930_s18 + $0x1f4] ss:$24 sps:$4 sm:$0xff]   ;;  %v4678_v54 = vld [vmem:[%s5930_s18 + $0x1b8] ss:$24 sps:$4 sm:$0xff]  }
 0x150   : > { %3386 = vmatpush1.bf16.msra.mxu1 %v4601_v55  ;;  %v4681_v55 = vld [vmem:[%s5930_s18 + $0x1f0] ss:$24 sps:$4 sm:$0xff]  }
 0x151   : > { %3468 = vmatpush1.bf16.msra.mxu0 %v4604_v56  ;;  %3387 = vmatprep.subr.bf16.mxu1 %v4609_v59  ;;  %v4686_v56 = vld [vmem:[%s5930_s18 + $0x1ec] ss:$24 sps:$4 sm:$0xff]  }
 0x152   : > { %3469 = vmatprep.subr.bf16.mxu0 %v4612_v60  ;;  %v4689_v59 = vld [vmem:[%s5930_s18 + $0x224] ss:$24 sps:$4 sm:$0xff]   ;;  %v4684_v60 = vld [vmem:[%s5930_s18 + $0x1e8] ss:$24 sps:$4 sm:$0xff]  }
 0x154   : > { %3388 = vmatpush1.bf16.msra.mxu1 %v4607_v62  ;;  %v4692_v62 = vld [vmem:[%s5930_s18 + $0x21c] ss:$24 sps:$4 sm:$0xff]  }
 0x155   : > { %3470 = vmatpush1.bf16.msra.mxu0 %v4610_v63  ;;  %3389 = vmatprep.subr.bf16.mxu1 %v4615_v0  ;;  %v4695_v63 = vld [vmem:[%s5930_s18 + $0x254] ss:$24 sps:$4 sm:$0xff]   ;;  %v4690_v0 = vld [vmem:[%s5930_s18 + $0x218] ss:$24 sps:$4 sm:$0xff]  }
 0x156   : > { %4324 = vmatprep.subr.msk.bf16.mxu0 %vm3301_vm1, %v4319_v1  ;;  %v4693_v1 = vld [vmem:[%s5930_s18 + $0x250] ss:$24 sps:$4 sm:$0xff]  }
 0x158   : > { %3390 = vmatpush1.bf16.msra.mxu1 %v4613_v3  ;;  %v4701_v3 = vld [vmem:[%s5930_s18 + $0x284] ss:$24 sps:$4 sm:$0xff]  }
 0x159   : > { %3472 = vmatpush1.bf16.msra.mxu0 %v3303_v7  ;;  %3391 = vmatprep.subr.bf16.mxu1 %v4620_v8  ;;  %v4699_v7 = vld [vmem:[%s5930_s18 + $0x280] ss:$24 sps:$4 sm:$0xff]   ;;  %v4704_v8 = vld [vmem:[%s5930_s18 + $0x27c] ss:$24 sps:$4 sm:$0xff]  }
 0x15a   : > { %3648 = vmatprep.subr.bf16.mxu0 %v4623_v11  ;;  %v4707_v11 = vld [vmem:[%s5930_s18 + $0x2b4] ss:$24 sps:$4 sm:$0xff]  }
 0x15c   : > { %3476 = vmatmul.mubr.bf16.vlgmr.msra.gmra.mrb[0].mxu0 %v6088_v13  ;;  %3392 = vmatpush1.bf16.msra.mxu1 %v4618_v12  ;;  %v4702_v12 = vld [vmem:[%s5930_s18 + $0x278] ss:$24 sps:$4 sm:$0xff]  }
 0x15d   : > { %3649 = vmatpush1.bf16.msra.mxu0 %v4621_v14  ;;  %3484 = vmatprep.subr.bf16.mxu1 %v4626_v16  ;;  %v4705_v14 = vld [vmem:[%s5930_s18 + $0x2b0] ss:$24 sps:$4 sm:$0xff]   ;;  %v4713_v16 = vld [vmem:[%s5930_s18 + $0x2e4] ss:$24 sps:$4 sm:$0xff]  }
 0x15e   : > { %3650 = vmatprep.subr.bf16.mxu0 %v4629_v17  ;;  %3680 = vmatprep.mubr.bf16.mxu0 %v5924_v57  ;;  %v4708_v17 = vld [vmem:[%s5930_s18 + $0x2a8] ss:$24 sps:$4 sm:$0xff]  }
 0x15f   : > { %3394 = vmatmul.mubr.bf16.vlgmr.msra.gmra.mrb[0].mxu1 %v6097_v18 }
 0x160   : > { %3485 = vmatpush1.bf16.msra.mxu1 %v4624_v19  ;;  %3516 = vmatprep.mubr.bf16.mxu1 %v5924_v57  ;;  %v4650_v57 = vld [vmem:[%s5930_s18 + $0xcc] ss:$24 sps:$4 sm:$0xff]   ;;  %v4711_v19 = vld [vmem:[%s5930_s18 + $0x2e0] ss:$24 sps:$4 sm:$0xff]  }
 0x161   : > { %3651 = vmatpush1.bf16.msra.mxu0 %v4627_v20  ;;  %3486 = vmatprep.subr.bf16.mxu1 %v4632_v21  ;;  %v4716_v20 = vld [vmem:[%s5930_s18 + $0x2dc] ss:$24 sps:$4 sm:$0xff]  }
 0x162   : > { %3652 = vmatprep.subr.bf16.mxu0 %v4635_v22  ;;  %v4719_v21 = vld [vmem:[%s5930_s18 + $0x314] ss:$24 sps:$4 sm:$0xff]   ;;  %v4714_v22 = vld [vmem:[%s5930_s18 + $0x2d8] ss:$24 sps:$4 sm:$0xff]  }
 0x164   : > { %3487 = vmatpush1.bf16.msra.mxu1 %v4630_v23  ;;  %v4717_v23 = vld [vmem:[%s5930_s18 + $0x310] ss:$24 sps:$4 sm:$0xff]  }
 0x165   : > { %3653 = vmatpush1.bf16.msra.mxu0 %v4633_v24  ;;  %3488 = vmatprep.subr.bf16.mxu1 %v4638_v25  ;;  %v4722_v24 = vld [vmem:[%s5930_s18 + $0x30c] ss:$24 sps:$4 sm:$0xff]  }
 0x166   : > { %3654 = vmatprep.subr.bf16.mxu0 %v4641_v26  ;;  %v4725_v25 = vld [vmem:[%s5930_s18 + $0x344] ss:$24 sps:$4 sm:$0xff]   ;;  %v4720_v26 = vld [vmem:[%s5930_s18 + $0x308] ss:$24 sps:$4 sm:$0xff]  }
 0x168   : > { %3489 = vmatpush1.bf16.msra.mxu1 %v4636_v27  ;;  %v4723_v27 = vld [vmem:[%s5930_s18 + $0x340] ss:$24 sps:$4 sm:$0xff]  }
 0x169   : > { %3655 = vmatpush1.bf16.msra.mxu0 %v4639_v28  ;;  %3490 = vmatprep.subr.bf16.mxu1 %v4644_v29  ;;  %v4728_v28 = vld [vmem:[%s5930_s18 + $0x33c] ss:$24 sps:$4 sm:$0xff]  }
 0x16a   : > { %3656 = vmatprep.subr.bf16.mxu0 %v4647_v30  ;;  %v4731_v29 = vld [vmem:[%s5930_s18 + $0x374] ss:$24 sps:$4 sm:$0xff]   ;;  %v4726_v30 = vld [vmem:[%s5930_s18 + $0x338] ss:$24 sps:$4 sm:$0xff]  }
 0x16c   : > { %3491 = vmatpush1.bf16.msra.mxu1 %v4642_v31  ;;  %v4729_v31 = vld [vmem:[%s5930_s18 + $0x370] ss:$24 sps:$4 sm:$0xff]  }
 0x16d   : > { %3657 = vmatpush1.bf16.msra.mxu0 %v4645_v32  ;;  %3492 = vmatprep.subr.bf16.mxu1 %v4650_v57  ;;  %v4734_v32 = vld [vmem:[%s5930_s18 + $0x36c] ss:$24 sps:$4 sm:$0xff]  }
 0x16e   : > { %3658 = vmatprep.subr.bf16.mxu0 %v4653_v33  ;;  %v4737_v57 = vld [vmem:[%s5930_s18 + $0x3a4] ss:$24 sps:$4 sm:$0xff]   ;;  %v4732_v33 = vld [vmem:[%s5930_s18 + $0x368] ss:$24 sps:$4 sm:$0xff]  }
 0x170   : > { %3493 = vmatpush1.bf16.msra.mxu1 %v4648_v34  ;;  %v4740_v34 = vld [vmem:[%s5930_s18 + $0x39c] ss:$24 sps:$4 sm:$0xff]  }
 0x171   : > { %3659 = vmatpush1.bf16.msra.mxu0 %v4651_v35  ;;  %3494 = vmatprep.subr.bf16.mxu1 %v4656_v36  ;;  %v4743_v35 = vld [vmem:[%s5930_s18 + $0x3d4] ss:$24 sps:$4 sm:$0xff]   ;;  %v4738_v36 = vld [vmem:[%s5930_s18 + $0x398] ss:$24 sps:$4 sm:$0xff]  }
 0x172   : > { %3660 = vmatprep.subr.bf16.mxu0 %v4659_v37  ;;  %v4741_v37 = vld [vmem:[%s5930_s18 + $0x3d0] ss:$24 sps:$4 sm:$0xff]  }
 0x174   : > { %3495 = vmatpush1.bf16.msra.mxu1 %v4654_v38  ;;  %v4749_v38 = vld [vmem:[%s5930_s18 + $0x404] ss:$24 sps:$4 sm:$0xff]  }
 0x175   : > { %3661 = vmatpush1.bf16.msra.mxu0 %v4657_v39  ;;  %3496 = vmatprep.subr.bf16.mxu1 %v4662_v40  ;;  %v4744_v39 = vld [vmem:[%s5930_s18 + $0x3c8] ss:$24 sps:$4 sm:$0xff]  }
 0x176   : > { %3662 = vmatprep.subr.bf16.mxu0 %v4665_v41  ;;  %v4747_v40 = vld [vmem:[%s5930_s18 + $0x400] ss:$24 sps:$4 sm:$0xff]   ;;  %v4752_v41 = vld [vmem:[%s5930_s18 + $0x3fc] ss:$24 sps:$4 sm:$0xff]  }
 0x178   : > { %3497 = vmatpush1.bf16.msra.mxu1 %v4660_v42  ;;  %v4755_v42 = vld [vmem:[%s5930_s18 + $0x434] ss:$24 sps:$4 sm:$0xff]  }
 0x179   : > { %3663 = vmatpush1.bf16.msra.mxu0 %v4663_v43  ;;  %3498 = vmatprep.subr.bf16.mxu1 %v4668_v44  ;;  %v4750_v43 = vld [vmem:[%s5930_s18 + $0x3f8] ss:$24 sps:$4 sm:$0xff]  }
 0x17a   : > { %3664 = vmatprep.subr.bf16.mxu0 %v4671_v45  ;;  %v4753_v44 = vld [vmem:[%s5930_s18 + $0x430] ss:$24 sps:$4 sm:$0xff]   ;;  %v4758_v45 = vld [vmem:[%s5930_s18 + $0x42c] ss:$24 sps:$4 sm:$0xff]  }
 0x17c   : > { %3499 = vmatpush1.bf16.msra.mxu1 %v4666_v46  ;;  %v4761_v46 = vld [vmem:[%s5930_s18 + $0x464] ss:$24 sps:$4 sm:$0xff]  }
 0x17d   : > { %3665 = vmatpush1.bf16.msra.mxu0 %v4669_v47  ;;  %3500 = vmatprep.subr.bf16.mxu1 %v4674_v48  ;;  %v4756_v47 = vld [vmem:[%s5930_s18 + $0x428] ss:$24 sps:$4 sm:$0xff]  }
 0x17e   : > { %3666 = vmatprep.subr.bf16.mxu0 %v4677_v49  ;;  %v4759_v48 = vld [vmem:[%s5930_s18 + $0x460] ss:$24 sps:$4 sm:$0xff]   ;;  %v4764_v49 = vld [vmem:[%s5930_s18 + $0x45c] ss:$24 sps:$4 sm:$0xff]  }
 0x180   : > { %3501 = vmatpush1.bf16.msra.mxu1 %v4672_v50  ;;  %v4767_v50 = vld [vmem:[%s5930_s18 + $0x494] ss:$24 sps:$4 sm:$0xff]  }
 0x181   : > { %3667 = vmatpush1.bf16.msra.mxu0 %v4675_v51  ;;  %3502 = vmatprep.subr.bf16.mxu1 %v4680_v52  ;;  %v4762_v51 = vld [vmem:[%s5930_s18 + $0x458] ss:$24 sps:$4 sm:$0xff]  }
 0x182   : > { %3668 = vmatprep.subr.bf16.mxu0 %v4683_v53  ;;  %v4765_v52 = vld [vmem:[%s5930_s18 + $0x490] ss:$24 sps:$4 sm:$0xff]   ;;  %v4770_v53 = vld [vmem:[%s5930_s18 + $0x48c] ss:$24 sps:$4 sm:$0xff]  }
 0x184   : > { %3503 = vmatpush1.bf16.msra.mxu1 %v4678_v54  ;;  %v4773_v54 = vld [vmem:[%s5930_s18 + $0x4c4] ss:$24 sps:$4 sm:$0xff]  }
 0x185   : > { %3669 = vmatpush1.bf16.msra.mxu0 %v4681_v55  ;;  %3504 = vmatprep.subr.bf16.mxu1 %v4686_v56  ;;  %v4768_v55 = vld [vmem:[%s5930_s18 + $0x488] ss:$24 sps:$4 sm:$0xff]  }
 0x186   : > { %3670 = vmatprep.subr.bf16.mxu0 %v4689_v59  ;;  %v4771_v56 = vld [vmem:[%s5930_s18 + $0x4c0] ss:$24 sps:$4 sm:$0xff]   ;;  %v4776_v59 = vld [vmem:[%s5930_s18 + $0x4bc] ss:$24 sps:$4 sm:$0xff]  }
 0x188   : > { %3505 = vmatpush1.bf16.msra.mxu1 %v4684_v60  ;;  %v4779_v60 = vld [vmem:[%s5930_s18 + $0x4f4] ss:$24 sps:$4 sm:$0xff]  }
 0x189   : > { %3671 = vmatpush1.bf16.msra.mxu0 %v4687_v61  ;;  %3506 = vmatprep.subr.bf16.mxu1 %v4692_v62  ;;  %v4774_v61 = vld [vmem:[%s5930_s18 + $0x4b8] ss:$24 sps:$4 sm:$0xff]  }
 0x18a   : > { %3672 = vmatprep.subr.bf16.mxu0 %v4695_v63  ;;  %v4777_v62 = vld [vmem:[%s5930_s18 + $0x4f0] ss:$24 sps:$4 sm:$0xff]   ;;  %v4782_v63 = vld [vmem:[%s5930_s18 + $0x4ec] ss:$24 sps:$4 sm:$0xff]  }
 0x18c   : > { %3507 = vmatpush1.bf16.msra.mxu1 %v4690_v0  ;;  %v4785_v0 = vld [vmem:[%s5930_s18 + $0x524] ss:$24 sps:$4 sm:$0xff]  }
 0x18d   : > { %3673 = vmatpush1.bf16.msra.mxu0 %v4693_v1  ;;  %3508 = vmatprep.subr.bf16.mxu1 %v4698_v2  ;;  %v4780_v1 = vld [vmem:[%s5930_s18 + $0x4e8] ss:$24 sps:$4 sm:$0xff]  }
 0x18e   : > { %3674 = vmatprep.subr.bf16.mxu0 %v4701_v3  ;;  %v4783_v2 = vld [vmem:[%s5930_s18 + $0x520] ss:$24 sps:$4 sm:$0xff]   ;;  %v4788_v3 = vld [vmem:[%s5930_s18 + $0x51c] ss:$24 sps:$4 sm:$0xff]  }
 0x190   : > { %3509 = vmatpush1.bf16.msra.mxu1 %v4696_v4  ;;  %v4791_v4 = vld [vmem:[%s5930_s18 + $0x554] ss:$24 sps:$4 sm:$0xff]  }
 0x191   : > { %3675 = vmatpush1.bf16.msra.mxu0 %v4699_v7  ;;  %3510 = vmatprep.subr.bf16.mxu1 %v4704_v8  ;;  %v4786_v7 = vld [vmem:[%s5930_s18 + $0x518] ss:$24 sps:$4 sm:$0xff]  }
 0x192   : > { %3676 = vmatprep.subr.bf16.mxu0 %v4707_v11  ;;  %v4789_v8 = vld [vmem:[%s5930_s18 + $0x550] ss:$24 sps:$4 sm:$0xff]   ;;  %v4794_v11 = vld [vmem:[%s5930_s18 + $0x54c] ss:$24 sps:$4 sm:$0xff]  }
 0x194   : > { %3511 = vmatpush1.bf16.msra.mxu1 %v4702_v12  ;;  %v4797_v12 = vld [vmem:[%s5930_s18 + $0x584] ss:$24 sps:$4 sm:$0xff]  }
 0x195   : > { %3677 = vmatpush1.bf16.msra.mxu0 %v4705_v14  ;;  %3512 = vmatprep.subr.bf16.mxu1 %v4710_v15  ;;  %v4792_v14 = vld [vmem:[%s5930_s18 + $0x548] ss:$24 sps:$4 sm:$0xff]  }
 0x196   : > { %3678 = vmatprep.subr.bf16.mxu0 %v4713_v16  ;;  %v4795_v15 = vld [vmem:[%s5930_s18 + $0x580] ss:$24 sps:$4 sm:$0xff]   ;;  %v4800_v16 = vld [vmem:[%s5930_s18 + $0x57c] ss:$24 sps:$4 sm:$0xff]  }
 0x198   : > { %3513 = vmatpush1.bf16.msra.mxu1 %v4708_v17  ;;  %v4803_v17 = vld [vmem:[%s5930_s18 + $0x5b4] ss:$24 sps:$4 sm:$0xff]  }
 0x199   : > { %3679 = vmatpush1.bf16.msra.mxu0 %v4711_v19  ;;  %3514 = vmatprep.subr.bf16.mxu1 %v4716_v20  ;;  %v4798_v19 = vld [vmem:[%s5930_s18 + $0x578] ss:$24 sps:$4 sm:$0xff]  }
 0x19a   : > { %3689 = vmatprep.subr.bf16.mxu0 %v4719_v21  ;;  %v4801_v20 = vld [vmem:[%s5930_s18 + $0x5b0] ss:$24 sps:$4 sm:$0xff]   ;;  %v4806_v21 = vld [vmem:[%s5930_s18 + $0x5ac] ss:$24 sps:$4 sm:$0xff]  }
 0x19c   : > { %3681 = vmatmul.mubr.bf16.vlgmr.msra.gmra.mrb[4].mxu0 %v6012_v5  ;;  %3515 = vmatpush1.bf16.msra.mxu1 %v4714_v22  ;;  %v4809_v22 = vld [vmem:[%s5930_s18 + $0x5e4] ss:$24 sps:$4 sm:$0xff]  }
 0x19d   : > { %3690 = vmatpush1.bf16.msra.mxu0 %v4717_v23  ;;  %3525 = vmatprep.subr.bf16.mxu1 %v4722_v24  ;;  %v4804_v23 = vld [vmem:[%s5930_s18 + $0x5a8] ss:$24 sps:$4 sm:$0xff]  }
 0x19e   : > { %3691 = vmatprep.subr.bf16.mxu0 %v4725_v25  ;;  %3721 = vmatprep.mubr.bf16.mxu0 %v6020_v10  ;;  %v4807_v24 = vld [vmem:[%s5930_s18 + $0x5e0] ss:$24 sps:$4 sm:$0xff]   ;;  %v4812_v25 = vld [vmem:[%s5930_s18 + $0x5dc] ss:$24 sps:$4 sm:$0xff]  }
 0x19f   : > { %3517 = vmatmul.mubr.bf16.vlgmr.msra.gmra.mrb[4].mxu1 %v6012_v5  ;;  %v4735_v5 = vld [vmem:[%s5930_s18 + $0x3a0] ss:$24 sps:$4 sm:$0xff]  }
 0x1a0   : > { %3526 = vmatpush1.bf16.msra.mxu1 %v4720_v26  ;;  %3557 = vmatprep.mubr.bf16.mxu1 %v6020_v10  ;;  %v4746_v10 = vld [vmem:[%s5930_s18 + $0x3cc] ss:$24 sps:$4 sm:$0xff]  }
 0x1a1   : > { %3692 = vmatpush1.bf16.msra.mxu0 %v4723_v27  ;;  %3527 = vmatprep.subr.bf16.mxu1 %v4728_v28  ;;  %v4815_v26 = vld [vmem:[%s5930_s18 + $0x614] ss:$24 sps:$4 sm:$0xff]   ;;  %v4810_v27 = vld [vmem:[%s5930_s18 + $0x5d8] ss:$24 sps:$4 sm:$0xff]  }
 0x1a2   : > { %3693 = vmatprep.subr.bf16.mxu0 %v4731_v29  ;;  %v4813_v28 = vld [vmem:[%s5930_s18 + $0x610] ss:$24 sps:$4 sm:$0xff]   ;;  %v4818_v29 = vld [vmem:[%s5930_s18 + $0x60c] ss:$24 sps:$4 sm:$0xff]  }
 0x1a4   : > { %3528 = vmatpush1.bf16.msra.mxu1 %v4726_v30  ;;  %v4821_v30 = vld [vmem:[%s5930_s18 + $0x644] ss:$24 sps:$4 sm:$0xff]  }
 0x1a5   : > { %3694 = vmatpush1.bf16.msra.mxu0 %v4729_v31  ;;  %3529 = vmatprep.subr.bf16.mxu1 %v4734_v32  ;;  %v4816_v31 = vld [vmem:[%s5930_s18 + $0x608] ss:$24 sps:$4 sm:$0xff]  }
 0x1a6   : > { %3695 = vmatprep.subr.bf16.mxu0 %v4737_v57  ;;  %v4819_v32 = vld [vmem:[%s5930_s18 + $0x640] ss:$24 sps:$4 sm:$0xff]   ;;  %v4824_v57 = vld [vmem:[%s5930_s18 + $0x63c] ss:$24 sps:$4 sm:$0xff]  }
 0x1a8   : > { %3530 = vmatpush1.bf16.msra.mxu1 %v4732_v33  ;;  %v4827_v33 = vld [vmem:[%s5930_s18 + $0x674] ss:$24 sps:$4 sm:$0xff]  }
 0x1a9   : > { %3696 = vmatpush1.bf16.msra.mxu0 %v4735_v5  ;;  %3531 = vmatprep.subr.bf16.mxu1 %v4740_v34  ;;  %v4822_v5 = vld [vmem:[%s5930_s18 + $0x638] ss:$24 sps:$4 sm:$0xff]  }
 0x1aa   : > { %3697 = vmatprep.subr.bf16.mxu0 %v4743_v35  ;;  %v4825_v34 = vld [vmem:[%s5930_s18 + $0x670] ss:$24 sps:$4 sm:$0xff]   ;;  %v4830_v35 = vld [vmem:[%s5930_s18 + $0x66c] ss:$24 sps:$4 sm:$0xff]  }
 0x1ac   : > { %3532 = vmatpush1.bf16.msra.mxu1 %v4738_v36  ;;  %v4833_v36 = vld [vmem:[%s5930_s18 + $0x6a4] ss:$24 sps:$4 sm:$0xff]  }
 0x1ad   : > { %3698 = vmatpush1.bf16.msra.mxu0 %v4741_v37  ;;  %3533 = vmatprep.subr.bf16.mxu1 %v4746_v10  ;;  %v4828_v37 = vld [vmem:[%s5930_s18 + $0x668] ss:$24 sps:$4 sm:$0xff]   ;;  %v4836_v10 = vld [vmem:[%s5930_s18 + $0x69c] ss:$24 sps:$4 sm:$0xff]  }
 0x1ae   : > { %3699 = vmatprep.subr.bf16.mxu0 %v4749_v38  ;;  %v4839_v38 = vld [vmem:[%s5930_s18 + $0x6d4] ss:$24 sps:$4 sm:$0xff]  }
 0x1b0   : > { %3534 = vmatpush1.bf16.msra.mxu1 %v4744_v39  ;;  %v4834_v39 = vld [vmem:[%s5930_s18 + $0x698] ss:$24 sps:$4 sm:$0xff]  }
 0x1b1   : > { %3700 = vmatpush1.bf16.msra.mxu0 %v4747_v40  ;;  %3535 = vmatprep.subr.bf16.mxu1 %v4752_v41  ;;  %v4837_v40 = vld [vmem:[%s5930_s18 + $0x6d0] ss:$24 sps:$4 sm:$0xff]   ;;  %v4845_v41 = vld [vmem:[%s5930_s18 + $0x704] ss:$24 sps:$4 sm:$0xff]  }
 0x1b2   : > { %3701 = vmatprep.subr.bf16.mxu0 %v4755_v42  ;;  %v4840_v42 = vld [vmem:[%s5930_s18 + $0x6c8] ss:$24 sps:$4 sm:$0xff]  }
 0x1b4   : > { %3536 = vmatpush1.bf16.msra.mxu1 %v4750_v43  ;;  %v4843_v43 = vld [vmem:[%s5930_s18 + $0x700] ss:$24 sps:$4 sm:$0xff]  }
 0x1b5   : > { %3702 = vmatpush1.bf16.msra.mxu0 %v4753_v44  ;;  %3537 = vmatprep.subr.bf16.mxu1 %v4758_v45  ;;  %v4848_v44 = vld [vmem:[%s5930_s18 + $0x6fc] ss:$24 sps:$4 sm:$0xff]  }
 0x1b6   : > { %3703 = vmatprep.subr.bf16.mxu0 %v4761_v46  ;;  %v4851_v45 = vld [vmem:[%s5930_s18 + $0x734] ss:$24 sps:$4 sm:$0xff]   ;;  %v4846_v46 = vld [vmem:[%s5930_s18 + $0x6f8] ss:$24 sps:$4 sm:$0xff]  }
 0x1b8   : > { %3538 = vmatpush1.bf16.msra.mxu1 %v4756_v47  ;;  %v4849_v47 = vld [vmem:[%s5930_s18 + $0x730] ss:$24 sps:$4 sm:$0xff]  }
 0x1b9   : > { %3704 = vmatpush1.bf16.msra.mxu0 %v4759_v48  ;;  %3539 = vmatprep.subr.bf16.mxu1 %v4764_v49  ;;  %v4854_v48 = vld [vmem:[%s5930_s18 + $0x72c] ss:$24 sps:$4 sm:$0xff]  }
 0x1ba   : > { %3705 = vmatprep.subr.bf16.mxu0 %v4767_v50  ;;  %v4857_v49 = vld [vmem:[%s5930_s18 + $0x764] ss:$24 sps:$4 sm:$0xff]   ;;  %v4852_v50 = vld [vmem:[%s5930_s18 + $0x728] ss:$24 sps:$4 sm:$0xff]  }
 0x1bc   : > { %3540 = vmatpush1.bf16.msra.mxu1 %v4762_v51  ;;  %v4855_v51 = vld [vmem:[%s5930_s18 + $0x760] ss:$24 sps:$4 sm:$0xff]  }
 0x1bd   : > { %3706 = vmatpush1.bf16.msra.mxu0 %v4765_v52  ;;  %3541 = vmatprep.subr.bf16.mxu1 %v4770_v53  ;;  %v4860_v52 = vld [vmem:[%s5930_s18 + $0x75c] ss:$24 sps:$4 sm:$0xff]  }
 0x1be   : > { %3707 = vmatprep.subr.bf16.mxu0 %v4773_v54  ;;  %v4863_v53 = vld [vmem:[%s5930_s18 + $0x794] ss:$24 sps:$4 sm:$0xff]   ;;  %v4858_v54 = vld [vmem:[%s5930_s18 + $0x758] ss:$24 sps:$4 sm:$0xff]  }
 0x1c0   : > { %3542 = vmatpush1.bf16.msra.mxu1 %v4768_v55  ;;  %v4861_v55 = vld [vmem:[%s5930_s18 + $0x790] ss:$24 sps:$4 sm:$0xff]  }
 0x1c1   : > { %3708 = vmatpush1.bf16.msra.mxu0 %v4771_v56  ;;  %3543 = vmatprep.subr.bf16.mxu1 %v4776_v59  ;;  %v4866_v56 = vld [vmem:[%s5930_s18 + $0x78c] ss:$24 sps:$4 sm:$0xff]  }
 0x1c2   : > { %3709 = vmatprep.subr.bf16.mxu0 %v4779_v60  ;;  %v4869_v59 = vld [vmem:[%s5930_s18 + $0x7c4] ss:$24 sps:$4 sm:$0xff]   ;;  %v4864_v60 = vld [vmem:[%s5930_s18 + $0x788] ss:$24 sps:$4 sm:$0xff]  }
 0x1c4   : > { %3544 = vmatpush1.bf16.msra.mxu1 %v4774_v61  ;;  %v4867_v61 = vld [vmem:[%s5930_s18 + $0x7c0] ss:$24 sps:$4 sm:$0xff]  }
 0x1c5   : > { %3710 = vmatpush1.bf16.msra.mxu0 %v4777_v62  ;;  %3545 = vmatprep.subr.bf16.mxu1 %v4782_v63  ;;  %v4872_v62 = vld [vmem:[%s5930_s18 + $0x7bc] ss:$24 sps:$4 sm:$0xff]  }
 0x1c6   : > { %3711 = vmatprep.subr.bf16.mxu0 %v4785_v0  ;;  %v4875_v63 = vld [vmem:[%s5930_s18 + $0x7f4] ss:$24 sps:$4 sm:$0xff]   ;;  %v4870_v0 = vld [vmem:[%s5930_s18 + $0x7b8] ss:$24 sps:$4 sm:$0xff]  }
 0x1c8   : > { %3546 = vmatpush1.bf16.msra.mxu1 %v4780_v1  ;;  %v4873_v1 = vld [vmem:[%s5930_s18 + $0x7f0] ss:$24 sps:$4 sm:$0xff]  }
 0x1c9   : > { %3712 = vmatpush1.bf16.msra.mxu0 %v4783_v2  ;;  %3547 = vmatprep.subr.bf16.mxu1 %v4788_v3  ;;  %v4878_v2 = vld [vmem:[%s5930_s18 + $0x7ec] ss:$24 sps:$4 sm:$0xff]  }
 0x1ca   : > { %3713 = vmatprep.subr.bf16.mxu0 %v4791_v4  ;;  %v4881_v3 = vld [vmem:[%s5930_s18 + $0x824] ss:$24 sps:$4 sm:$0xff]   ;;  %v4876_v4 = vld [vmem:[%s5930_s18 + $0x7e8] ss:$24 sps:$4 sm:$0xff]  }
 0x1cc   : > { %3548 = vmatpush1.bf16.msra.mxu1 %v4786_v7  ;;  %v4879_v7 = vld [vmem:[%s5930_s18 + $0x820] ss:$24 sps:$4 sm:$0xff]  }
 0x1cd   : > { %3714 = vmatpush1.bf16.msra.mxu0 %v4789_v8  ;;  %3549 = vmatprep.subr.bf16.mxu1 %v4794_v11  ;;  %v4884_v8 = vld [vmem:[%s5930_s18 + $0x81c] ss:$24 sps:$4 sm:$0xff]  }
 0x1ce   : > { %3715 = vmatprep.subr.bf16.mxu0 %v4797_v12  ;;  %v4887_v11 = vld [vmem:[%s5930_s18 + $0x854] ss:$24 sps:$4 sm:$0xff]   ;;  %v4882_v12 = vld [vmem:[%s5930_s18 + $0x818] ss:$24 sps:$4 sm:$0xff]  }
 0x1d0   : > { %3550 = vmatpush1.bf16.msra.mxu1 %v4792_v14  ;;  %v4885_v14 = vld [vmem:[%s5930_s18 + $0x850] ss:$24 sps:$4 sm:$0xff]  }
 0x1d1   : > { %3716 = vmatpush1.bf16.msra.mxu0 %v4795_v15  ;;  %3551 = vmatprep.subr.bf16.mxu1 %v4800_v16  ;;  %v4890_v15 = vld [vmem:[%s5930_s18 + $0x84c] ss:$24 sps:$4 sm:$0xff]  }
 0x1d2   : > { %3717 = vmatprep.subr.bf16.mxu0 %v4803_v17  ;;  %v4893_v16 = vld [vmem:[%s5930_s18 + $0x884] ss:$24 sps:$4 sm:$0xff]   ;;  %v4888_v17 = vld [vmem:[%s5930_s18 + $0x848] ss:$24 sps:$4 sm:$0xff]  }
 0x1d4   : > { %3552 = vmatpush1.bf16.msra.mxu1 %v4798_v19  ;;  %v4891_v19 = vld [vmem:[%s5930_s18 + $0x880] ss:$24 sps:$4 sm:$0xff]  }
 0x1d5   : > { %3718 = vmatpush1.bf16.msra.mxu0 %v4801_v20  ;;  %3553 = vmatprep.subr.bf16.mxu1 %v4806_v21  ;;  %v4896_v20 = vld [vmem:[%s5930_s18 + $0x87c] ss:$24 sps:$4 sm:$0xff]  }
 0x1d6   : > { %3719 = vmatprep.subr.bf16.mxu0 %v4809_v22  ;;  %v4899_v21 = vld [vmem:[%s5930_s18 + $0x8b4] ss:$24 sps:$4 sm:$0xff]   ;;  %v4894_v22 = vld [vmem:[%s5930_s18 + $0x878] ss:$24 sps:$4 sm:$0xff]  }
 0x1d8   : > { %3554 = vmatpush1.bf16.msra.mxu1 %v4804_v23  ;;  %v4897_v23 = vld [vmem:[%s5930_s18 + $0x8b0] ss:$24 sps:$4 sm:$0xff]  }
 0x1d9   : > { %3720 = vmatpush1.bf16.msra.mxu0 %v4807_v24  ;;  %3555 = vmatprep.subr.bf16.mxu1 %v4812_v25  ;;  %v4902_v24 = vld [vmem:[%s5930_s18 + $0x8ac] ss:$24 sps:$4 sm:$0xff]  }
 0x1da   : > { %3730 = vmatprep.subr.bf16.mxu0 %v4815_v26  ;;  %v4905_v25 = vld [vmem:[%s5930_s18 + $0x8e4] ss:$24 sps:$4 sm:$0xff]   ;;  %v4900_v26 = vld [vmem:[%s5930_s18 + $0x8a8] ss:$24 sps:$4 sm:$0xff]  }
 0x1dc   : > { %3722 = vmatmul.mubr.bf16.vlgmr.msra.gmra.mrb[4].mxu0 %v6097_v18  ;;  %3556 = vmatpush1.bf16.msra.mxu1 %v4810_v27  ;;  %v4903_v27 = vld [vmem:[%s5930_s18 + $0x8e0] ss:$24 sps:$4 sm:$0xff]  }
 0x1dd   : > { %3731 = vmatpush1.bf16.msra.mxu0 %v4813_v28  ;;  %3566 = vmatprep.subr.bf16.mxu1 %v4818_v29  ;;  %v4908_v28 = vld [vmem:[%s5930_s18 + $0x8dc] ss:$24 sps:$4 sm:$0xff]  }
 0x1de   : > { %3732 = vmatprep.subr.bf16.mxu0 %v4821_v30  ;;  %3762 = vmatprep.mubr.bf16.mxu0 %v5926_v58  ;;  %v4911_v29 = vld [vmem:[%s5930_s18 + $0x914] ss:$24 sps:$4 sm:$0xff]   ;;  %v4906_v30 = vld [vmem:[%s5930_s18 + $0x8d8] ss:$24 sps:$4 sm:$0xff]  }
 0x1df   : > { %3558 = vmatmul.mubr.bf16.vlgmr.msra.gmra.mrb[4].mxu1 %v6097_v18  ;;  %v4831_v18 = vld [vmem:[%s5930_s18 + $0x6a0] ss:$24 sps:$4 sm:$0xff]  }
 0x1e0   : > { %3567 = vmatpush1.bf16.msra.mxu1 %v4816_v31  ;;  %3598 = vmatprep.mubr.bf16.mxu1 %v5926_v58  ;;  %v4842_v58 = vld [vmem:[%s5930_s18 + $0x6cc] ss:$24 sps:$4 sm:$0xff]   ;;  %v4909_v31 = vld [vmem:[%s5930_s18 + $0x910] ss:$24 sps:$4 sm:$0xff]  }
 0x1e1   : > { %3733 = vmatpush1.bf16.msra.mxu0 %v4819_v32  ;;  %3568 = vmatprep.subr.bf16.mxu1 %v4824_v57  ;;  %v4914_v32 = vld [vmem:[%s5930_s18 + $0x90c] ss:$24 sps:$4 sm:$0xff]  }
 0x1e2   : > { %3734 = vmatprep.subr.bf16.mxu0 %v4827_v33  ;;  %v4917_v57 = vld [vmem:[%s5930_s18 + $0x944] ss:$24 sps:$4 sm:$0xff]   ;;  %v4912_v33 = vld [vmem:[%s5930_s18 + $0x908] ss:$24 sps:$4 sm:$0xff]  }
 0x1e4   : > { %3569 = vmatpush1.bf16.msra.mxu1 %v4822_v5  ;;  %v4915_v5 = vld [vmem:[%s5930_s18 + $0x940] ss:$24 sps:$4 sm:$0xff]  }
 0x1e5   : > { %3735 = vmatpush1.bf16.msra.mxu0 %v4825_v34  ;;  %3570 = vmatprep.subr.bf16.mxu1 %v4830_v35  ;;  %v4920_v34 = vld [vmem:[%s5930_s18 + $0x93c] ss:$24 sps:$4 sm:$0xff]  }
 0x1e6   : > { %3736 = vmatprep.subr.bf16.mxu0 %v4833_v36  ;;  %v4923_v35 = vld [vmem:[%s5930_s18 + $0x974] ss:$24 sps:$4 sm:$0xff]   ;;  %v4918_v36 = vld [vmem:[%s5930_s18 + $0x938] ss:$24 sps:$4 sm:$0xff]  }
 0x1e8   : > { %3571 = vmatpush1.bf16.msra.mxu1 %v4828_v37  ;;  %v4921_v37 = vld [vmem:[%s5930_s18 + $0x970] ss:$24 sps:$4 sm:$0xff]  }
 0x1e9   : > { %3737 = vmatpush1.bf16.msra.mxu0 %v4831_v18  ;;  %3572 = vmatprep.subr.bf16.mxu1 %v4836_v10  ;;  %v4926_v18 = vld [vmem:[%s5930_s18 + $0x96c] ss:$24 sps:$4 sm:$0xff]  }
 0x1ea   : > { %3738 = vmatprep.subr.bf16.mxu0 %v4839_v38  ;;  %v4929_v10 = vld [vmem:[%s5930_s18 + $0x9a4] ss:$24 sps:$4 sm:$0xff]   ;;  %v1392_v38 = vlaneseq }
 0x1ec   : > { %3573 = vmatpush1.bf16.msra.mxu1 %v4834_v39  ;;  %v4927_v39 = vld [vmem:[%s5930_s18 + $0x9a0] ss:$24 sps:$4 sm:$0xff]  }
 0x1ed   : > { %3739 = vmatpush1.bf16.msra.mxu0 %v4837_v40  ;;  %3574 = vmatprep.subr.bf16.mxu1 %v4842_v58  ;;  %v4932_v40 = vld [vmem:[%s5930_s18 + $0x99c] ss:$24 sps:$4 sm:$0xff]  }
 0x1ee   : > { %3740 = vmatprep.subr.bf16.mxu0 %v4845_v41  ;;  %v4935_v58 = vld [vmem:[%s5930_s18 + $0x9d4] ss:$24 sps:$4 sm:$0xff]   ;;  %v6321_v41 = vshrl.u32 %v1392_v38, 7  ;;  %v4987_v38 = vld [vmem:[%s5930_s18 + $0xb80] ss:$24 sps:$4 sm:$0xff]  }
 0x1f0   : > { %3575 = vmatpush1.bf16.msra.mxu1 %v4840_v42  ;;  %v4930_v42 = vld [vmem:[%s5930_s18 + $0x998] ss:$24 sps:$4 sm:$0xff]  }
 0x1f1   : > { %3741 = vmatpush1.bf16.msra.mxu0 %v4843_v43  ;;  %3576 = vmatprep.subr.bf16.mxu1 %v4848_v44  ;;  %v4938_v43 = vld [vmem:[%s5930_s18 + $0x9cc] ss:$24 sps:$4 sm:$0xff]  }
 0x1f2   : > { %3742 = vmatprep.subr.bf16.mxu0 %v4851_v45  ;;  %v4941_v44 = vld [vmem:[%s5930_s18 + $0xa04] ss:$24 sps:$4 sm:$0xff]   ;;  %v1394_v45 = vsub.s32 0, %v6321_v41 }
 0x1f4   : > { %3577 = vmatpush1.bf16.msra.mxu1 %v4846_v46  ;;  %v1398_v46 = vsub.s32 1, %v6321_v41 }
 0x1f5   : > { %3743 = vmatpush1.bf16.msra.mxu0 %v4849_v47  ;;  %3578 = vmatprep.subr.bf16.mxu1 %v4854_v48  ;;  %v4936_v47 = vld [vmem:[%s5930_s18 + $0x9c8] ss:$24 sps:$4 sm:$0xff]  }
 0x1f6   : > { %3744 = vmatprep.subr.bf16.mxu0 %v4857_v49  ;;  %v4939_v48 = vld [vmem:[%s5930_s18 + $0xa00] ss:$24 sps:$4 sm:$0xff]   ;;  %v6334_v49 = vld [vmem:[%s995_s19] sm:$0x3f] }
 0x1f8   : > { %3579 = vmatpush1.bf16.msra.mxu1 %v4852_v50  ;;  %v4944_v50 = vld [vmem:[%s5930_s18 + $0x9fc] ss:$24 sps:$4 sm:$0xff]  }
 0x1f9   : > { %3745 = vmatpush1.bf16.msra.mxu0 %v4855_v51  ;;  %3580 = vmatprep.subr.bf16.mxu1 %v4860_v52  ;;  %v4947_v51 = vld [vmem:[%s5930_s18 + $0xa34] ss:$24 sps:$4 sm:$0xff]  }
 0x1fa   : > { %3746 = vmatprep.subr.bf16.mxu0 %v4863_v53 }
 0x1fc   : > { %3581 = vmatpush1.bf16.msra.mxu1 %v4858_v54  ;;  %v1395_v54 = vrot.slane %v6334_v49, %v1394_v45 }
 0x1fd   : > { %3747 = vmatpush1.bf16.msra.mxu0 %v4861_v55  ;;  %3582 = vmatprep.subr.bf16.mxu1 %v4866_v56  ;;  %v1399_v56 = vrot.slane %v6334_v49, %v1398_v46  ;;  %v1410_v46 = vsub.s32 4, %v6321_v41 }
 0x1fe   : > { %3748 = vmatprep.subr.bf16.mxu0 %v4869_v59  ;;  %v4942_v59 = vld [vmem:[%s5930_s18 + $0x9f8] ss:$24 sps:$4 sm:$0xff]  }
 0x200   : > { %3583 = vmatpush1.bf16.msra.mxu1 %v4864_v60  ;;  %v4945_v60 = vld [vmem:[%s5930_s18 + $0xa30] ss:$24 sps:$4 sm:$0xff]  }
 0x201   : > { %3749 = vmatpush1.bf16.msra.mxu0 %v4867_v61  ;;  %3584 = vmatprep.subr.bf16.mxu1 %v4872_v62  ;;  %v4950_v62 = vld [vmem:[%s5930_s18 + $0xa2c] ss:$24 sps:$4 sm:$0xff]  }
 0x202   : > { %3750 = vmatprep.subr.bf16.mxu0 %v4875_v63  ;;  %v4953_v63 = vld [vmem:[%s5930_s18 + $0xa64] ss:$24 sps:$4 sm:$0xff]  }
 0x204   : > { %3585 = vmatpush1.bf16.msra.mxu1 %v4870_v0 }
 0x205   : > { %3751 = vmatpush1.bf16.msra.mxu0 %v4873_v1  ;;  %3586 = vmatprep.subr.bf16.mxu1 %v4878_v2 }
 0x206   : > { %3752 = vmatprep.subr.bf16.mxu0 %v4881_v3 }
 0x208   : > { %3587 = vmatpush1.bf16.msra.mxu1 %v4876_v4 }
 0x209   : > { %3753 = vmatpush1.bf16.msra.mxu0 %v4879_v7  ;;  %3588 = vmatprep.subr.bf16.mxu1 %v4884_v8  ;;  %v4948_v7 = vld [vmem:[%s5930_s18 + $0xa28] ss:$24 sps:$4 sm:$0xff]  }
 0x20a   : > { %3754 = vmatprep.subr.bf16.mxu0 %v4887_v11  ;;  %v4951_v8 = vld [vmem:[%s5930_s18 + $0xa60] ss:$24 sps:$4 sm:$0xff]  }
 0x20c   : > { %3589 = vmatpush1.bf16.msra.mxu1 %v4882_v12 }
 0x20d   : > { %3755 = vmatpush1.bf16.msra.mxu0 %v4885_v14  ;;  %3590 = vmatprep.subr.bf16.mxu1 %v4890_v15  ;;  %v4956_v14 = vld [vmem:[%s5930_s18 + $0xa5c] ss:$24 sps:$4 sm:$0xff]  }
 0x20e   : > { %3756 = vmatprep.subr.bf16.mxu0 %v4893_v16  ;;  %v4959_v15 = vld [vmem:[%s5930_s18 + $0xa94] ss:$24 sps:$4 sm:$0xff]  }
 0x210   : > { %3591 = vmatpush1.bf16.msra.mxu1 %v4888_v17 }
 0x211   : > { %3757 = vmatpush1.bf16.msra.mxu0 %v4891_v19  ;;  %3592 = vmatprep.subr.bf16.mxu1 %v4896_v20  ;;  %v4954_v20 = vld [vmem:[%s5930_s18 + $0xa58] ss:$24 sps:$4 sm:$0xff]  }
 0x212   : > { %3758 = vmatprep.subr.bf16.mxu0 %v4899_v21  ;;  %v4957_v21 = vld [vmem:[%s5930_s18 + $0xa90] ss:$24 sps:$4 sm:$0xff]  }
 0x214   : > { %3593 = vmatpush1.bf16.msra.mxu1 %v4894_v22  ;;  %v4962_v22 = vld [vmem:[%s5930_s18 + $0xa8c] ss:$24 sps:$4 sm:$0xff]  }
 0x215   : > { %3759 = vmatpush1.bf16.msra.mxu0 %v4897_v23  ;;  %3594 = vmatprep.subr.bf16.mxu1 %v4902_v24  ;;  %v4965_v23 = vld [vmem:[%s5930_s18 + $0xac4] ss:$24 sps:$4 sm:$0xff]   ;;  %v4960_v24 = vld [vmem:[%s5930_s18 + $0xa88] ss:$24 sps:$4 sm:$0xff]  }
 0x216   : > { %3760 = vmatprep.subr.bf16.mxu0 %v4905_v25  ;;  %v4963_v25 = vld [vmem:[%s5930_s18 + $0xac0] ss:$24 sps:$4 sm:$0xff]  }
 0x218   : > { %3595 = vmatpush1.bf16.msra.mxu1 %v4900_v26  ;;  %v4968_v26 = vld [vmem:[%s5930_s18 + $0xabc] ss:$24 sps:$4 sm:$0xff]  }
 0x219   : > { %3761 = vmatpush1.bf16.msra.mxu0 %v4903_v27  ;;  %3596 = vmatprep.subr.bf16.mxu1 %v4908_v28  ;;  %v4971_v27 = vld [vmem:[%s5930_s18 + $0xaf4] ss:$24 sps:$4 sm:$0xff]   ;;  %v4966_v28 = vld [vmem:[%s5930_s18 + $0xab8] ss:$24 sps:$4 sm:$0xff]  }
 0x21a   : > { %3771 = vmatprep.subr.bf16.mxu0 %v4911_v29  ;;  %v4969_v29 = vld [vmem:[%s5930_s18 + $0xaf0] ss:$24 sps:$4 sm:$0xff]  }
 0x21c   : > { %3763 = vmatmul.mubr.bf16.vlgmr.msra.gmra.mrb[4].mxu0 %v6014_v6  ;;  %3597 = vmatpush1.bf16.msra.mxu1 %v4906_v30  ;;  %v4974_v30 = vld [vmem:[%s5930_s18 + $0xaec] ss:$24 sps:$4 sm:$0xff]  }
 0x21d   : > { %3772 = vmatpush1.bf16.msra.mxu0 %v4909_v31  ;;  %3607 = vmatprep.subr.bf16.mxu1 %v4914_v32  ;;  %v4977_v31 = vld [vmem:[%s5930_s18 + $0xb24] ss:$24 sps:$4 sm:$0xff]   ;;  %v4972_v32 = vld [vmem:[%s5930_s18 + $0xae8] ss:$24 sps:$4 sm:$0xff]  }
 0x21e   : > { %3773 = vmatprep.subr.bf16.mxu0 %v4917_v57  ;;  %4329 = vmatprep.mubr.msk.bf16.mxu0 %vm3297_vm0, %v6018_v9  ;;  %v4975_v57 = vld [vmem:[%s5930_s18 + $0xb20] ss:$24 sps:$4 sm:$0xff]  }
 0x21f   : > { %3599 = vmatmul.mubr.bf16.vlgmr.msra.gmra.mrb[4].mxu1 %v6014_v6  ;;  %v4924_v6 = vld [vmem:[%s5930_s18 + $0x968] ss:$24 sps:$4 sm:$0xff]  }
 0x220   : > { %3608 = vmatpush1.bf16.msra.mxu1 %v4912_v33  ;;  %4327 = vmatprep.mubr.msk.bf16.mxu1 %vm3297_vm0, %v6018_v9  ;;  %v4933_v9 = vld [vmem:[%s5930_s18 + $0x9d0] ss:$24 sps:$4 sm:$0xff]   ;;  %v4980_v33 = vld [vmem:[%s5930_s18 + $0xb1c] ss:$24 sps:$4 sm:$0xff]  }
 0x221   : > { %3774 = vmatpush1.bf16.msra.mxu0 %v4915_v5  ;;  %3609 = vmatprep.subr.bf16.mxu1 %v4920_v34  ;;  %v4983_v5 = vld [vmem:[%s5930_s18 + $0xb54] ss:$24 sps:$4 sm:$0xff]   ;;  %v4978_v34 = vld [vmem:[%s5930_s18 + $0xb18] ss:$24 sps:$4 sm:$0xff]  }
 0x222   : > { %3775 = vmatprep.subr.bf16.mxu0 %v4923_v35  ;;  %v4981_v35 = vld [vmem:[%s5930_s18 + $0xb50] ss:$24 sps:$4 sm:$0xff]  }
 0x224   : > { %3610 = vmatpush1.bf16.msra.mxu1 %v4918_v36  ;;  %v4986_v36 = vld [vmem:[%s5930_s18 + $0xb4c] ss:$24 sps:$4 sm:$0xff]  }
 0x225   : > { %3776 = vmatpush1.bf16.msra.mxu0 %v4921_v37  ;;  %3611 = vmatprep.subr.bf16.mxu1 %v4926_v18  ;;  %v4989_v37 = vld [vmem:[%s5930_s18 + $0xb84] ss:$24 sps:$4 sm:$0xff]   ;;  %v1389_v18 = vld [vmem:[%s5930_s18 + $0xbb0] sm:$0xff] }
 0x226   : > { %3777 = vmatprep.subr.bf16.mxu0 %v4929_v10  ;;  %v4984_v10 = vld [vmem:[%s5930_s18 + $0xb48] ss:$24 sps:$4 sm:$0xff]  }
 0x228   : > { %3612 = vmatpush1.bf16.msra.mxu1 %v4924_v6  ;;  %v4992_v6 = vld [vmem:[%s5930_s18 + $0xb7c] ss:$24 sps:$4 sm:$0xff]  }
 0x229   : > { %3778 = vmatpush1.bf16.msra.mxu0 %v4927_v39  ;;  %3613 = vmatprep.subr.bf16.mxu1 %v4932_v40  ;;  %v4323_v39 = vcombine.high %v1389_v18, %v1389_v18  ;;  %v4322_v40 = vcombine.low %v1389_v18, %v1389_v18 }
 0x22a   : > { %3779 = vmatprep.subr.bf16.mxu0 %v4935_v58  ;;  %v1388_v58 = vld [vmem:[%s5930_s18 + $0xba8] sm:$0xff] }
 0x22c   : > { %3614 = vmatpush1.bf16.msra.mxu1 %v4930_v42  ;;  %v4990_v42 = vld [vmem:[%s5930_s18 + $0xb78] ss:$24 sps:$4 sm:$0xff]   ;;  %s4334_s18 = smul.u32 768, %s5067_s15  ;;  %s3825_s15 = scalar_lea.sflag [#allocation4], %s5915_s6 }
 0x22d   : > { %3780 = vmatpush1.bf16.msra.mxu0 %v4933_v9  ;;  %3615 = vmatprep.subr.bf16.mxu1 %v4938_v43  ;;  %v3315_v9 = vsel %vm3301_vm1, %v4322_v40, 0  ;;  %v4321_v43 = vcombine.high %v1388_v58, %v1388_v58 }
 0x22e   : > { %3781 = vmatprep.subr.bf16.mxu0 %v4941_v44  ;;  %v4320_v44 = vcombine.low %v1388_v58, %v1388_v58  ;;  %s6400_s29 = scalar_lea.hbm %s6453_s3, %s4334_s18 }
 0x22f   : > { %v3477_v52 = vpop.f32.mrb[0].mxu0 }
 0x230   : > { %v3479_v53 = vpop.f32.mrb[1].mxu0  ;;  %3616 = vmatpush1.bf16.msra.mxu1 %v4936_v47  ;;  %v3309_v45 = vsel %vm3301_vm1, %v4320_v44, 0  ;;  %v1414_v47 = vsub.s32 5, %v6321_v41 }
 0x231   : > { %v3481_v55 = vpop.f32.mrb[2].mxu0  ;;  %3782 = vmatpush1.bf16.msra.mxu0 %v4939_v48  ;;  %3617 = vmatprep.subr.bf16.mxu1 %v4944_v50  ;;  %v1411_v48 = vrot.slane %v6334_v49, %v1410_v46  ;;  %v1402_v50 = vsub.s32 2, %v6321_v41 }
 0x232   : > { %v3482_v61 = vpop.f32.mrb[3].mxu0  ;;  %3783 = vmatprep.subr.bf16.mxu0 %v4947_v51  ;;  %v3395_v0 = vpop.f32.mrb[0].mxu1  ;;  %v1415_v51 = vrot.slane %v6334_v49, %v1414_v47 }
 0x233   : > { %v4335_v1 = vadd.f32 %v3395_v0, %v1395_v54  ;;  %v3397_v2 = vpop.f32.mrb[1].mxu1 }
 0x234   : > { %v4337_v3 = vadd.f32 %v3397_v2, %v1399_v56  ;;  %v3399_v4 = vpop.f32.mrb[2].mxu1  ;;  %3618 = vmatpush1.bf16.msra.mxu1 %v4942_v59 }
 0x235   : > { %3784 = vmatpush1.bf16.msra.mxu0 %v4945_v60  ;;  %v4336_v11 = vadd.f32 %v4335_v1, %v3477_v52  ;;  %v3400_v12 = vpop.f32.mrb[3].mxu1  ;;  %3619 = vmatprep.subr.bf16.mxu1 %v4950_v62  ;;  %v1406_v52 = vsub.s32 3, %v6321_v41 }
 0x236   : > { %3785 = vmatprep.subr.bf16.mxu0 %v4953_v63  ;;  %v4338_v16 = vadd.f32 %v4337_v3, %v3479_v53 }
 0x237   : > { %v3812_v17 = vmax.f32 %v4336_v11, 0.0  ;;  %v1407_v60 = vrot.slane %v6334_v49, %v1406_v52 }
 0x238   : > { %v3813_v19 = vmax.f32 %v4338_v16, 0.0  ;;  %3620 = vmatpush1.bf16.msra.mxu1 %v4948_v7 }
 0x239   : > { %3786 = vmatpush1.bf16.msra.mxu0 %v4951_v8  ;;  %3818 = vst [vmem:[%s6351_s23] sm:$0xff] %v3812_v17  ;;  %3621 = vmatprep.subr.bf16.mxu1 %v4956_v14 }
 0x23a   : > { %3787 = vmatprep.subr.bf16.mxu0 %v4959_v15  ;;  %3819 = vst [vmem:[%s6351_s23 + $0x8] sm:$0xff] %v3813_v19 }
 0x23c   : > { %3622 = vmatpush1.bf16.msra.mxu1 %v4954_v20 }
 0x23d   : > { %3788 = vmatpush1.bf16.msra.mxu0 %v4957_v21  ;;  %3623 = vmatprep.subr.bf16.mxu1 %v4962_v22 }
 0x23e   : > { %3789 = vmatprep.subr.bf16.mxu0 %v4965_v23 }
 0x240   : > { %3624 = vmatpush1.bf16.msra.mxu1 %v4960_v24 }
 0x241   : > { %3790 = vmatpush1.bf16.msra.mxu0 %v4963_v25  ;;  %3625 = vmatprep.subr.bf16.mxu1 %v4968_v26 }
 0x242   : > { %3791 = vmatprep.subr.bf16.mxu0 %v4971_v27 }
 0x244   : > { %3626 = vmatpush1.bf16.msra.mxu1 %v4966_v28 }
 0x245   : > { %3792 = vmatpush1.bf16.msra.mxu0 %v4969_v29  ;;  %3627 = vmatprep.subr.bf16.mxu1 %v4974_v30 }
 0x246   : > { %3793 = vmatprep.subr.bf16.mxu0 %v4977_v31 }
 0x248   : > { %3628 = vmatpush1.bf16.msra.mxu1 %v4972_v32 }
 0x249   : > { %3794 = vmatpush1.bf16.msra.mxu0 %v4975_v57  ;;  %3629 = vmatprep.subr.bf16.mxu1 %v4980_v33 }
 0x24a   : > { %3795 = vmatprep.subr.bf16.mxu0 %v4983_v5 }
 0x24c   : > { %3630 = vmatpush1.bf16.msra.mxu1 %v4978_v34 }
 0x24d   : > { %3796 = vmatpush1.bf16.msra.mxu0 %v4981_v35  ;;  %3631 = vmatprep.subr.bf16.mxu1 %v4986_v36 }
 0x24e   : > { %3797 = vmatprep.subr.bf16.mxu0 %v4989_v37 }
 0x250   : > { %3632 = vmatpush1.bf16.msra.mxu1 %v4984_v10 }
 0x251   : > { %3798 = vmatpush1.bf16.msra.mxu0 %v4987_v38  ;;  %3633 = vmatprep.subr.bf16.mxu1 %v4992_v6 }
 0x252   : > { %4328 = vmatprep.subr.msk.bf16.mxu0 %vm3301_vm1, %v4323_v39 }
 0x254   : > { %3634 = vmatpush1.bf16.msra.mxu1 %v4990_v42 }
 0x255   : > { %3800 = vmatpush1.bf16.msra.mxu0 %v3315_v9  ;;  %4326 = vmatprep.subr.msk.bf16.mxu1 %vm3301_vm1, %v4321_v43 }
 0x258   : > { %3804 = vmatmul.mubr.bf16.vlgmr.msra.gmra.mrb[4].mxu0 %v6088_v13  ;;  %3636 = vmatpush1.bf16.msra.mxu1 %v3309_v45 }
 0x25b   : > { %3640 = vmatmul.mubr.bf16.vlgmr.msra.gmra.mrb[4].mxu1 %v6088_v13  ;;  %v1403_v13 = vrot.slane %v6334_v49, %v1402_v50 }
 0x32b   : > { %v3805_v53 = vpop.f32.mrb[4].mxu0 }
 0x32c   : > { %v4341_v54 = vadd.f32 %v3805_v53, %v1411_v48  ;;  %v3807_v55 = vpop.f32.mrb[5].mxu0 }
 0x32d   : > { %v4342_v56 = vadd.f32 %v3807_v55, %v1415_v51  ;;  %v3809_v59 = vpop.f32.mrb[6].mxu0 }
 0x32e   : > { %v3816_v61 = vmax.f32 %v4341_v54, 0.0  ;;  %v3810_v62 = vpop.f32.mrb[7].mxu0  ;;  %v3641_v0 = vpop.f32.mrb[4].mxu1 }
 0x32f   : > { %v3817_v63 = vmax.f32 %v4342_v56, 0.0  ;;  %v4339_v41 = vadd.f32 %v3641_v0, %v1403_v13  ;;  %v3643_v1 = vpop.f32.mrb[5].mxu1 }
 0x330   : > { %3822 = vst [vmem:[%s6351_s23 + $0x20] sm:$0xff] %v3816_v61  ;;  %v4340_v2 = vadd.f32 %v3643_v1, %v1407_v60  ;;  %v3645_v3 = vpop.f32.mrb[6].mxu1 }
 0x331   : > { %3823 = vst [vmem:[%s6351_s23 + $0x28] sm:$0xff] %v3817_v63  ;;  %v3814_v4 = vmax.f32 %v4339_v41, 0.0  ;;  %v3646_v7 = vpop.f32.mrb[7].mxu1 }
 0x332   : > { %v3815_v8 = vmax.f32 %v4340_v2, 0.0 }
 0x333   : > { %3820 = vst [vmem:[%s6351_s23 + $0x10] sm:$0xff] %v3814_v4 }
 0x334   : > { %3821 = vst [vmem:[%s6351_s23 + $0x18] sm:$0xff] %v3815_v8 }
 0x335   : > { %5010 = shalt.err (!%p5007_p8)
}
 0x336   : > { %s5011_s6 = scalar_lea.hbm %s6400_s29, 768  ;;  %s5015_s10 = scalar_lea.hbm %s6453_s3, 3840 }
 0x337   : > { %p5012_p10 = scmp.ne.s32.totalorder %s6400_s29, %s5011_s6  ;;  %p5016_p13 = scmp.lt.u32.totalorder %s6400_s29, %s6453_s3 }
 0x338   : > { %p5017_p0 = scmp.lt.u32.totalorder %s5015_s10, %s5011_s6  ;;  %p5019_p2 = scmp.lt.u32.totalorder %s5011_s6, %s6400_s29 }
 0x339   : > { %p5013_p11 = pnand %p5012_p10, %p5137_p5 }
 0x33a   : > { %p5018_p1 = por %p5017_p0, %p5016_p13 }
 0x33b   : > { %p5014_p12 = pneg %p5013_p11 }
 0x33c   : > { %p5020_p3 = por %p5019_p2, %p5018_p1 }
 0x33e   : > { %p5021_p4 = pnand %p5020_p3, %p5014_p12 }
 0x340   : > { %5024 = shalt.err (!%p5021_p4)
}
 0x341   : > { %4378 = dma.vmem_to_hbm [thread:$0]  (%p5137_p5), %s6402_s26, 768, %s6400_s29, %s3825_s15  }
 0x342 PF: > { %p4384_p6 = scmp.ge.s32.totalorder %s5075_s17, 2  ;;  %s3851_s21 = sand.u32 1, %s5055_s12  }
 0x343   : > { %s3852_s23 = scalar_lea.sflag [#allocation4], %s3851_s21 }
 0x344   : > { %p4381_p7 = pnand %p4384_p6, %p5148_p9 }
 0x346   : > { %5050 = dma.done.wait (!%p4381_p7), %s3852_s23, 768  }
 0x347   : > { %5052 = vsyncadd (!%p4381_p7), %s3852_s23, 4294966528  ;;  %s16_s17 = sadd.s32 1, %s5075_s17   ;;  %s6456_s12 = smov %s5059_s13 }
 0x348   : > { %p13_p8 = scmp.ge.s32.totalorder %s16_s17, 7   ;;  %s6457_s13 = smov %s5063_s14 }
 0x349   : > { %s6458_s14 = smov %s5146_s24  ;;  %s6459_s15 = smov %s5071_s16 }
 0x34a   : > { %s6460_s16 = smov %s6462_s20  ;;  %15 = sbr.rel (!%p13_p8) target bundleno = 4 (0x4), region = 101 }
 0x351   :  { %3857 = vsyncpa [#allocation4], 1 }
 0x352   :  { %3859 = vsyncpa [#allocation4 + $0x1], 1 }

// kernel: vae_forward.4
= control target key start
LH: loop header
LB: loop body
LE: loop exit
PB: predicated region body
PF: predicated region fallthrough
CT: control target
= control target key end

     0   :  { %s11587_s0 = inlined_call_operand.vmem [shape: f32[8,1000], index: 0, kind: input, shape index: {}]   ;;  %s11588_s1 = inlined_call_operand.hbm [shape: bf16[1000,1000], index: 1, kind: input, shape index: {}]   ;;  %s11589_s2 = inlined_call_operand.vmem [shape: f32[1,1000], index: 2, kind: input, shape index: {}]   ;;  %s11590_s3 = inlined_call_operand.vmem [shape: bf16[1000,100], index: 3, kind: input, shape index: {}]   ;;  %s11591_s4 = inlined_call_operand.vmem [shape: f32[1,100], index: 4, kind: input, shape index: {}]   ;;  %s11592_s5 = inlined_call_operand.vmem [shape: bf16[100,3], index: 5, kind: input, shape index: {}]   ;;  %s11593_s6 = inlined_call_operand.vmem [shape: f32[1,3], index: 6, kind: input, shape index: {}]   ;;  %s11594_s7 = inlined_call_operand.vmem [shape: bf16[100,3], index: 7, kind: input, shape index: {}]   ;;  %s11595_s8 = inlined_call_operand.vmem [shape: f32[1,3], index: 8, kind: input, shape index: {}]   ;;  %s11596_s9 = inlined_call_operand.vmem [shape: f32[8,3], index: 9, kind: input, shape index: {}]   ;;  %s11597_s10 = inlined_call_operand.vmem [shape: bf16[3,100], index: 10, kind: input, shape index: {}]   ;;  %s11598_s11 = inlined_call_operand.vmem [shape: f32[1,100], index: 11, kind: input, shape index: {}]   ;;  %s11599_s12 = inlined_call_operand.vmem [shape: bf16[100,1000], index: 12, kind: input, shape index: {}]   ;;  %s11600_s13 = inlined_call_operand.vmem [shape: f32[1,1000], index: 13, kind: input, shape index: {}]   ;;  %s11601_s14 = inlined_call_operand.hbm [shape: bf16[1000,1000], index: 14, kind: input, shape index: {}]   ;;  %s11602_s15 = inlined_call_operand.vmem [shape: f32[1,1000], index: 15, kind: input, shape index: {}]   ;;  %s11603_s16 = inlined_call_operand.vmem [shape: f32[8,3], index: 16, kind: output, shape index: {0}]   ;;  %s11604_s17 = inlined_call_operand.vmem [shape: f32[8,3], index: 17, kind: output, shape index: {1}]   ;;  %s11605_s18 = inlined_call_operand.vmem [shape: f32[8,1000], index: 18, kind: output, shape index: {2}]  }
   0x1   :  { %11609 = sst [smem:[#allocation8_spill]] %s11587_s0 }
   0x2   :  { %11610 = sst [smem:[#allocation9_spill]] %s11588_s1 }
   0x3   :  { %11611 = sst [smem:[#allocation10_spill]] %s11589_s2 }
   0x4   :  { %11612 = sst [smem:[#allocation11_spill]] %s11605_s18 }
   0x5   :  { %24 = vsyncpa [#allocation3], 0 }
   0x6   :  { %25 = vsyncpa [#allocation5], 0  ;;  %s10683_s27 = smov [#allocation2]   ;;  %s11613_s0 = sld [smem:[#allocation9_spill]] }
   0x7   :  { %s33_s28 = sshll.u32 %s10683_s27, 4  ;;  %s34_s28 = int_to_ptr.vmem [resolvable:$true] %s33_s28 }
   0xc   :  { %s10635_s19 = scalar_lea.hbm %s11613_s0, 64000 }
   0xd   :  { %p10636_p0 = scmp.ne.s32.totalorder %s11613_s0, %s10635_s19  ;;  %p10639_p1 = scmp.lt.u32.totalorder %s10635_s19, %s11613_s0 }
   0xf   :  { %p10641_p2 = pnand %p10639_p1, %p10636_p0 }
  0x11   :  { %10644 = shalt.err (!%p10641_p2)
}
  0x12   :  { %s10645_s2 = scalar_lea.vmem %s34_s28, 64000  ;;  %p10650_p4 = scmp.lt.s32.totalorder %s34_s28, %s34_s28 }
  0x13   :  { %p10646_p3 = scmp.ne.s32.totalorder %s34_s28, %s10645_s2  ;;  %p10651_p5 = scmp.lt.s32.totalorder %s10645_s2, %s10645_s2 }
  0x15   :  { %p10652_p6 = por %p10651_p5, %p10650_p4 }
  0x17   :  { %p10653_p7 = pnand %p10652_p6, %p10646_p3 }
  0x19   :  { %10656 = shalt.err (!%p10653_p7)
}
  0x1a   :  { %s10684_s23 = smov 512   ;;  %s10685_s24 = smov 32  }
  0x1b   :  { %39 = dma.hbm_to_vmem [thread:$0]  %s11613_s0, 64000, %s34_s28, [#allocation3], %s10684_s23, %s10684_s23, %s10685_s24  }
  0x1c   :  { %s10686_s27 = smov [#allocation4]   ;;  %s10657_s1 = scalar_lea.hbm %s11601_s14, 64000 }
  0x1d   :  { %s69_s29 = sshll.u32 %s10686_s27, 4  ;;  %p10658_p8 = scmp.ne.s32.totalorder %s11601_s14, %s10657_s1  ;;  %s70_s29 = int_to_ptr.vmem [resolvable:$true] %s69_s29 }
  0x1e   :  { %p10661_p9 = scmp.lt.u32.totalorder %s10657_s1, %s11601_s14 }
  0x20   :  { %p10663_p10 = pnand %p10661_p9, %p10658_p8 }
  0x22   :  { %10666 = shalt.err (!%p10663_p10)
}
  0x23   :  { %s10667_s18 = scalar_lea.vmem %s70_s29, 64000  ;;  %p10672_p12 = scmp.lt.s32.totalorder %s70_s29, %s70_s29 }
  0x24   :  { %p10668_p11 = scmp.ne.s32.totalorder %s70_s29, %s10667_s18  ;;  %p10673_p13 = scmp.lt.s32.totalorder %s10667_s18, %s10667_s18 }
  0x26   :  { %p10674_p0 = por %p10673_p13, %p10672_p12 }
  0x28   :  { %p10675_p1 = pnand %p10674_p0, %p10668_p11 }
  0x2a   :  { %10678 = shalt.err (!%p10675_p1)
}
  0x2b   :  { %75 = dma.hbm_to_vmem [thread:$0]  %s11601_s14, 64000, %s70_s29, [#allocation5], %s10684_s23, %s10684_s23, %s10685_s24  }
  0x2c   :  { %10679 = dma.done.wait [#allocation3], 64000  }
  0x2d   :  { %10680 = vsyncadd [#allocation3], 4294903296 }
  0x2e   :  { %10681 = dma.done.wait [#allocation5], 64000  }
  0x2f   :  { %10682 = vsyncadd [#allocation5], 4294903296  ;;  %v101_v0 = vld [vmem:[#allocation2] sm:$0xff]  ;;  %v102_v2 = vld [vmem:[#allocation2 + $0x8] sm:$0xff]  ;;  %s11614_s23 = sld [smem:[#allocation8_spill]]  ;;  %vm3143_vm0 = vcmask 850944  }
  0x30   :  { %v105_v1 = vld [vmem:[#allocation2 + $0x20] sm:$0xff]  ;;  %v106_v4 = vld [vmem:[#allocation2 + $0x28] sm:$0xff]  ;;  %vm3147_vm1 = vcmask 1043456   ;;  %vm4582_vm2 = vcmask 1041408   ;;  %vm10689_vm3 = vmmov 0   ;;  %vm4578_vm4 = vcmask 818176  }
  0x31   :  { %v9113_v3 = vcombine.high %v101_v0, %v105_v1  ;;  %v9112_v5 = vcombine.low %v101_v0, %v105_v1  ;;  %v109_v6 = vld [vmem:[#allocation2 + $0x40] sm:$0xff]  ;;  %v9115_v8 = vcombine.high %v102_v2, %v106_v4  ;;  %v9114_v9 = vcombine.low %v102_v2, %v106_v4  ;;  %v110_v11 = vld [vmem:[#allocation2 + $0x48] sm:$0xff] }
  0x32   :  { %v113_v7 = vld [vmem:[#allocation2 + $0x60] sm:$0xff]  ;;  %v114_v12 = vld [vmem:[#allocation2 + $0x68] sm:$0xff]  ;;  %vm4749_vm5 = vcmask 1040384   ;;  %vm4728_vm6 = vcmask 23552  }
  0x33   :  { %v9121_v10 = vcombine.high %v109_v6, %v113_v7  ;;  %v117_v13 = vld [vmem:[#allocation2 + $0x80] sm:$0xff]  ;;  %3172 = vmatprep.subr.bf16.mxu0 %v9113_v3  ;;  %v9123_v14 = vcombine.high %v110_v11, %v114_v12  ;;  %v118_v16 = vld [vmem:[#allocation2 + $0x88] sm:$0xff]  ;;  %3336 = vmatprep.subr.bf16.mxu1 %v9115_v8  ;;  %v9120_v18 = vcombine.low %v109_v6, %v113_v7 }
  0x34   :  { %v121_v15 = vld [vmem:[#allocation2 + $0xa0] sm:$0xff]  ;;  %v122_v17 = vld [vmem:[#allocation2 + $0xa8] sm:$0xff]  ;;  %3173 = vmatpush1.bf16.msra.mxu0 %v9112_v5  ;;  %3337 = vmatpush1.bf16.msra.mxu1 %v9114_v9  ;;  %v9122_v19 = vcombine.low %v110_v11, %v114_v12 }
  0x35   :  { %3174 = vmatprep.subr.bf16.mxu0 %v9121_v10  ;;  %v9129_v20 = vcombine.high %v117_v13, %v121_v15  ;;  %3338 = vmatprep.subr.bf16.mxu1 %v9123_v14  ;;  %v9131_v21 = vcombine.high %v118_v16, %v122_v17  ;;  %v125_v22 = vld [vmem:[#allocation2 + $0xc0] sm:$0xff]  ;;  %v126_v24 = vld [vmem:[#allocation2 + $0xc8] sm:$0xff]  ;;  %v9128_v26 = vcombine.low %v117_v13, %v121_v15  ;;  %v86_v53 = vld [vmem:[%s11614_s23 + $0x8] sm:$0xff] }
  0x36   :  { %v129_v23 = vld [vmem:[#allocation2 + $0xe0] sm:$0xff]  ;;  %v130_v25 = vld [vmem:[#allocation2 + $0xe8] sm:$0xff]  ;;  %v9130_v27 = vcombine.low %v118_v16, %v122_v17  ;;  %v10813_v57 = vpack.c.bf16 %v86_v53, %v86_v53 }
  0x37   :  { %v9137_v28 = vcombine.high %v125_v22, %v129_v23  ;;  %v9139_v29 = vcombine.high %v126_v24, %v130_v25  ;;  %v133_v30 = vld [vmem:[#allocation2 + $0x100] sm:$0xff]  ;;  %v134_v32 = vld [vmem:[#allocation2 + $0x108] sm:$0xff]  ;;  %v9136_v34 = vcombine.low %v125_v22, %v129_v23  ;;  %v9138_v35 = vcombine.low %v126_v24, %v130_v25 }
  0x38   :  { %3175 = vmatpush1.bf16.msra.mxu0 %v9120_v18  ;;  %3339 = vmatpush1.bf16.msra.mxu1 %v9122_v19  ;;  %v137_v31 = vld [vmem:[#allocation2 + $0x120] sm:$0xff]  ;;  %v138_v33 = vld [vmem:[#allocation2 + $0x128] sm:$0xff] }
  0x39   :  { %3176 = vmatprep.subr.bf16.mxu0 %v9129_v20  ;;  %3340 = vmatprep.subr.bf16.mxu1 %v9131_v21  ;;  %v9145_v36 = vcombine.high %v133_v30, %v137_v31  ;;  %v9147_v37 = vcombine.high %v134_v32, %v138_v33  ;;  %v141_v38 = vld [vmem:[#allocation2 + $0x140] sm:$0xff]  ;;  %v142_v40 = vld [vmem:[#allocation2 + $0x148] sm:$0xff]  ;;  %v9144_v42 = vcombine.low %v133_v30, %v137_v31 }
  0x3a   :  { %v145_v39 = vld [vmem:[#allocation2 + $0x160] sm:$0xff]  ;;  %v146_v41 = vld [vmem:[#allocation2 + $0x168] sm:$0xff]  ;;  %v9146_v43 = vcombine.low %v134_v32, %v138_v33  ;;  %3204 = vmatprep.mubr.bf16.mxu0 %v10813_v57  ;;  %3368 = vmatprep.mubr.bf16.mxu1 %v10813_v57 }
  0x3b   :  { %v9153_v44 = vcombine.high %v141_v38, %v145_v39  ;;  %v9155_v45 = vcombine.high %v142_v40, %v146_v41  ;;  %v149_v46 = vld [vmem:[#allocation2 + $0x180] sm:$0xff]  ;;  %v150_v48 = vld [vmem:[#allocation2 + $0x188] sm:$0xff]  ;;  %v9152_v50 = vcombine.low %v141_v38, %v145_v39  ;;  %v9154_v51 = vcombine.low %v142_v40, %v146_v41 }
  0x3c   :  { %3177 = vmatpush1.bf16.msra.mxu0 %v9128_v26  ;;  %3341 = vmatpush1.bf16.msra.mxu1 %v9130_v27  ;;  %v153_v47 = vld [vmem:[#allocation2 + $0x1a0] sm:$0xff]  ;;  %v154_v49 = vld [vmem:[#allocation2 + $0x1a8] sm:$0xff] }
  0x3d   :  { %3178 = vmatprep.subr.bf16.mxu0 %v9137_v28  ;;  %3342 = vmatprep.subr.bf16.mxu1 %v9139_v29  ;;  %v9161_v52 = vcombine.high %v149_v46, %v153_v47  ;;  %v9163_v54 = vcombine.high %v150_v48, %v154_v49  ;;  %v157_v55 = vld [vmem:[#allocation2 + $0x1c0] sm:$0xff]  ;;  %v158_v58 = vld [vmem:[#allocation2 + $0x1c8] sm:$0xff]  ;;  %v9160_v60 = vcombine.low %v149_v46, %v153_v47 }
  0x3e   :  { %v161_v56 = vld [vmem:[#allocation2 + $0x1e0] sm:$0xff]  ;;  %v162_v59 = vld [vmem:[#allocation2 + $0x1e8] sm:$0xff]  ;;  %v9162_v61 = vcombine.low %v150_v48, %v154_v49 }
  0x3f   :  { %v9169_v62 = vcombine.high %v157_v55, %v161_v56  ;;  %v9171_v63 = vcombine.high %v158_v58, %v162_v59  ;;  %v165_v0 = vld [vmem:[#allocation2 + $0x200] sm:$0xff]  ;;  %v166_v2 = vld [vmem:[#allocation2 + $0x208] sm:$0xff]  ;;  %v9168_v4 = vcombine.low %v157_v55, %v161_v56  ;;  %v9170_v5 = vcombine.low %v158_v58, %v162_v59 }
  0x40   :  { %3179 = vmatpush1.bf16.msra.mxu0 %v9136_v34  ;;  %3343 = vmatpush1.bf16.msra.mxu1 %v9138_v35  ;;  %v169_v1 = vld [vmem:[#allocation2 + $0x220] sm:$0xff]  ;;  %v170_v3 = vld [vmem:[#allocation2 + $0x228] sm:$0xff] }
  0x41   :  { %3180 = vmatprep.subr.bf16.mxu0 %v9145_v36  ;;  %3344 = vmatprep.subr.bf16.mxu1 %v9147_v37  ;;  %v9177_v6 = vcombine.high %v165_v0, %v169_v1  ;;  %v9179_v7 = vcombine.high %v166_v2, %v170_v3  ;;  %v173_v8 = vld [vmem:[#allocation2 + $0x240] sm:$0xff]  ;;  %v174_v10 = vld [vmem:[#allocation2 + $0x248] sm:$0xff]  ;;  %v9176_v12 = vcombine.low %v165_v0, %v169_v1 }
  0x42   :  { %v177_v9 = vld [vmem:[#allocation2 + $0x260] sm:$0xff]  ;;  %v178_v11 = vld [vmem:[#allocation2 + $0x268] sm:$0xff]  ;;  %v9178_v13 = vcombine.low %v166_v2, %v170_v3 }
  0x43   :  { %v9185_v14 = vcombine.high %v173_v8, %v177_v9  ;;  %v9187_v15 = vcombine.high %v174_v10, %v178_v11  ;;  %v181_v16 = vld [vmem:[#allocation2 + $0x280] sm:$0xff]  ;;  %v182_v18 = vld [vmem:[#allocation2 + $0x288] sm:$0xff]  ;;  %v9184_v20 = vcombine.low %v173_v8, %v177_v9  ;;  %v9186_v21 = vcombine.low %v174_v10, %v178_v11 }
  0x44   :  { %3181 = vmatpush1.bf16.msra.mxu0 %v9144_v42  ;;  %3345 = vmatpush1.bf16.msra.mxu1 %v9146_v43  ;;  %v185_v17 = vld [vmem:[#allocation2 + $0x2a0] sm:$0xff]  ;;  %v186_v19 = vld [vmem:[#allocation2 + $0x2a8] sm:$0xff] }
  0x45   :  { %3182 = vmatprep.subr.bf16.mxu0 %v9153_v44  ;;  %3346 = vmatprep.subr.bf16.mxu1 %v9155_v45  ;;  %v9193_v22 = vcombine.high %v181_v16, %v185_v17  ;;  %v9195_v23 = vcombine.high %v182_v18, %v186_v19  ;;  %v189_v24 = vld [vmem:[#allocation2 + $0x2c0] sm:$0xff]  ;;  %v190_v26 = vld [vmem:[#allocation2 + $0x2c8] sm:$0xff]  ;;  %v9192_v28 = vcombine.low %v181_v16, %v185_v17 }
  0x46   :  { %v193_v25 = vld [vmem:[#allocation2 + $0x2e0] sm:$0xff]  ;;  %v194_v27 = vld [vmem:[#allocation2 + $0x2e8] sm:$0xff]  ;;  %v9194_v29 = vcombine.low %v182_v18, %v186_v19 }
  0x47   :  { %v9201_v30 = vcombine.high %v189_v24, %v193_v25  ;;  %v9203_v31 = vcombine.high %v190_v26, %v194_v27  ;;  %v197_v32 = vld [vmem:[#allocation2 + $0x300] sm:$0xff]  ;;  %v198_v34 = vld [vmem:[#allocation2 + $0x308] sm:$0xff]  ;;  %v9200_v36 = vcombine.low %v189_v24, %v193_v25  ;;  %v9202_v37 = vcombine.low %v190_v26, %v194_v27 }
  0x48   :  { %3183 = vmatpush1.bf16.msra.mxu0 %v9152_v50  ;;  %3347 = vmatpush1.bf16.msra.mxu1 %v9154_v51  ;;  %v201_v33 = vld [vmem:[#allocation2 + $0x320] sm:$0xff]  ;;  %v202_v35 = vld [vmem:[#allocation2 + $0x328] sm:$0xff] }
  0x49   :  { %3184 = vmatprep.subr.bf16.mxu0 %v9161_v52  ;;  %3348 = vmatprep.subr.bf16.mxu1 %v9163_v54  ;;  %v9209_v38 = vcombine.high %v197_v32, %v201_v33  ;;  %v9211_v39 = vcombine.high %v198_v34, %v202_v35  ;;  %v205_v40 = vld [vmem:[#allocation2 + $0x340] sm:$0xff]  ;;  %v206_v42 = vld [vmem:[#allocation2 + $0x348] sm:$0xff]  ;;  %v9208_v44 = vcombine.low %v197_v32, %v201_v33 }
  0x4a   :  { %v209_v41 = vld [vmem:[#allocation2 + $0x360] sm:$0xff]  ;;  %v210_v43 = vld [vmem:[#allocation2 + $0x368] sm:$0xff]  ;;  %v9210_v45 = vcombine.low %v198_v34, %v202_v35 }
  0x4b   :  { %v9217_v46 = vcombine.high %v205_v40, %v209_v41  ;;  %v9219_v47 = vcombine.high %v206_v42, %v210_v43  ;;  %v213_v48 = vld [vmem:[#allocation2 + $0x380] sm:$0xff]  ;;  %v214_v50 = vld [vmem:[#allocation2 + $0x388] sm:$0xff]  ;;  %v9216_v52 = vcombine.low %v205_v40, %v209_v41  ;;  %v9218_v53 = vcombine.low %v206_v42, %v210_v43 }
  0x4c   :  { %3185 = vmatpush1.bf16.msra.mxu0 %v9160_v60  ;;  %3349 = vmatpush1.bf16.msra.mxu1 %v9162_v61  ;;  %v217_v49 = vld [vmem:[#allocation2 + $0x3a0] sm:$0xff]  ;;  %v218_v51 = vld [vmem:[#allocation2 + $0x3a8] sm:$0xff] }
  0x4d   :  { %3186 = vmatprep.subr.bf16.mxu0 %v9169_v62  ;;  %3350 = vmatprep.subr.bf16.mxu1 %v9171_v63  ;;  %v9225_v54 = vcombine.high %v213_v48, %v217_v49  ;;  %v9227_v55 = vcombine.high %v214_v50, %v218_v51  ;;  %v221_v56 = vld [vmem:[#allocation2 + $0x3c0] sm:$0xff]  ;;  %v222_v59 = vld [vmem:[#allocation2 + $0x3c8] sm:$0xff]  ;;  %v9224_v61 = vcombine.low %v213_v48, %v217_v49 }
  0x4e   :  { %v225_v58 = vld [vmem:[#allocation2 + $0x3e0] sm:$0xff]  ;;  %v226_v60 = vld [vmem:[#allocation2 + $0x3e8] sm:$0xff]  ;;  %v9226_v62 = vcombine.low %v214_v50, %v218_v51 }
  0x4f   :  { %v9233_v63 = vcombine.high %v221_v56, %v225_v58  ;;  %v9235_v0 = vcombine.high %v222_v59, %v226_v60  ;;  %v229_v1 = vld [vmem:[#allocation2 + $0x400] sm:$0xff]  ;;  %v230_v3 = vld [vmem:[#allocation2 + $0x408] sm:$0xff] }
  0x50   :  { %3187 = vmatpush1.bf16.msra.mxu0 %v9168_v4  ;;  %3351 = vmatpush1.bf16.msra.mxu1 %v9170_v5  ;;  %v233_v2 = vld [vmem:[#allocation2 + $0x420] sm:$0xff]  ;;  %v234_v4 = vld [vmem:[#allocation2 + $0x428] sm:$0xff]  ;;  %v9232_v5 = vcombine.low %v221_v56, %v225_v58 }
  0x51   :  { %3188 = vmatprep.subr.bf16.mxu0 %v9177_v6  ;;  %3352 = vmatprep.subr.bf16.mxu1 %v9179_v7  ;;  %v85_v6 = vld [vmem:[%s11614_s23] sm:$0xff]  ;;  %v9234_v7 = vcombine.low %v222_v59, %v226_v60  ;;  %v9241_v8 = vcombine.high %v229_v1, %v233_v2  ;;  %v9243_v9 = vcombine.high %v230_v3, %v234_v4  ;;  %v237_v10 = vld [vmem:[#allocation2 + $0x440] sm:$0xff] }
  0x52   :  { %v241_v11 = vld [vmem:[#allocation2 + $0x460] sm:$0xff]  ;;  %v9240_v16 = vcombine.low %v229_v1, %v233_v2  ;;  %v9242_v17 = vcombine.low %v230_v3, %v234_v4  ;;  %v250_v24 = vld [vmem:[#allocation2 + $0x4a8] sm:$0xff] }
  0x53   :  { %v9249_v18 = vcombine.high %v237_v10, %v241_v11  ;;  %v9248_v25 = vcombine.low %v237_v10, %v241_v11  ;;  %v258_v32 = vld [vmem:[#allocation2 + $0x4e8] sm:$0xff] }
  0x54   :  { %3189 = vmatpush1.bf16.msra.mxu0 %v9176_v12  ;;  %3353 = vmatpush1.bf16.msra.mxu1 %v9178_v13  ;;  %v10820_v12 = vpack.c.bf16 %v85_v6, %v85_v6  ;;  %v238_v13 = vld [vmem:[#allocation2 + $0x448] sm:$0xff]  ;;  %v297_v6 = vld [vmem:[#allocation2 + $0x620] sm:$0xff] }
  0x55   :  { %3190 = vmatprep.subr.bf16.mxu0 %v9185_v14  ;;  %3354 = vmatprep.subr.bf16.mxu1 %v9187_v15  ;;  %v242_v14 = vld [vmem:[#allocation2 + $0x468] sm:$0xff]  ;;  %v88_v15 = vld [vmem:[%s11614_s23 + $0x18] sm:$0xff] }
  0x56   :  { %v9251_v19 = vcombine.high %v238_v13, %v242_v14  ;;  %v9250_v26 = vcombine.low %v238_v13, %v242_v14  ;;  %v266_v40 = vld [vmem:[#allocation2 + $0x528] sm:$0xff]  ;;  %v301_v14 = vld [vmem:[#allocation2 + $0x640] sm:$0xff] }
  0x57   :  { %v274_v48 = vld [vmem:[#allocation2 + $0x568] sm:$0xff] }
  0x58   :  { %3191 = vmatpush1.bf16.msra.mxu0 %v9184_v20  ;;  %3355 = vmatpush1.bf16.msra.mxu1 %v9186_v21  ;;  %v245_v20 = vld [vmem:[#allocation2 + $0x480] sm:$0xff]  ;;  %v282_v56 = vld [vmem:[#allocation2 + $0x5a8] sm:$0xff] }
  0x59   :  { %3192 = vmatprep.subr.bf16.mxu0 %v9193_v22  ;;  %3356 = vmatprep.subr.bf16.mxu1 %v9195_v23  ;;  %v249_v21 = vld [vmem:[#allocation2 + $0x4a0] sm:$0xff]  ;;  %v246_v22 = vld [vmem:[#allocation2 + $0x488] sm:$0xff]  ;;  %v10825_v23 = vpack.c.bf16 %v88_v15, %v88_v15 }
  0x5a   :  { %v9257_v27 = vcombine.high %v245_v20, %v249_v21  ;;  %v9256_v33 = vcombine.low %v245_v20, %v249_v21  ;;  %v9258_v34 = vcombine.low %v246_v22, %v250_v24  ;;  %v290_v1 = vld [vmem:[#allocation2 + $0x5e8] sm:$0xff]  ;;  %v305_v15 = vld [vmem:[#allocation2 + $0x660] sm:$0xff] }
  0x5b   :  { %v9313_v21 = vcombine.high %v301_v14, %v305_v15 }
  0x5c   :  { %3193 = vmatpush1.bf16.msra.mxu0 %v9192_v28  ;;  %3357 = vmatpush1.bf16.msra.mxu1 %v9194_v29  ;;  %v253_v28 = vld [vmem:[#allocation2 + $0x4c0] sm:$0xff] }
  0x5d   :  { %3194 = vmatprep.subr.bf16.mxu0 %v9201_v30  ;;  %3358 = vmatprep.subr.bf16.mxu1 %v9203_v31  ;;  %v257_v29 = vld [vmem:[#allocation2 + $0x4e0] sm:$0xff]  ;;  %v254_v30 = vld [vmem:[#allocation2 + $0x4c8] sm:$0xff]  ;;  %v9259_v31 = vcombine.high %v246_v22, %v250_v24 }
  0x5e   :  { %v9265_v35 = vcombine.high %v253_v28, %v257_v29  ;;  %v9264_v41 = vcombine.low %v253_v28, %v257_v29  ;;  %v9266_v42 = vcombine.low %v254_v30, %v258_v32  ;;  %v309_v22 = vld [vmem:[#allocation2 + $0x680] sm:$0xff]  ;;  %v9312_v28 = vcombine.low %v301_v14, %v305_v15  ;;  %v87_v15 = vld [vmem:[%s11614_s23 + $0x10] sm:$0xff] }
  0x5f   :  { %v313_v24 = vld [vmem:[#allocation2 + $0x6a0] sm:$0xff] }
  0x60   :  { %3195 = vmatpush1.bf16.msra.mxu0 %v9200_v36  ;;  %3359 = vmatpush1.bf16.msra.mxu1 %v9202_v37  ;;  %v261_v36 = vld [vmem:[#allocation2 + $0x500] sm:$0xff] }
  0x61   :  { %3196 = vmatprep.subr.bf16.mxu0 %v9209_v38  ;;  %3360 = vmatprep.subr.bf16.mxu1 %v9211_v39  ;;  %v265_v37 = vld [vmem:[#allocation2 + $0x520] sm:$0xff]  ;;  %v262_v38 = vld [vmem:[#allocation2 + $0x508] sm:$0xff]  ;;  %v9267_v39 = vcombine.high %v254_v30, %v258_v32  ;;  %v9321_v30 = vcombine.high %v309_v22, %v313_v24 }
  0x62   :  { %v9273_v43 = vcombine.high %v261_v36, %v265_v37  ;;  %v9272_v49 = vcombine.low %v261_v36, %v265_v37  ;;  %v9274_v50 = vcombine.low %v262_v38, %v266_v40  ;;  %v321_v32 = vld [vmem:[#allocation2 + $0x6e0] sm:$0xff]  ;;  %v9320_v36 = vcombine.low %v309_v22, %v313_v24  ;;  %v370_v22 = vld [vmem:[#allocation2 + $0x868] sm:$0xff]  ;;  %v90_v24 = vld [vmem:[%s11614_s23 + $0x28] sm:$0xff] }
  0x64   :  { %3197 = vmatpush1.bf16.msra.mxu0 %v9208_v44  ;;  %3361 = vmatpush1.bf16.msra.mxu1 %v9210_v45  ;;  %v269_v44 = vld [vmem:[#allocation2 + $0x540] sm:$0xff] }
  0x65   :  { %3198 = vmatprep.subr.bf16.mxu0 %v9217_v46  ;;  %3362 = vmatprep.subr.bf16.mxu1 %v9219_v47  ;;  %v273_v45 = vld [vmem:[#allocation2 + $0x560] sm:$0xff]  ;;  %v270_v46 = vld [vmem:[#allocation2 + $0x548] sm:$0xff]  ;;  %v9275_v47 = vcombine.high %v262_v38, %v266_v40 }
  0x66   :  { %v9281_v51 = vcombine.high %v269_v44, %v273_v45  ;;  %v9280_v58 = vcombine.low %v269_v44, %v273_v45  ;;  %v9282_v59 = vcombine.low %v270_v46, %v274_v48  ;;  %v329_v40 = vld [vmem:[#allocation2 + $0x720] sm:$0xff] }
  0x68   :  { %3199 = vmatpush1.bf16.msra.mxu0 %v9216_v52  ;;  %3363 = vmatpush1.bf16.msra.mxu1 %v9218_v53  ;;  %v277_v52 = vld [vmem:[#allocation2 + $0x580] sm:$0xff] }
  0x69   :  { %3200 = vmatprep.subr.bf16.mxu0 %v9225_v54  ;;  %3364 = vmatprep.subr.bf16.mxu1 %v9227_v55  ;;  %v281_v53 = vld [vmem:[#allocation2 + $0x5a0] sm:$0xff]  ;;  %v278_v54 = vld [vmem:[#allocation2 + $0x588] sm:$0xff]  ;;  %v9283_v55 = vcombine.high %v270_v46, %v274_v48 }
  0x6a   :  { %v9289_v60 = vcombine.high %v277_v52, %v281_v53  ;;  %v9288_v2 = vcombine.low %v277_v52, %v281_v53  ;;  %v9290_v3 = vcombine.low %v278_v54, %v282_v56  ;;  %v337_v48 = vld [vmem:[#allocation2 + $0x760] sm:$0xff] }
  0x6c   :  { %3201 = vmatpush1.bf16.msra.mxu0 %v9224_v61  ;;  %3365 = vmatpush1.bf16.msra.mxu1 %v9226_v62  ;;  %v285_v61 = vld [vmem:[#allocation2 + $0x5c0] sm:$0xff] }
  0x6d   :  { %3202 = vmatprep.subr.bf16.mxu0 %v9233_v63  ;;  %3366 = vmatprep.subr.bf16.mxu1 %v9235_v0  ;;  %v289_v62 = vld [vmem:[#allocation2 + $0x5e0] sm:$0xff]  ;;  %v286_v63 = vld [vmem:[#allocation2 + $0x5c8] sm:$0xff]  ;;  %v9291_v0 = vcombine.high %v278_v54, %v282_v56 }
  0x6e   :  { %v9297_v4 = vcombine.high %v285_v61, %v289_v62  ;;  %v9296_v10 = vcombine.low %v285_v61, %v289_v62  ;;  %v9298_v11 = vcombine.low %v286_v63, %v290_v1  ;;  %v345_v56 = vld [vmem:[#allocation2 + $0x7a0] sm:$0xff] }
  0x70   :  { %3203 = vmatpush1.bf16.msra.mxu0 %v9232_v5  ;;  %3367 = vmatpush1.bf16.msra.mxu1 %v9234_v7  ;;  %v293_v5 = vld [vmem:[#allocation2 + $0x600] sm:$0xff]  ;;  %v294_v7 = vld [vmem:[#allocation2 + $0x608] sm:$0xff] }
  0x71   :  { %3213 = vmatprep.subr.bf16.mxu0 %v9241_v8  ;;  %3377 = vmatprep.subr.bf16.mxu1 %v9243_v9  ;;  %v9299_v8 = vcombine.high %v286_v63, %v290_v1  ;;  %v298_v9 = vld [vmem:[#allocation2 + $0x628] sm:$0xff]  ;;  %v9305_v13 = vcombine.high %v293_v5, %v297_v6  ;;  %v353_v1 = vld [vmem:[#allocation2 + $0x7e0] sm:$0xff] }
  0x72   :  { %v9306_v20 = vcombine.low %v294_v7, %v298_v9 }
  0x73   :  { %3205 = vmatmul.mubr.bf16.vlgmr.msra.gmra.mrb[0].mxu0 %v10820_v12  ;;  %3369 = vmatmul.mubr.bf16.vlgmr.msra.gmra.mrb[0].mxu1 %v10820_v12 }
  0x74   :  { %3214 = vmatpush1.bf16.msra.mxu0 %v9240_v16  ;;  %3378 = vmatpush1.bf16.msra.mxu1 %v9242_v17  ;;  %v302_v16 = vld [vmem:[#allocation2 + $0x648] sm:$0xff]  ;;  %v9307_v17 = vcombine.high %v294_v7, %v298_v9  ;;  %v361_v7 = vld [vmem:[#allocation2 + $0x820] sm:$0xff] }
  0x75   :  { %3215 = vmatprep.subr.bf16.mxu0 %v9249_v18  ;;  %3379 = vmatprep.subr.bf16.mxu1 %v9251_v19  ;;  %v306_v18 = vld [vmem:[#allocation2 + $0x668] sm:$0xff]  ;;  %v9304_v19 = vcombine.low %v293_v5, %v297_v6  ;;  %v357_v6 = vld [vmem:[#allocation2 + $0x800] sm:$0xff] }
  0x76   :  { %3245 = vmatprep.mubr.bf16.mxu0 %v10825_v23  ;;  %3409 = vmatprep.mubr.bf16.mxu1 %v10825_v23  ;;  %v9314_v29 = vcombine.low %v302_v16, %v306_v18 }
  0x78   :  { %3216 = vmatpush1.bf16.msra.mxu0 %v9248_v25  ;;  %3380 = vmatpush1.bf16.msra.mxu1 %v9250_v26  ;;  %v310_v25 = vld [vmem:[#allocation2 + $0x688] sm:$0xff]  ;;  %v9315_v26 = vcombine.high %v302_v16, %v306_v18  ;;  %v365_v18 = vld [vmem:[#allocation2 + $0x840] sm:$0xff] }
  0x79   :  { %3217 = vmatprep.subr.bf16.mxu0 %v9257_v27  ;;  %3381 = vmatprep.subr.bf16.mxu1 %v9259_v31  ;;  %v314_v27 = vld [vmem:[#allocation2 + $0x6a8] sm:$0xff]  ;;  %v317_v31 = vld [vmem:[#allocation2 + $0x6c0] sm:$0xff] }
  0x7a   :  { %v9322_v37 = vcombine.low %v310_v25, %v314_v27  ;;  %v9329_v38 = vcombine.high %v317_v31, %v321_v32  ;;  %v9328_v44 = vcombine.low %v317_v31, %v321_v32  ;;  %v374_v31 = vld [vmem:[#allocation2 + $0x888] sm:$0xff] }
  0x7c   :  { %3218 = vmatpush1.bf16.msra.mxu0 %v9256_v33  ;;  %3382 = vmatpush1.bf16.msra.mxu1 %v9258_v34  ;;  %v318_v33 = vld [vmem:[#allocation2 + $0x6c8] sm:$0xff]  ;;  %v9323_v34 = vcombine.high %v310_v25, %v314_v27  ;;  %v10837_v25 = vpack.c.bf16 %v87_v15, %v87_v15 }
  0x7d   :  { %3219 = vmatprep.subr.bf16.mxu0 %v9265_v35  ;;  %3383 = vmatprep.subr.bf16.mxu1 %v9267_v39  ;;  %v322_v35 = vld [vmem:[#allocation2 + $0x6e8] sm:$0xff]  ;;  %v325_v39 = vld [vmem:[#allocation2 + $0x700] sm:$0xff] }
  0x7e   :  { %v9330_v45 = vcombine.low %v318_v33, %v322_v35  ;;  %v9337_v46 = vcombine.high %v325_v39, %v329_v40  ;;  %v9336_v52 = vcombine.low %v325_v39, %v329_v40  ;;  %v385_v39 = vld [vmem:[#allocation2 + $0x8e0] sm:$0xff]  ;;  %v382_v40 = vld [vmem:[#allocation2 + $0x8c8] sm:$0xff] }
  0x80   :  { %3220 = vmatpush1.bf16.msra.mxu0 %v9264_v41  ;;  %3384 = vmatpush1.bf16.msra.mxu1 %v9266_v42  ;;  %v326_v41 = vld [vmem:[#allocation2 + $0x708] sm:$0xff]  ;;  %v9331_v42 = vcombine.high %v318_v33, %v322_v35 }
  0x81   :  { %3221 = vmatprep.subr.bf16.mxu0 %v9273_v43  ;;  %3385 = vmatprep.subr.bf16.mxu1 %v9275_v47  ;;  %v330_v43 = vld [vmem:[#allocation2 + $0x728] sm:$0xff]  ;;  %v333_v47 = vld [vmem:[#allocation2 + $0x740] sm:$0xff] }
  0x82   :  { %v9338_v53 = vcombine.low %v326_v41, %v330_v43  ;;  %v9345_v54 = vcombine.high %v333_v47, %v337_v48  ;;  %v9344_v61 = vcombine.low %v333_v47, %v337_v48  ;;  %v378_v33 = vld [vmem:[#allocation2 + $0x8a8] sm:$0xff]  ;;  %v393_v47 = vld [vmem:[#allocation2 + $0x920] sm:$0xff] }
  0x83   :  { %v390_v48 = vld [vmem:[#allocation2 + $0x908] sm:$0xff] }
  0x84   :  { %3222 = vmatpush1.bf16.msra.mxu0 %v9272_v49  ;;  %3386 = vmatpush1.bf16.msra.mxu1 %v9274_v50  ;;  %v334_v49 = vld [vmem:[#allocation2 + $0x748] sm:$0xff]  ;;  %v9339_v50 = vcombine.high %v326_v41, %v330_v43  ;;  %v9387_v41 = vcombine.high %v374_v31, %v378_v33 }
  0x85   :  { %3223 = vmatprep.subr.bf16.mxu0 %v9281_v51  ;;  %3387 = vmatprep.subr.bf16.mxu1 %v9283_v55  ;;  %v338_v51 = vld [vmem:[#allocation2 + $0x768] sm:$0xff]  ;;  %v341_v55 = vld [vmem:[#allocation2 + $0x780] sm:$0xff] }
  0x86   :  { %v9346_v62 = vcombine.low %v334_v49, %v338_v51  ;;  %v9353_v63 = vcombine.high %v341_v55, %v345_v56  ;;  %v9352_v5 = vcombine.low %v341_v55, %v345_v56  ;;  %v401_v56 = vld [vmem:[#allocation2 + $0x960] sm:$0xff] }
  0x88   :  { %3224 = vmatpush1.bf16.msra.mxu0 %v9280_v58  ;;  %3388 = vmatpush1.bf16.msra.mxu1 %v9282_v59  ;;  %v342_v58 = vld [vmem:[#allocation2 + $0x788] sm:$0xff]  ;;  %v9347_v59 = vcombine.high %v334_v49, %v338_v51 }
  0x89   :  { %3225 = vmatprep.subr.bf16.mxu0 %v9289_v60  ;;  %3389 = vmatprep.subr.bf16.mxu1 %v9291_v0  ;;  %v346_v60 = vld [vmem:[#allocation2 + $0x7a8] sm:$0xff]  ;;  %v349_v0 = vld [vmem:[#allocation2 + $0x7c0] sm:$0xff] }
  0x8a   :  { %v9361_v9 = vcombine.high %v349_v0, %v353_v1  ;;  %v9360_v14 = vcombine.low %v349_v0, %v353_v1  ;;  %v405_v0 = vld [vmem:[#allocation2 + $0x980] sm:$0xff] }
  0x8b   :  { %v409_v1 = vld [vmem:[#allocation2 + $0x9a0] sm:$0xff] }
  0x8c   :  { %3226 = vmatpush1.bf16.msra.mxu0 %v9288_v2  ;;  %3390 = vmatpush1.bf16.msra.mxu1 %v9290_v3  ;;  %v350_v2 = vld [vmem:[#allocation2 + $0x7c8] sm:$0xff]  ;;  %v9355_v3 = vcombine.high %v342_v58, %v346_v60 }
  0x8d   :  { %3227 = vmatprep.subr.bf16.mxu0 %v9297_v4  ;;  %3391 = vmatprep.subr.bf16.mxu1 %v9299_v8  ;;  %v354_v4 = vld [vmem:[#allocation2 + $0x7e8] sm:$0xff]  ;;  %v9354_v8 = vcombine.low %v342_v58, %v346_v60 }
  0x8e   :  { %v9362_v16 = vcombine.low %v350_v2, %v354_v4  ;;  %v398_v58 = vld [vmem:[#allocation2 + $0x948] sm:$0xff] }
  0x90   :  { %3228 = vmatpush1.bf16.msra.mxu0 %v9296_v10  ;;  %3392 = vmatpush1.bf16.msra.mxu1 %v9298_v11  ;;  %v358_v10 = vld [vmem:[#allocation2 + $0x808] sm:$0xff] }
  0x91   :  { %3229 = vmatprep.subr.bf16.mxu0 %v9305_v13  ;;  %3393 = vmatprep.subr.bf16.mxu1 %v9307_v17  ;;  %v362_v11 = vld [vmem:[#allocation2 + $0x828] sm:$0xff]  ;;  %v9363_v13 = vcombine.high %v350_v2, %v354_v4  ;;  %v9369_v17 = vcombine.high %v357_v6, %v361_v7 }
  0x92   :  { %v9370_v27 = vcombine.low %v358_v10, %v362_v11  ;;  %v406_v2 = vld [vmem:[#allocation2 + $0x988] sm:$0xff] }
  0x94   :  { %3230 = vmatpush1.bf16.msra.mxu0 %v9304_v19  ;;  %3394 = vmatpush1.bf16.msra.mxu1 %v9306_v20  ;;  %v369_v19 = vld [vmem:[#allocation2 + $0x860] sm:$0xff]  ;;  %v366_v20 = vld [vmem:[#allocation2 + $0x848] sm:$0xff] }
  0x95   :  { %3231 = vmatprep.subr.bf16.mxu0 %v9313_v21  ;;  %3395 = vmatprep.subr.bf16.mxu1 %v9315_v26  ;;  %v9371_v21 = vcombine.high %v358_v10, %v362_v11  ;;  %v9368_v26 = vcombine.low %v357_v6, %v361_v7  ;;  %v9379_v32 = vcombine.high %v366_v20, %v370_v22  ;;  %v414_v10 = vld [vmem:[#allocation2 + $0x9c8] sm:$0xff] }
  0x96   :  { %v9376_v35 = vcombine.low %v365_v18, %v369_v19  ;;  %v9417_v6 = vcombine.high %v405_v0, %v409_v1  ;;  %v418_v11 = vld [vmem:[#allocation2 + $0x9e8] sm:$0xff] }
  0x98   :  { %3232 = vmatpush1.bf16.msra.mxu0 %v9312_v28  ;;  %3396 = vmatpush1.bf16.msra.mxu1 %v9314_v29  ;;  %v9377_v28 = vcombine.high %v365_v18, %v369_v19  ;;  %v373_v29 = vld [vmem:[#allocation2 + $0x880] sm:$0xff]  ;;  %v422_v19 = vld [vmem:[#allocation2 + $0xa08] sm:$0xff] }
  0x99   :  { %3233 = vmatprep.subr.bf16.mxu0 %v9321_v30  ;;  %3397 = vmatprep.subr.bf16.mxu1 %v9323_v34  ;;  %v377_v30 = vld [vmem:[#allocation2 + $0x8a0] sm:$0xff]  ;;  %v10839_v34 = vpack.c.bf16 %v90_v24, %v90_v24 }
  0x9a   :  { %v9384_v43 = vcombine.low %v373_v29, %v377_v30  ;;  %v425_v18 = vld [vmem:[#allocation2 + $0xa20] sm:$0xff] }
  0x9c   :  { %3234 = vmatpush1.bf16.msra.mxu0 %v9320_v36  ;;  %3398 = vmatpush1.bf16.msra.mxu1 %v9322_v37  ;;  %v9378_v36 = vcombine.low %v366_v20, %v370_v22  ;;  %v9385_v37 = vcombine.high %v373_v29, %v377_v30  ;;  %v426_v20 = vld [vmem:[#allocation2 + $0xa28] sm:$0xff]  ;;  %v9426_v22 = vcombine.low %v414_v10, %v418_v11 }
  0x9d   :  { %3235 = vmatprep.subr.bf16.mxu0 %v9329_v38  ;;  %3399 = vmatprep.subr.bf16.mxu1 %v9331_v42  ;;  %v381_v38 = vld [vmem:[#allocation2 + $0x8c0] sm:$0xff]  ;;  %v386_v42 = vld [vmem:[#allocation2 + $0x8e8] sm:$0xff] }
  0x9e   :  { %v9395_v49 = vcombine.high %v382_v40, %v386_v42  ;;  %v9392_v51 = vcombine.low %v381_v38, %v385_v39  ;;  %v430_v29 = vld [vmem:[#allocation2 + $0xa48] sm:$0xff] }
  0x9f   :  { %v434_v30 = vld [vmem:[#allocation2 + $0xa68] sm:$0xff] }
  0xa0   :  { %3236 = vmatpush1.bf16.msra.mxu0 %v9328_v44  ;;  %3400 = vmatpush1.bf16.msra.mxu1 %v9330_v45  ;;  %v9386_v44 = vcombine.low %v374_v31, %v378_v33  ;;  %v9393_v45 = vcombine.high %v381_v38, %v385_v39  ;;  %v438_v38 = vld [vmem:[#allocation2 + $0xa88] sm:$0xff] }
  0xa1   :  { %3237 = vmatprep.subr.bf16.mxu0 %v9337_v46  ;;  %3401 = vmatprep.subr.bf16.mxu1 %v9339_v50  ;;  %v389_v46 = vld [vmem:[#allocation2 + $0x900] sm:$0xff]  ;;  %v394_v50 = vld [vmem:[#allocation2 + $0x928] sm:$0xff] }
  0xa2   :  { %v9403_v55 = vcombine.high %v390_v48, %v394_v50  ;;  %v9400_v60 = vcombine.low %v389_v46, %v393_v47  ;;  %v442_v39 = vld [vmem:[#allocation2 + $0xaa8] sm:$0xff] }
  0xa4   :  { %3238 = vmatpush1.bf16.msra.mxu0 %v9336_v52  ;;  %3402 = vmatpush1.bf16.msra.mxu1 %v9338_v53  ;;  %v9394_v52 = vcombine.low %v382_v40, %v386_v42  ;;  %v9401_v53 = vcombine.high %v389_v46, %v393_v47  ;;  %v446_v46 = vld [vmem:[#allocation2 + $0xac8] sm:$0xff] }
  0xa5   :  { %3239 = vmatprep.subr.bf16.mxu0 %v9345_v54  ;;  %3403 = vmatprep.subr.bf16.mxu1 %v9347_v59  ;;  %v397_v54 = vld [vmem:[#allocation2 + $0x940] sm:$0xff]  ;;  %v402_v59 = vld [vmem:[#allocation2 + $0x968] sm:$0xff] }
  0xa6   :  { %v9408_v4 = vcombine.low %v397_v54, %v401_v56  ;;  %v450_v47 = vld [vmem:[#allocation2 + $0xae8] sm:$0xff] }
  0xa8   :  { %3240 = vmatpush1.bf16.msra.mxu0 %v9344_v61  ;;  %3404 = vmatpush1.bf16.msra.mxu1 %v9346_v62  ;;  %v9402_v61 = vcombine.low %v390_v48, %v394_v50  ;;  %v9409_v62 = vcombine.high %v397_v54, %v401_v56  ;;  %v454_v54 = vld [vmem:[#allocation2 + $0xb08] sm:$0xff] }
  0xa9   :  { %3241 = vmatprep.subr.bf16.mxu0 %v9353_v63  ;;  %3405 = vmatprep.subr.bf16.mxu1 %v9355_v3  ;;  %v9411_v63 = vcombine.high %v398_v58, %v402_v59  ;;  %v410_v3 = vld [vmem:[#allocation2 + $0x9a8] sm:$0xff] }
  0xaa   :  { %v9419_v7 = vcombine.high %v406_v2, %v410_v3 }
  0xac   :  { %3242 = vmatpush1.bf16.msra.mxu0 %v9352_v5  ;;  %3406 = vmatpush1.bf16.msra.mxu1 %v9354_v8  ;;  %v9410_v5 = vcombine.low %v398_v58, %v402_v59  ;;  %v413_v8 = vld [vmem:[#allocation2 + $0x9c0] sm:$0xff]  ;;  %v9458_v58 = vcombine.low %v446_v46, %v450_v47 }
  0xad   :  { %3243 = vmatprep.subr.bf16.mxu0 %v9361_v9  ;;  %3407 = vmatprep.subr.bf16.mxu1 %v9363_v13  ;;  %v417_v9 = vld [vmem:[#allocation2 + $0x9e0] sm:$0xff]  ;;  %v9416_v13 = vcombine.low %v405_v0, %v409_v1  ;;  %v466_v0 = vld [vmem:[#allocation2 + $0xb68] sm:$0xff] }
  0xae   :  { %v9425_v15 = vcombine.high %v413_v8, %v417_v9 }
  0xb0   :  { %3244 = vmatpush1.bf16.msra.mxu0 %v9360_v14  ;;  %3408 = vmatpush1.bf16.msra.mxu1 %v9362_v16  ;;  %v9418_v14 = vcombine.low %v406_v2, %v410_v3  ;;  %v9427_v16 = vcombine.high %v414_v10, %v418_v11 }
  0xb1   :  { %3254 = vmatprep.subr.bf16.mxu0 %v9369_v17  ;;  %3418 = vmatprep.subr.bf16.mxu1 %v9371_v21  ;;  %v421_v17 = vld [vmem:[#allocation2 + $0xa00] sm:$0xff]  ;;  %v9424_v21 = vcombine.low %v413_v8, %v417_v9  ;;  %v474_v8 = vld [vmem:[#allocation2 + $0xba8] sm:$0xff] }
  0xb2   :  { %v9433_v24 = vcombine.high %v421_v17, %v425_v18  ;;  %v9432_v31 = vcombine.low %v421_v17, %v425_v18  ;;  %v482_v17 = vld [vmem:[#allocation2 + $0xbe8] sm:$0xff] }
  0xb3   :  { %3246 = vmatmul.mubr.bf16.vlgmr.msra.gmra.mrb[0].mxu0 %v10837_v25  ;;  %3410 = vmatmul.mubr.bf16.vlgmr.msra.gmra.mrb[0].mxu1 %v10837_v25 }
  0xb4   :  { %3255 = vmatpush1.bf16.msra.mxu0 %v9368_v26  ;;  %3419 = vmatpush1.bf16.msra.mxu1 %v9370_v27  ;;  %v9435_v26 = vcombine.high %v422_v19, %v426_v20  ;;  %v429_v27 = vld [vmem:[#allocation2 + $0xa40] sm:$0xff] }
  0xb5   :  { %3256 = vmatprep.subr.bf16.mxu0 %v9377_v28  ;;  %3420 = vmatprep.subr.bf16.mxu1 %v9379_v32  ;;  %v433_v28 = vld [vmem:[#allocation2 + $0xa60] sm:$0xff]  ;;  %v9434_v32 = vcombine.low %v422_v19, %v426_v20 }
  0xb6   :  { %3286 = vmatprep.mubr.bf16.mxu0 %v10839_v34  ;;  %3450 = vmatprep.mubr.bf16.mxu1 %v10839_v34  ;;  %v9441_v33 = vcombine.high %v429_v27, %v433_v28  ;;  %v9440_v40 = vcombine.low %v429_v27, %v433_v28  ;;  %v490_v27 = vld [vmem:[#allocation2 + $0xc28] sm:$0xff] }
  0xb8   :  { %3257 = vmatpush1.bf16.msra.mxu0 %v9376_v35  ;;  %3421 = vmatpush1.bf16.msra.mxu1 %v9378_v36  ;;  %v9443_v35 = vcombine.high %v430_v29, %v434_v30  ;;  %v437_v36 = vld [vmem:[#allocation2 + $0xa80] sm:$0xff] }
  0xb9   :  { %3258 = vmatprep.subr.bf16.mxu0 %v9385_v37  ;;  %3422 = vmatprep.subr.bf16.mxu1 %v9387_v41  ;;  %v441_v37 = vld [vmem:[#allocation2 + $0xaa0] sm:$0xff]  ;;  %v9442_v41 = vcombine.low %v430_v29, %v434_v30  ;;  %v89_v29 = vld [vmem:[%s11614_s23 + $0x20] sm:$0xff] }
  0xba   :  { %v9449_v42 = vcombine.high %v437_v36, %v441_v37  ;;  %v9448_v48 = vcombine.low %v437_v36, %v441_v37  ;;  %v10848_v36 = vpack.c.bf16 %v89_v29, %v89_v29  ;;  %v494_v37 = vld [vmem:[#allocation2 + $0xc48] sm:$0xff] }
  0xbc   :  { %3259 = vmatpush1.bf16.msra.mxu0 %v9384_v43  ;;  %3423 = vmatpush1.bf16.msra.mxu1 %v9386_v44  ;;  %v9451_v43 = vcombine.high %v438_v38, %v442_v39  ;;  %v445_v44 = vld [vmem:[#allocation2 + $0xac0] sm:$0xff] }
  0xbd   :  { %3260 = vmatprep.subr.bf16.mxu0 %v9393_v45  ;;  %3424 = vmatprep.subr.bf16.mxu1 %v9395_v49  ;;  %v449_v45 = vld [vmem:[#allocation2 + $0xae0] sm:$0xff]  ;;  %v9450_v49 = vcombine.low %v438_v38, %v442_v39  ;;  %v498_v38 = vld [vmem:[#allocation2 + $0xc68] sm:$0xff] }
  0xbe   :  { %v9457_v50 = vcombine.high %v445_v44, %v449_v45  ;;  %v9456_v56 = vcombine.low %v445_v44, %v449_v45  ;;  %v92_v39 = vld [vmem:[%s11614_s23 + $0x38] sm:$0xff] }
  0xbf   :  { %v501_v44 = vld [vmem:[#allocation2 + $0xc80] sm:$0xff] }
  0xc0   :  { %3261 = vmatpush1.bf16.msra.mxu0 %v9392_v51  ;;  %3425 = vmatpush1.bf16.msra.mxu1 %v9394_v52  ;;  %v9459_v51 = vcombine.high %v446_v46, %v450_v47  ;;  %v453_v52 = vld [vmem:[#allocation2 + $0xb00] sm:$0xff]  ;;  %v10853_v46 = vpack.c.bf16 %v92_v39, %v92_v39  ;;  %v502_v47 = vld [vmem:[#allocation2 + $0xc88] sm:$0xff] }
  0xc1   :  { %3262 = vmatprep.subr.bf16.mxu0 %v9401_v53  ;;  %3426 = vmatprep.subr.bf16.mxu1 %v9403_v55  ;;  %v457_v53 = vld [vmem:[#allocation2 + $0xb20] sm:$0xff]  ;;  %v458_v55 = vld [vmem:[#allocation2 + $0xb28] sm:$0xff] }
  0xc2   :  { %v9465_v59 = vcombine.high %v453_v52, %v457_v53  ;;  %v9464_v1 = vcombine.low %v453_v52, %v457_v53  ;;  %v9466_v2 = vcombine.low %v454_v54, %v458_v55  ;;  %v505_v45 = vld [vmem:[#allocation2 + $0xca0] sm:$0xff] }
  0xc3   :  { %v509_v53 = vld [vmem:[#allocation2 + $0xcc0] sm:$0xff] }
  0xc4   :  { %3263 = vmatpush1.bf16.msra.mxu0 %v9400_v60  ;;  %3427 = vmatpush1.bf16.msra.mxu1 %v9402_v61  ;;  %v9467_v60 = vcombine.high %v454_v54, %v458_v55  ;;  %v461_v61 = vld [vmem:[#allocation2 + $0xb40] sm:$0xff]  ;;  %v510_v55 = vld [vmem:[#allocation2 + $0xcc8] sm:$0xff] }
  0xc5   :  { %3264 = vmatprep.subr.bf16.mxu0 %v9409_v62  ;;  %3428 = vmatprep.subr.bf16.mxu1 %v9411_v63  ;;  %v465_v62 = vld [vmem:[#allocation2 + $0xb60] sm:$0xff]  ;;  %v462_v63 = vld [vmem:[#allocation2 + $0xb48] sm:$0xff] }
  0xc6   :  { %v9473_v3 = vcombine.high %v461_v61, %v465_v62  ;;  %v9472_v9 = vcombine.low %v461_v61, %v465_v62  ;;  %v9474_v10 = vcombine.low %v462_v63, %v466_v0  ;;  %v513_v54 = vld [vmem:[#allocation2 + $0xce0] sm:$0xff] }
  0xc7   :  { %v517_v62 = vld [vmem:[#allocation2 + $0xd00] sm:$0xff] }
  0xc8   :  { %3265 = vmatpush1.bf16.msra.mxu0 %v9408_v4  ;;  %3429 = vmatpush1.bf16.msra.mxu1 %v9410_v5  ;;  %v9475_v4 = vcombine.high %v462_v63, %v466_v0  ;;  %v469_v5 = vld [vmem:[#allocation2 + $0xb80] sm:$0xff]  ;;  %v518_v0 = vld [vmem:[#allocation2 + $0xd08] sm:$0xff] }
  0xc9   :  { %3266 = vmatprep.subr.bf16.mxu0 %v9417_v6  ;;  %3430 = vmatprep.subr.bf16.mxu1 %v9419_v7  ;;  %v473_v6 = vld [vmem:[#allocation2 + $0xba0] sm:$0xff]  ;;  %v470_v7 = vld [vmem:[#allocation2 + $0xb88] sm:$0xff] }
  0xca   :  { %v9481_v11 = vcombine.high %v469_v5, %v473_v6  ;;  %v9480_v18 = vcombine.low %v469_v5, %v473_v6  ;;  %v9482_v19 = vcombine.low %v470_v7, %v474_v8  ;;  %v521_v63 = vld [vmem:[#allocation2 + $0xd20] sm:$0xff] }
  0xcb   :  { %v525_v6 = vld [vmem:[#allocation2 + $0xd40] sm:$0xff] }
  0xcc   :  { %3267 = vmatpush1.bf16.msra.mxu0 %v9416_v13  ;;  %3431 = vmatpush1.bf16.msra.mxu1 %v9418_v14  ;;  %v9483_v13 = vcombine.high %v470_v7, %v474_v8  ;;  %v477_v14 = vld [vmem:[#allocation2 + $0xbc0] sm:$0xff]  ;;  %v526_v8 = vld [vmem:[#allocation2 + $0xd48] sm:$0xff] }
  0xcd   :  { %3268 = vmatprep.subr.bf16.mxu0 %v9425_v15  ;;  %3432 = vmatprep.subr.bf16.mxu1 %v9427_v16  ;;  %v481_v15 = vld [vmem:[#allocation2 + $0xbe0] sm:$0xff]  ;;  %v478_v16 = vld [vmem:[#allocation2 + $0xbc8] sm:$0xff] }
  0xce   :  { %v9489_v20 = vcombine.high %v477_v14, %v481_v15  ;;  %v9488_v28 = vcombine.low %v477_v14, %v481_v15  ;;  %v9490_v30 = vcombine.low %v478_v16, %v482_v17  ;;  %v529_v7 = vld [vmem:[#allocation2 + $0xd60] sm:$0xff] }
  0xcf   :  { %v533_v15 = vld [vmem:[#allocation2 + $0xd80] sm:$0xff] }
  0xd0   :  { %3269 = vmatpush1.bf16.msra.mxu0 %v9424_v21  ;;  %3433 = vmatpush1.bf16.msra.mxu1 %v9426_v22  ;;  %v9491_v21 = vcombine.high %v478_v16, %v482_v17  ;;  %v485_v22 = vld [vmem:[#allocation2 + $0xc00] sm:$0xff]  ;;  %v534_v17 = vld [vmem:[#allocation2 + $0xd88] sm:$0xff] }
  0xd1   :  { %3270 = vmatprep.subr.bf16.mxu0 %v9433_v24  ;;  %3434 = vmatprep.subr.bf16.mxu1 %v9435_v26  ;;  %v489_v24 = vld [vmem:[#allocation2 + $0xc20] sm:$0xff]  ;;  %v486_v26 = vld [vmem:[#allocation2 + $0xc08] sm:$0xff] }
  0xd2   :  { %v537_v16 = vld [vmem:[#allocation2 + $0xda0] sm:$0xff] }
  0xd3   :  { %v9544_v29 = vcombine.low %v533_v15, %v537_v16 }
  0xd4   :  { %3271 = vmatpush1.bf16.msra.mxu0 %v9432_v31  ;;  %3435 = vmatpush1.bf16.msra.mxu1 %v9434_v32  ;;  %v9497_v31 = vcombine.high %v485_v22, %v489_v24  ;;  %v9499_v32 = vcombine.high %v486_v26, %v490_v27 }
  0xd5   :  { %3272 = vmatprep.subr.bf16.mxu0 %v9441_v33  ;;  %3436 = vmatprep.subr.bf16.mxu1 %v9443_v35  ;;  %v493_v33 = vld [vmem:[#allocation2 + $0xc40] sm:$0xff] }
  0xd6   :  { %v497_v35 = vld [vmem:[#allocation2 + $0xc60] sm:$0xff] }
  0xd8   :  { %3273 = vmatpush1.bf16.msra.mxu0 %v9440_v40  ;;  %3437 = vmatpush1.bf16.msra.mxu1 %v9442_v41  ;;  %v9496_v40 = vcombine.low %v485_v22, %v489_v24  ;;  %v9498_v41 = vcombine.low %v486_v26, %v490_v27  ;;  %v541_v24 = vld [vmem:[#allocation2 + $0xdc0] sm:$0xff]  ;;  %v542_v27 = vld [vmem:[#allocation2 + $0xdc8] sm:$0xff] }
  0xd9   :  { %3274 = vmatprep.subr.bf16.mxu0 %v9449_v42  ;;  %3438 = vmatprep.subr.bf16.mxu1 %v9451_v43  ;;  %v9505_v42 = vcombine.high %v493_v33, %v497_v35  ;;  %v9507_v43 = vcombine.high %v494_v37, %v498_v38  ;;  %v545_v26 = vld [vmem:[#allocation2 + $0xde0] sm:$0xff] }
  0xda   :  { %v9552_v39 = vcombine.low %v541_v24, %v545_v26 }
  0xdc   :  { %3275 = vmatpush1.bf16.msra.mxu0 %v9448_v48  ;;  %3439 = vmatpush1.bf16.msra.mxu1 %v9450_v49  ;;  %v506_v48 = vld [vmem:[#allocation2 + $0xca8] sm:$0xff]  ;;  %v9504_v49 = vcombine.low %v493_v33, %v497_v35  ;;  %v549_v33 = vld [vmem:[#allocation2 + $0xe00] sm:$0xff] }
  0xdd   :  { %3276 = vmatprep.subr.bf16.mxu0 %v9457_v50  ;;  %3440 = vmatprep.subr.bf16.mxu1 %v9459_v51  ;;  %v9506_v50 = vcombine.low %v494_v37, %v498_v38  ;;  %v9513_v51 = vcombine.high %v501_v44, %v505_v45  ;;  %v9515_v52 = vcombine.high %v502_v47, %v506_v48  ;;  %v553_v35 = vld [vmem:[#allocation2 + $0xe20] sm:$0xff]  ;;  %v550_v37 = vld [vmem:[#allocation2 + $0xe08] sm:$0xff] }
  0xde   :  { %v554_v38 = vld [vmem:[#allocation2 + $0xe28] sm:$0xff] }
  0xe0   :  { %3277 = vmatpush1.bf16.msra.mxu0 %v9456_v56  ;;  %3441 = vmatpush1.bf16.msra.mxu1 %v9458_v58  ;;  %v514_v56 = vld [vmem:[#allocation2 + $0xce8] sm:$0xff]  ;;  %v9512_v58 = vcombine.low %v501_v44, %v505_v45  ;;  %v561_v44 = vld [vmem:[#allocation2 + $0xe60] sm:$0xff] }
  0xe1   :  { %3278 = vmatprep.subr.bf16.mxu0 %v9465_v59  ;;  %3442 = vmatprep.subr.bf16.mxu1 %v9467_v60  ;;  %v9514_v59 = vcombine.low %v502_v47, %v506_v48  ;;  %v9521_v60 = vcombine.high %v509_v53, %v513_v54  ;;  %v9523_v61 = vcombine.high %v510_v55, %v514_v56  ;;  %v558_v45 = vld [vmem:[#allocation2 + $0xe48] sm:$0xff] }
  0xe2   :  { %v562_v47 = vld [vmem:[#allocation2 + $0xe68] sm:$0xff]  ;;  %v9560_v48 = vcombine.low %v549_v33, %v553_v35 }
  0xe4   :  { %3279 = vmatpush1.bf16.msra.mxu0 %v9464_v1  ;;  %3443 = vmatpush1.bf16.msra.mxu1 %v9466_v2  ;;  %v522_v1 = vld [vmem:[#allocation2 + $0xd28] sm:$0xff]  ;;  %v9520_v2 = vcombine.low %v509_v53, %v513_v54  ;;  %v569_v53 = vld [vmem:[#allocation2 + $0xea0] sm:$0xff] }
  0xe5   :  { %3280 = vmatprep.subr.bf16.mxu0 %v9473_v3  ;;  %3444 = vmatprep.subr.bf16.mxu1 %v9475_v4  ;;  %v9522_v3 = vcombine.low %v510_v55, %v514_v56  ;;  %v9529_v4 = vcombine.high %v517_v62, %v521_v63  ;;  %v9531_v5 = vcombine.high %v518_v0, %v522_v1  ;;  %v566_v54 = vld [vmem:[#allocation2 + $0xe88] sm:$0xff] }
  0xe6   :  { %v570_v55 = vld [vmem:[#allocation2 + $0xea8] sm:$0xff] }
  0xe8   :  { %3281 = vmatpush1.bf16.msra.mxu0 %v9472_v9  ;;  %3445 = vmatpush1.bf16.msra.mxu1 %v9474_v10  ;;  %v530_v9 = vld [vmem:[#allocation2 + $0xd68] sm:$0xff]  ;;  %v9528_v10 = vcombine.low %v517_v62, %v521_v63  ;;  %v577_v62 = vld [vmem:[#allocation2 + $0xee0] sm:$0xff] }
  0xe9   :  { %3282 = vmatprep.subr.bf16.mxu0 %v9481_v11  ;;  %3446 = vmatprep.subr.bf16.mxu1 %v9483_v13  ;;  %v9530_v11 = vcombine.low %v518_v0, %v522_v1  ;;  %v9537_v13 = vcombine.high %v525_v6, %v529_v7  ;;  %v9539_v14 = vcombine.high %v526_v8, %v530_v9  ;;  %v574_v63 = vld [vmem:[#allocation2 + $0xec8] sm:$0xff] }
  0xea   :  { %v578_v0 = vld [vmem:[#allocation2 + $0xee8] sm:$0xff] }
  0xec   :  { %3283 = vmatpush1.bf16.msra.mxu0 %v9480_v18  ;;  %3447 = vmatpush1.bf16.msra.mxu1 %v9482_v19  ;;  %v538_v18 = vld [vmem:[#allocation2 + $0xda8] sm:$0xff]  ;;  %v9536_v19 = vcombine.low %v525_v6, %v529_v7  ;;  %v585_v6 = vld [vmem:[#allocation2 + $0xf20] sm:$0xff] }
  0xed   :  { %3284 = vmatprep.subr.bf16.mxu0 %v9489_v20  ;;  %3448 = vmatprep.subr.bf16.mxu1 %v9491_v21  ;;  %v9538_v20 = vcombine.low %v526_v8, %v530_v9  ;;  %v9545_v21 = vcombine.high %v533_v15, %v537_v16  ;;  %v9547_v22 = vcombine.high %v534_v17, %v538_v18  ;;  %v582_v7 = vld [vmem:[#allocation2 + $0xf08] sm:$0xff]  ;;  %v593_v15 = vld [vmem:[#allocation2 + $0xf60] sm:$0xff] }
  0xee   :  { %v586_v8 = vld [vmem:[#allocation2 + $0xf28] sm:$0xff] }
  0xef   :  { %v590_v16 = vld [vmem:[#allocation2 + $0xf48] sm:$0xff] }
  0xf0   :  { %3285 = vmatpush1.bf16.msra.mxu0 %v9488_v28  ;;  %3449 = vmatpush1.bf16.msra.mxu1 %v9490_v30  ;;  %v546_v28 = vld [vmem:[#allocation2 + $0xde8] sm:$0xff]  ;;  %v9546_v30 = vcombine.low %v534_v17, %v538_v18 }
  0xf1   :  { %3295 = vmatprep.subr.bf16.mxu0 %v9497_v31  ;;  %3459 = vmatprep.subr.bf16.mxu1 %v9499_v32  ;;  %v9553_v31 = vcombine.high %v541_v24, %v545_v26  ;;  %v9555_v32 = vcombine.high %v542_v27, %v546_v28  ;;  %v594_v17 = vld [vmem:[#allocation2 + $0xf68] sm:$0xff] }
  0xf2   :  { %v598_v24 = vld [vmem:[#allocation2 + $0xf88] sm:$0xff] }
  0xf3   :  { %3287 = vmatmul.mubr.bf16.vlgmr.msra.gmra.mrb[0].mxu0 %v10848_v36  ;;  %3451 = vmatmul.mubr.bf16.vlgmr.msra.gmra.mrb[0].mxu1 %v10848_v36 }
  0xf4   :  { %3296 = vmatpush1.bf16.msra.mxu0 %v9496_v40  ;;  %3460 = vmatpush1.bf16.msra.mxu1 %v9498_v41  ;;  %v9554_v40 = vcombine.low %v542_v27, %v546_v28  ;;  %v9561_v41 = vcombine.high %v549_v33, %v553_v35  ;;  %v9602_v27 = vcombine.low %v590_v16, %v594_v17  ;;  %v107_v33 = vld [vmem:[#allocation2 + $0x30] sm:$0xff]  ;;  %v104_v35 = vld [vmem:[#allocation2 + $0x18] sm:$0xff] }
  0xf5   :  { %3297 = vmatprep.subr.bf16.mxu0 %v9505_v42  ;;  %3461 = vmatprep.subr.bf16.mxu1 %v9507_v43  ;;  %v9563_v42 = vcombine.high %v550_v37, %v554_v38  ;;  %v557_v43 = vld [vmem:[#allocation2 + $0xe40] sm:$0xff] }
  0xf6   :  { %9617 = vmatprep.mubr.msk.bf16.mxu0 %vm3143_vm0, %v10853_v46  ;;  %9619 = vmatprep.mubr.msk.bf16.mxu1 %vm3143_vm0, %v10853_v46  ;;  %v9568_v56 = vcombine.low %v557_v43, %v561_v44 }
  0xf8   :  { %3298 = vmatpush1.bf16.msra.mxu0 %v9504_v49  ;;  %3462 = vmatpush1.bf16.msra.mxu1 %v9506_v50  ;;  %v9562_v49 = vcombine.low %v550_v37, %v554_v38  ;;  %v9569_v50 = vcombine.high %v557_v43, %v561_v44  ;;  %v108_v37 = vld [vmem:[#allocation2 + $0x38] sm:$0xff]  ;;  %v111_v43 = vld [vmem:[#allocation2 + $0x50] sm:$0xff] }
  0xf9   :  { %3299 = vmatprep.subr.bf16.mxu0 %v9513_v51  ;;  %3463 = vmatprep.subr.bf16.mxu1 %v9515_v52  ;;  %v9571_v51 = vcombine.high %v558_v45, %v562_v47  ;;  %v565_v52 = vld [vmem:[#allocation2 + $0xe80] sm:$0xff]  ;;  %v91_v38 = vld [vmem:[%s11614_s23 + $0x30] sm:$0xff]  ;;  %v115_v44 = vld [vmem:[#allocation2 + $0x70] sm:$0xff]  ;;  %s11615_s23 = sld [smem:[#allocation10_spill]] }
  0xfa   :  { %v9576_v1 = vcombine.low %v565_v52, %v569_v53 }
  0xfc   :  { %3300 = vmatpush1.bf16.msra.mxu0 %v9512_v58  ;;  %3464 = vmatpush1.bf16.msra.mxu1 %v9514_v59  ;;  %v9570_v58 = vcombine.low %v558_v45, %v562_v47  ;;  %v9577_v59 = vcombine.high %v565_v52, %v569_v53  ;;  %v10868_v45 = vpack.c.bf16 %v91_v38, %v91_v38  ;;  %v112_v47 = vld [vmem:[#allocation2 + $0x58] sm:$0xff]  ;;  %v119_v53 = vld [vmem:[#allocation2 + $0x90] sm:$0xff] }
  0xfd   :  { %3301 = vmatprep.subr.bf16.mxu0 %v9521_v60  ;;  %3465 = vmatprep.subr.bf16.mxu1 %v9523_v61  ;;  %v9579_v60 = vcombine.high %v566_v54, %v570_v55  ;;  %v573_v61 = vld [vmem:[#allocation2 + $0xec0] sm:$0xff] }
  0xfe   :  { %v9584_v9 = vcombine.low %v573_v61, %v577_v62 }
 0x100   :  { %3302 = vmatpush1.bf16.msra.mxu0 %v9520_v2  ;;  %3466 = vmatpush1.bf16.msra.mxu1 %v9522_v3  ;;  %v9578_v2 = vcombine.low %v566_v54, %v570_v55  ;;  %v9585_v3 = vcombine.high %v573_v61, %v577_v62  ;;  %v123_v54 = vld [vmem:[#allocation2 + $0xb0] sm:$0xff]  ;;  %v120_v55 = vld [vmem:[#allocation2 + $0x98] sm:$0xff] }
 0x101   :  { %3303 = vmatprep.subr.bf16.mxu0 %v9529_v4  ;;  %3467 = vmatprep.subr.bf16.mxu1 %v9531_v5  ;;  %v9587_v4 = vcombine.high %v574_v63, %v578_v0  ;;  %v581_v5 = vld [vmem:[#allocation2 + $0xf00] sm:$0xff]  ;;  %v127_v62 = vld [vmem:[#allocation2 + $0xd0] sm:$0xff] }
 0x102   :  { %v9592_v18 = vcombine.low %v581_v5, %v585_v6 }
 0x104   :  { %3304 = vmatpush1.bf16.msra.mxu0 %v9528_v10  ;;  %3468 = vmatpush1.bf16.msra.mxu1 %v9530_v11  ;;  %v9586_v10 = vcombine.low %v574_v63, %v578_v0  ;;  %v9593_v11 = vcombine.high %v581_v5, %v585_v6  ;;  %v131_v63 = vld [vmem:[#allocation2 + $0xf0] sm:$0xff]  ;;  %v128_v0 = vld [vmem:[#allocation2 + $0xd8] sm:$0xff] }
 0x105   :  { %3305 = vmatprep.subr.bf16.mxu0 %v9537_v13  ;;  %3469 = vmatprep.subr.bf16.mxu1 %v9539_v14  ;;  %v9595_v13 = vcombine.high %v582_v7, %v586_v8  ;;  %v589_v14 = vld [vmem:[#allocation2 + $0xf40] sm:$0xff]  ;;  %v135_v6 = vld [vmem:[#allocation2 + $0x110] sm:$0xff] }
 0x106   :  { %v9600_v26 = vcombine.low %v589_v14, %v593_v15 }
 0x108   :  { %3306 = vmatpush1.bf16.msra.mxu0 %v9536_v19  ;;  %3470 = vmatpush1.bf16.msra.mxu1 %v9538_v20  ;;  %v9594_v19 = vcombine.low %v582_v7, %v586_v8  ;;  %v9601_v20 = vcombine.high %v589_v14, %v593_v15  ;;  %v139_v7 = vld [vmem:[#allocation2 + $0x130] sm:$0xff]  ;;  %v136_v8 = vld [vmem:[#allocation2 + $0x118] sm:$0xff] }
 0x109   :  { %3307 = vmatprep.subr.bf16.mxu0 %v9545_v21  ;;  %3471 = vmatprep.subr.bf16.mxu1 %v9547_v22  ;;  %v9603_v21 = vcombine.high %v590_v16, %v594_v17  ;;  %v597_v22 = vld [vmem:[#allocation2 + $0xf80] sm:$0xff]  ;;  %v143_v14 = vld [vmem:[#allocation2 + $0x150] sm:$0xff]  ;;  %v144_v16 = vld [vmem:[#allocation2 + $0x158] sm:$0xff] }
 0x10a   :  { %v9609_v28 = vcombine.high %v597_v22, %v597_v22  ;;  %v147_v15 = vld [vmem:[#allocation2 + $0x170] sm:$0xff]  ;;  %v148_v17 = vld [vmem:[#allocation2 + $0x178] sm:$0xff] }
 0x10c   :  { %3308 = vmatpush1.bf16.msra.mxu0 %v9544_v29  ;;  %3472 = vmatpush1.bf16.msra.mxu1 %v9546_v30  ;;  %v9608_v29 = vcombine.low %v597_v22, %v597_v22  ;;  %v9611_v30 = vcombine.high %v598_v24, %v598_v24  ;;  %v151_v22 = vld [vmem:[#allocation2 + $0x190] sm:$0xff] }
 0x10d   :  { %3309 = vmatprep.subr.bf16.mxu0 %v9553_v31  ;;  %3473 = vmatprep.subr.bf16.mxu1 %v9555_v32  ;;  %v9610_v31 = vcombine.low %v598_v24, %v598_v24  ;;  %v103_v32 = vld [vmem:[#allocation2 + $0x10] sm:$0xff] }
 0x10e   :  { %v155_v24 = vld [vmem:[#allocation2 + $0x1b0] sm:$0xff] }
 0x10f   :  { %v9164_v38 = vcombine.low %v151_v22, %v155_v24 }
 0x110   :  { %3310 = vmatpush1.bf16.msra.mxu0 %v9552_v39  ;;  %3474 = vmatpush1.bf16.msra.mxu1 %v9554_v40  ;;  %v3149_v39 = vsel %vm3147_vm1, %v9608_v29, 0  ;;  %v9117_v40 = vcombine.high %v103_v32, %v107_v33  ;;  %v9158_v29 = vcombine.low %v144_v16, %v148_v17 }
 0x111   :  { %3311 = vmatprep.subr.bf16.mxu0 %v9561_v41  ;;  %3475 = vmatprep.subr.bf16.mxu1 %v9563_v42  ;;  %v3155_v41 = vsel %vm3147_vm1, %v9610_v31, 0  ;;  %v9119_v42 = vcombine.high %v104_v35, %v108_v37 }
 0x114   :  { %3312 = vmatpush1.bf16.msra.mxu0 %v9560_v48  ;;  %3476 = vmatpush1.bf16.msra.mxu1 %v9562_v49  ;;  %v116_v48 = vld [vmem:[#allocation2 + $0x78] sm:$0xff]  ;;  %v9116_v49 = vcombine.low %v103_v32, %v107_v33  ;;  %v159_v32 = vld [vmem:[#allocation2 + $0x1d0] sm:$0xff] }
 0x115   :  { %3313 = vmatprep.subr.bf16.mxu0 %v9569_v50  ;;  %3477 = vmatprep.subr.bf16.mxu1 %v9571_v51  ;;  %v9118_v50 = vcombine.low %v104_v35, %v108_v37  ;;  %v9125_v51 = vcombine.high %v111_v43, %v115_v44  ;;  %v9127_v52 = vcombine.high %v112_v47, %v116_v48  ;;  %v163_v33 = vld [vmem:[#allocation2 + $0x1f0] sm:$0xff]  ;;  %v160_v35 = vld [vmem:[#allocation2 + $0x1d8] sm:$0xff] }
 0x116   :  { %v164_v37 = vld [vmem:[#allocation2 + $0x1f8] sm:$0xff] }
 0x118   :  { %3314 = vmatpush1.bf16.msra.mxu0 %v9568_v56  ;;  %3478 = vmatpush1.bf16.msra.mxu1 %v9570_v58  ;;  %v124_v56 = vld [vmem:[#allocation2 + $0xb8] sm:$0xff]  ;;  %v9124_v58 = vcombine.low %v111_v43, %v115_v44  ;;  %v171_v43 = vld [vmem:[#allocation2 + $0x230] sm:$0xff] }
 0x119   :  { %3315 = vmatprep.subr.bf16.mxu0 %v9577_v59  ;;  %3479 = vmatprep.subr.bf16.mxu1 %v9579_v60  ;;  %v9126_v59 = vcombine.low %v112_v47, %v116_v48  ;;  %v9133_v60 = vcombine.high %v119_v53, %v123_v54  ;;  %v9135_v61 = vcombine.high %v120_v55, %v124_v56  ;;  %v168_v44 = vld [vmem:[#allocation2 + $0x218] sm:$0xff] }
 0x11a   :  { %v172_v47 = vld [vmem:[#allocation2 + $0x238] sm:$0xff]  ;;  %v9172_v48 = vcombine.low %v159_v32, %v163_v33 }
 0x11c   :  { %3316 = vmatpush1.bf16.msra.mxu0 %v9576_v1  ;;  %3480 = vmatpush1.bf16.msra.mxu1 %v9578_v2  ;;  %v132_v1 = vld [vmem:[#allocation2 + $0xf8] sm:$0xff]  ;;  %v9132_v2 = vcombine.low %v119_v53, %v123_v54  ;;  %v179_v53 = vld [vmem:[#allocation2 + $0x270] sm:$0xff] }
 0x11d   :  { %3317 = vmatprep.subr.bf16.mxu0 %v9585_v3  ;;  %3481 = vmatprep.subr.bf16.mxu1 %v9587_v4  ;;  %v9134_v3 = vcombine.low %v120_v55, %v124_v56  ;;  %v9141_v4 = vcombine.high %v127_v62, %v131_v63  ;;  %v9143_v5 = vcombine.high %v128_v0, %v132_v1  ;;  %v176_v54 = vld [vmem:[#allocation2 + $0x258] sm:$0xff] }
 0x11e   :  { %v180_v55 = vld [vmem:[#allocation2 + $0x278] sm:$0xff] }
 0x120   :  { %3318 = vmatpush1.bf16.msra.mxu0 %v9584_v9  ;;  %3482 = vmatpush1.bf16.msra.mxu1 %v9586_v10  ;;  %v140_v9 = vld [vmem:[#allocation2 + $0x138] sm:$0xff]  ;;  %v9140_v10 = vcombine.low %v127_v62, %v131_v63  ;;  %v187_v62 = vld [vmem:[#allocation2 + $0x2b0] sm:$0xff] }
 0x121   :  { %3319 = vmatprep.subr.bf16.mxu0 %v9593_v11  ;;  %3483 = vmatprep.subr.bf16.mxu1 %v9595_v13  ;;  %v9142_v11 = vcombine.low %v128_v0, %v132_v1  ;;  %v9149_v13 = vcombine.high %v135_v6, %v139_v7  ;;  %v184_v63 = vld [vmem:[#allocation2 + $0x298] sm:$0xff] }
 0x122   :  { %v188_v0 = vld [vmem:[#allocation2 + $0x2b8] sm:$0xff] }
 0x124   :  { %3320 = vmatpush1.bf16.msra.mxu0 %v9592_v18  ;;  %3484 = vmatpush1.bf16.msra.mxu1 %v9594_v19  ;;  %v9148_v18 = vcombine.low %v135_v6, %v139_v7  ;;  %v9150_v19 = vcombine.low %v136_v8, %v140_v9  ;;  %v195_v6 = vld [vmem:[#allocation2 + $0x2f0] sm:$0xff]  ;;  %v192_v7 = vld [vmem:[#allocation2 + $0x2d8] sm:$0xff] }
 0x125   :  { %3321 = vmatprep.subr.bf16.mxu0 %v9601_v20  ;;  %3485 = vmatprep.subr.bf16.mxu1 %v9603_v21  ;;  %v9157_v20 = vcombine.high %v143_v14, %v147_v15  ;;  %v9159_v21 = vcombine.high %v144_v16, %v148_v17  ;;  %v204_v16 = vld [vmem:[#allocation2 + $0x338] sm:$0xff] }
 0x128   :  { %3322 = vmatpush1.bf16.msra.mxu0 %v9600_v26  ;;  %3486 = vmatpush1.bf16.msra.mxu1 %v9602_v27  ;;  %v152_v26 = vld [vmem:[#allocation2 + $0x198] sm:$0xff] }
 0x129   :  { %9616 = vmatprep.subr.msk.bf16.mxu0 %vm3147_vm1, %v9609_v28  ;;  %9618 = vmatprep.subr.msk.bf16.mxu1 %vm3147_vm1, %v9611_v30  ;;  %v156_v27 = vld [vmem:[#allocation2 + $0x1b8] sm:$0xff]  ;;  %v9156_v28 = vcombine.low %v143_v14, %v147_v15  ;;  %v9165_v30 = vcombine.high %v151_v22, %v155_v24  ;;  %v203_v14 = vld [vmem:[#allocation2 + $0x330] sm:$0xff] }
 0x12a   :  { %v9167_v31 = vcombine.high %v152_v26, %v156_v27  ;;  %v200_v15 = vld [vmem:[#allocation2 + $0x318] sm:$0xff]  ;;  %v211_v22 = vld [vmem:[#allocation2 + $0x370] sm:$0xff] }
 0x12b   :  { %v208_v24 = vld [vmem:[#allocation2 + $0x358] sm:$0xff] }
 0x12c   :  { %3324 = vmatpush1.bf16.msra.mxu0 %v3149_v39  ;;  %3488 = vmatpush1.bf16.msra.mxu1 %v3155_v41  ;;  %v9166_v39 = vcombine.low %v152_v26, %v156_v27  ;;  %v9175_v41 = vcombine.high %v160_v35, %v164_v37  ;;  %v212_v26 = vld [vmem:[#allocation2 + $0x378] sm:$0xff] }
 0x12d   :  { %3500 = vmatprep.subr.bf16.mxu0 %v9117_v40  ;;  %3664 = vmatprep.subr.bf16.mxu1 %v9119_v42  ;;  %v9173_v40 = vcombine.high %v159_v32, %v163_v33  ;;  %v167_v42 = vld [vmem:[#allocation2 + $0x210] sm:$0xff]  ;;  %v216_v33 = vld [vmem:[#allocation2 + $0x398] sm:$0xff] }
 0x12e   :  { %v9180_v56 = vcombine.low %v167_v42, %v171_v43  ;;  %v219_v32 = vld [vmem:[#allocation2 + $0x3b0] sm:$0xff] }
 0x12f   :  { %3328 = vmatmul.mubr.bf16.vlgmr.msra.gmra.mrb[0].mxu0 %v10868_v45  ;;  %3492 = vmatmul.mubr.bf16.vlgmr.msra.gmra.mrb[0].mxu1 %v10868_v45 }
 0x130   :  { %3501 = vmatpush1.bf16.msra.mxu0 %v9116_v49  ;;  %3665 = vmatpush1.bf16.msra.mxu1 %v9118_v50  ;;  %v9174_v49 = vcombine.low %v160_v35, %v164_v37  ;;  %v9181_v50 = vcombine.high %v167_v42, %v171_v43  ;;  %v220_v35 = vld [vmem:[#allocation2 + $0x3b8] sm:$0xff]  ;;  %v227_v42 = vld [vmem:[#allocation2 + $0x3f0] sm:$0xff] }
 0x131   :  { %3502 = vmatprep.subr.bf16.mxu0 %v9125_v51  ;;  %3666 = vmatprep.subr.bf16.mxu1 %v9127_v52  ;;  %v9183_v51 = vcombine.high %v168_v44, %v172_v47  ;;  %v175_v52 = vld [vmem:[#allocation2 + $0x250] sm:$0xff]  ;;  %v224_v43 = vld [vmem:[#allocation2 + $0x3d8] sm:$0xff] }
 0x132   :  { %3532 = vmatprep.mubr.bf16.mxu0 %v10813_v57  ;;  %3696 = vmatprep.mubr.bf16.mxu1 %v10813_v57  ;;  %v9151_v57 = vcombine.high %v136_v8, %v140_v9  ;;  %v9188_v1 = vcombine.low %v175_v52, %v179_v53  ;;  %v196_v8 = vld [vmem:[#allocation2 + $0x2f8] sm:$0xff] }
 0x134   :  { %3503 = vmatpush1.bf16.msra.mxu0 %v9124_v58  ;;  %3667 = vmatpush1.bf16.msra.mxu1 %v9126_v59  ;;  %v9182_v58 = vcombine.low %v168_v44, %v172_v47  ;;  %v9189_v59 = vcombine.high %v175_v52, %v179_v53  ;;  %v228_v44 = vld [vmem:[#allocation2 + $0x3f8] sm:$0xff]  ;;  %v235_v52 = vld [vmem:[#allocation2 + $0x430] sm:$0xff] }
 0x135   :  { %3504 = vmatprep.subr.bf16.mxu0 %v9133_v60  ;;  %3668 = vmatprep.subr.bf16.mxu1 %v9135_v61  ;;  %v9191_v60 = vcombine.high %v176_v54, %v180_v55  ;;  %v183_v61 = vld [vmem:[#allocation2 + $0x290] sm:$0xff]  ;;  %v232_v53 = vld [vmem:[#allocation2 + $0x418] sm:$0xff] }
 0x136   :  { %v9196_v9 = vcombine.low %v183_v61, %v187_v62 }
 0x138   :  { %3505 = vmatpush1.bf16.msra.mxu0 %v9132_v2  ;;  %3669 = vmatpush1.bf16.msra.mxu1 %v9134_v3  ;;  %v9190_v2 = vcombine.low %v176_v54, %v180_v55  ;;  %v9197_v3 = vcombine.high %v183_v61, %v187_v62  ;;  %v236_v54 = vld [vmem:[#allocation2 + $0x438] sm:$0xff]  ;;  %v243_v61 = vld [vmem:[#allocation2 + $0x470] sm:$0xff] }
 0x139   :  { %3506 = vmatprep.subr.bf16.mxu0 %v9141_v4  ;;  %3670 = vmatprep.subr.bf16.mxu1 %v9143_v5  ;;  %v9199_v4 = vcombine.high %v184_v63, %v188_v0  ;;  %v191_v5 = vld [vmem:[#allocation2 + $0x2d0] sm:$0xff]  ;;  %v240_v62 = vld [vmem:[#allocation2 + $0x458] sm:$0xff] }
 0x13a   :  { %v9204_v17 = vcombine.low %v191_v5, %v195_v6 }
 0x13c   :  { %3507 = vmatpush1.bf16.msra.mxu0 %v9140_v10  ;;  %3671 = vmatpush1.bf16.msra.mxu1 %v9142_v11  ;;  %v9198_v10 = vcombine.low %v184_v63, %v188_v0  ;;  %v9205_v11 = vcombine.high %v191_v5, %v195_v6  ;;  %v244_v63 = vld [vmem:[#allocation2 + $0x478] sm:$0xff]  ;;  %v251_v5 = vld [vmem:[#allocation2 + $0x4b0] sm:$0xff] }
 0x13d   :  { %3508 = vmatprep.subr.bf16.mxu0 %v9149_v13  ;;  %3672 = vmatprep.subr.bf16.mxu1 %v9151_v57  ;;  %v9207_v13 = vcombine.high %v192_v7, %v196_v8  ;;  %v199_v57 = vld [vmem:[#allocation2 + $0x310] sm:$0xff]  ;;  %v248_v6 = vld [vmem:[#allocation2 + $0x498] sm:$0xff] }
 0x13e   :  { %v9212_v27 = vcombine.low %v199_v57, %v203_v14 }
 0x140   :  { %3509 = vmatpush1.bf16.msra.mxu0 %v9148_v18  ;;  %3673 = vmatpush1.bf16.msra.mxu1 %v9150_v19  ;;  %v9206_v18 = vcombine.low %v192_v7, %v196_v8  ;;  %v9213_v19 = vcombine.high %v199_v57, %v203_v14  ;;  %v252_v7 = vld [vmem:[#allocation2 + $0x4b8] sm:$0xff]  ;;  %v259_v57 = vld [vmem:[#allocation2 + $0x4f0] sm:$0xff] }
 0x141   :  { %3510 = vmatprep.subr.bf16.mxu0 %v9157_v20  ;;  %3674 = vmatprep.subr.bf16.mxu1 %v9159_v21  ;;  %v9215_v20 = vcombine.high %v200_v15, %v204_v16  ;;  %v207_v21 = vld [vmem:[#allocation2 + $0x350] sm:$0xff]  ;;  %v256_v14 = vld [vmem:[#allocation2 + $0x4d8] sm:$0xff] }
 0x142   :  { %v9220_v37 = vcombine.low %v207_v21, %v211_v22 }
 0x144   :  { %3511 = vmatpush1.bf16.msra.mxu0 %v9156_v28  ;;  %3675 = vmatpush1.bf16.msra.mxu1 %v9158_v29  ;;  %v9214_v28 = vcombine.low %v200_v15, %v204_v16  ;;  %v9221_v29 = vcombine.high %v207_v21, %v211_v22  ;;  %v260_v15 = vld [vmem:[#allocation2 + $0x4f8] sm:$0xff] }
 0x145   :  { %3512 = vmatprep.subr.bf16.mxu0 %v9165_v30  ;;  %3676 = vmatprep.subr.bf16.mxu1 %v9167_v31  ;;  %v9223_v30 = vcombine.high %v208_v24, %v212_v26  ;;  %v215_v31 = vld [vmem:[#allocation2 + $0x390] sm:$0xff]  ;;  %v264_v21 = vld [vmem:[#allocation2 + $0x518] sm:$0xff] }
 0x146   :  { %v9228_v47 = vcombine.low %v215_v31, %v219_v32  ;;  %v268_v22 = vld [vmem:[#allocation2 + $0x538] sm:$0xff] }
 0x148   :  { %3513 = vmatpush1.bf16.msra.mxu0 %v9164_v38  ;;  %3677 = vmatpush1.bf16.msra.mxu1 %v9166_v39  ;;  %v9222_v38 = vcombine.low %v208_v24, %v212_v26  ;;  %v9229_v39 = vcombine.high %v215_v31, %v219_v32  ;;  %v9270_v26 = vcombine.low %v256_v14, %v260_v15  ;;  %v276_v31 = vld [vmem:[#allocation2 + $0x578] sm:$0xff] }
 0x149   :  { %3514 = vmatprep.subr.bf16.mxu0 %v9173_v40  ;;  %3678 = vmatprep.subr.bf16.mxu1 %v9175_v41  ;;  %v9231_v40 = vcombine.high %v216_v33, %v220_v35  ;;  %v223_v41 = vld [vmem:[#allocation2 + $0x3d0] sm:$0xff] }
 0x14a   :  { %v9236_v55 = vcombine.low %v223_v41, %v227_v42 }
 0x14c   :  { %3515 = vmatpush1.bf16.msra.mxu0 %v9172_v48  ;;  %3679 = vmatpush1.bf16.msra.mxu1 %v9174_v49  ;;  %v9230_v48 = vcombine.low %v216_v33, %v220_v35  ;;  %v9237_v49 = vcombine.high %v223_v41, %v227_v42  ;;  %v9278_v33 = vcombine.low %v264_v21, %v268_v22  ;;  %v284_v41 = vld [vmem:[#allocation2 + $0x5b8] sm:$0xff] }
 0x14d   :  { %3516 = vmatprep.subr.bf16.mxu0 %v9181_v50  ;;  %3680 = vmatprep.subr.bf16.mxu1 %v9183_v51  ;;  %v9239_v50 = vcombine.high %v224_v43, %v228_v44  ;;  %v231_v51 = vld [vmem:[#allocation2 + $0x410] sm:$0xff] }
 0x14e   :  { %v9244_v0 = vcombine.low %v231_v51, %v235_v52 }
 0x150   :  { %3517 = vmatpush1.bf16.msra.mxu0 %v9180_v56  ;;  %3681 = vmatpush1.bf16.msra.mxu1 %v9182_v58  ;;  %v9238_v56 = vcombine.low %v224_v43, %v228_v44  ;;  %v9245_v58 = vcombine.high %v231_v51, %v235_v52  ;;  %v292_v51 = vld [vmem:[#allocation2 + $0x5f8] sm:$0xff] }
 0x151   :  { %3518 = vmatprep.subr.bf16.mxu0 %v9189_v59  ;;  %3682 = vmatprep.subr.bf16.mxu1 %v9191_v60  ;;  %v9247_v59 = vcombine.high %v232_v53, %v236_v54  ;;  %v239_v60 = vld [vmem:[#allocation2 + $0x450] sm:$0xff] }
 0x152   :  { %v9252_v8 = vcombine.low %v239_v60, %v243_v61 }
 0x154   :  { %3519 = vmatpush1.bf16.msra.mxu0 %v9188_v1  ;;  %3683 = vmatpush1.bf16.msra.mxu1 %v9190_v2  ;;  %v9246_v1 = vcombine.low %v232_v53, %v236_v54  ;;  %v9253_v2 = vcombine.high %v239_v60, %v243_v61  ;;  %v300_v60 = vld [vmem:[#allocation2 + $0x638] sm:$0xff] }
 0x155   :  { %3520 = vmatprep.subr.bf16.mxu0 %v9197_v3  ;;  %3684 = vmatprep.subr.bf16.mxu1 %v9199_v4  ;;  %v9255_v3 = vcombine.high %v240_v62, %v244_v63  ;;  %v247_v4 = vld [vmem:[#allocation2 + $0x490] sm:$0xff] }
 0x156   :  { %v9260_v16 = vcombine.low %v247_v4, %v251_v5 }
 0x158   :  { %3521 = vmatpush1.bf16.msra.mxu0 %v9196_v9  ;;  %3685 = vmatpush1.bf16.msra.mxu1 %v9198_v10  ;;  %v9254_v9 = vcombine.low %v240_v62, %v244_v63  ;;  %v9261_v10 = vcombine.high %v247_v4, %v251_v5  ;;  %v308_v4 = vld [vmem:[#allocation2 + $0x678] sm:$0xff] }
 0x159   :  { %3522 = vmatprep.subr.bf16.mxu0 %v9205_v11  ;;  %3686 = vmatprep.subr.bf16.mxu1 %v9207_v13  ;;  %v9263_v11 = vcombine.high %v248_v6, %v252_v7  ;;  %v255_v13 = vld [vmem:[#allocation2 + $0x4d0] sm:$0xff] }
 0x15a   :  { %v9268_v24 = vcombine.low %v255_v13, %v259_v57 }
 0x15c   :  { %3523 = vmatpush1.bf16.msra.mxu0 %v9204_v17  ;;  %3687 = vmatpush1.bf16.msra.mxu1 %v9206_v18  ;;  %v9269_v17 = vcombine.high %v255_v13, %v259_v57  ;;  %v9271_v18 = vcombine.high %v256_v14, %v260_v15  ;;  %v316_v13 = vld [vmem:[#allocation2 + $0x6b8] sm:$0xff] }
 0x15d   :  { %3524 = vmatprep.subr.bf16.mxu0 %v9213_v19  ;;  %3688 = vmatprep.subr.bf16.mxu1 %v9215_v20  ;;  %v263_v19 = vld [vmem:[#allocation2 + $0x510] sm:$0xff] }
 0x15e   :  { %v267_v20 = vld [vmem:[#allocation2 + $0x530] sm:$0xff] }
 0x15f   :  { %v9276_v32 = vcombine.low %v263_v19, %v267_v20 }
 0x160   :  { %3525 = vmatpush1.bf16.msra.mxu0 %v9212_v27  ;;  %3689 = vmatpush1.bf16.msra.mxu1 %v9214_v28  ;;  %v9277_v27 = vcombine.high %v263_v19, %v267_v20  ;;  %v271_v28 = vld [vmem:[#allocation2 + $0x550] sm:$0xff]  ;;  %v324_v19 = vld [vmem:[#allocation2 + $0x6f8] sm:$0xff] }
 0x161   :  { %3526 = vmatprep.subr.bf16.mxu0 %v9221_v29  ;;  %3690 = vmatprep.subr.bf16.mxu1 %v9223_v30  ;;  %v275_v29 = vld [vmem:[#allocation2 + $0x570] sm:$0xff]  ;;  %v272_v30 = vld [vmem:[#allocation2 + $0x558] sm:$0xff] }
 0x162   :  { %v9285_v35 = vcombine.high %v271_v28, %v275_v29  ;;  %v9284_v42 = vcombine.low %v271_v28, %v275_v29  ;;  %v9286_v43 = vcombine.low %v272_v30, %v276_v31  ;;  %v332_v28 = vld [vmem:[#allocation2 + $0x738] sm:$0xff] }
 0x164   :  { %3527 = vmatpush1.bf16.msra.mxu0 %v9220_v37  ;;  %3691 = vmatpush1.bf16.msra.mxu1 %v9222_v38  ;;  %v9287_v37 = vcombine.high %v272_v30, %v276_v31  ;;  %v279_v38 = vld [vmem:[#allocation2 + $0x590] sm:$0xff] }
 0x165   :  { %3528 = vmatprep.subr.bf16.mxu0 %v9229_v39  ;;  %3692 = vmatprep.subr.bf16.mxu1 %v9231_v40  ;;  %v283_v39 = vld [vmem:[#allocation2 + $0x5b0] sm:$0xff]  ;;  %v280_v40 = vld [vmem:[#allocation2 + $0x598] sm:$0xff] }
 0x166   :  { %v9293_v44 = vcombine.high %v279_v38, %v283_v39  ;;  %v9292_v52 = vcombine.low %v279_v38, %v283_v39  ;;  %v9294_v53 = vcombine.low %v280_v40, %v284_v41  ;;  %v340_v38 = vld [vmem:[#allocation2 + $0x778] sm:$0xff] }
 0x168   :  { %3529 = vmatpush1.bf16.msra.mxu0 %v9228_v47  ;;  %3693 = vmatpush1.bf16.msra.mxu1 %v9230_v48  ;;  %v9295_v47 = vcombine.high %v280_v40, %v284_v41  ;;  %v287_v48 = vld [vmem:[#allocation2 + $0x5d0] sm:$0xff] }
 0x169   :  { %3530 = vmatprep.subr.bf16.mxu0 %v9237_v49  ;;  %3694 = vmatprep.subr.bf16.mxu1 %v9239_v50  ;;  %v291_v49 = vld [vmem:[#allocation2 + $0x5f0] sm:$0xff]  ;;  %v288_v50 = vld [vmem:[#allocation2 + $0x5d8] sm:$0xff] }
 0x16a   :  { %v9301_v54 = vcombine.high %v287_v48, %v291_v49  ;;  %v9300_v61 = vcombine.low %v287_v48, %v291_v49  ;;  %v9302_v62 = vcombine.low %v288_v50, %v292_v51  ;;  %v348_v48 = vld [vmem:[#allocation2 + $0x7b8] sm:$0xff] }
 0x16c   :  { %3531 = vmatpush1.bf16.msra.mxu0 %v9236_v55  ;;  %3695 = vmatpush1.bf16.msra.mxu1 %v9238_v56  ;;  %v9303_v55 = vcombine.high %v288_v50, %v292_v51  ;;  %v295_v56 = vld [vmem:[#allocation2 + $0x610] sm:$0xff] }
 0x16d   :  { %3541 = vmatprep.subr.bf16.mxu0 %v9245_v58  ;;  %3705 = vmatprep.subr.bf16.mxu1 %v9247_v59  ;;  %v299_v58 = vld [vmem:[#allocation2 + $0x630] sm:$0xff]  ;;  %v296_v59 = vld [vmem:[#allocation2 + $0x618] sm:$0xff] }
 0x16e   :  { %v9309_v63 = vcombine.high %v295_v56, %v299_v58  ;;  %v9308_v5 = vcombine.low %v295_v56, %v299_v58  ;;  %v356_v56 = vld [vmem:[#allocation2 + $0x7f8] sm:$0xff] }
 0x16f   :  { %3533 = vmatmul.mubr.bf16.vlgmr.msra.gmra.mrb[4].mxu0 %v10820_v12  ;;  %3697 = vmatmul.mubr.bf16.vlgmr.msra.gmra.mrb[4].mxu1 %v10820_v12  ;;  %v9262_v12 = vcombine.low %v248_v6, %v252_v7  ;;  %v9310_v6 = vcombine.low %v296_v59, %v300_v60 }
 0x170   :  { %3542 = vmatpush1.bf16.msra.mxu0 %v9244_v0  ;;  %3706 = vmatpush1.bf16.msra.mxu1 %v9246_v1  ;;  %v9311_v0 = vcombine.high %v296_v59, %v300_v60  ;;  %v303_v1 = vld [vmem:[#allocation2 + $0x650] sm:$0xff] }
 0x171   :  { %3543 = vmatprep.subr.bf16.mxu0 %v9253_v2  ;;  %3707 = vmatprep.subr.bf16.mxu1 %v9255_v3  ;;  %v307_v2 = vld [vmem:[#allocation2 + $0x670] sm:$0xff]  ;;  %v304_v3 = vld [vmem:[#allocation2 + $0x658] sm:$0xff] }
 0x172   :  { %3573 = vmatprep.mubr.bf16.mxu0 %v10825_v23  ;;  %3737 = vmatprep.mubr.bf16.mxu1 %v10825_v23  ;;  %v9279_v23 = vcombine.high %v264_v21, %v268_v22  ;;  %v9317_v7 = vcombine.high %v303_v1, %v307_v2  ;;  %v9316_v57 = vcombine.low %v303_v1, %v307_v2  ;;  %v364_v1 = vld [vmem:[#allocation2 + $0x838] sm:$0xff] }
 0x173   :  { %v9318_v14 = vcombine.low %v304_v3, %v308_v4 }
 0x174   :  { %3544 = vmatpush1.bf16.msra.mxu0 %v9252_v8  ;;  %3708 = vmatpush1.bf16.msra.mxu1 %v9254_v9  ;;  %v9319_v8 = vcombine.high %v304_v3, %v308_v4  ;;  %v311_v9 = vld [vmem:[#allocation2 + $0x690] sm:$0xff] }
 0x175   :  { %3545 = vmatprep.subr.bf16.mxu0 %v9261_v10  ;;  %3709 = vmatprep.subr.bf16.mxu1 %v9263_v11  ;;  %v315_v10 = vld [vmem:[#allocation2 + $0x6b0] sm:$0xff]  ;;  %v312_v11 = vld [vmem:[#allocation2 + $0x698] sm:$0xff] }
 0x176   :  { %v9325_v15 = vcombine.high %v311_v9, %v315_v10  ;;  %v9324_v20 = vcombine.low %v311_v9, %v315_v10  ;;  %v9326_v21 = vcombine.low %v312_v11, %v316_v13  ;;  %v372_v9 = vld [vmem:[#allocation2 + $0x878] sm:$0xff] }
 0x178   :  { %3546 = vmatpush1.bf16.msra.mxu0 %v9260_v16  ;;  %3710 = vmatpush1.bf16.msra.mxu1 %v9262_v12  ;;  %v9327_v16 = vcombine.high %v312_v11, %v316_v13  ;;  %v319_v12 = vld [vmem:[#allocation2 + $0x6d0] sm:$0xff] }
 0x179   :  { %3547 = vmatprep.subr.bf16.mxu0 %v9269_v17  ;;  %3711 = vmatprep.subr.bf16.mxu1 %v9271_v18  ;;  %v323_v17 = vld [vmem:[#allocation2 + $0x6f0] sm:$0xff]  ;;  %v320_v18 = vld [vmem:[#allocation2 + $0x6d8] sm:$0xff] }
 0x17a   :  { %v9333_v22 = vcombine.high %v319_v12, %v323_v17  ;;  %v9332_v29 = vcombine.low %v319_v12, %v323_v17  ;;  %v9334_v30 = vcombine.low %v320_v18, %v324_v19  ;;  %v380_v12 = vld [vmem:[#allocation2 + $0x8b8] sm:$0xff] }
 0x17c   :  { %3548 = vmatpush1.bf16.msra.mxu0 %v9268_v24  ;;  %3712 = vmatpush1.bf16.msra.mxu1 %v9270_v26  ;;  %v9335_v24 = vcombine.high %v320_v18, %v324_v19  ;;  %v327_v26 = vld [vmem:[#allocation2 + $0x710] sm:$0xff] }
 0x17d   :  { %3549 = vmatprep.subr.bf16.mxu0 %v9277_v27  ;;  %3713 = vmatprep.subr.bf16.mxu1 %v9279_v23  ;;  %v331_v27 = vld [vmem:[#allocation2 + $0x730] sm:$0xff]  ;;  %v328_v23 = vld [vmem:[#allocation2 + $0x718] sm:$0xff] }
 0x17e   :  { %v9341_v31 = vcombine.high %v327_v26, %v331_v27  ;;  %v9340_v39 = vcombine.low %v327_v26, %v331_v27  ;;  %v9342_v40 = vcombine.low %v328_v23, %v332_v28  ;;  %v388_v26 = vld [vmem:[#allocation2 + $0x8f8] sm:$0xff] }
 0x180   :  { %3550 = vmatpush1.bf16.msra.mxu0 %v9276_v32  ;;  %3714 = vmatpush1.bf16.msra.mxu1 %v9278_v33  ;;  %v9343_v32 = vcombine.high %v328_v23, %v332_v28  ;;  %v335_v33 = vld [vmem:[#allocation2 + $0x750] sm:$0xff] }
 0x181   :  { %3551 = vmatprep.subr.bf16.mxu0 %v9285_v35  ;;  %3715 = vmatprep.subr.bf16.mxu1 %v9287_v37  ;;  %v339_v35 = vld [vmem:[#allocation2 + $0x770] sm:$0xff]  ;;  %v336_v37 = vld [vmem:[#allocation2 + $0x758] sm:$0xff] }
 0x182   :  { %v9349_v41 = vcombine.high %v335_v33, %v339_v35  ;;  %v9348_v49 = vcombine.low %v335_v33, %v339_v35  ;;  %v9350_v50 = vcombine.low %v336_v37, %v340_v38 }
 0x184   :  { %3552 = vmatpush1.bf16.msra.mxu0 %v9284_v42  ;;  %3716 = vmatpush1.bf16.msra.mxu1 %v9286_v43  ;;  %v9351_v42 = vcombine.high %v336_v37, %v340_v38  ;;  %v343_v43 = vld [vmem:[#allocation2 + $0x790] sm:$0xff] }
 0x185   :  { %3553 = vmatprep.subr.bf16.mxu0 %v9293_v44  ;;  %3717 = vmatprep.subr.bf16.mxu1 %v9295_v47  ;;  %v347_v44 = vld [vmem:[#allocation2 + $0x7b0] sm:$0xff]  ;;  %v344_v47 = vld [vmem:[#allocation2 + $0x798] sm:$0xff] }
 0x186   :  { %v9357_v51 = vcombine.high %v343_v43, %v347_v44  ;;  %v9356_v58 = vcombine.low %v343_v43, %v347_v44  ;;  %v9358_v59 = vcombine.low %v344_v47, %v348_v48  ;;  %v399_v38 = vld [vmem:[#allocation2 + $0x950] sm:$0xff] }
 0x188   :  { %3554 = vmatpush1.bf16.msra.mxu0 %v9292_v52  ;;  %3718 = vmatpush1.bf16.msra.mxu1 %v9294_v53  ;;  %v9359_v52 = vcombine.high %v344_v47, %v348_v48  ;;  %v351_v53 = vld [vmem:[#allocation2 + $0x7d0] sm:$0xff] }
 0x189   :  { %3555 = vmatprep.subr.bf16.mxu0 %v9301_v54  ;;  %3719 = vmatprep.subr.bf16.mxu1 %v9303_v55  ;;  %v355_v54 = vld [vmem:[#allocation2 + $0x7f0] sm:$0xff]  ;;  %v352_v55 = vld [vmem:[#allocation2 + $0x7d8] sm:$0xff] }
 0x18a   :  { %v9365_v60 = vcombine.high %v351_v53, %v355_v54  ;;  %v9364_v2 = vcombine.low %v351_v53, %v355_v54  ;;  %v9366_v3 = vcombine.low %v352_v55, %v356_v56  ;;  %v407_v48 = vld [vmem:[#allocation2 + $0x990] sm:$0xff] }
 0x18c   :  { %3556 = vmatpush1.bf16.msra.mxu0 %v9300_v61  ;;  %3720 = vmatpush1.bf16.msra.mxu1 %v9302_v62  ;;  %v9367_v61 = vcombine.high %v352_v55, %v356_v56  ;;  %v359_v62 = vld [vmem:[#allocation2 + $0x810] sm:$0xff] }
 0x18d   :  { %3557 = vmatprep.subr.bf16.mxu0 %v9309_v63  ;;  %3721 = vmatprep.subr.bf16.mxu1 %v9311_v0  ;;  %v363_v63 = vld [vmem:[#allocation2 + $0x830] sm:$0xff]  ;;  %v360_v0 = vld [vmem:[#allocation2 + $0x818] sm:$0xff] }
 0x18e   :  { %v9373_v4 = vcombine.high %v359_v62, %v363_v63  ;;  %v9372_v10 = vcombine.low %v359_v62, %v363_v63  ;;  %v9374_v11 = vcombine.low %v360_v0, %v364_v1  ;;  %v415_v56 = vld [vmem:[#allocation2 + $0x9d0] sm:$0xff] }
 0x190   :  { %3558 = vmatpush1.bf16.msra.mxu0 %v9308_v5  ;;  %3722 = vmatpush1.bf16.msra.mxu1 %v9310_v6  ;;  %v9375_v5 = vcombine.high %v360_v0, %v364_v1  ;;  %v367_v6 = vld [vmem:[#allocation2 + $0x850] sm:$0xff] }
 0x191   :  { %3559 = vmatprep.subr.bf16.mxu0 %v9317_v7  ;;  %3723 = vmatprep.subr.bf16.mxu1 %v9319_v8  ;;  %v371_v7 = vld [vmem:[#allocation2 + $0x870] sm:$0xff]  ;;  %v368_v8 = vld [vmem:[#allocation2 + $0x858] sm:$0xff] }
 0x192   :  { %v9381_v13 = vcombine.high %v367_v6, %v371_v7  ;;  %v9380_v17 = vcombine.low %v367_v6, %v371_v7  ;;  %v9382_v18 = vcombine.low %v368_v8, %v372_v9  ;;  %v423_v1 = vld [vmem:[#allocation2 + $0xa10] sm:$0xff] }
 0x194   :  { %3560 = vmatpush1.bf16.msra.mxu0 %v9316_v57  ;;  %3724 = vmatpush1.bf16.msra.mxu1 %v9318_v14  ;;  %v9383_v57 = vcombine.high %v368_v8, %v372_v9  ;;  %v375_v14 = vld [vmem:[#allocation2 + $0x890] sm:$0xff] }
 0x195   :  { %3561 = vmatprep.subr.bf16.mxu0 %v9325_v15  ;;  %3725 = vmatprep.subr.bf16.mxu1 %v9327_v16  ;;  %v379_v15 = vld [vmem:[#allocation2 + $0x8b0] sm:$0xff]  ;;  %v376_v16 = vld [vmem:[#allocation2 + $0x898] sm:$0xff] }
 0x196   :  { %v9389_v19 = vcombine.high %v375_v14, %v379_v15  ;;  %v9388_v27 = vcombine.low %v375_v14, %v379_v15  ;;  %v431_v9 = vld [vmem:[#allocation2 + $0xa50] sm:$0xff] }
 0x198   :  { %3562 = vmatpush1.bf16.msra.mxu0 %v9324_v20  ;;  %3726 = vmatpush1.bf16.msra.mxu1 %v9326_v21  ;;  %v9391_v20 = vcombine.high %v376_v16, %v380_v12  ;;  %v383_v21 = vld [vmem:[#allocation2 + $0x8d0] sm:$0xff] }
 0x199   :  { %3563 = vmatprep.subr.bf16.mxu0 %v9333_v22  ;;  %3727 = vmatprep.subr.bf16.mxu1 %v9335_v24  ;;  %v387_v22 = vld [vmem:[#allocation2 + $0x8f0] sm:$0xff]  ;;  %v384_v24 = vld [vmem:[#allocation2 + $0x8d8] sm:$0xff] }
 0x19a   :  { %v9397_v23 = vcombine.high %v383_v21, %v387_v22  ;;  %v9399_v28 = vcombine.high %v384_v24, %v388_v26  ;;  %v9396_v33 = vcombine.low %v383_v21, %v387_v22  ;;  %v9398_v35 = vcombine.low %v384_v24, %v388_v26  ;;  %v447_v26 = vld [vmem:[#allocation2 + $0xad0] sm:$0xff] }
 0x19c   :  { %3564 = vmatpush1.bf16.msra.mxu0 %v9332_v29  ;;  %3728 = vmatpush1.bf16.msra.mxu1 %v9334_v30  ;;  %v391_v29 = vld [vmem:[#allocation2 + $0x910] sm:$0xff] }
 0x19d   :  { %3565 = vmatprep.subr.bf16.mxu0 %v9341_v31  ;;  %3729 = vmatprep.subr.bf16.mxu1 %v9343_v32  ;;  %v395_v30 = vld [vmem:[#allocation2 + $0x930] sm:$0xff]  ;;  %v392_v31 = vld [vmem:[#allocation2 + $0x918] sm:$0xff] }
 0x19e   :  { %v396_v32 = vld [vmem:[#allocation2 + $0x938] sm:$0xff]  ;;  %v9405_v37 = vcombine.high %v391_v29, %v395_v30 }
 0x19f   :  { %v9406_v43 = vcombine.low %v392_v31, %v396_v32 }
 0x1a0   :  { %3566 = vmatpush1.bf16.msra.mxu0 %v9340_v39  ;;  %3730 = vmatpush1.bf16.msra.mxu1 %v9342_v40  ;;  %v403_v39 = vld [vmem:[#allocation2 + $0x970] sm:$0xff]  ;;  %v400_v40 = vld [vmem:[#allocation2 + $0x958] sm:$0xff] }
 0x1a1   :  { %3567 = vmatprep.subr.bf16.mxu0 %v9349_v41  ;;  %3731 = vmatprep.subr.bf16.mxu1 %v9351_v42  ;;  %v404_v41 = vld [vmem:[#allocation2 + $0x978] sm:$0xff]  ;;  %v9404_v42 = vcombine.low %v391_v29, %v395_v30  ;;  %v9413_v44 = vcombine.high %v399_v38, %v403_v39 }
 0x1a2   :  { %v9415_v47 = vcombine.high %v400_v40, %v404_v41  ;;  %v9414_v53 = vcombine.low %v400_v40, %v404_v41  ;;  %v463_v41 = vld [vmem:[#allocation2 + $0xb50] sm:$0xff] }
 0x1a4   :  { %3568 = vmatpush1.bf16.msra.mxu0 %v9348_v49  ;;  %3732 = vmatpush1.bf16.msra.mxu1 %v9350_v50  ;;  %v411_v49 = vld [vmem:[#allocation2 + $0x9b0] sm:$0xff]  ;;  %v408_v50 = vld [vmem:[#allocation2 + $0x998] sm:$0xff] }
 0x1a5   :  { %3569 = vmatprep.subr.bf16.mxu0 %v9357_v51  ;;  %3733 = vmatprep.subr.bf16.mxu1 %v9359_v52  ;;  %v412_v51 = vld [vmem:[#allocation2 + $0x9b8] sm:$0xff]  ;;  %v9412_v52 = vcombine.low %v399_v38, %v403_v39  ;;  %v9421_v54 = vcombine.high %v407_v48, %v411_v49 }
 0x1a6   :  { %v9423_v55 = vcombine.high %v408_v50, %v412_v51  ;;  %v9422_v62 = vcombine.low %v408_v50, %v412_v51  ;;  %v471_v51 = vld [vmem:[#allocation2 + $0xb90] sm:$0xff] }
 0x1a8   :  { %3570 = vmatpush1.bf16.msra.mxu0 %v9356_v58  ;;  %3734 = vmatpush1.bf16.msra.mxu1 %v9358_v59  ;;  %v419_v58 = vld [vmem:[#allocation2 + $0x9f0] sm:$0xff]  ;;  %v416_v59 = vld [vmem:[#allocation2 + $0x9d8] sm:$0xff] }
 0x1a9   :  { %3571 = vmatprep.subr.bf16.mxu0 %v9365_v60  ;;  %3735 = vmatprep.subr.bf16.mxu1 %v9367_v61  ;;  %v420_v60 = vld [vmem:[#allocation2 + $0x9f8] sm:$0xff]  ;;  %v9420_v61 = vcombine.low %v407_v48, %v411_v49  ;;  %v9429_v63 = vcombine.high %v415_v56, %v419_v58 }
 0x1aa   :  { %v9431_v0 = vcombine.high %v416_v59, %v420_v60  ;;  %v9430_v6 = vcombine.low %v416_v59, %v420_v60  ;;  %v479_v60 = vld [vmem:[#allocation2 + $0xbd0] sm:$0xff] }
 0x1ac   :  { %3572 = vmatpush1.bf16.msra.mxu0 %v9364_v2  ;;  %3736 = vmatpush1.bf16.msra.mxu1 %v9366_v3  ;;  %v427_v2 = vld [vmem:[#allocation2 + $0xa30] sm:$0xff]  ;;  %v424_v3 = vld [vmem:[#allocation2 + $0xa18] sm:$0xff] }
 0x1ad   :  { %3582 = vmatprep.subr.bf16.mxu0 %v9373_v4  ;;  %3746 = vmatprep.subr.bf16.mxu1 %v9375_v5  ;;  %v428_v4 = vld [vmem:[#allocation2 + $0xa38] sm:$0xff]  ;;  %v9428_v5 = vcombine.low %v415_v56, %v419_v58  ;;  %v9437_v7 = vcombine.high %v423_v1, %v427_v2 }
 0x1ae   :  { %v9439_v8 = vcombine.high %v424_v3, %v428_v4  ;;  %v9438_v14 = vcombine.low %v424_v3, %v428_v4  ;;  %v487_v4 = vld [vmem:[#allocation2 + $0xc10] sm:$0xff] }
 0x1af   :  { %3574 = vmatmul.mubr.bf16.vlgmr.msra.gmra.mrb[4].mxu0 %v10837_v25  ;;  %3738 = vmatmul.mubr.bf16.vlgmr.msra.gmra.mrb[4].mxu1 %v10837_v25  ;;  %v9390_v25 = vcombine.low %v376_v16, %v380_v12  ;;  %v439_v12 = vld [vmem:[#allocation2 + $0xa90] sm:$0xff] }
 0x1b0   :  { %3583 = vmatpush1.bf16.msra.mxu0 %v9372_v10  ;;  %3747 = vmatpush1.bf16.msra.mxu1 %v9374_v11  ;;  %v435_v10 = vld [vmem:[#allocation2 + $0xa70] sm:$0xff]  ;;  %v432_v11 = vld [vmem:[#allocation2 + $0xa58] sm:$0xff] }
 0x1b1   :  { %3584 = vmatprep.subr.bf16.mxu0 %v9381_v13  ;;  %3748 = vmatprep.subr.bf16.mxu1 %v9383_v57  ;;  %v436_v13 = vld [vmem:[#allocation2 + $0xa78] sm:$0xff]  ;;  %v9436_v57 = vcombine.low %v423_v1, %v427_v2  ;;  %v9445_v15 = vcombine.high %v431_v9, %v435_v10 }
 0x1b2   :  { %3614 = vmatprep.mubr.bf16.mxu0 %v10839_v34  ;;  %3778 = vmatprep.mubr.bf16.mxu1 %v10839_v34  ;;  %v9407_v34 = vcombine.high %v392_v31, %v396_v32  ;;  %v9447_v16 = vcombine.high %v432_v11, %v436_v13  ;;  %v9446_v21 = vcombine.low %v432_v11, %v436_v13  ;;  %v455_v32 = vld [vmem:[#allocation2 + $0xb10] sm:$0xff] }
 0x1b3   :  { %v495_v13 = vld [vmem:[#allocation2 + $0xc50] sm:$0xff] }
 0x1b4   :  { %3585 = vmatpush1.bf16.msra.mxu0 %v9380_v17  ;;  %3749 = vmatpush1.bf16.msra.mxu1 %v9382_v18  ;;  %v443_v17 = vld [vmem:[#allocation2 + $0xab0] sm:$0xff]  ;;  %v440_v18 = vld [vmem:[#allocation2 + $0xa98] sm:$0xff] }
 0x1b5   :  { %3586 = vmatprep.subr.bf16.mxu0 %v9389_v19  ;;  %3750 = vmatprep.subr.bf16.mxu1 %v9391_v20  ;;  %v444_v19 = vld [vmem:[#allocation2 + $0xab8] sm:$0xff]  ;;  %v9444_v20 = vcombine.low %v431_v9, %v435_v10  ;;  %v9453_v22 = vcombine.high %v439_v12, %v443_v17 }
 0x1b6   :  { %v9455_v24 = vcombine.high %v440_v18, %v444_v19  ;;  %v9454_v29 = vcombine.low %v440_v18, %v444_v19  ;;  %v503_v19 = vld [vmem:[#allocation2 + $0xc90] sm:$0xff] }
 0x1b8   :  { %3587 = vmatpush1.bf16.msra.mxu0 %v9388_v27  ;;  %3751 = vmatpush1.bf16.msra.mxu1 %v9390_v25  ;;  %v451_v27 = vld [vmem:[#allocation2 + $0xaf0] sm:$0xff]  ;;  %v448_v25 = vld [vmem:[#allocation2 + $0xad8] sm:$0xff] }
 0x1b9   :  { %3588 = vmatprep.subr.bf16.mxu0 %v9397_v23  ;;  %3752 = vmatprep.subr.bf16.mxu1 %v9399_v28  ;;  %v452_v23 = vld [vmem:[#allocation2 + $0xaf8] sm:$0xff]  ;;  %v9452_v28 = vcombine.low %v439_v12, %v443_v17  ;;  %v9461_v30 = vcombine.high %v447_v26, %v451_v27 }
 0x1ba   :  { %v9463_v31 = vcombine.high %v448_v25, %v452_v23  ;;  %v9462_v38 = vcombine.low %v448_v25, %v452_v23  ;;  %v511_v23 = vld [vmem:[#allocation2 + $0xcd0] sm:$0xff] }
 0x1bc   :  { %3589 = vmatpush1.bf16.msra.mxu0 %v9396_v33  ;;  %3753 = vmatpush1.bf16.msra.mxu1 %v9398_v35  ;;  %v459_v33 = vld [vmem:[#allocation2 + $0xb30] sm:$0xff]  ;;  %v456_v35 = vld [vmem:[#allocation2 + $0xb18] sm:$0xff] }
 0x1bd   :  { %3590 = vmatprep.subr.bf16.mxu0 %v9405_v37  ;;  %3754 = vmatprep.subr.bf16.mxu1 %v9407_v34  ;;  %v460_v37 = vld [vmem:[#allocation2 + $0xb38] sm:$0xff]  ;;  %v9460_v34 = vcombine.low %v447_v26, %v451_v27  ;;  %v9469_v39 = vcombine.high %v455_v32, %v459_v33 }
 0x1be   :  { %v9471_v40 = vcombine.high %v456_v35, %v460_v37  ;;  %v9470_v48 = vcombine.low %v456_v35, %v460_v37  ;;  %v519_v35 = vld [vmem:[#allocation2 + $0xd10] sm:$0xff] }
 0x1bf   :  { %v523_v37 = vld [vmem:[#allocation2 + $0xd30] sm:$0xff] }
 0x1c0   :  { %3591 = vmatpush1.bf16.msra.mxu0 %v9404_v42  ;;  %3755 = vmatpush1.bf16.msra.mxu1 %v9406_v43  ;;  %v467_v42 = vld [vmem:[#allocation2 + $0xb70] sm:$0xff]  ;;  %v464_v43 = vld [vmem:[#allocation2 + $0xb58] sm:$0xff] }
 0x1c1   :  { %3592 = vmatprep.subr.bf16.mxu0 %v9413_v44  ;;  %3756 = vmatprep.subr.bf16.mxu1 %v9415_v47  ;;  %v468_v44 = vld [vmem:[#allocation2 + $0xb78] sm:$0xff]  ;;  %v9468_v47 = vcombine.low %v455_v32, %v459_v33  ;;  %v9477_v49 = vcombine.high %v463_v41, %v467_v42 }
 0x1c2   :  { %v9479_v50 = vcombine.high %v464_v43, %v468_v44  ;;  %v9478_v56 = vcombine.low %v464_v43, %v468_v44  ;;  %v531_v43 = vld [vmem:[#allocation2 + $0xd70] sm:$0xff]  ;;  %v528_v44 = vld [vmem:[#allocation2 + $0xd58] sm:$0xff] }
 0x1c4   :  { %3593 = vmatpush1.bf16.msra.mxu0 %v9412_v52  ;;  %3757 = vmatpush1.bf16.msra.mxu1 %v9414_v53  ;;  %v475_v52 = vld [vmem:[#allocation2 + $0xbb0] sm:$0xff]  ;;  %v472_v53 = vld [vmem:[#allocation2 + $0xb98] sm:$0xff] }
 0x1c5   :  { %3594 = vmatprep.subr.bf16.mxu0 %v9421_v54  ;;  %3758 = vmatprep.subr.bf16.mxu1 %v9423_v55  ;;  %v476_v54 = vld [vmem:[#allocation2 + $0xbb8] sm:$0xff]  ;;  %v9476_v55 = vcombine.low %v463_v41, %v467_v42  ;;  %v9485_v58 = vcombine.high %v471_v51, %v475_v52  ;;  %v9533_v41 = vcombine.high %v519_v35, %v523_v37  ;;  %v527_v42 = vld [vmem:[#allocation2 + $0xd50] sm:$0xff] }
 0x1c6   :  { %v9487_v59 = vcombine.high %v472_v53, %v476_v54  ;;  %v9486_v1 = vcombine.low %v472_v53, %v476_v54  ;;  %v539_v53 = vld [vmem:[#allocation2 + $0xdb0] sm:$0xff]  ;;  %v536_v54 = vld [vmem:[#allocation2 + $0xd98] sm:$0xff] }
 0x1c8   :  { %3595 = vmatpush1.bf16.msra.mxu0 %v9420_v61  ;;  %3759 = vmatpush1.bf16.msra.mxu1 %v9422_v62  ;;  %v483_v61 = vld [vmem:[#allocation2 + $0xbf0] sm:$0xff]  ;;  %v480_v62 = vld [vmem:[#allocation2 + $0xbd8] sm:$0xff] }
 0x1c9   :  { %3596 = vmatprep.subr.bf16.mxu0 %v9429_v63  ;;  %3760 = vmatprep.subr.bf16.mxu1 %v9431_v0  ;;  %v484_v63 = vld [vmem:[#allocation2 + $0xbf8] sm:$0xff]  ;;  %v9484_v0 = vcombine.low %v471_v51, %v475_v52  ;;  %v9493_v2 = vcombine.high %v479_v60, %v483_v61  ;;  %v535_v52 = vld [vmem:[#allocation2 + $0xd90] sm:$0xff] }
 0x1ca   :  { %v9495_v3 = vcombine.high %v480_v62, %v484_v63  ;;  %v9494_v9 = vcombine.low %v480_v62, %v484_v63  ;;  %v543_v62 = vld [vmem:[#allocation2 + $0xdd0] sm:$0xff] }
 0x1cb   :  { %v547_v63 = vld [vmem:[#allocation2 + $0xdf0] sm:$0xff] }
 0x1cc   :  { %3597 = vmatpush1.bf16.msra.mxu0 %v9428_v5  ;;  %3761 = vmatpush1.bf16.msra.mxu1 %v9430_v6  ;;  %v491_v5 = vld [vmem:[#allocation2 + $0xc30] sm:$0xff]  ;;  %v488_v6 = vld [vmem:[#allocation2 + $0xc18] sm:$0xff] }
 0x1cd   :  { %3598 = vmatprep.subr.bf16.mxu0 %v9437_v7  ;;  %3762 = vmatprep.subr.bf16.mxu1 %v9439_v8  ;;  %v492_v7 = vld [vmem:[#allocation2 + $0xc38] sm:$0xff]  ;;  %v9492_v8 = vcombine.low %v479_v60, %v483_v61  ;;  %v9501_v10 = vcombine.high %v487_v4, %v491_v5 }
 0x1ce   :  { %v9503_v11 = vcombine.high %v488_v6, %v492_v7  ;;  %v9502_v12 = vcombine.low %v488_v6, %v492_v7  ;;  %v9548_v6 = vcombine.low %v535_v52, %v539_v53 }
 0x1d0   :  { %3599 = vmatpush1.bf16.msra.mxu0 %v9436_v57  ;;  %3763 = vmatpush1.bf16.msra.mxu1 %v9438_v14  ;;  %v499_v57 = vld [vmem:[#allocation2 + $0xc70] sm:$0xff]  ;;  %v496_v14 = vld [vmem:[#allocation2 + $0xc58] sm:$0xff] }
 0x1d1   :  { %3600 = vmatprep.subr.bf16.mxu0 %v9445_v15  ;;  %3764 = vmatprep.subr.bf16.mxu1 %v9447_v16  ;;  %v500_v15 = vld [vmem:[#allocation2 + $0xc78] sm:$0xff]  ;;  %v9500_v16 = vcombine.low %v487_v4, %v491_v5  ;;  %v9509_v17 = vcombine.high %v495_v13, %v499_v57 }
 0x1d2   :  { %v9511_v18 = vcombine.high %v496_v14, %v500_v15  ;;  %v9510_v26 = vcombine.low %v496_v14, %v500_v15  ;;  %v555_v14 = vld [vmem:[#allocation2 + $0xe30] sm:$0xff]  ;;  %v552_v15 = vld [vmem:[#allocation2 + $0xe18] sm:$0xff] }
 0x1d4   :  { %3601 = vmatpush1.bf16.msra.mxu0 %v9444_v20  ;;  %3765 = vmatpush1.bf16.msra.mxu1 %v9446_v21  ;;  %v507_v20 = vld [vmem:[#allocation2 + $0xcb0] sm:$0xff]  ;;  %v504_v21 = vld [vmem:[#allocation2 + $0xc98] sm:$0xff] }
 0x1d5   :  { %3602 = vmatprep.subr.bf16.mxu0 %v9453_v22  ;;  %3766 = vmatprep.subr.bf16.mxu1 %v9455_v24  ;;  %v508_v22 = vld [vmem:[#allocation2 + $0xcb8] sm:$0xff]  ;;  %v9508_v24 = vcombine.low %v495_v13, %v499_v57  ;;  %v9517_v27 = vcombine.high %v503_v19, %v507_v20  ;;  %v551_v57 = vld [vmem:[#allocation2 + $0xe10] sm:$0xff] }
 0x1d6   :  { %v9519_v25 = vcombine.high %v504_v21, %v508_v22 }
 0x1d8   :  { %3603 = vmatpush1.bf16.msra.mxu0 %v9452_v28  ;;  %3767 = vmatpush1.bf16.msra.mxu1 %v9454_v29  ;;  %v515_v28 = vld [vmem:[#allocation2 + $0xcf0] sm:$0xff]  ;;  %v512_v29 = vld [vmem:[#allocation2 + $0xcd8] sm:$0xff] }
 0x1d9   :  { %3604 = vmatprep.subr.bf16.mxu0 %v9461_v30  ;;  %3768 = vmatprep.subr.bf16.mxu1 %v9463_v31  ;;  %v516_v30 = vld [vmem:[#allocation2 + $0xcf8] sm:$0xff]  ;;  %v9516_v31 = vcombine.low %v503_v19, %v507_v20  ;;  %v9525_v32 = vcombine.high %v511_v23, %v515_v28  ;;  %v559_v20 = vld [vmem:[#allocation2 + $0xe50] sm:$0xff] }
 0x1da   :  { %v9527_v33 = vcombine.high %v512_v29, %v516_v30 }
 0x1dc   :  { %3605 = vmatpush1.bf16.msra.mxu0 %v9460_v34  ;;  %3769 = vmatpush1.bf16.msra.mxu1 %v9462_v38  ;;  %v520_v34 = vld [vmem:[#allocation2 + $0xd18] sm:$0xff] }
 0x1dd   :  { %3606 = vmatprep.subr.bf16.mxu0 %v9469_v39  ;;  %3770 = vmatprep.subr.bf16.mxu1 %v9471_v40  ;;  %v524_v38 = vld [vmem:[#allocation2 + $0xd38] sm:$0xff]  ;;  %v9524_v39 = vcombine.low %v511_v23, %v515_v28  ;;  %v9526_v40 = vcombine.low %v512_v29, %v516_v30  ;;  %v567_v28 = vld [vmem:[#allocation2 + $0xe90] sm:$0xff] }
 0x1de   :  { %v571_v29 = vld [vmem:[#allocation2 + $0xeb0] sm:$0xff]  ;;  %v568_v30 = vld [vmem:[#allocation2 + $0xe98] sm:$0xff] }
 0x1e0   :  { %3607 = vmatpush1.bf16.msra.mxu0 %v9468_v47  ;;  %3771 = vmatpush1.bf16.msra.mxu1 %v9470_v48  ;;  %v532_v47 = vld [vmem:[#allocation2 + $0xd78] sm:$0xff]  ;;  %v9532_v48 = vcombine.low %v519_v35, %v523_v37  ;;  %v575_v37 = vld [vmem:[#allocation2 + $0xed0] sm:$0xff] }
 0x1e1   :  { %3608 = vmatprep.subr.bf16.mxu0 %v9477_v49  ;;  %3772 = vmatprep.subr.bf16.mxu1 %v9479_v50  ;;  %v9534_v49 = vcombine.low %v520_v34, %v524_v38  ;;  %v9541_v50 = vcombine.high %v527_v42, %v531_v43  ;;  %v9543_v51 = vcombine.high %v528_v44, %v532_v47 }
 0x1e4   :  { %3609 = vmatpush1.bf16.msra.mxu0 %v9476_v55  ;;  %3773 = vmatpush1.bf16.msra.mxu1 %v9478_v56  ;;  %v540_v55 = vld [vmem:[#allocation2 + $0xdb8] sm:$0xff]  ;;  %v9540_v56 = vcombine.low %v527_v42, %v531_v43 }
 0x1e5   :  { %3610 = vmatprep.subr.bf16.mxu0 %v9485_v58  ;;  %3774 = vmatprep.subr.bf16.mxu1 %v9487_v59  ;;  %v9542_v58 = vcombine.low %v528_v44, %v532_v47  ;;  %v9549_v59 = vcombine.high %v535_v52, %v539_v53  ;;  %v9551_v61 = vcombine.high %v536_v54, %v540_v55  ;;  %v583_v44 = vld [vmem:[#allocation2 + $0xf10] sm:$0xff] }
 0x1e6   :  { %v587_v47 = vld [vmem:[#allocation2 + $0xf30] sm:$0xff] }
 0x1e7   :  { %v9597_v53 = vcombine.high %v583_v44, %v587_v47 }
 0x1e8   :  { %3611 = vmatpush1.bf16.msra.mxu0 %v9484_v0  ;;  %3775 = vmatpush1.bf16.msra.mxu1 %v9486_v1 }
 0x1e9   :  { %3612 = vmatprep.subr.bf16.mxu0 %v9493_v2  ;;  %3776 = vmatprep.subr.bf16.mxu1 %v9495_v3  ;;  %v544_v2 = vld [vmem:[#allocation2 + $0xdd8] sm:$0xff] }
 0x1ea   :  { %v548_v3 = vld [vmem:[#allocation2 + $0xdf8] sm:$0xff] }
 0x1eb   :  { %v9559_v13 = vcombine.high %v544_v2, %v548_v3 }
 0x1ec   :  { %3613 = vmatpush1.bf16.msra.mxu0 %v9492_v8  ;;  %3777 = vmatpush1.bf16.msra.mxu1 %v9494_v9  ;;  %v9550_v9 = vcombine.low %v536_v54, %v540_v55  ;;  %v591_v55 = vld [vmem:[#allocation2 + $0xf50] sm:$0xff] }
 0x1ed   :  { %3623 = vmatprep.subr.bf16.mxu0 %v9501_v10  ;;  %3787 = vmatprep.subr.bf16.mxu1 %v9503_v11  ;;  %v9557_v10 = vcombine.high %v543_v62, %v547_v63 }
 0x1ef   :  { %3615 = vmatmul.mubr.bf16.vlgmr.msra.gmra.mrb[4].mxu0 %v10848_v36  ;;  %3779 = vmatmul.mubr.bf16.vlgmr.msra.gmra.mrb[4].mxu1 %v10848_v36  ;;  %v9518_v36 = vcombine.low %v504_v21, %v508_v22  ;;  %v563_v21 = vld [vmem:[#allocation2 + $0xe70] sm:$0xff]  ;;  %v560_v22 = vld [vmem:[#allocation2 + $0xe58] sm:$0xff] }
 0x1f0   :  { %3624 = vmatpush1.bf16.msra.mxu0 %v9500_v16  ;;  %3788 = vmatpush1.bf16.msra.mxu1 %v9502_v12  ;;  %v556_v16 = vld [vmem:[#allocation2 + $0xe38] sm:$0xff]  ;;  %v9556_v12 = vcombine.low %v543_v62, %v547_v63  ;;  %v10904_v62 = vld [vmem:[%s11615_s23] sm:$0xff] }
 0x1f1   :  { %3625 = vmatprep.subr.bf16.mxu0 %v9509_v17  ;;  %3789 = vmatprep.subr.bf16.mxu1 %v9511_v18  ;;  %v9558_v17 = vcombine.low %v544_v2, %v548_v3  ;;  %v9565_v18 = vcombine.high %v551_v57, %v555_v14  ;;  %v9567_v19 = vcombine.high %v552_v15, %v556_v16 }
 0x1f2   :  { %9621 = vmatprep.mubr.msk.bf16.mxu0 %vm3143_vm0, %v10853_v46  ;;  %9623 = vmatprep.mubr.msk.bf16.mxu1 %vm3143_vm0, %v10853_v46  ;;  %v9535_v46 = vcombine.high %v520_v34, %v524_v38  ;;  %v579_v34 = vld [vmem:[#allocation2 + $0xef0] sm:$0xff]  ;;  %v603_v38 = vlaneseq  ;;  %v9596_v2 = vcombine.low %v583_v44, %v587_v47 }
 0x1f3   :  { %v9589_v42 = vcombine.high %v575_v37, %v579_v34  ;;  %v10561_v44 = vld [vmem:[%s11590_s3 + $0x28] sm:$0xff]  }
 0x1f4   :  { %3626 = vmatpush1.bf16.msra.mxu0 %v9508_v24  ;;  %3790 = vmatpush1.bf16.msra.mxu1 %v9510_v26  ;;  %v564_v24 = vld [vmem:[#allocation2 + $0xe78] sm:$0xff]  ;;  %v9564_v26 = vcombine.low %v551_v57, %v555_v14 }
 0x1f5   :  { %3627 = vmatprep.subr.bf16.mxu0 %v9517_v27  ;;  %3791 = vmatprep.subr.bf16.mxu1 %v9519_v25  ;;  %v9566_v27 = vcombine.low %v552_v15, %v556_v16  ;;  %v9573_v25 = vcombine.high %v559_v20, %v563_v21  ;;  %v9575_v23 = vcombine.high %v560_v22, %v564_v24 }
 0x1f8   :  { %3628 = vmatpush1.bf16.msra.mxu0 %v9516_v31  ;;  %3792 = vmatpush1.bf16.msra.mxu1 %v9518_v36  ;;  %v572_v31 = vld [vmem:[#allocation2 + $0xeb8] sm:$0xff]  ;;  %v9572_v36 = vcombine.low %v559_v20, %v563_v21 }
 0x1f9   :  { %3629 = vmatprep.subr.bf16.mxu0 %v9525_v32  ;;  %3793 = vmatprep.subr.bf16.mxu1 %v9527_v33  ;;  %v9574_v32 = vcombine.low %v560_v22, %v564_v24  ;;  %v9581_v33 = vcombine.high %v567_v28, %v571_v29  ;;  %v9583_v35 = vcombine.high %v568_v30, %v572_v31  ;;  %v10541_v22 = vld [vmem:[%s11590_s3] sm:$0xff]  }
 0x1fa   :  { %v10542_v24 = vld [vmem:[%s11590_s3 + $0x80] sm:$0xff]  }
 0x1fc   :  { %3630 = vmatpush1.bf16.msra.mxu0 %v9524_v39  ;;  %3794 = vmatpush1.bf16.msra.mxu1 %v9526_v40  ;;  %v576_v39 = vld [vmem:[#allocation2 + $0xed8] sm:$0xff] }
 0x1fd   :  { %3631 = vmatprep.subr.bf16.mxu0 %v9533_v41  ;;  %3795 = vmatprep.subr.bf16.mxu1 %v9535_v46  ;;  %v580_v40 = vld [vmem:[#allocation2 + $0xef8] sm:$0xff]  ;;  %v9580_v41 = vcombine.low %v567_v28, %v571_v29  ;;  %v9582_v46 = vcombine.low %v568_v30, %v572_v31  ;;  %v10545_v28 = vld [vmem:[%s11590_s3 + $0x8] sm:$0xff]  }
 0x1fe   :  { %v9591_v43 = vcombine.high %v576_v39, %v580_v40  ;;  %v9590_v52 = vcombine.low %v576_v39, %v580_v40  ;;  %v10546_v29 = vld [vmem:[%s11590_s3 + $0x88] sm:$0xff]   ;;  %v10547_v30 = vld [vmem:[%s11590_s3 + $0x50] sm:$0xff]   ;;  %v10557_v39 = vld [vmem:[%s11590_s3 + $0x20] sm:$0xff]  }
 0x1ff   :  { %v10549_v31 = vld [vmem:[%s11590_s3 + $0x10] sm:$0xff]  }
 0x200   :  { %3632 = vmatpush1.bf16.msra.mxu0 %v9532_v48  ;;  %3796 = vmatpush1.bf16.msra.mxu1 %v9534_v49  ;;  %v10896_v48 = vshrl.u32 %v603_v38, 7  ;;  %v584_v49 = vld [vmem:[#allocation2 + $0xf18] sm:$0xff]  ;;  %v10556_v38 = vld [vmem:[%s11590_s3 + $0xe0] sm:$0xff]  }
 0x201   :  { %3633 = vmatprep.subr.bf16.mxu0 %v9541_v50  ;;  %3797 = vmatprep.subr.bf16.mxu1 %v9543_v51  ;;  %v588_v50 = vld [vmem:[#allocation2 + $0xf38] sm:$0xff]  ;;  %v9588_v51 = vcombine.low %v575_v37, %v579_v34  ;;  %v10554_v37 = vld [vmem:[%s11590_s3 + $0x98] sm:$0xff]   ;;  %v10555_v34 = vld [vmem:[%s11590_s3 + $0x60] sm:$0xff]  }
 0x202   :  { %v10888_v60 = vpop.f32.mrb[0].mxu0  ;;  %v10890_v0 = vpop.f32.mrb[0].mxu1  ;;  %v9599_v54 = vcombine.high %v584_v49, %v588_v50  ;;  %v10907_v63 = vsub.s32 3, %v10896_v48  ;;  %v9598_v3 = vcombine.low %v584_v49, %v588_v50  ;;  %v10979_v40 = vsub.s32 0, %v10896_v48  ;;  %v10562_v49 = vld [vmem:[%s11590_s3 + $0xa8] sm:$0xff]   ;;  %v10563_v50 = vld [vmem:[%s11590_s3 + $0x70] sm:$0xff]  }
 0x203   :  { %v10892_v1 = vpop.f32.mrb[1].mxu0  ;;  %v10894_v4 = vpop.f32.mrb[1].mxu1 }
 0x204   :  { %v3333_v5 = vpop.f32.mrb[2].mxu0  ;;  %3634 = vmatpush1.bf16.msra.mxu0 %v9540_v56  ;;  %v3497_v7 = vpop.f32.mrb[2].mxu1  ;;  %3798 = vmatpush1.bf16.msra.mxu1 %v9542_v58  ;;  %v595_v56 = vld [vmem:[#allocation2 + $0xf70] sm:$0xff]  ;;  %v10899_v58 = vsub.s32 1, %v10896_v48  ;;  %v606_v47 = vrot.slane %v10904_v62, %v10979_v40 }
 0x205   :  { %v3334_v8 = vpop.f32.mrb[3].mxu0  ;;  %3635 = vmatprep.subr.bf16.mxu0 %v9549_v59  ;;  %v3498_v11 = vpop.f32.mrb[3].mxu1  ;;  %3799 = vmatprep.subr.bf16.mxu1 %v9551_v61  ;;  %v592_v59 = vld [vmem:[#allocation2 + $0xf58] sm:$0xff]  ;;  %v9605_v5 = vcombine.high %v591_v55, %v595_v56  ;;  %v599_v7 = vld [vmem:[#allocation2 + $0xf90] sm:$0xff] }
 0x206   :  { %v596_v61 = vld [vmem:[#allocation2 + $0xf78] sm:$0xff]  ;;  %v610_v8 = vrot.slane %v10904_v62, %v10899_v58  ;;  %v9604_v11 = vcombine.low %v591_v55, %v595_v56  ;;  %v9613_v57 = vcombine.high %v599_v7, %v599_v7  ;;  %v9612_v14 = vcombine.low %v599_v7, %v599_v7  ;;  %v10567_v56 = vld [vmem:[%s11590_s3 + $0x78] sm:$0xff]  }
 0x207   :  { %v10566_v55 = vld [vmem:[%s11590_s3 + $0xb0] sm:$0xff]  }
 0x208   :  { %3636 = vmatpush1.bf16.msra.mxu0 %v9548_v6  ;;  %3800 = vmatpush1.bf16.msra.mxu1 %v9550_v9  ;;  %v9607_v6 = vcombine.high %v592_v59, %v596_v61  ;;  %v600_v9 = vld [vmem:[#allocation2 + $0xf98] sm:$0xff] }
 0x209   :  { %3637 = vmatprep.subr.bf16.mxu0 %v9557_v10  ;;  %3801 = vmatprep.subr.bf16.mxu1 %v9559_v13  ;;  %v618_v10 = vrot.slane %v10904_v62, %v10907_v63  ;;  %v9606_v13 = vcombine.low %v592_v59, %v596_v61  ;;  %v9615_v15 = vcombine.high %v600_v9, %v600_v9  ;;  %v10568_v61 = vld [vmem:[%s11590_s3 + $0xf8] sm:$0xff]  }
 0x20a   :  { %v9614_v16 = vcombine.low %v600_v9, %v600_v9  ;;  %v10581_v9 = vld [vmem:[%s11590_s3 + $0x148] sm:$0xff]  }
 0x20c   :  { %3638 = vmatpush1.bf16.msra.mxu0 %v9556_v12  ;;  %3802 = vmatpush1.bf16.msra.mxu1 %v9558_v17  ;;  %v10412_v12 = vadd.f32 %v10892_v1, %v610_v8  ;;  %v10414_v17 = vadd.f32 %v10894_v4, %v618_v10  ;;  %v3167_v20 = vsel %vm3147_vm1, %v9614_v16, 0  ;;  %v10540_v1 = vld [vmem:[%s11590_s3 + $0xc0] sm:$0xff]   ;;  %v10573_v16 = vld [vmem:[%s11590_s3 + $0x190] sm:$0xff]  }
 0x20d   :  { %3639 = vmatprep.subr.bf16.mxu0 %v9565_v18  ;;  %3803 = vmatprep.subr.bf16.mxu1 %v9567_v19  ;;  %v3161_v18 = vsel %vm3147_vm1, %v9612_v14, 0  ;;  %v10539_v19 = vld [vmem:[%s11590_s3 + $0x40] sm:$0xff]   ;;  %v10584_v14 = vld [vmem:[%s11590_s3 + $0x150] sm:$0xff]  }
 0x20e   :  { %v3829_v21 = vmax.f32 %v10412_v12, 0.0  ;;  %v3831_v4 = vmax.f32 %v10414_v17, 0.0  ;;  %v10571_v8 = vld [vmem:[%s11590_s3 + $0x180] sm:$0xff]   ;;  %v10587_v12 = vld [vmem:[%s11590_s3 + $0x158] sm:$0xff]  }
 0x20f   :  { %v10588_v17 = vld [vmem:[%s11590_s3 + $0x118] sm:$0xff]  }
 0x210   :  { %3640 = vmatpush1.bf16.msra.mxu0 %v9564_v26  ;;  %3804 = vmatpush1.bf16.msra.mxu1 %v9566_v27  ;;  %v10543_v26 = vld [vmem:[%s11590_s3 + $0x48] sm:$0xff]   ;;  %v3837_v27 = vpack.c.bf16 %v3829_v21, %v3829_v21 }
 0x211   :  { %3641 = vmatprep.subr.bf16.mxu0 %v9573_v25  ;;  %3805 = vmatprep.subr.bf16.mxu1 %v9575_v23  ;;  %v10544_v25 = vld [vmem:[%s11590_s3 + $0xc8] sm:$0xff]   ;;  %v3839_v23 = vpack.c.bf16 %v3831_v4, %v3831_v4 }
 0x212   :  { %v10593_v21 = vld [vmem:[%s11590_s3 + $0x168] sm:$0xff]  }
 0x213   :  { %v10594_v4 = vld [vmem:[%s11590_s3 + $0x128] sm:$0xff]  }
 0x214   :  { %3642 = vmatpush1.bf16.msra.mxu0 %v9572_v36  ;;  %3806 = vmatpush1.bf16.msra.mxu1 %v9574_v32  ;;  %v10550_v36 = vld [vmem:[%s11590_s3 + $0x90] sm:$0xff]   ;;  %v10551_v32 = vld [vmem:[%s11590_s3 + $0x58] sm:$0xff]  }
 0x215   :  { %3643 = vmatprep.subr.bf16.mxu0 %v9581_v33  ;;  %3807 = vmatprep.subr.bf16.mxu1 %v9583_v35  ;;  %v10552_v33 = vld [vmem:[%s11590_s3 + $0xd8] sm:$0xff]  }
 0x216   :  { %v10553_v35 = vld [vmem:[%s11590_s3 + $0x18] sm:$0xff]  }
 0x218   :  { %3644 = vmatpush1.bf16.msra.mxu0 %v9580_v41  ;;  %3808 = vmatpush1.bf16.msra.mxu1 %v9582_v46  ;;  %v10558_v41 = vld [vmem:[%s11590_s3 + $0xa0] sm:$0xff]   ;;  %v10559_v46 = vld [vmem:[%s11590_s3 + $0x68] sm:$0xff]  }
 0x219   :  { %3645 = vmatprep.subr.bf16.mxu0 %v9589_v42  ;;  %3809 = vmatprep.subr.bf16.mxu1 %v9591_v43  ;;  %v10988_v42 = vsub.s32 2, %v10896_v48  ;;  %v10560_v43 = vld [vmem:[%s11590_s3 + $0xe8] sm:$0xff]  }
 0x21c   :  { %3646 = vmatpush1.bf16.msra.mxu0 %v9588_v51  ;;  %3810 = vmatpush1.bf16.msra.mxu1 %v9590_v52  ;;  %v614_v51 = vrot.slane %v10904_v62, %v10988_v42  ;;  %v10564_v52 = vld [vmem:[%s11590_s3 + $0xf0] sm:$0xff]  }
 0x21d   :  { %3647 = vmatprep.subr.bf16.mxu0 %v9597_v53  ;;  %3811 = vmatprep.subr.bf16.mxu1 %v9599_v54  ;;  %v10565_v53 = vld [vmem:[%s11590_s3 + $0x30] sm:$0xff]   ;;  %v10411_v54 = vadd.f32 %v10888_v60, %v606_v47  ;;  %v10569_v60 = vld [vmem:[%s11590_s3 + $0x38] sm:$0xff]  }
 0x21e   :  { %v10413_v59 = vadd.f32 %v10890_v0, %v614_v51  ;;  %v10578_v0 = vld [vmem:[%s11590_s3 + $0x140] sm:$0xff]  }
 0x220   :  { %3648 = vmatpush1.bf16.msra.mxu0 %v9596_v2  ;;  %3812 = vmatpush1.bf16.msra.mxu1 %v9598_v3  ;;  %v3828_v2 = vmax.f32 %v10411_v54, 0.0  ;;  %v10570_v3 = vld [vmem:[%s11590_s3 + $0xb8] sm:$0xff]  }
 0x221   :  { %3649 = vmatprep.subr.bf16.mxu0 %v9605_v5  ;;  %3813 = vmatprep.subr.bf16.mxu1 %v9607_v6  ;;  %v3830_v5 = vmax.f32 %v10413_v59, 0.0  ;;  %v10579_v6 = vld [vmem:[%s11590_s3 + $0x100] sm:$0xff]  }
 0x222   :  { %v3836_v7 = vpack.c.bf16 %v3828_v2, %v3828_v2 }
 0x223   :  { %v3838_v10 = vpack.c.bf16 %v3830_v5, %v3830_v5 }
 0x224   :  { %3650 = vmatpush1.bf16.msra.mxu0 %v9604_v11  ;;  %3814 = vmatpush1.bf16.msra.mxu1 %v9606_v13  ;;  %v10687_v11 = vmov 0   ;;  %v10582_v13 = vld [vmem:[%s11590_s3 + $0x108] sm:$0xff]  }
 0x225   :  { %9620 = vmatprep.subr.msk.bf16.mxu0 %vm3147_vm1, %v9613_v57  ;;  %9622 = vmatprep.subr.msk.bf16.mxu1 %vm3147_vm1, %v9615_v15  ;;  %v10572_v57 = vld [vmem:[%s11590_s3 + $0x188] sm:$0xff]   ;;  %v10585_v15 = vld [vmem:[%s11590_s3 + $0x110] sm:$0xff]  }
 0x228   :  { %3652 = vmatpush1.bf16.msra.mxu0 %v3161_v18  ;;  %3816 = vmatpush1.bf16.msra.mxu1 %v3167_v20  ;;  %v10574_v18 = vld [vmem:[%s11590_s3 + $0x198] sm:$0xff]   ;;  %v10591_v20 = vld [vmem:[%s11590_s3 + $0x120] sm:$0xff]  }
 0x229   :  { %10285 = vmatprep.subr.bf16.mxu0 %v10539_v19  ;;  %10307 = vmatprep.subr.bf16.mxu1 %v10540_v1  ;;  %v10590_v19 = vld [vmem:[%s11590_s3 + $0x160] sm:$0xff]  }
 0x22a   :  { %v10575_v1 = vld [vmem:[%s11590_s3 + $0x1a0] sm:$0xff]  }
 0x22b   :  { %3656 = vmatmul.mubr.bf16.vlgmr.msra.gmra.mrb[4].mxu0 %v10868_v45  ;;  %3820 = vmatmul.mubr.bf16.vlgmr.msra.gmra.mrb[4].mxu1 %v10868_v45  ;;  %v10548_v45 = vld [vmem:[%s11590_s3 + $0xd0] sm:$0xff]  }
 0x22c   :  { %10286 = vmatpush3.bf16.msra.mxu0 %v10541_v22  ;;  %4389 = vmatprep.mubr.bf16.mxu0 %v3837_v27  ;;  %v10576_v22 = vld [vmem:[%s11590_s3 + $0x1a8] sm:$0xff]   ;;  %v10583_v27 = vld [vmem:[%s11590_s3 + $0x1c0] sm:$0xff]  }
 0x22d   :  { %10308 = vmatpush3.bf16.msra.mxu1 %v10542_v24  ;;  %4429 = vmatprep.mubr.bf16.mxu1 %v3839_v23  ;;  %v10577_v24 = vld [vmem:[%s11590_s3 + $0x1b0] sm:$0xff]  }
 0x22e   :  { %10287 = vmatprep.subr.bf16.mxu0 %v10543_v26  ;;  %10309 = vmatprep.subr.bf16.mxu1 %v10544_v25  ;;  %v10580_v26 = vld [vmem:[%s11590_s3 + $0x1b8] sm:$0xff]   ;;  %v10586_v25 = vld [vmem:[%s11590_s3 + $0x1c8] sm:$0xff]   ;;  %v10589_v23 = vld [vmem:[%s11590_s3 + $0x1d0] sm:$0xff]  }
 0x230   :  { %10288 = vmatpush3.bf16.msra.mxu0 %v10545_v28  ;;  %v10592_v28 = vld [vmem:[%s11590_s3 + $0x1d8] sm:$0xff]  }
 0x231   :  { %10310 = vmatpush3.bf16.msra.mxu1 %v10546_v29  ;;  %10289 = vmatprep.subr.bf16.mxu0 %v10547_v30  ;;  %v10595_v29 = vld [vmem:[%s11590_s3 + $0x1e0] sm:$0xff]   ;;  %v10596_v30 = vld [vmem:[%s11590_s3 + $0x170] sm:$0xff]  }
 0x232   :  { %10311 = vmatprep.subr.bf16.mxu1 %v10548_v45  ;;  %v10597_v45 = vld [vmem:[%s11590_s3 + $0x130] sm:$0xff]  }
 0x234   :  { %10290 = vmatpush3.bf16.msra.mxu0 %v10549_v31  ;;  %v10598_v31 = vld [vmem:[%s11590_s3 + $0x1e8] sm:$0xff]  }
 0x235   :  { %10312 = vmatpush3.bf16.msra.mxu1 %v10550_v36  ;;  %10291 = vmatprep.subr.bf16.mxu0 %v10551_v32  ;;  %v10599_v36 = vld [vmem:[%s11590_s3 + $0x178] sm:$0xff]   ;;  %v10601_v32 = vld [vmem:[%s11590_s3 + $0x1f0] ss:$0 sps:$4 sm:$0xff]  }
 0x236   :  { %10313 = vmatprep.subr.bf16.mxu1 %v10552_v33  ;;  %v10600_v33 = vld [vmem:[%s11590_s3 + $0x138] sm:$0xff]  }
 0x238   :  { %10292 = vmatpush3.bf16.msra.mxu0 %v10553_v35  ;;  %v4355_v35 = vsel %vm3147_vm1, %v10601_v32, 0 }
 0x239   :  { %10314 = vmatpush3.bf16.msra.mxu1 %v10554_v37  ;;  %10293 = vmatprep.subr.bf16.mxu0 %v10555_v34  ;;  %v10688_v37 = vmov 0.0   ;;  %v11141_v34 = vsub.s32 4, %v10896_v48 }
 0x23a   :  { %10315 = vmatprep.subr.bf16.mxu1 %v10556_v38  ;;  %v11144_v38 = vsub.s32 6, %v10896_v48 }
 0x23c   :  { %10294 = vmatpush3.bf16.msra.mxu0 %v10557_v39  ;;  %v11147_v39 = vsub.s32 5, %v10896_v48 }
 0x23d   :  { %10316 = vmatpush3.bf16.msra.mxu1 %v10558_v41  ;;  %10295 = vmatprep.subr.bf16.mxu0 %v10559_v46  ;;  %v11150_v41 = vsub.s32 7, %v10896_v48  ;;  %v622_v46 = vrot.slane %v10904_v62, %v11141_v34 }
 0x23e   :  { %10317 = vmatprep.subr.bf16.mxu1 %v10560_v43  ;;  %v630_v43 = vrot.slane %v10904_v62, %v11144_v38 }
 0x23f   :  { %v634_v47 = vrot.slane %v10904_v62, %v11150_v41 }
 0x240   :  { %10296 = vmatpush3.bf16.msra.mxu0 %v10561_v44  ;;  %v626_v44 = vrot.slane %v10904_v62, %v11147_v39  ;;  %v10602_v62 = vld [vmem:[%s11592_s5] sm:$0xff]  }
 0x241   :  { %10318 = vmatpush3.bf16.msra.mxu1 %v10562_v49  ;;  %10297 = vmatprep.subr.bf16.mxu0 %v10563_v50 }
 0x242   :  { %10319 = vmatprep.subr.bf16.mxu1 %v10564_v52 }
 0x244   :  { %10298 = vmatpush3.bf16.msra.mxu0 %v10565_v53 }
 0x245   :  { %10320 = vmatpush3.bf16.msra.mxu1 %v10566_v55  ;;  %10299 = vmatprep.subr.bf16.mxu0 %v10567_v56 }
 0x246   :  { %10321 = vmatprep.subr.bf16.mxu1 %v10568_v61 }
 0x248   :  { %10300 = vmatpush3.bf16.msra.mxu0 %v10569_v60 }
 0x249   :  { %10322 = vmatpush3.bf16.msra.mxu1 %v10570_v3  ;;  %10329 = vmatprep.subr.bf16.mxu0 %v10578_v0 }
 0x24a   :  { %4477 = vmatprep.subr.bf16.mxu1 %v10687_v11 }
 0x24b   :  { %4390 = vmatmul.mubr.bf16.vlgmr.msra.gmra.mrb[8].mxu0 %v3836_v7 }
 0x24c   :  { %4430 = vmatmul.mubr.bf16.vlgmr.msra.gmra.mrb[8].mxu1 %v3838_v10  ;;  %10330 = vmatpush3.bf16.msra.mxu0 %v10579_v6  ;;  %v10603_v10 = vld [vmem:[%s11592_s5 + $0x8] sm:$0xff]  }
 0x24d   :  { %4478 = vmatpush1.bf16.msra.mxu1 %v10571_v8  ;;  %10331 = vmatprep.subr.bf16.mxu0 %v10581_v9 }
 0x24e   :  { %4479 = vmatprep.subr.bf16.mxu1 %v10687_v11 }
 0x250   :  { %10332 = vmatpush3.bf16.msra.mxu0 %v10582_v13  ;;  %v10604_v13 = vld [vmem:[%s11592_s5 + $0x10] sm:$0xff]  }
 0x251   :  { %4480 = vmatpush1.bf16.msra.mxu1 %v10572_v57  ;;  %10333 = vmatprep.subr.bf16.mxu0 %v10584_v14  ;;  %v10605_v57 = vld [vmem:[%s11592_s5 + $0x18] sm:$0xff]  }
 0x252   :  { %4481 = vmatprep.subr.bf16.mxu1 %v10687_v11 }
 0x254   :  { %10334 = vmatpush3.bf16.msra.mxu0 %v10585_v15 }
 0x255   :  { %4482 = vmatpush1.bf16.msra.mxu1 %v10573_v16  ;;  %10335 = vmatprep.subr.bf16.mxu0 %v10587_v12  ;;  %v9624_v16 = vld [vmem:[%s11591_s4] ss:$0 sm:$0xff] }
 0x256   :  { %4483 = vmatprep.subr.bf16.mxu1 %v10687_v11 }
 0x258   :  { %10336 = vmatpush3.bf16.msra.mxu0 %v10588_v17 }
 0x259   :  { %4484 = vmatpush1.bf16.msra.mxu1 %v10574_v18  ;;  %10337 = vmatprep.subr.bf16.mxu0 %v10590_v19 }
 0x25a   :  { %4485 = vmatprep.subr.bf16.mxu1 %v10687_v11 }
 0x25c   :  { %10338 = vmatpush3.bf16.msra.mxu0 %v10591_v20 }
 0x25d   :  { %4486 = vmatpush1.bf16.msra.mxu1 %v10575_v1  ;;  %10339 = vmatprep.subr.bf16.mxu0 %v10593_v21 }
 0x25e   :  { %4487 = vmatprep.subr.bf16.mxu1 %v10687_v11 }
 0x260   :  { %10340 = vmatpush3.bf16.msra.mxu0 %v10594_v4 }
 0x261   :  { %4488 = vmatpush1.bf16.msra.mxu1 %v10576_v22  ;;  %10341 = vmatprep.subr.bf16.mxu0 %v10596_v30 }
 0x262   :  { %4489 = vmatprep.subr.bf16.mxu1 %v10687_v11 }
 0x264   :  { %10342 = vmatpush3.bf16.msra.mxu0 %v10597_v45 }
 0x265   :  { %4490 = vmatpush1.bf16.msra.mxu1 %v10577_v24  ;;  %10343 = vmatprep.subr.bf16.mxu0 %v10599_v36 }
 0x266   :  { %4491 = vmatprep.subr.bf16.mxu1 %v10687_v11 }
 0x268   :  { %10344 = vmatpush3.bf16.msra.mxu0 %v10600_v33 }
 0x269   :  { %4492 = vmatpush1.bf16.msra.mxu1 %v10580_v26  ;;  %10369 = vmatprep.subr.bf16.mxu0 %v10688_v37  ;;  %v10606_v26 = vld [vmem:[%s11592_s5 + $0x20] sm:$0xff]  }
 0x26a   :  { %4493 = vmatprep.subr.bf16.mxu1 %v10687_v11 }
 0x26d   :  { %4494 = vmatpush1.bf16.msra.mxu1 %v10583_v27  ;;  %v10607_v27 = vld [vmem:[%s11592_s5 + $0x28] sm:$0xff]  }
 0x26e   :  { %4495 = vmatprep.subr.bf16.mxu1 %v10687_v11 }
 0x271   :  { %4496 = vmatpush1.bf16.msra.mxu1 %v10586_v25  ;;  %v10608_v25 = vld [vmem:[%s11592_s5 + $0x30] ss:$0 sps:$4 sm:$0x33]  }
 0x272   :  { %4497 = vmatprep.subr.bf16.mxu1 %v10687_v11 }
 0x275   :  { %4498 = vmatpush1.bf16.msra.mxu1 %v10589_v23  ;;  %v4584_v23 = vsel %vm4582_vm2, %v10608_v25, 0 }
 0x276   :  { %4499 = vmatprep.subr.bf16.mxu1 %v10687_v11 }
 0x279   :  { %4500 = vmatpush1.bf16.msra.mxu1 %v10592_v28 }
 0x27a   :  { %4501 = vmatprep.subr.bf16.mxu1 %v10687_v11 }
 0x27d   :  { %4502 = vmatpush1.bf16.msra.mxu1 %v10595_v29 }
 0x27e   :  { %4503 = vmatprep.subr.bf16.mxu1 %v10687_v11 }
 0x281   :  { %4504 = vmatpush1.bf16.msra.mxu1 %v10598_v31 }
 0x282   :  { %4505 = vmatprep.subr.bf16.mxu1 %v10687_v11 }
 0x285   :  { %4506 = vmatpush1.bf16.msra.mxu1 %v4355_v35 }
 0x286   :  { %10405 = vmatprep.subr.bf16.mxu1 %v10688_v37 }
 0x2fe   :  { %v3657_v49 = vpop.f32.mrb[4].mxu0  ;;  %v3821_v51 = vpop.f32.mrb[4].mxu1 }
 0x2ff   :  { %v10415_v50 = vadd.f32 %v3657_v49, %v622_v46  ;;  %v3659_v52 = vpop.f32.mrb[5].mxu0  ;;  %v10417_v53 = vadd.f32 %v3821_v51, %v630_v43  ;;  %v3823_v48 = vpop.f32.mrb[5].mxu1  ;;  %v10611_v51 = vld [vmem:[%s11594_s7 + $0x10] sm:$0xff]  }
 0x300   :  { %v10416_v54 = vadd.f32 %v3659_v52, %v626_v44  ;;  %v3661_v55 = vpop.f32.mrb[6].mxu0  ;;  %v10418_v59 = vadd.f32 %v3823_v48, %v634_v47  ;;  %v3825_v61 = vpop.f32.mrb[6].mxu1  ;;  %v10609_v47 = vld [vmem:[%s11594_s7] sm:$0xff]   ;;  %v10612_v52 = vld [vmem:[%s11594_s7 + $0x18] sm:$0xff]  }
 0x301   :  { %v3832_v56 = vmax.f32 %v10415_v50, 0.0  ;;  %v3662_v60 = vpop.f32.mrb[7].mxu0  ;;  %v3834_v2 = vmax.f32 %v10417_v53, 0.0  ;;  %v3826_v0 = vpop.f32.mrb[7].mxu1  ;;  %v10610_v50 = vld [vmem:[%s11594_s7 + $0x8] sm:$0xff]   ;;  %v10613_v53 = vld [vmem:[%s11594_s7 + $0x20] sm:$0xff]  }
 0x302   :  { %v3833_v3 = vmax.f32 %v10416_v54, 0.0  ;;  %v3835_v5 = vmax.f32 %v10418_v59, 0.0  ;;  %v10614_v54 = vld [vmem:[%s11594_s7 + $0x28] sm:$0xff]   ;;  %v10615_v48 = vld [vmem:[%s11594_s7 + $0x30] ss:$0 sps:$4 sm:$0x33]  }
 0x303   :  { %v3840_v7 = vpack.c.bf16 %v3832_v56, %v3832_v56  ;;  %v3842_v9 = vpack.c.bf16 %v3834_v2, %v3834_v2  ;;  %v4686_v55 = vsel %vm4582_vm2, %v10615_v48, 0  ;;  %v4738_v56 = vld [vmem:[%s11597_s10] sm:$0x3]  ;;  %v10690_v59 = vmov 65535   ;;  %v4797_v0 = vld [vmem:[%s11599_s12 + $0x8] sm:$0xff] }
 0x304   :  { %v3841_v6 = vpack.c.bf16 %v3833_v3, %v3833_v3  ;;  %v3843_v8 = vpack.c.bf16 %v3835_v5, %v3835_v5  ;;  %v4750_v61 = vsel %vm4749_vm5, 4294967295, %v10690_v59  ;;  %v11242_v3 = vld [vmem:[%s11599_s12 + $0x20] sm:$0xff] }
 0x305   :  { %v4751_v60 = vsel %vm4582_vm2, %v4750_v61, 0  ;;  %v4816_v59 = vld [vmem:[%s11599_s12 + $0xa0] sm:$0xff] }
 0x306   :  { %4469 = vmatprep.mubr.bf16.mxu0 %v3841_v6  ;;  %9688 = vmatprep.mubr.msk.bf16.mxu1 %vm3143_vm0, %v3843_v8  ;;  %v4753_v2 = vand.u32 %v4751_v60, %v4738_v56  ;;  %v4812_v56 = vld [vmem:[%s11599_s12 + $0x80] sm:$0xff] }
 0x307   :  { %4470 = vmatmul.mubr.bf16.vlgmr.msra.gmra.mrb[12].mxu0 %v3840_v7  ;;  %4510 = vmatmul.mubr.bf16.vlgmr.msra.gmra.mrb[12].mxu1 %v3842_v9  ;;  %v4805_v9 = vld [vmem:[%s11599_s12 + $0x48] sm:$0xff]  ;;  %v9726_v60 = vcombine.high %v4812_v56, %v4816_v59 }
 0x308   :  { %10370 = vmatpush3.bf16.msra.mxu0 %v10602_v62  ;;  %10383 = vmatprep.mubr.msk.bf16.mxu0 %vm10689_vm3, %v10688_v37  ;;  %v4801_v62 = vld [vmem:[%s11599_s12 + $0x28] sm:$0xff] }
 0x309   :  { %10371 = vmatprep.subr.bf16.mxu0 %v10688_v37  ;;  %10407 = vmatprep.mubr.msk.bf16.mxu1 %vm10689_vm3, %v10688_v37  ;;  %v9711_v7 = vcombine.low %v4797_v0, %v4801_v62  ;;  %v9712_v8 = vcombine.high %v4797_v0, %v4801_v62  ;;  %v4824_v0 = vld [vmem:[%s11599_s12 + $0xe0] sm:$0xff] }
 0x30a   :  { %10406 = vmatpush3.bf16.msra.mxu1 %v4753_v2  ;;  %v4820_v2 = vld [vmem:[%s11599_s12 + $0xc0] sm:$0xff] }
 0x30b   :  { %v9734_v62 = vcombine.high %v4820_v2, %v4824_v0 }
 0x30c   :  { %10372 = vmatpush3.bf16.msra.mxu0 %v10603_v10  ;;  %v4809_v10 = vld [vmem:[%s11599_s12 + $0x68] sm:$0xff] }
 0x30d   :  { %10373 = vmatprep.subr.bf16.mxu0 %v10688_v37 }
 0x310   :  { %10374 = vmatpush3.bf16.msra.mxu0 %v10604_v13  ;;  %v9720_v13 = vcombine.high %v4805_v9, %v4809_v10 }
 0x311   :  { %10375 = vmatprep.subr.bf16.mxu0 %v10688_v37 }
 0x314   :  { %10376 = vmatpush3.bf16.msra.mxu0 %v10605_v57  ;;  %v9719_v57 = vcombine.low %v4805_v9, %v4809_v10  ;;  %v4840_v9 = vld [vmem:[%s11599_s12 + $0x160] sm:$0xff] }
 0x315   :  { %10377 = vmatprep.subr.bf16.mxu0 %v10688_v37 }
 0x318   :  { %10378 = vmatpush3.bf16.msra.mxu0 %v10606_v26  ;;  %v4841_v26 = vld [vmem:[%s11599_s12 + $0x168] sm:$0xff] }
 0x319   :  { %10379 = vmatprep.subr.bf16.mxu0 %v10688_v37 }
 0x31c   :  { %10380 = vmatpush3.bf16.msra.mxu0 %v10607_v27 }
 0x31d   :  { %10381 = vmatprep.subr.bf16.mxu0 %v10688_v37 }
 0x31e   :  { %v10301_v14 = vpop.f32.mrb[8].mxu0 }
 0x31f   :  { %v10323_v15 = vpop.f32.mrb[8].mxu1  ;;  %v10302_v12 = vpop.f32.mrb[9].mxu0 }
 0x320   :  { %v10303_v17 = vadd.f32 %v10302_v12, %v10301_v14  ;;  %v10324_v18 = vpop.f32.mrb[9].mxu1  ;;  %v10304_v19 = vpop.f32.mrb[10].mxu0  ;;  %10382 = vmatpush3.bf16.msra.mxu0 %v4584_v23  ;;  %v4813_v14 = vld [vmem:[%s11599_s12 + $0x88] sm:$0xff]  ;;  %v9689_v23 = vld [vmem:[%s11593_s6] ss:$0 sm:$0xff] }
 0x321   :  { %v10325_v20 = vadd.f32 %v10324_v18, %v10323_v15  ;;  %v10326_v1 = vpop.f32.mrb[10].mxu1  ;;  %v10305_v21 = vpop.f32.mrb[11].mxu0  ;;  %10387 = vmatprep.subr.bf16.mxu0 %v10688_v37  ;;  %v4817_v15 = vld [vmem:[%s11599_s12 + $0xa8] sm:$0xff] }
 0x322   :  { %v4392_v4 = vadd.f32 %v10303_v17, %v9624_v16  ;;  %v10327_v22 = vpop.f32.mrb[11].mxu1  ;;  %v9728_v16 = vcombine.high %v4813_v14, %v4817_v15  ;;  %v9727_v12 = vcombine.low %v4813_v14, %v4817_v15  ;;  %v4821_v17 = vld [vmem:[%s11599_s12 + $0xc8] sm:$0xff]  ;;  %v4844_v14 = vld [vmem:[%s11599_s12 + $0x180] sm:$0x33] }
 0x323   :  { %v4825_v18 = vld [vmem:[%s11599_s12 + $0xe8] sm:$0xff] }
 0x324   :  { %v4432_v24 = vadd.f32 %v10325_v20, %v4392_v4  ;;  %v9736_v19 = vcombine.high %v4821_v17, %v4825_v18  ;;  %v9735_v20 = vcombine.low %v4821_v17, %v4825_v18  ;;  %v4829_v1 = vld [vmem:[%s11599_s12 + $0x108] sm:$0xff]  ;;  %v9757_v17 = vcombine.low %v4844_v14, %v4844_v14 }
 0x325   :  { %v4833_v21 = vld [vmem:[%s11599_s12 + $0x128] sm:$0xff] }
 0x326   :  { %v9744_v4 = vcombine.high %v4829_v1, %v4833_v21  ;;  %v9743_v22 = vcombine.low %v4829_v1, %v4833_v21  ;;  %v4845_v15 = vld [vmem:[%s11599_s12 + $0x188] sm:$0x33]  ;;  %v4798_v1 = vld [vmem:[%s11599_s12 + $0x10] sm:$0xff] }
 0x327   :  { %v9759_v18 = vcombine.low %v4845_v15, %v4845_v15  ;;  %v4802_v21 = vld [vmem:[%s11599_s12 + $0x30] sm:$0xff] }
 0x3da   :  { %v10345_v28 = vpop.f32.mrb[12].mxu0  ;;  %v4511_v29 = vpop.f32.mrb[12].mxu1 }
 0x3db   :  { %v10346_v30 = vpop.f32.mrb[13].mxu0  ;;  %v4513_v31 = vpop.f32.mrb[13].mxu1 }
 0x3dc   :  { %v10347_v45 = vadd.f32 %v10346_v30, %v10345_v28  ;;  %v10348_v36 = vpop.f32.mrb[14].mxu0  ;;  %v4514_v32 = vpop.f32.mrb[14].mxu1 }
 0x3dd   :  { %v10349_v33 = vpop.f32.mrb[15].mxu0  ;;  %v4515_v46 = vpop.f32.mrb[15].mxu1  ;;  %v9698_v36 = vld [vmem:[%s11595_s8] ss:$0 sm:$0xff]  ;;  %s11616_s8 = sld [smem:[#allocation11_spill]] }
 0x3de   :  { %v4472_v35 = vadd.f32 %v10347_v45, %v4432_v24  ;;  %v4837_v24 = vld [vmem:[%s11599_s12 + $0x148] sm:$0xff] }
 0x3df   :  { %v9752_v27 = vcombine.high %v4837_v24, %v4841_v26  ;;  %v9751_v25 = vcombine.low %v4837_v24, %v4841_v26  ;;  %v9714_v24 = vcombine.high %v4798_v1, %v4802_v21  ;;  %v4803_v26 = vld [vmem:[%s11599_s12 + $0x38] sm:$0xff] }
 0x3e0   :  { %v4512_v43 = vadd.f32 %v4511_v29, %v4472_v35 }
 0x3e2   :  { %v4517_v44 = vmax.f32 %v4512_v43, 0.0 }
 0x3e4   :  { %v4518_v49 = vpack.c.bf16 %v4517_v44, %v4517_v44 }
 0x3e6   :  { %10384 = vmatmul.mubr.msk.bf16.vlgmr.msra.gmra.mrb[16].mxu0 %vm4578_vm4, %v4518_v49 }
 0x3e7   :  { %10388 = vmatpush3.bf16.msra.mxu0 %v10609_v47  ;;  %10401 = vmatprep.mubr.msk.bf16.mxu0 %vm10689_vm3, %v10688_v37 }
 0x3e8   :  { %10389 = vmatprep.subr.bf16.mxu0 %v10688_v37 }
 0x3eb   :  { %10390 = vmatpush3.bf16.msra.mxu0 %v10610_v50 }
 0x3ec   :  { %10391 = vmatprep.subr.bf16.mxu0 %v10688_v37 }
 0x3ef   :  { %10392 = vmatpush3.bf16.msra.mxu0 %v10611_v51 }
 0x3f0   :  { %10393 = vmatprep.subr.bf16.mxu0 %v10688_v37 }
 0x3f3   :  { %10394 = vmatpush3.bf16.msra.mxu0 %v10612_v52  ;;  %v4804_v52 = vld [vmem:[%s11599_s12 + $0x40] sm:$0xff] }
 0x3f4   :  { %10395 = vmatprep.subr.bf16.mxu0 %v10688_v37 }
 0x3f7   :  { %10396 = vmatpush3.bf16.msra.mxu0 %v10613_v53  ;;  %v4808_v53 = vld [vmem:[%s11599_s12 + $0x60] sm:$0xff] }
 0x3f8   :  { %10397 = vmatprep.subr.bf16.mxu0 %v10688_v37  ;;  %v9717_v61 = vcombine.low %v4804_v52, %v4808_v53 }
 0x3fb   :  { %10398 = vmatpush3.bf16.msra.mxu0 %v10614_v54 }
 0x3fc   :  { %10399 = vmatprep.subr.bf16.mxu0 %v10688_v37  ;;  %v11237_v37 = vld [vmem:[%s11599_s12] sm:$0xff] }
 0x3fd   :  { %v9709_v5 = vcombine.low %v11237_v37, %v11242_v3  ;;  %v9710_v6 = vcombine.high %v11237_v37, %v11242_v3  ;;  %v4828_v37 = vld [vmem:[%s11599_s12 + $0x100] sm:$0xff] }
 0x3fe   :  { %v4832_v3 = vld [vmem:[%s11599_s12 + $0x120] sm:$0xff] }
 0x3ff   :  { %10400 = vmatpush3.bf16.msra.mxu0 %v4686_v55  ;;  %5177 = vmatprep.subr.bf16.mxu1 %v9710_v6  ;;  %v9718_v55 = vcombine.high %v4804_v52, %v4808_v53  ;;  %v9725_v6 = vcombine.low %v4812_v56, %v4816_v59  ;;  %v9741_v10 = vcombine.low %v4828_v37, %v4832_v3  ;;  %v4826_v56 = vld [vmem:[%s11599_s12 + $0xf0] sm:$0xff]  ;;  %v4823_v59 = vld [vmem:[%s11599_s12 + $0xd8] sm:$0xff] }
 0x400   :  { %5218 = vmatprep.subr.bf16.mxu0 %v9712_v8  ;;  %v4836_v8 = vld [vmem:[%s11599_s12 + $0x140] sm:$0xff] }
 0x402   :  { %10402 = vmatmul.mubr.msk.bf16.vlgmr.msra.gmra.mrb[20].mxu0 %vm4578_vm4, %v4518_v49  ;;  %v4731_v49 = vld [vmem:[%s11596_s9] sm:$0xff] }
 0x403   :  { %5250 = vmatprep.mubr.bf16.mxu0 %v10687_v11  ;;  %5219 = vmatpush1.bf16.msra.mxu0 %v9711_v7  ;;  %v9742_v7 = vcombine.high %v4828_v37, %v4832_v3  ;;  %v4834_v37 = vld [vmem:[%s11599_s12 + $0x130] sm:$0xff]  ;;  %v4835_v3 = vld [vmem:[%s11599_s12 + $0x138] sm:$0xff] }
 0x404   :  { %5220 = vmatprep.subr.bf16.mxu0 %v9720_v13  ;;  %v9750_v13 = vcombine.high %v4836_v8, %v4840_v9 }
 0x407   :  { %5221 = vmatpush1.bf16.msra.mxu0 %v9719_v57  ;;  %v9749_v57 = vcombine.low %v4836_v8, %v4840_v9 }
 0x408   :  { %5222 = vmatprep.subr.bf16.mxu0 %v9728_v16  ;;  %v9758_v16 = vcombine.high %v4844_v14, %v4844_v14  ;;  %v4843_v14 = vld [vmem:[%s11599_s12 + $0x178] sm:$0xff] }
 0x40b   :  { %5223 = vmatpush1.bf16.msra.mxu0 %v9727_v12  ;;  %v9760_v12 = vcombine.high %v4845_v15, %v4845_v15 }
 0x40c   :  { %5224 = vmatprep.subr.bf16.mxu0 %v9736_v19  ;;  %v5154_v19 = vsel %vm4582_vm2, %v9757_v17, 0 }
 0x40f   :  { %5225 = vmatpush1.bf16.msra.mxu0 %v9735_v20  ;;  %v5160_v20 = vsel %vm4582_vm2, %v9759_v18, 0  ;;  %v4846_v18 = vld [vmem:[%s11599_s12 + $0x190] sm:$0x33] }
 0x410   :  { %5226 = vmatprep.subr.bf16.mxu0 %v9744_v4  ;;  %v4799_v4 = vld [vmem:[%s11599_s12 + $0x18] sm:$0xff] }
 0x413   :  { %5227 = vmatpush1.bf16.msra.mxu0 %v9743_v22  ;;  %v9713_v22 = vcombine.low %v4798_v1, %v4802_v21  ;;  %v9762_v21 = vcombine.high %v4846_v18, %v4846_v18 }
 0x414   :  { %5228 = vmatprep.subr.bf16.mxu0 %v9752_v27  ;;  %v9715_v27 = vcombine.low %v4799_v4, %v4803_v26 }
 0x417   :  { %5229 = vmatpush1.bf16.msra.mxu0 %v9751_v25  ;;  %v9716_v25 = vcombine.high %v4799_v4, %v4803_v26  ;;  %v5357_v26 = vld [vmem:[#allocation4] sm:$0xff] }
 0x418   :  { %9767 = vmatprep.subr.msk.bf16.mxu0 %vm4582_vm2, %v9760_v12 }
 0x41b   :  { %5231 = vmatpush1.bf16.msra.mxu0 %v5160_v20 }
 0x41c   :  { %5300 = vmatprep.subr.bf16.mxu0 %v9716_v25  ;;  %v5358_v25 = vld [vmem:[#allocation4 + $0x8] sm:$0xff] }
 0x4b9   :  { %v4620_v28 = vpop.f32.mrb[16].mxu0 }
 0x4ba   :  { %v4621_v29 = vadd.f32 %v9689_v23, %v4620_v28  ;;  %v10385_v30 = vpop.f32.mrb[17].mxu0  ;;  %v9707_v23 = vld [vmem:[%s11598_s11] ss:$0 sm:$0xff]  ;;  %v4806_v28 = vld [vmem:[%s11599_s12 + $0x50] sm:$0xff] }
 0x4bb   :  { %v4623_v45 = vpop.f32.mrb[18].mxu0  ;;  %v4810_v30 = vld [vmem:[%s11599_s12 + $0x70] sm:$0xff] }
 0x4bc   :  { %4729 = vst.msk [vmem:[%s11603_s16] sm:$0xff] %vm4728_vm6, %v4621_v29  ;;  %v10386_v31 = vpop.f32.mrb[19].mxu0  ;;  %v4807_v45 = vld [vmem:[%s11599_s12 + $0x58] sm:$0xff]  ;;  %v9721_v52 = vcombine.low %v4806_v28, %v4810_v30 }
 0x4bd   :  { %v4811_v31 = vld [vmem:[%s11599_s12 + $0x78] sm:$0xff] }
 0x4be   :  { %v9723_v53 = vcombine.low %v4807_v45, %v4811_v31 }
 0x4d5   :  { %v4722_v32 = vpop.f32.mrb[20].mxu0 }
 0x4d6   :  { %v4723_v33 = vadd.f32 %v9698_v36, %v4722_v32  ;;  %v10403_v35 = vpop.f32.mrb[21].mxu0 }
 0x4d7   :  { %v4725_v46 = vpop.f32.mrb[22].mxu0 }
 0x4d8   :  { %4730 = vst.msk [vmem:[%s11604_s17] sm:$0xff] %vm4728_vm6, %v4723_v33  ;;  %v4732_v43 = vmul.f32 0.5, %v4723_v33  ;;  %v10404_v44 = vpop.f32.mrb[23].mxu0 }
 0x4d9   :  { %v9724_v44 = vcombine.high %v4807_v45, %v4811_v31  ;;  %v5365_v31 = vld [vmem:[#allocation4 + $0x40] sm:$0xff] }
 0x4da   :  { %v4733_v47 = vmul.f32 1.442695, %v4732_v43  ;;  %v9722_v43 = vcombine.high %v4806_v28, %v4810_v30 }
 0x4dc   :  { %10632 = vpow2.f32 %v4733_v47  ;;  %v4814_v47 = vld [vmem:[%s11599_s12 + $0x90] sm:$0xff] }
 0x4e6   :  { %v10633_v50 = vpop.eup %10632 }
 0x4e7   :  { %v4735_v51 = vmul.f32 %v10633_v50, %v4731_v49  ;;  %v4818_v49 = vld [vmem:[%s11599_s12 + $0xb0] sm:$0xff]  ;;  %v4815_v50 = vld [vmem:[%s11599_s12 + $0x98] sm:$0xff] }
 0x4e9   :  { %v4736_v54 = vadd.f32 %v4735_v51, %v4621_v29  ;;  %v4819_v51 = vld [vmem:[%s11599_s12 + $0xb8] sm:$0xff] }
 0x4eb   :  { %v4737_v48 = vpack.c.bf16 %v4736_v54, %v4736_v54  ;;  %v9730_v54 = vcombine.high %v4814_v47, %v4818_v49 }
 0x4ed   :  { %10408 = vmatmul.mubr.msk.bf16.vlgmr.msra.gmra.mrb[16].mxu1 %vm4728_vm6, %v4737_v48  ;;  %v9732_v48 = vcombine.high %v4815_v50, %v4819_v51 }
 0x4ee   :  { %5178 = vmatpush1.bf16.msra.mxu1 %v9709_v5  ;;  %5209 = vmatprep.mubr.bf16.mxu1 %v10687_v11  ;;  %v9733_v5 = vcombine.low %v4820_v2, %v4824_v0  ;;  %v9731_v2 = vcombine.low %v4815_v50, %v4819_v51  ;;  %v5377_v50 = vld [vmem:[#allocation4 + $0xa0] sm:$0xff]  ;;  %v5374_v51 = vld [vmem:[#allocation4 + $0x88] sm:$0xff] }
 0x4ef   :  { %5179 = vmatprep.subr.bf16.mxu1 %v9718_v55  ;;  %v4822_v55 = vld [vmem:[%s11599_s12 + $0xd0] sm:$0xff] }
 0x4f0   :  { %v9738_v0 = vcombine.high %v4822_v55, %v4826_v56 }
 0x4f2   :  { %5180 = vmatpush1.bf16.msra.mxu1 %v9717_v61  ;;  %v4827_v61 = vld [vmem:[%s11599_s12 + $0xf8] sm:$0xff] }
 0x4f3   :  { %5181 = vmatprep.subr.bf16.mxu1 %v9726_v60  ;;  %v9729_v60 = vcombine.low %v4814_v47, %v4818_v49  ;;  %v5373_v49 = vld [vmem:[#allocation4 + $0x80] sm:$0xff] }
 0x4f6   :  { %5182 = vmatpush1.bf16.msra.mxu1 %v9725_v6  ;;  %v9740_v6 = vcombine.high %v4823_v59, %v4827_v61 }
 0x4f7   :  { %5183 = vmatprep.subr.bf16.mxu1 %v9734_v62  ;;  %v4830_v62 = vld [vmem:[%s11599_s12 + $0x110] sm:$0xff] }
 0x4f8   :  { %v9746_v8 = vcombine.high %v4830_v62, %v4834_v37  ;;  %v9745_v15 = vcombine.low %v4830_v62, %v4834_v37  ;;  %v5389_v62 = vld [vmem:[#allocation4 + $0x100] sm:$0xff] }
 0x4f9   :  { %v5393_v37 = vld [vmem:[#allocation4 + $0x120] sm:$0xff] }
 0x4fa   :  { %5184 = vmatpush1.bf16.msra.mxu1 %v9733_v5  ;;  %v9737_v5 = vcombine.low %v4822_v55, %v4826_v56  ;;  %v5381_v56 = vld [vmem:[#allocation4 + $0xc0] sm:$0xff] }
 0x4fb   :  { %5185 = vmatprep.subr.bf16.mxu1 %v9742_v7  ;;  %v9739_v7 = vcombine.low %v4823_v59, %v4827_v61  ;;  %v5385_v59 = vld [vmem:[#allocation4 + $0xe0] sm:$0xff]  ;;  %v5382_v61 = vld [vmem:[#allocation4 + $0xc8] sm:$0xff] }
 0x4fe   :  { %5186 = vmatpush1.bf16.msra.mxu1 %v9741_v10  ;;  %v4838_v10 = vld [vmem:[%s11599_s12 + $0x150] sm:$0xff] }
 0x4ff   :  { %5187 = vmatprep.subr.bf16.mxu1 %v9750_v13  ;;  %v4842_v13 = vld [vmem:[%s11599_s12 + $0x170] sm:$0xff] }
 0x500   :  { %v9754_v12 = vcombine.high %v4838_v10, %v4842_v13  ;;  %v9753_v20 = vcombine.low %v4838_v10, %v4842_v13  ;;  %v5397_v10 = vld [vmem:[#allocation4 + $0x140] sm:$0xff] }
 0x501   :  { %v5401_v13 = vld [vmem:[#allocation4 + $0x160] sm:$0xff] }
 0x502   :  { %5188 = vmatpush1.bf16.msra.mxu1 %v9749_v57  ;;  %v4839_v57 = vld [vmem:[%s11599_s12 + $0x158] sm:$0xff] }
 0x503   :  { %9765 = vmatprep.subr.msk.bf16.mxu1 %vm4582_vm2, %v9758_v16  ;;  %v9756_v17 = vcombine.high %v4839_v57, %v4843_v14  ;;  %v9755_v1 = vcombine.low %v4839_v57, %v4843_v14  ;;  %v5398_v57 = vld [vmem:[#allocation4 + $0x148] sm:$0xff] }
 0x504   :  { %v5402_v14 = vld [vmem:[#allocation4 + $0x168] sm:$0xff] }
 0x506   :  { %5190 = vmatpush1.bf16.msra.mxu1 %v5154_v19  ;;  %v4847_v19 = vld [vmem:[%s11599_s12 + $0x198] sm:$0x33] }
 0x507   :  { %5259 = vmatprep.subr.bf16.mxu1 %v9714_v24  ;;  %v9764_v4 = vcombine.high %v4847_v19, %v4847_v19  ;;  %v9763_v24 = vcombine.low %v4847_v19, %v4847_v19  ;;  %v5409_v19 = vld [vmem:[#allocation4 + $0x1a0] sm:$0xff] }
 0x5c0   :  { %v4789_v29 = vpop.f32.mrb[16].mxu1 }
 0x5c1   :  { %v4790_v36 = vadd.f32 %v9707_v23, %v4789_v29  ;;  %v10409_v32 = vpop.f32.mrb[17].mxu1  ;;  %v5362_v23 = vld [vmem:[#allocation4 + $0x28] sm:$0xff]  ;;  %v5172_v29 = vsel %vm4582_vm2, %v9763_v24, 0 }
 0x5c2   :  { %v4792_v33 = vpop.f32.mrb[18].mxu1  ;;  %v9776_v45 = vcombine.high %v5358_v25, %v5362_v23  ;;  %v5366_v32 = vld [vmem:[#allocation4 + $0x48] sm:$0xff] }
 0x5c3   :  { %v11373_v35 = vpack.c.bf16 %v4790_v36, %v4790_v36  ;;  %v10410_v46 = vpop.f32.mrb[19].mxu1  ;;  %v5369_v36 = vld [vmem:[#allocation4 + $0x60] sm:$0xff]  ;;  %v5370_v33 = vld [vmem:[#allocation4 + $0x68] sm:$0xff] }
 0x5c4   :  { %v9784_v47 = vcombine.high %v5366_v32, %v5370_v33 }
 0x5c5   :  { %9766 = vmatmul.mubr.msk.bf16.vlgmr.msra.gmra.mrb[20].mxu1 %vm4578_vm4, %v11373_v35  ;;  %9768 = vmatmul.mubr.msk.bf16.vlgmr.msra.gmra.mrb[24].mxu0 %vm4578_vm4, %v11373_v35 }
 0x5c6   :  { %5260 = vmatpush1.bf16.msra.mxu1 %v9713_v22  ;;  %5301 = vmatpush1.bf16.msra.mxu0 %v9715_v27  ;;  %v9761_v22 = vcombine.low %v4846_v18, %v4846_v18  ;;  %v5361_v27 = vld [vmem:[#allocation4 + $0x20] sm:$0xff] }
 0x5c7   :  { %5261 = vmatprep.subr.bf16.mxu1 %v9722_v43  ;;  %5302 = vmatprep.subr.bf16.mxu0 %v9724_v44  ;;  %v9774_v30 = vcombine.high %v5357_v26, %v5361_v27  ;;  %v9773_v46 = vcombine.low %v5357_v26, %v5361_v27  ;;  %v9775_v43 = vcombine.low %v5358_v25, %v5362_v23  ;;  %v5405_v18 = vld [vmem:[#allocation4 + $0x180] sm:$0xff]  ;;  %v5414_v25 = vld [vmem:[#allocation4 + $0x1c8] sm:$0xff] }
 0x5c8   :  { %5291 = vmatprep.mubr.bf16.mxu1 %v10687_v11  ;;  %5332 = vmatprep.mubr.bf16.mxu0 %v10687_v11  ;;  %v4831_v11 = vld [vmem:[%s11599_s12 + $0x118] sm:$0xff]  ;;  %v5166_v28 = vsel %vm4582_vm2, %v9761_v22, 0  ;;  %v9782_v44 = vcombine.high %v5365_v31, %v5369_v36  ;;  %v9822_v22 = vcombine.high %v5405_v18, %v5409_v19  ;;  %v5418_v23 = vld [vmem:[#allocation4 + $0x1e8] sm:$0xff] }
 0x5c9   :  { %v9748_v9 = vcombine.high %v4831_v11, %v4835_v3  ;;  %v9747_v16 = vcombine.low %v4831_v11, %v4835_v3  ;;  %v5390_v11 = vld [vmem:[#allocation4 + $0x108] sm:$0xff]  ;;  %v5413_v26 = vld [vmem:[#allocation4 + $0x1c0] sm:$0xff] }
 0x5ca   :  { %5262 = vmatpush1.bf16.msra.mxu1 %v9721_v52  ;;  %5303 = vmatpush1.bf16.msra.mxu0 %v9723_v53  ;;  %v5378_v52 = vld [vmem:[#allocation4 + $0xa8] sm:$0xff]  ;;  %v9781_v53 = vcombine.low %v5365_v31, %v5369_v36  ;;  %v5417_v27 = vld [vmem:[#allocation4 + $0x1e0] sm:$0xff] }
 0x5cb   :  { %5263 = vmatprep.subr.bf16.mxu1 %v9730_v54  ;;  %5304 = vmatprep.subr.bf16.mxu0 %v9732_v48  ;;  %v9783_v54 = vcombine.low %v5366_v32, %v5370_v33  ;;  %v9790_v48 = vcombine.high %v5373_v49, %v5377_v50  ;;  %v9792_v55 = vcombine.high %v5374_v51, %v5378_v52  ;;  %v5394_v3 = vld [vmem:[#allocation4 + $0x128] sm:$0xff]  ;;  %v5421_v31 = vld [vmem:[#allocation4 + $0x200] sm:$0xff] }
 0x5cc   :  { %v5425_v36 = vld [vmem:[#allocation4 + $0x220] sm:$0xff]  ;;  %v5422_v32 = vld [vmem:[#allocation4 + $0x208] sm:$0xff] }
 0x5cd   :  { %v5426_v33 = vld [vmem:[#allocation4 + $0x228] sm:$0xff] }
 0x5ce   :  { %5264 = vmatpush1.bf16.msra.mxu1 %v9729_v60  ;;  %5305 = vmatpush1.bf16.msra.mxu0 %v9731_v2  ;;  %v5386_v60 = vld [vmem:[#allocation4 + $0xe8] sm:$0xff]  ;;  %v9789_v2 = vcombine.low %v5373_v49, %v5377_v50  ;;  %v5429_v49 = vld [vmem:[#allocation4 + $0x240] sm:$0xff] }
 0x5cf   :  { %5265 = vmatprep.subr.bf16.mxu1 %v9738_v0  ;;  %5306 = vmatprep.subr.bf16.mxu0 %v9740_v6  ;;  %v9791_v0 = vcombine.low %v5374_v51, %v5378_v52  ;;  %v9798_v6 = vcombine.high %v5381_v56, %v5385_v59  ;;  %v5433_v50 = vld [vmem:[#allocation4 + $0x260] sm:$0xff]  ;;  %v5430_v51 = vld [vmem:[#allocation4 + $0x248] sm:$0xff] }
 0x5d0   :  { %v5434_v52 = vld [vmem:[#allocation4 + $0x268] sm:$0xff] }
 0x5d2   :  { %5266 = vmatpush1.bf16.msra.mxu1 %v9737_v5  ;;  %5307 = vmatpush1.bf16.msra.mxu0 %v9739_v7  ;;  %v9797_v5 = vcombine.low %v5381_v56, %v5385_v59  ;;  %v9799_v7 = vcombine.low %v5382_v61, %v5386_v60  ;;  %v5437_v56 = vld [vmem:[#allocation4 + $0x280] sm:$0xff] }
 0x5d3   :  { %5267 = vmatprep.subr.bf16.mxu1 %v9746_v8  ;;  %5308 = vmatprep.subr.bf16.mxu0 %v9748_v9  ;;  %v9806_v8 = vcombine.high %v5389_v62, %v5393_v37  ;;  %v9808_v9 = vcombine.high %v5390_v11, %v5394_v3  ;;  %v5441_v59 = vld [vmem:[#allocation4 + $0x2a0] sm:$0xff] }
 0x5d6   :  { %5268 = vmatpush1.bf16.msra.mxu1 %v9745_v15  ;;  %5309 = vmatpush1.bf16.msra.mxu0 %v9747_v16  ;;  %v9805_v15 = vcombine.low %v5389_v62, %v5393_v37  ;;  %v9807_v16 = vcombine.low %v5390_v11, %v5394_v3  ;;  %v5445_v62 = vld [vmem:[#allocation4 + $0x2c0] sm:$0xff]  ;;  %v5446_v11 = vld [vmem:[#allocation4 + $0x2c8] sm:$0xff] }
 0x5d7   :  { %5269 = vmatprep.subr.bf16.mxu1 %v9754_v12  ;;  %5310 = vmatprep.subr.bf16.mxu0 %v9756_v17  ;;  %v9814_v12 = vcombine.high %v5397_v10, %v5401_v13  ;;  %v9816_v17 = vcombine.high %v5398_v57, %v5402_v14  ;;  %v5449_v37 = vld [vmem:[#allocation4 + $0x2e0] sm:$0xff]  ;;  %v5450_v3 = vld [vmem:[#allocation4 + $0x2e8] sm:$0xff] }
 0x5da   :  { %5270 = vmatpush1.bf16.msra.mxu1 %v9753_v20  ;;  %5311 = vmatpush1.bf16.msra.mxu0 %v9755_v1  ;;  %v5406_v20 = vld [vmem:[#allocation4 + $0x188] sm:$0xff] }
 0x5db   :  { %9769 = vmatprep.subr.msk.bf16.mxu1 %vm4582_vm2, %v9762_v21  ;;  %9771 = vmatprep.subr.msk.bf16.mxu0 %vm4582_vm2, %v9764_v4  ;;  %v5410_v1 = vld [vmem:[#allocation4 + $0x1a8] sm:$0xff]  ;;  %v9813_v21 = vcombine.low %v5397_v10, %v5401_v13  ;;  %v9815_v4 = vcombine.low %v5398_v57, %v5402_v14  ;;  %v5453_v10 = vld [vmem:[#allocation4 + $0x300] sm:$0xff] }
 0x5dc   :  { %v9824_v24 = vcombine.high %v5406_v20, %v5410_v1  ;;  %v5457_v13 = vld [vmem:[#allocation4 + $0x320] sm:$0xff]  ;;  %v5454_v57 = vld [vmem:[#allocation4 + $0x308] sm:$0xff] }
 0x5dd   :  { %v5458_v14 = vld [vmem:[#allocation4 + $0x328] sm:$0xff] }
 0x5de   :  { %5272 = vmatpush1.bf16.msra.mxu1 %v5166_v28  ;;  %5313 = vmatpush1.bf16.msra.mxu0 %v5172_v29  ;;  %v9821_v28 = vcombine.low %v5405_v18, %v5409_v19  ;;  %v9823_v29 = vcombine.low %v5406_v20, %v5410_v1  ;;  %v5461_v18 = vld [vmem:[#allocation4 + $0x340] sm:$0xff]  ;;  %v5462_v20 = vld [vmem:[#allocation4 + $0x348] sm:$0xff] }
 0x5df   :  { %8426 = vmatprep.subr.bf16.mxu1 %v9774_v30  ;;  %8590 = vmatprep.subr.bf16.mxu0 %v9776_v45  ;;  %v9830_v30 = vcombine.high %v5413_v26, %v5417_v27  ;;  %v9832_v45 = vcombine.high %v5414_v25, %v5418_v23  ;;  %v5465_v19 = vld [vmem:[#allocation4 + $0x360] sm:$0xff]  ;;  %v5466_v1 = vld [vmem:[#allocation4 + $0x368] sm:$0xff] }
 0x5e1   :  { %9770 = vmatmul.mubr.msk.bf16.vlgmr.msra.gmra.mrb[24].mxu1 %vm4578_vm4, %v11373_v35  ;;  %9772 = vmatmul.mubr.msk.bf16.vlgmr.msra.gmra.mrb[28].mxu0 %vm4578_vm4, %v11373_v35  ;;  %v9800_v35 = vcombine.high %v5382_v61, %v5386_v60  ;;  %v5438_v61 = vld [vmem:[#allocation4 + $0x288] sm:$0xff] }
 0x5e2   :  { %8427 = vmatpush1.bf16.msra.mxu1 %v9773_v46  ;;  %8591 = vmatpush1.bf16.msra.mxu0 %v9775_v43  ;;  %v9829_v46 = vcombine.low %v5413_v26, %v5417_v27  ;;  %v9831_v43 = vcombine.low %v5414_v25, %v5418_v23  ;;  %v5442_v60 = vld [vmem:[#allocation4 + $0x2a8] sm:$0xff]  ;;  %v9877_v26 = vcombine.low %v5461_v18, %v5465_v19  ;;  %v5469_v25 = vld [vmem:[#allocation4 + $0x380] sm:$0xff] }
 0x5e3   :  { %8428 = vmatprep.subr.bf16.mxu1 %v9782_v44  ;;  %8592 = vmatprep.subr.bf16.mxu0 %v9784_v47  ;;  %v9838_v44 = vcombine.high %v5421_v31, %v5425_v36  ;;  %v9840_v47 = vcombine.high %v5422_v32, %v5426_v33  ;;  %v9879_v27 = vcombine.low %v5462_v20, %v5466_v1  ;;  %v5473_v23 = vld [vmem:[#allocation4 + $0x3a0] sm:$0xff] }
 0x5e6   :  { %8429 = vmatpush1.bf16.msra.mxu1 %v9781_v53  ;;  %8593 = vmatpush1.bf16.msra.mxu0 %v9783_v54  ;;  %v9837_v53 = vcombine.low %v5421_v31, %v5425_v36  ;;  %v9839_v54 = vcombine.low %v5422_v32, %v5426_v33  ;;  %v5477_v32 = vld [vmem:[#allocation4 + $0x3c0] sm:$0xff] }
 0x5e7   :  { %8430 = vmatprep.subr.bf16.mxu1 %v9790_v48  ;;  %8594 = vmatprep.subr.bf16.mxu0 %v9792_v55  ;;  %v9846_v48 = vcombine.high %v5429_v49, %v5433_v50  ;;  %v9848_v55 = vcombine.high %v5430_v51, %v5434_v52  ;;  %v5481_v33 = vld [vmem:[#allocation4 + $0x3e0] sm:$0xff] }
 0x5ea   :  { %8431 = vmatpush1.bf16.msra.mxu1 %v9789_v2  ;;  %8595 = vmatpush1.bf16.msra.mxu0 %v9791_v0  ;;  %v9845_v2 = vcombine.low %v5429_v49, %v5433_v50  ;;  %v9847_v0 = vcombine.low %v5430_v51, %v5434_v52  ;;  %v5485_v51 = vld [vmem:[#allocation4 + $0x400] sm:$0xff] }
 0x5eb   :  { %8432 = vmatprep.subr.bf16.mxu1 %v9798_v6  ;;  %8596 = vmatprep.subr.bf16.mxu0 %v9800_v35  ;;  %v9854_v6 = vcombine.high %v5437_v56, %v5441_v59  ;;  %v9856_v35 = vcombine.high %v5438_v61, %v5442_v60  ;;  %v5489_v52 = vld [vmem:[#allocation4 + $0x420] sm:$0xff] }
 0x5ee   :  { %8433 = vmatpush1.bf16.msra.mxu1 %v9797_v5  ;;  %8597 = vmatpush1.bf16.msra.mxu0 %v9799_v7  ;;  %v9853_v5 = vcombine.low %v5437_v56, %v5441_v59  ;;  %v9855_v7 = vcombine.low %v5438_v61, %v5442_v60  ;;  %v11446_v61 = vld [vmem:[%s11600_s13] sm:$0xff] }
 0x5ef   :  { %8434 = vmatprep.subr.bf16.mxu1 %v9806_v8  ;;  %8598 = vmatprep.subr.bf16.mxu0 %v9808_v9  ;;  %v9862_v8 = vcombine.high %v5445_v62, %v5449_v37  ;;  %v9864_v9 = vcombine.high %v5446_v11, %v5450_v3  ;;  %v4853_v60 = vrot.slane %v11446_v61, %v10979_v40 }
 0x5f2   :  { %8435 = vmatpush1.bf16.msra.mxu1 %v9805_v15  ;;  %8599 = vmatpush1.bf16.msra.mxu0 %v9807_v16  ;;  %v9861_v15 = vcombine.low %v5445_v62, %v5449_v37  ;;  %v9863_v16 = vcombine.low %v5446_v11, %v5450_v3 }
 0x5f3   :  { %8436 = vmatprep.subr.bf16.mxu1 %v9814_v12  ;;  %8600 = vmatprep.subr.bf16.mxu0 %v9816_v17  ;;  %v9870_v12 = vcombine.high %v5453_v10, %v5457_v13  ;;  %v9872_v17 = vcombine.high %v5454_v57, %v5458_v14 }
 0x5f6   :  { %8437 = vmatpush1.bf16.msra.mxu1 %v9813_v21  ;;  %8601 = vmatpush1.bf16.msra.mxu0 %v9815_v4  ;;  %v9869_v21 = vcombine.low %v5453_v10, %v5457_v13  ;;  %v9871_v4 = vcombine.low %v5454_v57, %v5458_v14  ;;  %v5493_v14 = vld [vmem:[#allocation4 + $0x440] sm:$0xff] }
 0x5f7   :  { %8438 = vmatprep.subr.bf16.mxu1 %v9822_v22  ;;  %8602 = vmatprep.subr.bf16.mxu0 %v9824_v24  ;;  %v9878_v22 = vcombine.high %v5461_v18, %v5465_v19  ;;  %v9880_v24 = vcombine.high %v5462_v20, %v5466_v1  ;;  %v5501_v20 = vld [vmem:[#allocation4 + $0x480] sm:$0xff] }
 0x5fa   :  { %8439 = vmatpush1.bf16.msra.mxu1 %v9821_v28  ;;  %8603 = vmatpush1.bf16.msra.mxu0 %v9823_v29  ;;  %v5470_v28 = vld [vmem:[#allocation4 + $0x388] sm:$0xff]  ;;  %v9886_v29 = vcombine.high %v5469_v25, %v5473_v23 }
 0x5fb   :  { %8440 = vmatprep.subr.bf16.mxu1 %v9830_v30  ;;  %8604 = vmatprep.subr.bf16.mxu0 %v9832_v45  ;;  %v5474_v30 = vld [vmem:[#allocation4 + $0x3a8] sm:$0xff]  ;;  %v9885_v45 = vcombine.low %v5469_v25, %v5473_v23 }
 0x5fc   :  { %v9887_v31 = vcombine.low %v5470_v28, %v5474_v30  ;;  %v9888_v36 = vcombine.high %v5470_v28, %v5474_v30  ;;  %v5513_v30 = vld [vmem:[#allocation4 + $0x4e0] sm:$0xff] }
 0x5fe   :  { %8441 = vmatpush1.bf16.msra.mxu1 %v9829_v46  ;;  %8605 = vmatpush1.bf16.msra.mxu0 %v9831_v43  ;;  %v5478_v46 = vld [vmem:[#allocation4 + $0x3c8] sm:$0xff]  ;;  %v9894_v43 = vcombine.high %v5477_v32, %v5481_v33 }
 0x5ff   :  { %8442 = vmatprep.subr.bf16.mxu1 %v9838_v44  ;;  %8606 = vmatprep.subr.bf16.mxu0 %v9840_v47  ;;  %v5482_v44 = vld [vmem:[#allocation4 + $0x3e8] sm:$0xff]  ;;  %v9893_v47 = vcombine.low %v5477_v32, %v5481_v33 }
 0x600   :  { %v9895_v49 = vcombine.low %v5478_v46, %v5482_v44  ;;  %v9896_v50 = vcombine.high %v5478_v46, %v5482_v44  ;;  %v5521_v44 = vld [vmem:[#allocation4 + $0x520] sm:$0xff] }
 0x602   :  { %8443 = vmatpush1.bf16.msra.mxu1 %v9837_v53  ;;  %8607 = vmatpush1.bf16.msra.mxu0 %v9839_v54  ;;  %v5486_v53 = vld [vmem:[#allocation4 + $0x408] sm:$0xff]  ;;  %v9902_v54 = vcombine.high %v5485_v51, %v5489_v52 }
 0x603   :  { %8444 = vmatprep.subr.bf16.mxu1 %v9846_v48  ;;  %8608 = vmatprep.subr.bf16.mxu0 %v9848_v55  ;;  %v5490_v48 = vld [vmem:[#allocation4 + $0x428] sm:$0xff]  ;;  %v9901_v55 = vcombine.low %v5485_v51, %v5489_v52 }
 0x604   :  { %v9903_v56 = vcombine.low %v5486_v53, %v5490_v48  ;;  %v9904_v59 = vcombine.high %v5486_v53, %v5490_v48  ;;  %v5529_v48 = vld [vmem:[#allocation4 + $0x560] sm:$0xff] }
 0x606   :  { %8445 = vmatpush1.bf16.msra.mxu1 %v9845_v2  ;;  %8609 = vmatpush1.bf16.msra.mxu0 %v9847_v0  ;;  %v4857_v2 = vrot.slane %v11446_v61, %v10899_v58  ;;  %v4865_v0 = vrot.slane %v11446_v61, %v10907_v63 }
 0x607   :  { %8446 = vmatprep.subr.bf16.mxu1 %v9854_v6  ;;  %8610 = vmatprep.subr.bf16.mxu0 %v9856_v35 }
 0x60a   :  { %8447 = vmatpush1.bf16.msra.mxu1 %v9853_v5  ;;  %8611 = vmatpush1.bf16.msra.mxu0 %v9855_v7 }
 0x60b   :  { %8448 = vmatprep.subr.bf16.mxu1 %v9862_v8  ;;  %8612 = vmatprep.subr.bf16.mxu0 %v9864_v9 }
 0x60e   :  { %8449 = vmatpush1.bf16.msra.mxu1 %v9861_v15  ;;  %8613 = vmatpush1.bf16.msra.mxu0 %v9863_v16  ;;  %v5497_v16 = vld [vmem:[#allocation4 + $0x460] sm:$0xff] }
 0x60f   :  { %8450 = vmatprep.subr.bf16.mxu1 %v9870_v12  ;;  %8614 = vmatprep.subr.bf16.mxu0 %v9872_v17  ;;  %v5494_v12 = vld [vmem:[#allocation4 + $0x448] sm:$0xff]  ;;  %v9910_v1 = vcombine.high %v5493_v14, %v5497_v16 }
 0x610   :  { %v5498_v17 = vld [vmem:[#allocation4 + $0x468] sm:$0xff] }
 0x611   :  { %v9911_v25 = vcombine.low %v5494_v12, %v5498_v17 }
 0x612   :  { %8451 = vmatpush1.bf16.msra.mxu1 %v9869_v21  ;;  %8615 = vmatpush1.bf16.msra.mxu0 %v9871_v4  ;;  %v9912_v21 = vcombine.high %v5494_v12, %v5498_v17  ;;  %v5505_v4 = vld [vmem:[#allocation4 + $0x4a0] sm:$0xff] }
 0x613   :  { %8452 = vmatprep.subr.bf16.mxu1 %v9878_v22  ;;  %8616 = vmatprep.subr.bf16.mxu0 %v9880_v24  ;;  %v5502_v22 = vld [vmem:[#allocation4 + $0x488] sm:$0xff]  ;;  %v9918_v23 = vcombine.high %v5501_v20, %v5505_v4 }
 0x614   :  { %v5506_v24 = vld [vmem:[#allocation4 + $0x4a8] sm:$0xff] }
 0x615   :  { %v9920_v28 = vcombine.high %v5502_v22, %v5506_v24  ;;  %v9919_v32 = vcombine.low %v5502_v22, %v5506_v24 }
 0x616   :  { %8453 = vmatpush1.bf16.msra.mxu1 %v9877_v26  ;;  %8617 = vmatpush1.bf16.msra.mxu0 %v9879_v27  ;;  %v9909_v27 = vcombine.low %v5493_v14, %v5497_v16  ;;  %v5542_v14 = vld [vmem:[#allocation4 + $0x5c8] sm:$0xff] }
 0x617   :  { %8454 = vmatprep.subr.bf16.mxu1 %v9886_v29  ;;  %8618 = vmatprep.subr.bf16.mxu0 %v9888_v36  ;;  %v5509_v29 = vld [vmem:[#allocation4 + $0x4c0] sm:$0xff]  ;;  %v9917_v36 = vcombine.low %v5501_v20, %v5505_v4 }
 0x618   :  { %v9926_v33 = vcombine.high %v5509_v29, %v5513_v30 }
 0x61a   :  { %8455 = vmatpush1.bf16.msra.mxu1 %v9885_v45  ;;  %8619 = vmatpush1.bf16.msra.mxu0 %v9887_v31  ;;  %v5510_v45 = vld [vmem:[#allocation4 + $0x4c8] sm:$0xff] }
 0x61b   :  { %8456 = vmatprep.subr.bf16.mxu1 %v9894_v43  ;;  %8620 = vmatprep.subr.bf16.mxu0 %v9896_v50  ;;  %v5514_v31 = vld [vmem:[#allocation4 + $0x4e8] sm:$0xff]  ;;  %v5517_v43 = vld [vmem:[#allocation4 + $0x500] sm:$0xff]  ;;  %v9925_v50 = vcombine.low %v5509_v29, %v5513_v30 }
 0x61c   :  { %v9928_v46 = vcombine.high %v5510_v45, %v5514_v31  ;;  %v9927_v51 = vcombine.low %v5510_v45, %v5514_v31  ;;  %v9934_v52 = vcombine.high %v5517_v43, %v5521_v44  ;;  %v5554_v29 = vld [vmem:[#allocation4 + $0x628] sm:$0xff] }
 0x61e   :  { %8457 = vmatpush1.bf16.msra.mxu1 %v9893_v47  ;;  %8621 = vmatpush1.bf16.msra.mxu0 %v9895_v49  ;;  %v5518_v47 = vld [vmem:[#allocation4 + $0x508] sm:$0xff] }
 0x61f   :  { %8467 = vmatprep.subr.bf16.mxu1 %v9902_v54  ;;  %8631 = vmatprep.subr.bf16.mxu0 %v9904_v59  ;;  %v5522_v49 = vld [vmem:[#allocation4 + $0x528] sm:$0xff]  ;;  %v5525_v54 = vld [vmem:[#allocation4 + $0x540] sm:$0xff]  ;;  %v9933_v59 = vcombine.low %v5517_v43, %v5521_v44 }
 0x620   :  { %v9936_v53 = vcombine.high %v5518_v47, %v5522_v49  ;;  %v5562_v43 = vld [vmem:[#allocation4 + $0x668] sm:$0xff] }
 0x698   :  { %v5211_v6 = vpop.f32.mrb[20].mxu1  ;;  %v11454_v35 = vpop.f32.mrb[24].mxu0 }
 0x699   :  { %v5212_v62 = vadd.f32 %v5211_v6, %v4853_v60  ;;  %v5213_v37 = vpop.f32.mrb[21].mxu1  ;;  %v5254_v11 = vpop.f32.mrb[25].mxu0  ;;  %v9935_v60 = vcombine.low %v5518_v47, %v5522_v49  ;;  %v5533_v6 = vld [vmem:[#allocation4 + $0x580] sm:$0xff] }
 0x69a   :  { %v5214_v3 = vadd.f32 %v5213_v37, %v4857_v2  ;;  %v5255_v5 = vadd.f32 %v5254_v11, %v4865_v0  ;;  %v5215_v7 = vpop.f32.mrb[22].mxu1  ;;  %v5256_v8 = vpop.f32.mrb[26].mxu0  ;;  %v9942_v2 = vcombine.high %v5525_v54, %v5529_v48  ;;  %v5534_v37 = vld [vmem:[#allocation4 + $0x588] sm:$0xff] }
 0x69b   :  { %v5341_v9 = vmax.f32 %v5212_v62, 0.0  ;;  %v5216_v10 = vpop.f32.mrb[23].mxu1  ;;  %v5257_v13 = vpop.f32.mrb[27].mxu0  ;;  %v5537_v62 = vld [vmem:[#allocation4 + $0x5a0] sm:$0xff]  ;;  %v5538_v11 = vld [vmem:[#allocation4 + $0x5a8] sm:$0xff] }
 0x69c   :  { %v5342_v57 = vmax.f32 %v5214_v3, 0.0  ;;  %v5344_v15 = vmax.f32 %v5255_v5, 0.0  ;;  %v9941_v3 = vcombine.low %v5525_v54, %v5529_v48  ;;  %v9950_v7 = vcombine.high %v5533_v6, %v5537_v62  ;;  %v5570_v54 = vld [vmem:[#allocation4 + $0x6a8] sm:$0xff] }
 0x69d   :  { %v11458_v19 = vpack.c.bf16 %v5341_v9, %v5341_v9  ;;  %v9952_v8 = vcombine.high %v5534_v37, %v5538_v11  ;;  %v5541_v9 = vld [vmem:[#allocation4 + $0x5c0] sm:$0xff] }
 0x69e   :  { %v11456_v18 = vpack.c.bf16 %v5342_v57, %v5342_v57  ;;  %v11462_v26 = vpack.c.bf16 %v5344_v15, %v5344_v15  ;;  %v5545_v57 = vld [vmem:[#allocation4 + $0x5e0] sm:$0xff]  ;;  %v5546_v15 = vld [vmem:[#allocation4 + $0x5e8] sm:$0xff] }
 0x69f   :  { %v9958_v24 = vcombine.high %v5541_v9, %v5545_v57  ;;  %v9957_v30 = vcombine.low %v5541_v9, %v5545_v57  ;;  %v9959_v45 = vcombine.low %v5542_v14, %v5546_v15  ;;  %v5586_v9 = vld [vmem:[#allocation4 + $0x728] sm:$0xff] }
 0x6a0   :  { %8458 = vmatprep.mubr.bf16.mxu1 %v11456_v18  ;;  %8622 = vmatprep.mubr.bf16.mxu0 %v11456_v18 }
 0x6a1   :  { %8459 = vmatmul.mubr.bf16.vlgmr.msra.gmra.mrb[28].mxu1 %v11458_v19  ;;  %8623 = vmatmul.mubr.bf16.vlgmr.msra.gmra.mrb[32].mxu0 %v11458_v19 }
 0x6a2   :  { %8468 = vmatpush1.bf16.msra.mxu1 %v9901_v55  ;;  %8632 = vmatpush1.bf16.msra.mxu0 %v9903_v56  ;;  %v5526_v55 = vld [vmem:[#allocation4 + $0x548] sm:$0xff] }
 0x6a3   :  { %8499 = vmatprep.mubr.bf16.mxu1 %v11462_v26  ;;  %8663 = vmatprep.mubr.bf16.mxu0 %v11462_v26  ;;  %v5530_v56 = vld [vmem:[#allocation4 + $0x568] sm:$0xff] }
 0x6a4   :  { %8469 = vmatprep.subr.bf16.mxu1 %v9910_v1  ;;  %8633 = vmatprep.subr.bf16.mxu0 %v9912_v21  ;;  %v9944_v0 = vcombine.high %v5526_v55, %v5530_v56  ;;  %v9943_v5 = vcombine.low %v5526_v55, %v5530_v56  ;;  %v9949_v1 = vcombine.low %v5533_v6, %v5537_v62  ;;  %v5578_v6 = vld [vmem:[#allocation4 + $0x6e8] sm:$0xff] }
 0x6a5   :  { %v9951_v21 = vcombine.low %v5534_v37, %v5538_v11 }
 0x6a6   :  { %8470 = vmatpush1.bf16.msra.mxu1 %v9909_v27  ;;  %8634 = vmatpush1.bf16.msra.mxu0 %v9911_v25  ;;  %v9960_v27 = vcombine.high %v5542_v14, %v5546_v15  ;;  %v5549_v25 = vld [vmem:[#allocation4 + $0x600] sm:$0xff] }
 0x6a7   :  { %8471 = vmatprep.subr.bf16.mxu1 %v9918_v23  ;;  %8635 = vmatprep.subr.bf16.mxu0 %v9920_v28  ;;  %v5553_v23 = vld [vmem:[#allocation4 + $0x620] sm:$0xff]  ;;  %v5550_v28 = vld [vmem:[#allocation4 + $0x608] sm:$0xff] }
 0x6a8   :  { %v9966_v31 = vcombine.high %v5549_v25, %v5553_v23  ;;  %v9965_v44 = vcombine.low %v5549_v25, %v5553_v23  ;;  %v9967_v47 = vcombine.low %v5550_v28, %v5554_v29  ;;  %v5597_v23 = vld [vmem:[#allocation4 + $0x780] sm:$0xff] }
 0x6aa   :  { %8472 = vmatpush1.bf16.msra.mxu1 %v9917_v36  ;;  %8636 = vmatpush1.bf16.msra.mxu0 %v9919_v32  ;;  %v9968_v36 = vcombine.high %v5550_v28, %v5554_v29  ;;  %v5557_v32 = vld [vmem:[#allocation4 + $0x640] sm:$0xff]  ;;  %v5598_v29 = vld [vmem:[#allocation4 + $0x788] sm:$0xff] }
 0x6ab   :  { %8473 = vmatprep.subr.bf16.mxu1 %v9926_v33  ;;  %8637 = vmatprep.subr.bf16.mxu0 %v9928_v46  ;;  %v5561_v33 = vld [vmem:[#allocation4 + $0x660] sm:$0xff]  ;;  %v5558_v46 = vld [vmem:[#allocation4 + $0x648] sm:$0xff] }
 0x6ac   :  { %v9974_v49 = vcombine.high %v5557_v32, %v5561_v33  ;;  %v9973_v48 = vcombine.low %v5557_v32, %v5561_v33  ;;  %v9975_v55 = vcombine.low %v5558_v46, %v5562_v43  ;;  %v5601_v28 = vld [vmem:[#allocation4 + $0x7a0] sm:$0xff] }
 0x6ad   :  { %v10014_v32 = vcombine.high %v5597_v23, %v5601_v28 }
 0x6ae   :  { %8474 = vmatpush1.bf16.msra.mxu1 %v9925_v50  ;;  %8638 = vmatpush1.bf16.msra.mxu0 %v9927_v51  ;;  %v9976_v50 = vcombine.high %v5558_v46, %v5562_v43  ;;  %v5565_v51 = vld [vmem:[#allocation4 + $0x680] sm:$0xff]  ;;  %v4873_v43 = vrot.slane %v11446_v61, %v11147_v39 }
 0x6af   :  { %8475 = vmatprep.subr.bf16.mxu1 %v9934_v52  ;;  %8639 = vmatprep.subr.bf16.mxu0 %v9936_v53  ;;  %v5569_v52 = vld [vmem:[#allocation4 + $0x6a0] sm:$0xff]  ;;  %v5566_v53 = vld [vmem:[#allocation4 + $0x688] sm:$0xff] }
 0x6b0   :  { %v9982_v56 = vcombine.high %v5565_v51, %v5569_v52  ;;  %v9981_v62 = vcombine.low %v5565_v51, %v5569_v52  ;;  %v9983_v37 = vcombine.low %v5566_v53, %v5570_v54  ;;  %v5605_v46 = vld [vmem:[#allocation4 + $0x7c0] sm:$0xff] }
 0x6b2   :  { %8476 = vmatpush1.bf16.msra.mxu1 %v9933_v59  ;;  %8640 = vmatpush1.bf16.msra.mxu0 %v9935_v60  ;;  %v9984_v59 = vcombine.high %v5566_v53, %v5570_v54  ;;  %v5573_v60 = vld [vmem:[#allocation4 + $0x6c0] sm:$0xff] }
 0x6b3   :  { %8477 = vmatprep.subr.bf16.mxu1 %v9942_v2  ;;  %8641 = vmatprep.subr.bf16.mxu0 %v9944_v0  ;;  %v5577_v2 = vld [vmem:[#allocation4 + $0x6e0] sm:$0xff]  ;;  %v5574_v0 = vld [vmem:[#allocation4 + $0x6c8] sm:$0xff] }
 0x6b4   :  { %v11468_v10 = vpop.f32.mrb[24].mxu1  ;;  %v11470_v13 = vpop.f32.mrb[28].mxu0  ;;  %v9990_v11 = vcombine.high %v5573_v60, %v5577_v2  ;;  %v9989_v57 = vcombine.low %v5573_v60, %v5577_v2  ;;  %v9991_v14 = vcombine.low %v5574_v0, %v5578_v6  ;;  %v5618_v60 = vld [vmem:[#allocation4 + $0x828] sm:$0xff] }
 0x6b5   :  { %v11472_v16 = vpop.f32.mrb[25].mxu1  ;;  %v11474_v12 = vpop.f32.mrb[29].mxu0 }
 0x6b6   :  { %v5297_v17 = vpop.f32.mrb[26].mxu1  ;;  %v5338_v20 = vpop.f32.mrb[30].mxu0  ;;  %8478 = vmatpush1.bf16.msra.mxu1 %v9941_v3  ;;  %8642 = vmatpush1.bf16.msra.mxu0 %v9943_v5  ;;  %v9992_v3 = vcombine.high %v5574_v0, %v5578_v6  ;;  %v5581_v5 = vld [vmem:[#allocation4 + $0x700] sm:$0xff] }
 0x6b7   :  { %v5298_v4 = vpop.f32.mrb[27].mxu1  ;;  %v5339_v22 = vpop.f32.mrb[31].mxu0  ;;  %8479 = vmatprep.subr.bf16.mxu1 %v9950_v7  ;;  %8643 = vmatprep.subr.bf16.mxu0 %v9952_v8  ;;  %v5585_v7 = vld [vmem:[#allocation4 + $0x720] sm:$0xff]  ;;  %v5582_v8 = vld [vmem:[#allocation4 + $0x708] sm:$0xff] }
 0x6b8   :  { %v9998_v15 = vcombine.high %v5581_v5, %v5585_v7  ;;  %v10000_v17 = vcombine.high %v5582_v8, %v5586_v9  ;;  %v5589_v20 = vld [vmem:[#allocation4 + $0x740] sm:$0xff]  ;;  %v5594_v4 = vld [vmem:[#allocation4 + $0x768] sm:$0xff]  ;;  %v9997_v22 = vcombine.low %v5581_v5, %v5585_v7 }
 0x6b9   :  { %v5622_v5 = vld [vmem:[#allocation4 + $0x848] sm:$0xff] }
 0x6ba   :  { %8480 = vmatpush1.bf16.msra.mxu1 %v9949_v1  ;;  %8644 = vmatpush1.bf16.msra.mxu0 %v9951_v21  ;;  %v5593_v1 = vld [vmem:[#allocation4 + $0x760] sm:$0xff]  ;;  %v5590_v21 = vld [vmem:[#allocation4 + $0x748] sm:$0xff] }
 0x6bb   :  { %8481 = vmatprep.subr.bf16.mxu1 %v9958_v24  ;;  %8645 = vmatprep.subr.bf16.mxu0 %v9960_v27  ;;  %v9999_v24 = vcombine.low %v5582_v8, %v5586_v9  ;;  %v10006_v27 = vcombine.high %v5589_v20, %v5593_v1  ;;  %v10008_v25 = vcombine.high %v5590_v21, %v5594_v4  ;;  %v5626_v7 = vld [vmem:[#allocation4 + $0x868] sm:$0xff] }
 0x6be   :  { %8482 = vmatpush1.bf16.msra.mxu1 %v9957_v30  ;;  %8646 = vmatpush1.bf16.msra.mxu0 %v9959_v45  ;;  %v5602_v30 = vld [vmem:[#allocation4 + $0x7a8] sm:$0xff]  ;;  %v10005_v45 = vcombine.low %v5589_v20, %v5593_v1  ;;  %v5633_v20 = vld [vmem:[#allocation4 + $0x8a0] sm:$0xff] }
 0x6bf   :  { %8483 = vmatprep.subr.bf16.mxu1 %v9966_v31  ;;  %8647 = vmatprep.subr.bf16.mxu0 %v9968_v36  ;;  %v10007_v31 = vcombine.low %v5590_v21, %v5594_v4  ;;  %v4861_v36 = vrot.slane %v11446_v61, %v10988_v42  ;;  %v10016_v33 = vcombine.high %v5598_v29, %v5602_v30  ;;  %v5630_v1 = vld [vmem:[#allocation4 + $0x888] sm:$0xff] }
 0x6c0   :  { %v10015_v51 = vcombine.low %v5598_v29, %v5602_v30  ;;  %v5634_v21 = vld [vmem:[#allocation4 + $0x8a8] sm:$0xff] }
 0x6c1   :  { %v5253_v52 = vadd.f32 %v11454_v35, %v4861_v36  ;;  %v5642_v29 = vld [vmem:[#allocation4 + $0x8e8] sm:$0xff] }
 0x6c2   :  { %8484 = vmatpush1.bf16.msra.mxu1 %v9965_v44  ;;  %8648 = vmatpush1.bf16.msra.mxu0 %v9967_v47  ;;  %v5609_v44 = vld [vmem:[#allocation4 + $0x7e0] sm:$0xff]  ;;  %v5606_v47 = vld [vmem:[#allocation4 + $0x7c8] sm:$0xff] }
 0x6c3   :  { %8485 = vmatprep.subr.bf16.mxu1 %v9974_v49  ;;  %8649 = vmatprep.subr.bf16.mxu0 %v9976_v50  ;;  %v5610_v49 = vld [vmem:[#allocation4 + $0x7e8] sm:$0xff]  ;;  %v10013_v50 = vcombine.low %v5597_v23, %v5601_v28  ;;  %v10022_v53 = vcombine.high %v5605_v46, %v5609_v44  ;;  %v10021_v2 = vcombine.low %v5605_v46, %v5609_v44  ;;  %v5343_v6 = vmax.f32 %v5253_v52, 0.0  ;;  %v5641_v23 = vld [vmem:[#allocation4 + $0x8e0] sm:$0xff] }
 0x6c4   :  { %v10024_v54 = vcombine.high %v5606_v47, %v5610_v49  ;;  %v10023_v0 = vcombine.low %v5606_v47, %v5610_v49  ;;  %v5638_v28 = vld [vmem:[#allocation4 + $0x8c8] sm:$0xff]  ;;  %v5657_v52 = vld [vmem:[#allocation4 + $0x960] sm:$0xff] }
 0x6c5   :  { %v11482_v8 = vpack.c.bf16 %v5343_v6, %v5343_v6  ;;  %v10056_v36 = vcombine.high %v5638_v28, %v5642_v29  ;;  %v5646_v46 = vld [vmem:[#allocation4 + $0x908] sm:$0xff]  ;;  %v10055_v47 = vcombine.low %v5638_v28, %v5642_v29  ;;  %v5689_v28 = vld [vmem:[#allocation4 + $0xa60] sm:$0xff] }
 0x6c6   :  { %8486 = vmatpush1.bf16.msra.mxu1 %v9973_v48  ;;  %8650 = vmatpush1.bf16.msra.mxu0 %v9975_v55  ;;  %v5613_v48 = vld [vmem:[#allocation4 + $0x800] sm:$0xff]  ;;  %v5296_v55 = vadd.f32 %v11472_v16, %v4873_v43  ;;  %v5650_v43 = vld [vmem:[#allocation4 + $0x928] sm:$0xff] }
 0x6c7   :  { %8487 = vmatprep.subr.bf16.mxu1 %v9982_v56  ;;  %8651 = vmatprep.subr.bf16.mxu0 %v9984_v59  ;;  %v5617_v56 = vld [vmem:[#allocation4 + $0x820] sm:$0xff]  ;;  %v5614_v59 = vld [vmem:[#allocation4 + $0x808] sm:$0xff] }
 0x6c8   :  { %v5346_v35 = vmax.f32 %v5296_v55, 0.0  ;;  %v10029_v16 = vcombine.low %v5613_v48, %v5617_v56  ;;  %v10031_v9 = vcombine.low %v5614_v59, %v5618_v60  ;;  %v10063_v55 = vcombine.low %v5646_v46, %v5650_v43  ;;  %v5666_v6 = vld [vmem:[#allocation4 + $0x9a8] sm:$0xff] }
 0x6c9   :  { %v5686_v29 = vld [vmem:[#allocation4 + $0xa48] sm:$0xff] }
 0x6ca   :  { %8488 = vmatpush1.bf16.msra.mxu1 %v9981_v62  ;;  %8652 = vmatpush1.bf16.msra.mxu0 %v9983_v37  ;;  %v10030_v62 = vcombine.high %v5613_v48, %v5617_v56  ;;  %v10032_v37 = vcombine.high %v5614_v59, %v5618_v60  ;;  %v5661_v60 = vld [vmem:[#allocation4 + $0x980] sm:$0xff] }
 0x6cb   :  { %8489 = vmatprep.subr.bf16.mxu1 %v9990_v11  ;;  %8653 = vmatprep.subr.bf16.mxu0 %v9992_v3  ;;  %v5621_v11 = vld [vmem:[#allocation4 + $0x840] sm:$0xff] }
 0x6cc   :  { %v5625_v3 = vld [vmem:[#allocation4 + $0x860] sm:$0xff] }
 0x6cd   :  { %v10037_v4 = vcombine.low %v5621_v11, %v5625_v3 }
 0x6ce   :  { %8490 = vmatpush1.bf16.msra.mxu1 %v9989_v57  ;;  %8654 = vmatpush1.bf16.msra.mxu0 %v9991_v14  ;;  %v11484_v57 = vpack.c.bf16 %v5346_v35, %v5346_v35  ;;  %v10038_v14 = vcombine.high %v5621_v11, %v5625_v3  ;;  %v5669_v3 = vld [vmem:[#allocation4 + $0x9c0] sm:$0xff] }
 0x6cf   :  { %8491 = vmatprep.subr.bf16.mxu1 %v9998_v15  ;;  %8655 = vmatprep.subr.bf16.mxu0 %v10000_v17  ;;  %v10040_v15 = vcombine.high %v5622_v5, %v5626_v7  ;;  %v5629_v17 = vld [vmem:[#allocation4 + $0x880] sm:$0xff] }
 0x6d0   :  { %v10045_v30 = vcombine.low %v5629_v17, %v5633_v20 }
 0x6d2   :  { %8492 = vmatpush1.bf16.msra.mxu1 %v9997_v22  ;;  %8656 = vmatpush1.bf16.msra.mxu0 %v9999_v24  ;;  %v10039_v22 = vcombine.low %v5622_v5, %v5626_v7  ;;  %v10046_v24 = vcombine.high %v5629_v17, %v5633_v20  ;;  %v5673_v5 = vld [vmem:[#allocation4 + $0x9e0] sm:$0xff]  ;;  %v5670_v7 = vld [vmem:[#allocation4 + $0x9c8] sm:$0xff] }
 0x6d3   :  { %8493 = vmatprep.subr.bf16.mxu1 %v10006_v27  ;;  %8657 = vmatprep.subr.bf16.mxu0 %v10008_v25  ;;  %v10048_v27 = vcombine.high %v5630_v1, %v5634_v21  ;;  %v5637_v25 = vld [vmem:[#allocation4 + $0x8c0] sm:$0xff] }
 0x6d4   :  { %v10053_v44 = vcombine.low %v5637_v25, %v5641_v23  ;;  %v5677_v20 = vld [vmem:[#allocation4 + $0xa00] sm:$0xff] }
 0x6d6   :  { %8494 = vmatpush1.bf16.msra.mxu1 %v10005_v45  ;;  %8658 = vmatpush1.bf16.msra.mxu0 %v10007_v31  ;;  %v10047_v45 = vcombine.low %v5630_v1, %v5634_v21  ;;  %v10054_v31 = vcombine.high %v5637_v25, %v5641_v23  ;;  %v5681_v1 = vld [vmem:[#allocation4 + $0xa20] sm:$0xff]  ;;  %v5678_v21 = vld [vmem:[#allocation4 + $0xa08] sm:$0xff] }
 0x6d7   :  { %8495 = vmatprep.subr.bf16.mxu1 %v10014_v32  ;;  %8659 = vmatprep.subr.bf16.mxu0 %v10016_v33  ;;  %v5645_v32 = vld [vmem:[#allocation4 + $0x900] sm:$0xff] }
 0x6d8   :  { %v5649_v33 = vld [vmem:[#allocation4 + $0x920] sm:$0xff] }
 0x6d9   :  { %v10062_v49 = vcombine.high %v5645_v32, %v5649_v33  ;;  %v10061_v48 = vcombine.low %v5645_v32, %v5649_v33  ;;  %v5685_v23 = vld [vmem:[#allocation4 + $0xa40] sm:$0xff] }
 0x6da   :  { %8496 = vmatpush1.bf16.msra.mxu1 %v10013_v50  ;;  %8660 = vmatpush1.bf16.msra.mxu0 %v10015_v51  ;;  %v10064_v50 = vcombine.high %v5646_v46, %v5650_v43  ;;  %v5653_v51 = vld [vmem:[#allocation4 + $0x940] sm:$0xff]  ;;  %v5694_v43 = vld [vmem:[#allocation4 + $0xa88] sm:$0xff] }
 0x6db   :  { %8497 = vmatprep.subr.bf16.mxu1 %v10022_v53  ;;  %8661 = vmatprep.subr.bf16.mxu0 %v10024_v54  ;;  %v5654_v53 = vld [vmem:[#allocation4 + $0x948] sm:$0xff]  ;;  %v10070_v56 = vcombine.high %v5653_v51, %v5657_v52  ;;  %v5693_v33 = vld [vmem:[#allocation4 + $0xa80] sm:$0xff] }
 0x6dc   :  { %v5658_v54 = vld [vmem:[#allocation4 + $0x968] sm:$0xff]  ;;  %v5697_v46 = vld [vmem:[#allocation4 + $0xaa0] sm:$0xff] }
 0x6dd   :  { %v10072_v59 = vcombine.high %v5654_v53, %v5658_v54 }
 0x6de   :  { %8498 = vmatpush1.bf16.msra.mxu1 %v10021_v2  ;;  %8662 = vmatpush1.bf16.msra.mxu0 %v10023_v0  ;;  %v5665_v2 = vld [vmem:[#allocation4 + $0x9a0] sm:$0xff]  ;;  %v5662_v0 = vld [vmem:[#allocation4 + $0x988] sm:$0xff] }
 0x6df   :  { %8508 = vmatprep.subr.bf16.mxu1 %v10030_v62  ;;  %8672 = vmatprep.subr.bf16.mxu0 %v10032_v37  ;;  %v10069_v62 = vcombine.low %v5653_v51, %v5657_v52  ;;  %v10071_v37 = vcombine.low %v5654_v53, %v5658_v54  ;;  %v10078_v35 = vcombine.high %v5661_v60, %v5665_v2  ;;  %v5701_v52 = vld [vmem:[#allocation4 + $0xac0] sm:$0xff]  ;;  %v5702_v54 = vld [vmem:[#allocation4 + $0xac8] sm:$0xff] }
 0x6e0   :  { %v10080_v11 = vcombine.high %v5662_v0, %v5666_v6  ;;  %v5705_v53 = vld [vmem:[#allocation4 + $0xae0] sm:$0xff] }
 0x6e1   :  { %8500 = vmatmul.mubr.bf16.vlgmr.msra.gmra.mrb[28].mxu1 %v11482_v8  ;;  %8664 = vmatmul.mubr.bf16.vlgmr.msra.gmra.mrb[32].mxu0 %v11482_v8 }
 0x6e2   :  { %8509 = vmatpush1.bf16.msra.mxu1 %v10029_v16  ;;  %8540 = vmatprep.mubr.bf16.mxu1 %v11484_v57  ;;  %v5674_v16 = vld [vmem:[#allocation4 + $0x9e8] sm:$0xff] }
 0x6e3   :  { %8673 = vmatpush1.bf16.msra.mxu0 %v10031_v9  ;;  %8704 = vmatprep.mubr.bf16.mxu0 %v11484_v57  ;;  %v10077_v9 = vcombine.low %v5661_v60, %v5665_v2  ;;  %v10088_v17 = vcombine.high %v5670_v7, %v5674_v16  ;;  %v5709_v2 = vld [vmem:[#allocation4 + $0xb00] sm:$0xff] }
 0x6e4   :  { %8510 = vmatprep.subr.bf16.mxu1 %v10038_v14  ;;  %8674 = vmatprep.subr.bf16.mxu0 %v10040_v15  ;;  %v10079_v14 = vcombine.low %v5662_v0, %v5666_v6  ;;  %v10086_v15 = vcombine.high %v5669_v3, %v5673_v5  ;;  %v5713_v0 = vld [vmem:[#allocation4 + $0xb20] sm:$0xff]  ;;  %v5710_v6 = vld [vmem:[#allocation4 + $0xb08] sm:$0xff] }
 0x6e6   :  { %8511 = vmatpush1.bf16.msra.mxu1 %v10037_v4  ;;  %v5682_v4 = vld [vmem:[#allocation4 + $0xa28] sm:$0xff] }
 0x6e7   :  { %8675 = vmatpush1.bf16.msra.mxu0 %v10039_v22  ;;  %8512 = vmatprep.subr.bf16.mxu1 %v10046_v24  ;;  %v10085_v22 = vcombine.low %v5669_v3, %v5673_v5  ;;  %v10087_v24 = vcombine.low %v5670_v7, %v5674_v16  ;;  %v10096_v25 = vcombine.high %v5678_v21, %v5682_v4  ;;  %v5717_v5 = vld [vmem:[#allocation4 + $0xb40] sm:$0xff]  ;;  %v5718_v16 = vld [vmem:[#allocation4 + $0xb48] sm:$0xff] }
 0x6e8   :  { %8676 = vmatprep.subr.bf16.mxu0 %v10048_v27  ;;  %v10094_v27 = vcombine.high %v5677_v20, %v5681_v1  ;;  %v5721_v7 = vld [vmem:[#allocation4 + $0xb60] sm:$0xff] }
 0x6ea   :  { %8513 = vmatpush1.bf16.msra.mxu1 %v10045_v30  ;;  %v5690_v30 = vld [vmem:[#allocation4 + $0xa68] sm:$0xff] }
 0x6eb   :  { %8677 = vmatpush1.bf16.msra.mxu0 %v10047_v45  ;;  %8514 = vmatprep.subr.bf16.mxu1 %v10054_v31  ;;  %v10093_v45 = vcombine.low %v5677_v20, %v5681_v1  ;;  %v10095_v31 = vcombine.low %v5678_v21, %v5682_v4  ;;  %v10104_v32 = vcombine.high %v5686_v29, %v5690_v30  ;;  %v5725_v1 = vld [vmem:[#allocation4 + $0xb80] sm:$0xff]  ;;  %v5726_v4 = vld [vmem:[#allocation4 + $0xb88] sm:$0xff] }
 0x6ec   :  { %8678 = vmatprep.subr.bf16.mxu0 %v10056_v36  ;;  %v10102_v36 = vcombine.high %v5685_v23, %v5689_v28  ;;  %v5729_v21 = vld [vmem:[#allocation4 + $0xba0] sm:$0xff] }
 0x6ee   :  { %8515 = vmatpush1.bf16.msra.mxu1 %v10053_v44  ;;  %v5698_v44 = vld [vmem:[#allocation4 + $0xaa8] sm:$0xff] }
 0x6ef   :  { %8679 = vmatpush1.bf16.msra.mxu0 %v10055_v47  ;;  %8516 = vmatprep.subr.bf16.mxu1 %v10062_v49  ;;  %v10101_v47 = vcombine.low %v5685_v23, %v5689_v28  ;;  %v10103_v49 = vcombine.low %v5686_v29, %v5690_v30  ;;  %v10112_v51 = vcombine.high %v5694_v43, %v5698_v44  ;;  %v5733_v29 = vld [vmem:[#allocation4 + $0xbc0] sm:$0xff] }
 0x6f0   :  { %8680 = vmatprep.subr.bf16.mxu0 %v10064_v50  ;;  %v10110_v50 = vcombine.high %v5693_v33, %v5697_v46  ;;  %v10142_v23 = vcombine.high %v5725_v1, %v5729_v21  ;;  %v5737_v30 = vld [vmem:[#allocation4 + $0xbe0] sm:$0xff] }
 0x6f2   :  { %8517 = vmatpush1.bf16.msra.mxu1 %v10061_v48  ;;  %v5706_v48 = vld [vmem:[#allocation4 + $0xae8] sm:$0xff] }
 0x6f3   :  { %8681 = vmatpush1.bf16.msra.mxu0 %v10063_v55  ;;  %8518 = vmatprep.subr.bf16.mxu1 %v10070_v56  ;;  %v10109_v55 = vcombine.low %v5693_v33, %v5697_v46  ;;  %v10111_v56 = vcombine.low %v5694_v43, %v5698_v44  ;;  %v10120_v60 = vcombine.high %v5702_v54, %v5706_v48 }
 0x6f4   :  { %8682 = vmatprep.subr.bf16.mxu0 %v10072_v59  ;;  %v10118_v59 = vcombine.high %v5701_v52, %v5705_v53  ;;  %v10150_v43 = vcombine.high %v5733_v29, %v5737_v30 }
 0x6f6   :  { %8519 = vmatpush1.bf16.msra.mxu1 %v10069_v62  ;;  %v5714_v62 = vld [vmem:[#allocation4 + $0xb28] sm:$0xff] }
 0x6f7   :  { %8683 = vmatpush1.bf16.msra.mxu0 %v10071_v37  ;;  %8520 = vmatprep.subr.bf16.mxu1 %v10078_v35  ;;  %v10117_v37 = vcombine.low %v5701_v52, %v5705_v53  ;;  %v10119_v35 = vcombine.low %v5702_v54, %v5706_v48  ;;  %v10128_v3 = vcombine.high %v5710_v6, %v5714_v62  ;;  %v5746_v52 = vld [vmem:[#allocation4 + $0xc28] sm:$0xff] }
 0x6f8   :  { %8684 = vmatprep.subr.bf16.mxu0 %v10080_v11  ;;  %v10126_v11 = vcombine.high %v5709_v2, %v5713_v0 }
 0x6fa   :  { %8521 = vmatpush1.bf16.msra.mxu1 %v10077_v9  ;;  %v5722_v9 = vld [vmem:[#allocation4 + $0xb68] sm:$0xff] }
 0x6fb   :  { %8685 = vmatpush1.bf16.msra.mxu0 %v10079_v14  ;;  %8522 = vmatprep.subr.bf16.mxu1 %v10086_v15  ;;  %v10125_v14 = vcombine.low %v5709_v2, %v5713_v0  ;;  %v10127_v15 = vcombine.low %v5710_v6, %v5714_v62  ;;  %v10136_v20 = vcombine.high %v5718_v16, %v5722_v9  ;;  %v5750_v2 = vld [vmem:[#allocation4 + $0xc48] sm:$0xff] }
 0x6fc   :  { %8686 = vmatprep.subr.bf16.mxu0 %v10088_v17  ;;  %v10134_v17 = vcombine.high %v5717_v5, %v5721_v7  ;;  %v5754_v0 = vld [vmem:[#allocation4 + $0xc68] sm:$0xff] }
 0x6fe   :  { %8523 = vmatpush1.bf16.msra.mxu1 %v10085_v22  ;;  %v5730_v22 = vld [vmem:[#allocation4 + $0xba8] sm:$0xff] }
 0x6ff   :  { %8687 = vmatpush1.bf16.msra.mxu0 %v10087_v24  ;;  %8524 = vmatprep.subr.bf16.mxu1 %v10094_v27  ;;  %v10133_v24 = vcombine.low %v5717_v5, %v5721_v7  ;;  %v4869_v27 = vrot.slane %v11446_v61, %v11141_v34  ;;  %v10144_v28 = vcombine.high %v5726_v4, %v5730_v22  ;;  %v5758_v5 = vld [vmem:[#allocation4 + $0xc88] sm:$0xff] }
 0x700   :  { %8688 = vmatprep.subr.bf16.mxu0 %v10096_v25  ;;  %v10135_v25 = vcombine.low %v5718_v16, %v5722_v9  ;;  %v10143_v46 = vcombine.low %v5726_v4, %v5730_v22  ;;  %v5762_v7 = vld [vmem:[#allocation4 + $0xca8] sm:$0xff]  ;;  %v10167_v9 = vcombine.low %v5750_v2, %v5754_v0 }
 0x701   :  { %v5294_v33 = vadd.f32 %v11468_v10, %v4869_v27  ;;  %v10175_v22 = vcombine.low %v5758_v5, %v5762_v7 }
 0x702   :  { %8525 = vmatpush1.bf16.msra.mxu1 %v10093_v45  ;;  %v4881_v45 = vrot.slane %v11446_v61, %v11150_v41  ;;  %v10149_v61 = vcombine.low %v5733_v29, %v5737_v30  ;;  %v5778_v29 = vld [vmem:[#allocation4 + $0xd28] sm:$0xff] }
 0x703   :  { %8689 = vmatpush1.bf16.msra.mxu0 %v10095_v31  ;;  %8526 = vmatprep.subr.bf16.mxu1 %v10102_v36  ;;  %v5734_v31 = vld [vmem:[#allocation4 + $0xbc8] sm:$0xff]  ;;  %v5345_v53 = vmax.f32 %v5294_v33, 0.0  ;;  %v5785_v33 = vld [vmem:[#allocation4 + $0xd60] sm:$0xff] }
 0x704   :  { %8690 = vmatprep.subr.bf16.mxu0 %v10104_v32  ;;  %v5738_v36 = vld [vmem:[#allocation4 + $0xbe8] sm:$0xff]  ;;  %v10141_v32 = vcombine.low %v5725_v1, %v5729_v21 }
 0x705   :  { %v10152_v44 = vcombine.high %v5734_v31, %v5738_v36  ;;  %v10151_v54 = vcombine.low %v5734_v31, %v5738_v36  ;;  %v11496_v6 = vpack.c.bf16 %v5345_v53, %v5345_v53  ;;  %v5766_v1 = vld [vmem:[#allocation4 + $0xcc8] sm:$0xff] }
 0x706   :  { %8527 = vmatpush1.bf16.msra.mxu1 %v10101_v47  ;;  %v5741_v47 = vld [vmem:[#allocation4 + $0xc00] sm:$0xff]  ;;  %v5770_v21 = vld [vmem:[#allocation4 + $0xce8] sm:$0xff] }
 0x707   :  { %8691 = vmatpush1.bf16.msra.mxu0 %v10103_v49  ;;  %8528 = vmatprep.subr.bf16.mxu1 %v10110_v50  ;;  %v5745_v49 = vld [vmem:[#allocation4 + $0xc20] sm:$0xff]  ;;  %v5337_v50 = vadd.f32 %v11474_v12, %v4881_v45  ;;  %v10184_v27 = vcombine.high %v5766_v1, %v5770_v21  ;;  %v10183_v45 = vcombine.low %v5766_v1, %v5770_v21  ;;  %v5794_v53 = vld [vmem:[#allocation4 + $0xda8] sm:$0xff] }
 0x708   :  { %8692 = vmatprep.subr.bf16.mxu0 %v10112_v51  ;;  %v5742_v51 = vld [vmem:[#allocation4 + $0xc08] sm:$0xff]  ;;  %v10158_v48 = vcombine.high %v5741_v47, %v5745_v49 }
 0x709   :  { %v10160_v10 = vcombine.high %v5742_v51, %v5746_v52  ;;  %v10159_v12 = vcombine.low %v5742_v51, %v5746_v52  ;;  %v5789_v51 = vld [vmem:[#allocation4 + $0xd80] sm:$0xff]  ;;  %v5814_v1 = vld [vmem:[#allocation4 + $0xe48] sm:$0xff] }
 0x70a   :  { %8529 = vmatpush1.bf16.msra.mxu1 %v10109_v55  ;;  %v5348_v55 = vmax.f32 %v5337_v50, 0.0  ;;  %v5793_v52 = vld [vmem:[#allocation4 + $0xda0] sm:$0xff]  ;;  %v5818_v21 = vld [vmem:[#allocation4 + $0xe68] sm:$0xff] }
 0x70b   :  { %8693 = vmatpush1.bf16.msra.mxu0 %v10111_v56  ;;  %8530 = vmatprep.subr.bf16.mxu1 %v10118_v59  ;;  %v5749_v56 = vld [vmem:[#allocation4 + $0xc40] sm:$0xff] }
 0x70c   :  { %8694 = vmatprep.subr.bf16.mxu0 %v10120_v60  ;;  %v5753_v59 = vld [vmem:[#allocation4 + $0xc60] sm:$0xff]  ;;  %v10157_v60 = vcombine.low %v5741_v47, %v5745_v49 }
 0x70d   :  { %v10166_v62 = vcombine.high %v5749_v56, %v5753_v59  ;;  %v10165_v16 = vcombine.low %v5749_v56, %v5753_v59  ;;  %v5797_v56 = vld [vmem:[#allocation4 + $0xdc0] sm:$0xff] }
 0x70e   :  { %8531 = vmatpush1.bf16.msra.mxu1 %v10117_v37  ;;  %v5757_v37 = vld [vmem:[#allocation4 + $0xc80] sm:$0xff] }
 0x70f   :  { %8695 = vmatpush1.bf16.msra.mxu0 %v10119_v35  ;;  %8532 = vmatprep.subr.bf16.mxu1 %v10126_v11  ;;  %v5761_v35 = vld [vmem:[#allocation4 + $0xca0] sm:$0xff]  ;;  %v11498_v11 = vpack.c.bf16 %v5348_v55, %v5348_v55 }
 0x710   :  { %8696 = vmatprep.subr.bf16.mxu0 %v10128_v3  ;;  %v10168_v3 = vcombine.high %v5750_v2, %v5754_v0  ;;  %v10173_v4 = vcombine.low %v5757_v37, %v5761_v35  ;;  %v5801_v59 = vld [vmem:[#allocation4 + $0xde0] sm:$0xff]  ;;  %v5802_v2 = vld [vmem:[#allocation4 + $0xde8] sm:$0xff]  ;;  %v10205_v0 = vcombine.low %v5789_v51, %v5793_v52 }
 0x712   :  { %8533 = vmatpush1.bf16.msra.mxu1 %v10125_v14  ;;  %v10174_v14 = vcombine.high %v5757_v37, %v5761_v35  ;;  %v5805_v35 = vld [vmem:[#allocation4 + $0xe00] sm:$0xff] }
 0x713   :  { %8697 = vmatpush1.bf16.msra.mxu0 %v10127_v15  ;;  %8534 = vmatprep.subr.bf16.mxu1 %v10134_v17  ;;  %v10176_v15 = vcombine.high %v5758_v5, %v5762_v7  ;;  %v5765_v17 = vld [vmem:[#allocation4 + $0xcc0] sm:$0xff]  ;;  %v5806_v5 = vld [vmem:[#allocation4 + $0xe08] sm:$0xff] }
 0x714   :  { %8698 = vmatprep.subr.bf16.mxu0 %v10136_v20  ;;  %v5769_v20 = vld [vmem:[#allocation4 + $0xce0] sm:$0xff]  ;;  %v5810_v7 = vld [vmem:[#allocation4 + $0xe28] sm:$0xff] }
 0x715   :  { %v10181_v30 = vcombine.low %v5765_v17, %v5769_v20 }
 0x716   :  { %8535 = vmatpush1.bf16.msra.mxu1 %v10133_v24  ;;  %v10182_v24 = vcombine.high %v5765_v17, %v5769_v20  ;;  %v5813_v17 = vld [vmem:[#allocation4 + $0xe40] sm:$0xff] }
 0x717   :  { %8699 = vmatpush1.bf16.msra.mxu0 %v10135_v25  ;;  %8536 = vmatprep.subr.bf16.mxu1 %v10142_v23  ;;  %v5773_v25 = vld [vmem:[#allocation4 + $0xd00] sm:$0xff] }
 0x718   :  { %8700 = vmatprep.subr.bf16.mxu0 %v10144_v28  ;;  %v5777_v23 = vld [vmem:[#allocation4 + $0xd20] sm:$0xff]  ;;  %v5774_v28 = vld [vmem:[#allocation4 + $0xd08] sm:$0xff] }
 0x719   :  { %v10190_v31 = vcombine.high %v5773_v25, %v5777_v23  ;;  %v10192_v36 = vcombine.high %v5774_v28, %v5778_v29  ;;  %v10191_v47 = vcombine.low %v5774_v28, %v5778_v29  ;;  %v5817_v20 = vld [vmem:[#allocation4 + $0xe60] sm:$0xff]  ;;  %v5822_v28 = vld [vmem:[#allocation4 + $0xe88] sm:$0xff] }
 0x71a   :  { %8537 = vmatpush1.bf16.msra.mxu1 %v10141_v32  ;;  %v5781_v32 = vld [vmem:[#allocation4 + $0xd40] sm:$0xff]  ;;  %v5826_v29 = vld [vmem:[#allocation4 + $0xea8] sm:$0xff] }
 0x71b   :  { %8701 = vmatpush1.bf16.msra.mxu0 %v10143_v46  ;;  %8538 = vmatprep.subr.bf16.mxu1 %v10150_v43  ;;  %v5782_v46 = vld [vmem:[#allocation4 + $0xd48] sm:$0xff]  ;;  %v10198_v49 = vcombine.high %v5781_v32, %v5785_v33 }
 0x71c   :  { %8702 = vmatprep.subr.bf16.mxu0 %v10152_v44  ;;  %v5786_v43 = vld [vmem:[#allocation4 + $0xd68] sm:$0xff]  ;;  %v10189_v44 = vcombine.low %v5773_v25, %v5777_v23  ;;  %v5821_v25 = vld [vmem:[#allocation4 + $0xe80] sm:$0xff] }
 0x71d   :  { %v10200_v50 = vcombine.high %v5782_v46, %v5786_v43  ;;  %v5825_v23 = vld [vmem:[#allocation4 + $0xea0] sm:$0xff] }
 0x71e   :  { %8539 = vmatpush1.bf16.msra.mxu1 %v10149_v61  ;;  %v5790_v61 = vld [vmem:[#allocation4 + $0xd88] sm:$0xff] }
 0x71f   :  { %8703 = vmatpush1.bf16.msra.mxu0 %v10151_v54  ;;  %8549 = vmatprep.subr.bf16.mxu1 %v10158_v48  ;;  %v10197_v54 = vcombine.low %v5781_v32, %v5785_v33  ;;  %v10199_v48 = vcombine.low %v5782_v46, %v5786_v43  ;;  %v10208_v55 = vcombine.high %v5790_v61, %v5794_v53  ;;  %v5829_v32 = vld [vmem:[#allocation4 + $0xec0] sm:$0xff]  ;;  %v5830_v46 = vld [vmem:[#allocation4 + $0xec8] sm:$0xff] }
 0x720   :  { %8713 = vmatprep.subr.bf16.mxu0 %v10160_v10  ;;  %v10206_v10 = vcombine.high %v5789_v51, %v5793_v52  ;;  %v5833_v33 = vld [vmem:[#allocation4 + $0xee0] sm:$0xff]  ;;  %v5834_v43 = vld [vmem:[#allocation4 + $0xee8] sm:$0xff] }
 0x721   :  { %8541 = vmatmul.mubr.bf16.vlgmr.msra.gmra.mrb[28].mxu1 %v11496_v6  ;;  %v5837_v51 = vld [vmem:[#allocation4 + $0xf00] sm:$0xff] }
 0x722   :  { %8705 = vmatmul.mubr.bf16.vlgmr.msra.gmra.mrb[32].mxu0 %v11496_v6  ;;  %8550 = vmatpush1.bf16.msra.mxu1 %v10157_v60  ;;  %v5798_v60 = vld [vmem:[#allocation4 + $0xdc8] sm:$0xff]  ;;  %v5841_v52 = vld [vmem:[#allocation4 + $0xf20] sm:$0xff] }
 0x723   :  { %10278 = vmatprep.mubr.msk.bf16.mxu1 %vm3143_vm0, %v11498_v11  ;;  %8714 = vmatpush1.bf16.msra.mxu0 %v10159_v12  ;;  %v10207_v12 = vcombine.low %v5790_v61, %v5794_v53  ;;  %v10216_v37 = vcombine.high %v5798_v60, %v5802_v2  ;;  %v5838_v61 = vld [vmem:[#allocation4 + $0xf08] sm:$0xff] }
 0x724   :  { %10280 = vmatprep.mubr.msk.bf16.mxu0 %vm3143_vm0, %v11498_v11  ;;  %8551 = vmatprep.subr.bf16.mxu1 %v10166_v62  ;;  %v10214_v62 = vcombine.high %v5797_v56, %v5801_v59  ;;  %v5842_v53 = vld [vmem:[#allocation4 + $0xf28] sm:$0xff] }
 0x725   :  { %8715 = vmatprep.subr.bf16.mxu0 %v10168_v3  ;;  %v5809_v3 = vld [vmem:[#allocation4 + $0xe20] sm:$0xff] }
 0x726   :  { %8552 = vmatpush1.bf16.msra.mxu1 %v10165_v16  ;;  %v10213_v16 = vcombine.low %v5797_v56, %v5801_v59  ;;  %v5845_v56 = vld [vmem:[#allocation4 + $0xf40] sm:$0xff] }
 0x727   :  { %8716 = vmatpush1.bf16.msra.mxu0 %v10167_v9  ;;  %8553 = vmatprep.subr.bf16.mxu1 %v10174_v14  ;;  %v10215_v9 = vcombine.low %v5798_v60, %v5802_v2  ;;  %v10222_v14 = vcombine.high %v5805_v35, %v5809_v3  ;;  %v5849_v59 = vld [vmem:[#allocation4 + $0xf60] sm:$0xff]  ;;  %v5846_v60 = vld [vmem:[#allocation4 + $0xf48] sm:$0xff] }
 0x728   :  { %8717 = vmatprep.subr.bf16.mxu0 %v10176_v15  ;;  %v10224_v15 = vcombine.high %v5806_v5, %v5810_v7  ;;  %v5850_v2 = vld [vmem:[#allocation4 + $0xf68] sm:$0xff] }
 0x72a   :  { %8554 = vmatpush1.bf16.msra.mxu1 %v10173_v4  ;;  %v10221_v4 = vcombine.low %v5805_v35, %v5809_v3  ;;  %v10262_v35 = vcombine.high %v5845_v56, %v5849_v59  ;;  %v10264_v3 = vcombine.high %v5846_v60, %v5850_v2 }
 0x72b   :  { %8718 = vmatpush1.bf16.msra.mxu0 %v10175_v22  ;;  %8555 = vmatprep.subr.bf16.mxu1 %v10182_v24  ;;  %v10223_v22 = vcombine.low %v5806_v5, %v5810_v7  ;;  %v10230_v24 = vcombine.high %v5813_v17, %v5817_v20  ;;  %v5853_v5 = vld [vmem:[#allocation4 + $0xf80] sm:$0xff]  ;;  %v5854_v7 = vld [vmem:[#allocation4 + $0xf88] sm:$0xff] }
 0x72c   :  { %8719 = vmatprep.subr.bf16.mxu0 %v10184_v27  ;;  %v10232_v27 = vcombine.high %v5814_v1, %v5818_v21 }
 0x72e   :  { %8556 = vmatpush1.bf16.msra.mxu1 %v10181_v30  ;;  %v10229_v30 = vcombine.low %v5813_v17, %v5817_v20  ;;  %v10269_v17 = vcombine.low %v5853_v5, %v5853_v5  ;;  %v10272_v20 = vcombine.high %v5854_v7, %v5854_v7 }
 0x72f   :  { %8720 = vmatpush1.bf16.msra.mxu0 %v10183_v45  ;;  %8557 = vmatprep.subr.bf16.mxu1 %v10190_v31  ;;  %v10231_v45 = vcombine.low %v5814_v1, %v5818_v21  ;;  %v10238_v31 = vcombine.high %v5821_v25, %v5825_v23  ;;  %v10271_v1 = vcombine.low %v5854_v7, %v5854_v7  ;;  %v5359_v21 = vld [vmem:[#allocation4 + $0x10] sm:$0xff] }
 0x730   :  { %8721 = vmatprep.subr.bf16.mxu0 %v10192_v36  ;;  %v10240_v36 = vcombine.high %v5822_v28, %v5826_v29  ;;  %v5399_v7 = vld [vmem:[#allocation4 + $0x150] sm:$0xff] }
 0x732   :  { %8558 = vmatpush1.bf16.msra.mxu1 %v10189_v44  ;;  %v10237_v44 = vcombine.low %v5821_v25, %v5825_v23  ;;  %v8409_v23 = vsel %vm3147_vm1, %v10271_v1, 0 }
 0x733   :  { %8722 = vmatpush1.bf16.msra.mxu0 %v10191_v47  ;;  %8559 = vmatprep.subr.bf16.mxu1 %v10198_v49  ;;  %v10239_v47 = vcombine.low %v5822_v28, %v5826_v29  ;;  %v10246_v49 = vcombine.high %v5829_v32, %v5833_v33  ;;  %v5367_v29 = vld [vmem:[#allocation4 + $0x50] sm:$0xff] }
 0x734   :  { %8723 = vmatprep.subr.bf16.mxu0 %v10200_v50  ;;  %v10248_v50 = vcombine.high %v5830_v46, %v5834_v43 }
 0x736   :  { %8560 = vmatpush1.bf16.msra.mxu1 %v10197_v54  ;;  %v10245_v54 = vcombine.low %v5829_v32, %v5833_v33 }
 0x737   :  { %8724 = vmatpush1.bf16.msra.mxu0 %v10199_v48  ;;  %8561 = vmatprep.subr.bf16.mxu1 %v10206_v10  ;;  %v10247_v48 = vcombine.low %v5830_v46, %v5834_v43  ;;  %v10254_v10 = vcombine.high %v5837_v51, %v5841_v52  ;;  %v5375_v43 = vld [vmem:[#allocation4 + $0x90] sm:$0xff] }
 0x738   :  { %8725 = vmatprep.subr.bf16.mxu0 %v10208_v55  ;;  %v10256_v55 = vcombine.high %v5838_v61, %v5842_v53 }
 0x73a   :  { %8562 = vmatpush1.bf16.msra.mxu1 %v10205_v0  ;;  %v10634_v0 = vld [vmem:[%s11600_s13] sm:$0xff] }
 0x73b   :  { %8726 = vmatpush1.bf16.msra.mxu0 %v10207_v12  ;;  %8563 = vmatprep.subr.bf16.mxu1 %v10214_v62  ;;  %v4877_v12 = vrot.slane %v10634_v0, %v11144_v38  ;;  %v10253_v62 = vcombine.low %v5837_v51, %v5841_v52  ;;  %v5391_v0 = vld [vmem:[#allocation4 + $0x110] sm:$0xff] }
 0x73c   :  { %8727 = vmatprep.subr.bf16.mxu0 %v10216_v37  ;;  %v10255_v37 = vcombine.low %v5838_v61, %v5842_v53 }
 0x73e   :  { %8564 = vmatpush1.bf16.msra.mxu1 %v10213_v16  ;;  %v5335_v16 = vadd.f32 %v11470_v13, %v4877_v12  ;;  %v8403_v13 = vsel %vm3147_vm1, %v10269_v17, 0  ;;  %v5395_v12 = vld [vmem:[#allocation4 + $0x130] sm:$0xff] }
 0x73f   :  { %8728 = vmatpush1.bf16.msra.mxu0 %v10215_v9  ;;  %8565 = vmatprep.subr.bf16.mxu1 %v10222_v14  ;;  %v10261_v9 = vcombine.low %v5845_v56, %v5849_v59  ;;  %v10263_v14 = vcombine.low %v5846_v60, %v5850_v2 }
 0x740   :  { %8729 = vmatprep.subr.bf16.mxu0 %v10224_v15  ;;  %v10270_v15 = vcombine.high %v5853_v5, %v5853_v5 }
 0x742   :  { %8566 = vmatpush1.bf16.msra.mxu1 %v10221_v4  ;;  %v5363_v4 = vld [vmem:[#allocation4 + $0x30] sm:$0xff] }
 0x743   :  { %8730 = vmatpush1.bf16.msra.mxu0 %v10223_v22  ;;  %8567 = vmatprep.subr.bf16.mxu1 %v10230_v24  ;;  %v5360_v22 = vld [vmem:[#allocation4 + $0x18] sm:$0xff]  ;;  %v9778_v25 = vcombine.high %v5359_v21, %v5363_v4 }
 0x744   :  { %8731 = vmatprep.subr.bf16.mxu0 %v10232_v27  ;;  %v5364_v24 = vld [vmem:[#allocation4 + $0x38] sm:$0xff]  ;;  %v5347_v27 = vmax.f32 %v5335_v16, 0.0  ;;  %v5403_v16 = vld [vmem:[#allocation4 + $0x170] sm:$0xff] }
 0x745   :  { %v9780_v28 = vcombine.high %v5360_v22, %v5364_v24  ;;  %v9779_v33 = vcombine.low %v5360_v22, %v5364_v24  ;;  %v5408_v22 = vld [vmem:[#allocation4 + $0x198] sm:$0xff] }
 0x746   :  { %8568 = vmatpush1.bf16.msra.mxu1 %v10229_v30  ;;  %v5371_v30 = vld [vmem:[#allocation4 + $0x70] sm:$0xff]  ;;  %v11515_v32 = vpack.c.bf16 %v5347_v27, %v5347_v27  ;;  %v5412_v24 = vld [vmem:[#allocation4 + $0x1b8] sm:$0xff]  ;;  %v9817_v27 = vcombine.low %v5399_v7, %v5403_v16 }
 0x747   :  { %8732 = vmatpush1.bf16.msra.mxu0 %v10231_v45  ;;  %8569 = vmatprep.subr.bf16.mxu1 %v10238_v31  ;;  %v9777_v45 = vcombine.low %v5359_v21, %v5363_v4  ;;  %v5368_v31 = vld [vmem:[#allocation4 + $0x58] sm:$0xff]  ;;  %v9786_v46 = vcombine.high %v5367_v29, %v5371_v30  ;;  %v9785_v51 = vcombine.low %v5367_v29, %v5371_v30  ;;  %v5407_v21 = vld [vmem:[#allocation4 + $0x190] sm:$0xff] }
 0x748   :  { %8733 = vmatprep.subr.bf16.mxu0 %v10240_v36  ;;  %v5372_v36 = vld [vmem:[#allocation4 + $0x78] sm:$0xff]  ;;  %v5411_v4 = vld [vmem:[#allocation4 + $0x1b0] sm:$0xff] }
 0x749   :  { %v9787_v52 = vcombine.low %v5368_v31, %v5372_v36  ;;  %v5419_v29 = vld [vmem:[#allocation4 + $0x1f0] sm:$0xff]  ;;  %v5416_v30 = vld [vmem:[#allocation4 + $0x1d8] sm:$0xff] }
 0x74a   :  { %8570 = vmatpush1.bf16.msra.mxu1 %v10237_v44  ;;  %v5379_v44 = vld [vmem:[#allocation4 + $0xb0] sm:$0xff] }
 0x74b   :  { %8734 = vmatpush1.bf16.msra.mxu0 %v10239_v47  ;;  %8571 = vmatprep.subr.bf16.mxu1 %v10246_v49  ;;  %v9788_v47 = vcombine.high %v5368_v31, %v5372_v36  ;;  %v5376_v49 = vld [vmem:[#allocation4 + $0x98] sm:$0xff]  ;;  %v9794_v61 = vcombine.high %v5375_v43, %v5379_v44  ;;  %v9793_v56 = vcombine.low %v5375_v43, %v5379_v44  ;;  %v5423_v43 = vld [vmem:[#allocation4 + $0x210] sm:$0xff] }
 0x74c   :  { %8735 = vmatprep.subr.bf16.mxu0 %v10248_v50  ;;  %v5380_v50 = vld [vmem:[#allocation4 + $0xb8] sm:$0xff]  ;;  %v9825_v31 = vcombine.low %v5407_v21, %v5411_v4  ;;  %v9827_v36 = vcombine.low %v5408_v22, %v5412_v24  ;;  %v5427_v44 = vld [vmem:[#allocation4 + $0x230] sm:$0xff] }
 0x74d   :  { %v9796_v53 = vcombine.high %v5376_v49, %v5380_v50  ;;  %v9795_v59 = vcombine.low %v5376_v49, %v5380_v50  ;;  %v5428_v49 = vld [vmem:[#allocation4 + $0x238] sm:$0xff] }
 0x74e   :  { %8572 = vmatpush1.bf16.msra.mxu1 %v10245_v54  ;;  %v5383_v54 = vld [vmem:[#allocation4 + $0xd0] sm:$0xff] }
 0x74f   :  { %8736 = vmatpush1.bf16.msra.mxu0 %v10247_v48  ;;  %8573 = vmatprep.subr.bf16.mxu1 %v10254_v10  ;;  %v5387_v48 = vld [vmem:[#allocation4 + $0xf0] sm:$0xff]  ;;  %v5384_v10 = vld [vmem:[#allocation4 + $0xd8] sm:$0xff] }
 0x750   :  { %8737 = vmatprep.subr.bf16.mxu0 %v10256_v55  ;;  %v5388_v55 = vld [vmem:[#allocation4 + $0xf8] sm:$0xff]  ;;  %v9802_v60 = vcombine.high %v5383_v54, %v5387_v48 }
 0x751   :  { %v9804_v2 = vcombine.high %v5384_v10, %v5388_v55 }
 0x752   :  { %8574 = vmatpush1.bf16.msra.mxu1 %v10253_v62  ;;  %v5392_v62 = vld [vmem:[#allocation4 + $0x118] sm:$0xff] }
 0x753   :  { %8738 = vmatpush1.bf16.msra.mxu0 %v10255_v37  ;;  %8575 = vmatprep.subr.bf16.mxu1 %v10262_v35  ;;  %v5396_v37 = vld [vmem:[#allocation4 + $0x138] sm:$0xff]  ;;  %v9803_v35 = vcombine.low %v5384_v10, %v5388_v55  ;;  %v9841_v55 = vcombine.low %v5423_v43, %v5427_v44 }
 0x754   :  { %8739 = vmatprep.subr.bf16.mxu0 %v10264_v3  ;;  %v9810_v3 = vcombine.high %v5391_v0, %v5395_v12  ;;  %v9812_v5 = vcombine.high %v5392_v62, %v5396_v37  ;;  %v9811_v17 = vcombine.low %v5392_v62, %v5396_v37  ;;  %v5436_v10 = vld [vmem:[#allocation4 + $0x278] sm:$0xff] }
 0x755   :  { %v5444_v62 = vld [vmem:[#allocation4 + $0x2b8] sm:$0xff] }
 0x756   :  { %8576 = vmatpush1.bf16.msra.mxu1 %v10261_v9  ;;  %v5400_v9 = vld [vmem:[#allocation4 + $0x158] sm:$0xff] }
 0x757   :  { %8740 = vmatpush1.bf16.msra.mxu0 %v10263_v14  ;;  %10277 = vmatprep.subr.msk.bf16.mxu1 %vm3147_vm1, %v10270_v15  ;;  %v5404_v14 = vld [vmem:[#allocation4 + $0x178] sm:$0xff]  ;;  %v9809_v15 = vcombine.low %v5391_v0, %v5395_v12  ;;  %v5443_v0 = vld [vmem:[#allocation4 + $0x2b0] sm:$0xff] }
 0x758   :  { %10279 = vmatprep.subr.msk.bf16.mxu0 %vm3147_vm1, %v10272_v20  ;;  %v9818_v20 = vcombine.high %v5399_v7, %v5403_v16  ;;  %v9820_v1 = vcombine.high %v5400_v9, %v5404_v14  ;;  %v5440_v12 = vld [vmem:[#allocation4 + $0x298] sm:$0xff]  ;;  %v5451_v7 = vld [vmem:[#allocation4 + $0x2f0] sm:$0xff] }
 0x759   :  { %v5448_v16 = vld [vmem:[#allocation4 + $0x2d8] sm:$0xff] }
 0x75a   :  { %8578 = vmatpush1.bf16.msra.mxu1 %v8403_v13  ;;  %v9819_v13 = vcombine.low %v5400_v9, %v5404_v14  ;;  %v5452_v9 = vld [vmem:[#allocation4 + $0x2f8] sm:$0xff] }
 0x75b   :  { %8742 = vmatpush1.bf16.msra.mxu0 %v8409_v23  ;;  %8754 = vmatprep.subr.bf16.mxu1 %v9778_v25  ;;  %v9826_v25 = vcombine.high %v5407_v21, %v5411_v4  ;;  %v9828_v23 = vcombine.high %v5408_v22, %v5412_v24  ;;  %v5459_v21 = vld [vmem:[#allocation4 + $0x330] sm:$0xff]  ;;  %v5456_v4 = vld [vmem:[#allocation4 + $0x318] sm:$0xff] }
 0x75c   :  { %8918 = vmatprep.subr.bf16.mxu0 %v9780_v28  ;;  %v5415_v28 = vld [vmem:[#allocation4 + $0x1d0] sm:$0xff]  ;;  %v5460_v22 = vld [vmem:[#allocation4 + $0x338] sm:$0xff] }
 0x75d   :  { %8582 = vmatmul.mubr.bf16.vlgmr.msra.gmra.mrb[28].mxu1 %v11515_v32  ;;  %v9833_v50 = vcombine.low %v5415_v28, %v5419_v29 }
 0x75e   :  { %8746 = vmatmul.mubr.bf16.vlgmr.msra.gmra.mrb[32].mxu0 %v11515_v32  ;;  %8755 = vmatpush1.bf16.msra.mxu1 %v9777_v45  ;;  %v5420_v45 = vld [vmem:[#allocation4 + $0x1f8] sm:$0xff] }
 0x75f   :  { %8786 = vmatprep.mubr.bf16.mxu1 %v11456_v18  ;;  %8919 = vmatpush1.bf16.msra.mxu0 %v9779_v33  ;;  %v9834_v33 = vcombine.high %v5415_v28, %v5419_v29  ;;  %v5467_v28 = vld [vmem:[#allocation4 + $0x370] sm:$0xff]  ;;  %v5464_v29 = vld [vmem:[#allocation4 + $0x358] sm:$0xff] }
 0x760   :  { %8950 = vmatprep.mubr.bf16.mxu0 %v11456_v18  ;;  %8756 = vmatprep.subr.bf16.mxu1 %v9786_v46  ;;  %v9801_v18 = vcombine.low %v5383_v54, %v5387_v48  ;;  %v9836_v46 = vcombine.high %v5416_v30, %v5420_v45  ;;  %v5435_v54 = vld [vmem:[#allocation4 + $0x270] sm:$0xff]  ;;  %v5432_v48 = vld [vmem:[#allocation4 + $0x258] sm:$0xff] }
 0x761   :  { %8920 = vmatprep.subr.bf16.mxu0 %v9788_v47  ;;  %v5424_v47 = vld [vmem:[#allocation4 + $0x218] sm:$0xff] }
 0x762   :  { %8757 = vmatpush1.bf16.msra.mxu1 %v9785_v51  ;;  %v9835_v51 = vcombine.low %v5416_v30, %v5420_v45  ;;  %v5468_v30 = vld [vmem:[#allocation4 + $0x378] sm:$0xff] }
 0x763   :  { %8921 = vmatpush1.bf16.msra.mxu0 %v9787_v52  ;;  %8758 = vmatprep.subr.bf16.mxu1 %v9794_v61  ;;  %v9842_v52 = vcombine.high %v5423_v43, %v5427_v44  ;;  %v9844_v61 = vcombine.high %v5424_v47, %v5428_v49  ;;  %v5475_v43 = vld [vmem:[#allocation4 + $0x3b0] sm:$0xff]  ;;  %v5472_v44 = vld [vmem:[#allocation4 + $0x398] sm:$0xff] }
 0x764   :  { %8922 = vmatprep.subr.bf16.mxu0 %v9796_v53  ;;  %v5431_v53 = vld [vmem:[#allocation4 + $0x250] sm:$0xff] }
 0x765   :  { %v9849_v37 = vcombine.low %v5431_v53, %v5435_v54 }
 0x766   :  { %8759 = vmatpush1.bf16.msra.mxu1 %v9793_v56  ;;  %v9843_v56 = vcombine.low %v5424_v47, %v5428_v49  ;;  %v5476_v47 = vld [vmem:[#allocation4 + $0x3b8] sm:$0xff] }
 0x767   :  { %8923 = vmatpush1.bf16.msra.mxu0 %v9795_v59  ;;  %8760 = vmatprep.subr.bf16.mxu1 %v9802_v60  ;;  %v9850_v59 = vcombine.high %v5431_v53, %v5435_v54  ;;  %v9852_v60 = vcombine.high %v5432_v48, %v5436_v10  ;;  %v5483_v53 = vld [vmem:[#allocation4 + $0x3f0] sm:$0xff]  ;;  %v5480_v54 = vld [vmem:[#allocation4 + $0x3d8] sm:$0xff] }
 0x768   :  { %8924 = vmatprep.subr.bf16.mxu0 %v9804_v2  ;;  %v5439_v2 = vld [vmem:[#allocation4 + $0x290] sm:$0xff] }
 0x769   :  { %v9857_v14 = vcombine.low %v5439_v2, %v5443_v0 }
 0x76a   :  { %8761 = vmatpush1.bf16.msra.mxu1 %v9801_v18  ;;  %v9851_v18 = vcombine.low %v5432_v48, %v5436_v10  ;;  %v5484_v48 = vld [vmem:[#allocation4 + $0x3f8] sm:$0xff] }
 0x76b   :  { %8925 = vmatpush1.bf16.msra.mxu0 %v9803_v35  ;;  %8762 = vmatprep.subr.bf16.mxu1 %v9810_v3  ;;  %v9858_v35 = vcombine.high %v5439_v2, %v5443_v0  ;;  %v9860_v3 = vcombine.high %v5440_v12, %v5444_v62  ;;  %v5491_v2 = vld [vmem:[#allocation4 + $0x430] sm:$0xff]  ;;  %v5488_v0 = vld [vmem:[#allocation4 + $0x418] sm:$0xff] }
 0x76c   :  { %8926 = vmatprep.subr.bf16.mxu0 %v9812_v5  ;;  %v5447_v5 = vld [vmem:[#allocation4 + $0x2d0] sm:$0xff] }
 0x76d   :  { %v9865_v24 = vcombine.low %v5447_v5, %v5451_v7 }
 0x76e   :  { %8763 = vmatpush1.bf16.msra.mxu1 %v9809_v15  ;;  %v9859_v15 = vcombine.low %v5440_v12, %v5444_v62  ;;  %v5492_v12 = vld [vmem:[#allocation4 + $0x438] sm:$0xff] }
 0x76f   :  { %8927 = vmatpush1.bf16.msra.mxu0 %v9811_v17  ;;  %8764 = vmatprep.subr.bf16.mxu1 %v9818_v20  ;;  %v9866_v17 = vcombine.high %v5447_v5, %v5451_v7  ;;  %v9868_v20 = vcombine.high %v5448_v16, %v5452_v9  ;;  %v5499_v5 = vld [vmem:[#allocation4 + $0x470] sm:$0xff] }
 0x770   :  { %8928 = vmatprep.subr.bf16.mxu0 %v9820_v1  ;;  %v5455_v1 = vld [vmem:[#allocation4 + $0x310] sm:$0xff] }
 0x771   :  { %v9873_v45 = vcombine.low %v5455_v1, %v5459_v21 }
 0x772   :  { %8765 = vmatpush1.bf16.msra.mxu1 %v9817_v27  ;;  %v9867_v27 = vcombine.low %v5448_v16, %v5452_v9  ;;  %v5496_v16 = vld [vmem:[#allocation4 + $0x458] sm:$0xff] }
 0x773   :  { %8929 = vmatpush1.bf16.msra.mxu0 %v9819_v13  ;;  %8766 = vmatprep.subr.bf16.mxu1 %v9826_v25  ;;  %v9874_v13 = vcombine.high %v5455_v1, %v5459_v21  ;;  %v9876_v25 = vcombine.high %v5456_v4, %v5460_v22  ;;  %v5500_v9 = vld [vmem:[#allocation4 + $0x478] sm:$0xff] }
 0x774   :  { %8930 = vmatprep.subr.bf16.mxu0 %v9828_v23  ;;  %v5463_v23 = vld [vmem:[#allocation4 + $0x350] sm:$0xff]  ;;  %v9916_v1 = vcombine.high %v5496_v16, %v5500_v9  ;;  %v5504_v21 = vld [vmem:[#allocation4 + $0x498] sm:$0xff] }
 0x775   :  { %v9881_v49 = vcombine.low %v5463_v23, %v5467_v28 }
 0x776   :  { %8767 = vmatpush1.bf16.msra.mxu1 %v9825_v31  ;;  %v9875_v31 = vcombine.low %v5456_v4, %v5460_v22  ;;  %v5508_v4 = vld [vmem:[#allocation4 + $0x4b8] sm:$0xff] }
 0x777   :  { %8931 = vmatpush1.bf16.msra.mxu0 %v9827_v36  ;;  %8768 = vmatprep.subr.bf16.mxu1 %v9834_v33  ;;  %v9882_v36 = vcombine.high %v5463_v23, %v5467_v28  ;;  %v9884_v33 = vcombine.high %v5464_v29, %v5468_v30  ;;  %v5515_v23 = vld [vmem:[#allocation4 + $0x4f0] sm:$0xff]  ;;  %v5512_v28 = vld [vmem:[#allocation4 + $0x4d8] sm:$0xff] }
 0x778   :  { %8932 = vmatprep.subr.bf16.mxu0 %v9836_v46  ;;  %v5471_v46 = vld [vmem:[#allocation4 + $0x390] sm:$0xff] }
 0x779   :  { %v9889_v10 = vcombine.low %v5471_v46, %v5475_v43 }
 0x77a   :  { %8769 = vmatpush1.bf16.msra.mxu1 %v9833_v50  ;;  %v9883_v50 = vcombine.low %v5464_v29, %v5468_v30  ;;  %v5516_v29 = vld [vmem:[#allocation4 + $0x4f8] sm:$0xff] }
 0x77b   :  { %8933 = vmatpush1.bf16.msra.mxu0 %v9835_v51  ;;  %8770 = vmatprep.subr.bf16.mxu1 %v9842_v52  ;;  %v9890_v51 = vcombine.high %v5471_v46, %v5475_v43  ;;  %v9892_v52 = vcombine.high %v5472_v44, %v5476_v47  ;;  %v5520_v46 = vld [vmem:[#allocation4 + $0x518] sm:$0xff] }
 0x77c   :  { %8934 = vmatprep.subr.bf16.mxu0 %v9844_v61  ;;  %v5479_v61 = vld [vmem:[#allocation4 + $0x3d0] sm:$0xff]  ;;  %v5524_v43 = vld [vmem:[#allocation4 + $0x538] sm:$0xff] }
 0x77d   :  { %v9897_v62 = vcombine.low %v5479_v61, %v5483_v53 }
 0x77e   :  { %8771 = vmatpush1.bf16.msra.mxu1 %v9841_v55  ;;  %v9891_v55 = vcombine.low %v5472_v44, %v5476_v47  ;;  %v9931_v44 = vcombine.low %v5512_v28, %v5516_v29 }
 0x77f   :  { %8935 = vmatpush1.bf16.msra.mxu0 %v9843_v56  ;;  %8772 = vmatprep.subr.bf16.mxu1 %v9850_v59  ;;  %v9898_v56 = vcombine.high %v5479_v61, %v5483_v53  ;;  %v9900_v59 = vcombine.high %v5480_v54, %v5484_v48  ;;  %v5532_v61 = vld [vmem:[#allocation4 + $0x578] sm:$0xff] }
 0x780   :  { %8936 = vmatprep.subr.bf16.mxu0 %v9852_v60  ;;  %v5487_v60 = vld [vmem:[#allocation4 + $0x410] sm:$0xff] }
 0x781   :  { %v9905_v7 = vcombine.low %v5487_v60, %v5491_v2 }
 0x782   :  { %8773 = vmatpush1.bf16.msra.mxu1 %v9849_v37  ;;  %v9899_v37 = vcombine.low %v5480_v54, %v5484_v48  ;;  %v9939_v54 = vcombine.low %v5520_v46, %v5524_v43 }
 0x783   :  { %8937 = vmatpush1.bf16.msra.mxu0 %v9851_v18  ;;  %8774 = vmatprep.subr.bf16.mxu1 %v9858_v35  ;;  %v9906_v18 = vcombine.high %v5487_v60, %v5491_v2  ;;  %v9908_v35 = vcombine.high %v5488_v0, %v5492_v12  ;;  %v5540_v60 = vld [vmem:[#allocation4 + $0x5b8] sm:$0xff] }
 0x784   :  { %8938 = vmatprep.subr.bf16.mxu0 %v9860_v3  ;;  %v5495_v3 = vld [vmem:[#allocation4 + $0x450] sm:$0xff] }
 0x785   :  { %v9913_v22 = vcombine.low %v5495_v3, %v5499_v5 }
 0x786   :  { %8775 = vmatpush1.bf16.msra.mxu1 %v9857_v14  ;;  %v9907_v14 = vcombine.low %v5488_v0, %v5492_v12 }
 0x787   :  { %8939 = vmatpush1.bf16.msra.mxu0 %v9859_v15  ;;  %8776 = vmatprep.subr.bf16.mxu1 %v9866_v17  ;;  %v9914_v15 = vcombine.high %v5495_v3, %v5499_v5  ;;  %v5503_v17 = vld [vmem:[#allocation4 + $0x490] sm:$0xff]  ;;  %v5548_v3 = vld [vmem:[#allocation4 + $0x5f8] sm:$0xff] }
 0x788   :  { %8940 = vmatprep.subr.bf16.mxu0 %v9868_v20  ;;  %v5507_v20 = vld [vmem:[#allocation4 + $0x4b0] sm:$0xff] }
 0x789   :  { %v9921_v30 = vcombine.low %v5503_v17, %v5507_v20 }
 0x78a   :  { %8777 = vmatpush1.bf16.msra.mxu1 %v9865_v24  ;;  %v9915_v24 = vcombine.low %v5496_v16, %v5500_v9 }
 0x78b   :  { %8941 = vmatpush1.bf16.msra.mxu0 %v9867_v27  ;;  %8778 = vmatprep.subr.bf16.mxu1 %v9874_v13  ;;  %v9922_v27 = vcombine.high %v5503_v17, %v5507_v20  ;;  %v9924_v13 = vcombine.high %v5504_v21, %v5508_v4  ;;  %v5552_v17 = vld [vmem:[#allocation4 + $0x618] sm:$0xff] }
 0x78c   :  { %8942 = vmatprep.subr.bf16.mxu0 %v9876_v25  ;;  %v5511_v25 = vld [vmem:[#allocation4 + $0x4d0] sm:$0xff]  ;;  %v5556_v20 = vld [vmem:[#allocation4 + $0x638] sm:$0xff] }
 0x78e   :  { %8779 = vmatpush1.bf16.msra.mxu1 %v9873_v45  ;;  %v9930_v45 = vcombine.high %v5511_v25, %v5515_v23 }
 0x78f   :  { %8943 = vmatpush1.bf16.msra.mxu0 %v9875_v31  ;;  %8780 = vmatprep.subr.bf16.mxu1 %v9882_v36  ;;  %v9932_v31 = vcombine.high %v5512_v28, %v5516_v29  ;;  %v5519_v36 = vld [vmem:[#allocation4 + $0x510] sm:$0xff]  ;;  %v9971_v28 = vcombine.low %v5552_v17, %v5556_v20 }
 0x790   :  { %8944 = vmatprep.subr.bf16.mxu0 %v9884_v33  ;;  %v5523_v33 = vld [vmem:[#allocation4 + $0x530] sm:$0xff] }
 0x791   :  { %v9938_v47 = vcombine.high %v5519_v36, %v5523_v33  ;;  %v9937_v53 = vcombine.low %v5519_v36, %v5523_v33  ;;  %v5572_v36 = vld [vmem:[#allocation4 + $0x6b8] sm:$0xff] }
 0x792   :  { %8781 = vmatpush1.bf16.msra.mxu1 %v9881_v49  ;;  %v9940_v49 = vcombine.high %v5520_v46, %v5524_v43 }
 0x793   :  { %8945 = vmatpush1.bf16.msra.mxu0 %v9883_v50  ;;  %8782 = vmatprep.subr.bf16.mxu1 %v9890_v51  ;;  %v5527_v50 = vld [vmem:[#allocation4 + $0x550] sm:$0xff] }
 0x794   :  { %8946 = vmatprep.subr.bf16.mxu0 %v9892_v52  ;;  %v5531_v51 = vld [vmem:[#allocation4 + $0x570] sm:$0xff]  ;;  %v5528_v52 = vld [vmem:[#allocation4 + $0x558] sm:$0xff] }
 0x795   :  { %v9946_v48 = vcombine.high %v5527_v50, %v5531_v51  ;;  %v9945_v2 = vcombine.low %v5527_v50, %v5531_v51  ;;  %v9947_v0 = vcombine.low %v5528_v52, %v5532_v61  ;;  %v5580_v50 = vld [vmem:[#allocation4 + $0x6f8] sm:$0xff] }
 0x796   :  { %8783 = vmatpush1.bf16.msra.mxu1 %v9889_v10  ;;  %v9948_v10 = vcombine.high %v5528_v52, %v5532_v61 }
 0x797   :  { %8947 = vmatpush1.bf16.msra.mxu0 %v9891_v55  ;;  %8784 = vmatprep.subr.bf16.mxu1 %v9898_v56  ;;  %v5535_v55 = vld [vmem:[#allocation4 + $0x590] sm:$0xff] }
 0x798   :  { %8948 = vmatprep.subr.bf16.mxu0 %v9900_v59  ;;  %v5539_v56 = vld [vmem:[#allocation4 + $0x5b0] sm:$0xff]  ;;  %v5536_v59 = vld [vmem:[#allocation4 + $0x598] sm:$0xff] }
 0x799   :  { %v9954_v12 = vcombine.high %v5535_v55, %v5539_v56  ;;  %v9953_v5 = vcombine.low %v5535_v55, %v5539_v56  ;;  %v5588_v55 = vld [vmem:[#allocation4 + $0x738] sm:$0xff] }
 0x79a   :  { %8785 = vmatpush1.bf16.msra.mxu1 %v9897_v62  ;;  %v9956_v62 = vcombine.high %v5536_v59, %v5540_v60 }
 0x79b   :  { %8949 = vmatpush1.bf16.msra.mxu0 %v9899_v37  ;;  %8795 = vmatprep.subr.bf16.mxu1 %v9906_v18  ;;  %v5543_v37 = vld [vmem:[#allocation4 + $0x5d0] sm:$0xff] }
 0x79c   :  { %8959 = vmatprep.subr.bf16.mxu0 %v9908_v35  ;;  %v5547_v18 = vld [vmem:[#allocation4 + $0x5f0] sm:$0xff]  ;;  %v5544_v35 = vld [vmem:[#allocation4 + $0x5d8] sm:$0xff] }
 0x79d   :  { %8787 = vmatmul.mubr.bf16.vlgmr.msra.gmra.mrb[32].mxu1 %v11458_v19  ;;  %v9962_v16 = vcombine.high %v5543_v37, %v5547_v18  ;;  %v9964_v9 = vcombine.high %v5544_v35, %v5548_v3 }
 0x79e   :  { %8951 = vmatmul.mubr.bf16.vlgmr.msra.gmra.mrb[36].mxu0 %v11458_v19  ;;  %8796 = vmatpush1.bf16.msra.mxu1 %v9905_v7  ;;  %v9923_v19 = vcombine.low %v5504_v21, %v5508_v4  ;;  %v9955_v7 = vcombine.low %v5536_v59, %v5540_v60  ;;  %v9963_v21 = vcombine.low %v5544_v35, %v5548_v3 }
 0x79f   :  { %8827 = vmatprep.mubr.bf16.mxu1 %v11462_v26  ;;  %8960 = vmatpush1.bf16.msra.mxu0 %v9907_v14  ;;  %v5551_v14 = vld [vmem:[#allocation4 + $0x610] sm:$0xff] }
 0x7a0   :  { %8991 = vmatprep.mubr.bf16.mxu0 %v11462_v26  ;;  %8797 = vmatprep.subr.bf16.mxu1 %v9914_v15  ;;  %v9929_v26 = vcombine.low %v5511_v25, %v5515_v23  ;;  %v5555_v15 = vld [vmem:[#allocation4 + $0x630] sm:$0xff]  ;;  %v5564_v25 = vld [vmem:[#allocation4 + $0x678] sm:$0xff] }
 0x7a1   :  { %8961 = vmatprep.subr.bf16.mxu0 %v9916_v1  ;;  %v9961_v1 = vcombine.low %v5543_v37, %v5547_v18  ;;  %v9970_v4 = vcombine.high %v5551_v14, %v5555_v15  ;;  %v9969_v23 = vcombine.low %v5551_v14, %v5555_v15  ;;  %v5596_v37 = vld [vmem:[#allocation4 + $0x778] sm:$0xff] }
 0x7a2   :  { %8798 = vmatpush1.bf16.msra.mxu1 %v9913_v22  ;;  %v9972_v22 = vcombine.high %v5552_v17, %v5556_v20  ;;  %v5604_v14 = vld [vmem:[#allocation4 + $0x7b8] sm:$0xff] }
 0x7a3   :  { %8962 = vmatpush1.bf16.msra.mxu0 %v9915_v24  ;;  %8799 = vmatprep.subr.bf16.mxu1 %v9922_v27  ;;  %v5559_v24 = vld [vmem:[#allocation4 + $0x650] sm:$0xff] }
 0x7a4   :  { %8963 = vmatprep.subr.bf16.mxu0 %v9924_v13  ;;  %v5563_v27 = vld [vmem:[#allocation4 + $0x670] sm:$0xff]  ;;  %v5560_v13 = vld [vmem:[#allocation4 + $0x658] sm:$0xff] }
 0x7a5   :  { %v9978_v29 = vcombine.high %v5559_v24, %v5563_v27  ;;  %v9977_v33 = vcombine.low %v5559_v24, %v5563_v27  ;;  %v9979_v46 = vcombine.low %v5560_v13, %v5564_v25  ;;  %v5612_v24 = vld [vmem:[#allocation4 + $0x7f8] sm:$0xff] }
 0x7a6   :  { %8800 = vmatpush1.bf16.msra.mxu1 %v9921_v30  ;;  %v9980_v30 = vcombine.high %v5560_v13, %v5564_v25 }
 0x7a7   :  { %8964 = vmatpush1.bf16.msra.mxu0 %v9923_v19  ;;  %8801 = vmatprep.subr.bf16.mxu1 %v9930_v45  ;;  %v5567_v19 = vld [vmem:[#allocation4 + $0x690] sm:$0xff] }
 0x7a8   :  { %8965 = vmatprep.subr.bf16.mxu0 %v9932_v31  ;;  %v5571_v45 = vld [vmem:[#allocation4 + $0x6b0] sm:$0xff]  ;;  %v5568_v31 = vld [vmem:[#allocation4 + $0x698] sm:$0xff] }
 0x7a9   :  { %v9986_v43 = vcombine.high %v5567_v19, %v5571_v45  ;;  %v9985_v51 = vcombine.low %v5567_v19, %v5571_v45  ;;  %v9987_v52 = vcombine.low %v5568_v31, %v5572_v36  ;;  %v5620_v19 = vld [vmem:[#allocation4 + $0x838] sm:$0xff] }
 0x7aa   :  { %8802 = vmatpush1.bf16.msra.mxu1 %v9929_v26  ;;  %v9988_v26 = vcombine.high %v5568_v31, %v5572_v36 }
 0x7ab   :  { %8966 = vmatpush1.bf16.msra.mxu0 %v9931_v44  ;;  %8803 = vmatprep.subr.bf16.mxu1 %v9938_v47  ;;  %v5575_v44 = vld [vmem:[#allocation4 + $0x6d0] sm:$0xff] }
 0x7ac   :  { %8967 = vmatprep.subr.bf16.mxu0 %v9940_v49  ;;  %v5579_v47 = vld [vmem:[#allocation4 + $0x6f0] sm:$0xff]  ;;  %v5576_v49 = vld [vmem:[#allocation4 + $0x6d8] sm:$0xff] }
 0x7ad   :  { %v9994_v61 = vcombine.high %v5575_v44, %v5579_v47  ;;  %v9993_v56 = vcombine.low %v5575_v44, %v5579_v47  ;;  %v9995_v59 = vcombine.low %v5576_v49, %v5580_v50  ;;  %v5624_v44 = vld [vmem:[#allocation4 + $0x858] sm:$0xff] }
 0x7ae   :  { %8804 = vmatpush1.bf16.msra.mxu1 %v9937_v53  ;;  %v9996_v53 = vcombine.high %v5576_v49, %v5580_v50  ;;  %v5628_v47 = vld [vmem:[#allocation4 + $0x878] sm:$0xff] }
 0x7af   :  { %8968 = vmatpush1.bf16.msra.mxu0 %v9939_v54  ;;  %8805 = vmatprep.subr.bf16.mxu1 %v9946_v48  ;;  %v5583_v54 = vld [vmem:[#allocation4 + $0x710] sm:$0xff] }
 0x7b0   :  { %8969 = vmatprep.subr.bf16.mxu0 %v9948_v10  ;;  %v5587_v48 = vld [vmem:[#allocation4 + $0x730] sm:$0xff]  ;;  %v5584_v10 = vld [vmem:[#allocation4 + $0x718] sm:$0xff] }
 0x7b1   :  { %v10002_v60 = vcombine.high %v5583_v54, %v5587_v48  ;;  %v10001_v18 = vcombine.low %v5583_v54, %v5587_v48  ;;  %v10003_v35 = vcombine.low %v5584_v10, %v5588_v55  ;;  %v5636_v54 = vld [vmem:[#allocation4 + $0x8b8] sm:$0xff] }
 0x7b2   :  { %8806 = vmatpush1.bf16.msra.mxu1 %v9945_v2  ;;  %v10004_v2 = vcombine.high %v5584_v10, %v5588_v55  ;;  %v10043_v10 = vcombine.low %v5624_v44, %v5628_v47 }
 0x7b3   :  { %8970 = vmatpush1.bf16.msra.mxu0 %v9947_v0  ;;  %8807 = vmatprep.subr.bf16.mxu1 %v9954_v12  ;;  %v5591_v0 = vld [vmem:[#allocation4 + $0x750] sm:$0xff] }
 0x7b4   :  { %8971 = vmatprep.subr.bf16.mxu0 %v9956_v62  ;;  %v5595_v12 = vld [vmem:[#allocation4 + $0x770] sm:$0xff]  ;;  %v5592_v62 = vld [vmem:[#allocation4 + $0x758] sm:$0xff] }
 0x7b5   :  { %v10010_v3 = vcombine.high %v5591_v0, %v5595_v12  ;;  %v10009_v15 = vcombine.low %v5591_v0, %v5595_v12  ;;  %v10011_v17 = vcombine.low %v5592_v62, %v5596_v37  ;;  %v5644_v0 = vld [vmem:[#allocation4 + $0x8f8] sm:$0xff] }
 0x7b6   :  { %8808 = vmatpush1.bf16.msra.mxu1 %v9953_v5  ;;  %v10012_v5 = vcombine.high %v5592_v62, %v5596_v37 }
 0x7b7   :  { %8972 = vmatpush1.bf16.msra.mxu0 %v9955_v7  ;;  %8809 = vmatprep.subr.bf16.mxu1 %v9962_v16  ;;  %v5599_v7 = vld [vmem:[#allocation4 + $0x790] sm:$0xff] }
 0x7b8   :  { %8973 = vmatprep.subr.bf16.mxu0 %v9964_v9  ;;  %v5603_v16 = vld [vmem:[#allocation4 + $0x7b0] sm:$0xff]  ;;  %v5600_v9 = vld [vmem:[#allocation4 + $0x798] sm:$0xff] }
 0x7b9   :  { %v10018_v20 = vcombine.high %v5599_v7, %v5603_v16  ;;  %v10017_v27 = vcombine.low %v5599_v7, %v5603_v16  ;;  %v10019_v13 = vcombine.low %v5600_v9, %v5604_v14 }
 0x7ba   :  { %8810 = vmatpush1.bf16.msra.mxu1 %v9961_v1  ;;  %v10020_v1 = vcombine.high %v5600_v9, %v5604_v14  ;;  %v5655_v14 = vld [vmem:[#allocation4 + $0x950] sm:$0xff] }
 0x7bb   :  { %8974 = vmatpush1.bf16.msra.mxu0 %v9963_v21  ;;  %8811 = vmatprep.subr.bf16.mxu1 %v9970_v4  ;;  %v5607_v21 = vld [vmem:[#allocation4 + $0x7d0] sm:$0xff] }
 0x7bc   :  { %8975 = vmatprep.subr.bf16.mxu0 %v9972_v22  ;;  %v5611_v4 = vld [vmem:[#allocation4 + $0x7f0] sm:$0xff]  ;;  %v5608_v22 = vld [vmem:[#allocation4 + $0x7d8] sm:$0xff] }
 0x7bd   :  { %v10026_v25 = vcombine.high %v5607_v21, %v5611_v4  ;;  %v10025_v45 = vcombine.low %v5607_v21, %v5611_v4  ;;  %v10027_v31 = vcombine.low %v5608_v22, %v5612_v24 }
 0x7be   :  { %8812 = vmatpush1.bf16.msra.mxu1 %v9969_v23  ;;  %v10028_v23 = vcombine.high %v5608_v22, %v5612_v24  ;;  %v5663_v24 = vld [vmem:[#allocation4 + $0x990] sm:$0xff] }
 0x7bf   :  { %8976 = vmatpush1.bf16.msra.mxu0 %v9971_v28  ;;  %8813 = vmatprep.subr.bf16.mxu1 %v9978_v29  ;;  %v5615_v28 = vld [vmem:[#allocation4 + $0x810] sm:$0xff] }
 0x7c0   :  { %8977 = vmatprep.subr.bf16.mxu0 %v9980_v30  ;;  %v5619_v29 = vld [vmem:[#allocation4 + $0x830] sm:$0xff]  ;;  %v5616_v30 = vld [vmem:[#allocation4 + $0x818] sm:$0xff] }
 0x7c1   :  { %v10034_v36 = vcombine.high %v5615_v28, %v5619_v29  ;;  %v10035_v49 = vcombine.low %v5616_v30, %v5620_v19 }
 0x7c2   :  { %8814 = vmatpush1.bf16.msra.mxu1 %v9977_v33  ;;  %v10036_v33 = vcombine.high %v5616_v30, %v5620_v19  ;;  %v5671_v19 = vld [vmem:[#allocation4 + $0x9d0] sm:$0xff] }
 0x7c3   :  { %8978 = vmatpush1.bf16.msra.mxu0 %v9979_v46  ;;  %8815 = vmatprep.subr.bf16.mxu1 %v9986_v43  ;;  %v5623_v46 = vld [vmem:[#allocation4 + $0x850] sm:$0xff] }
 0x7c4   :  { %8979 = vmatprep.subr.bf16.mxu0 %v9988_v26  ;;  %v5627_v43 = vld [vmem:[#allocation4 + $0x870] sm:$0xff]  ;;  %v10033_v26 = vcombine.low %v5615_v28, %v5619_v29 }
 0x7c5   :  { %v10042_v50 = vcombine.high %v5623_v46, %v5627_v43  ;;  %v10041_v48 = vcombine.low %v5623_v46, %v5627_v43 }
 0x7c6   :  { %8816 = vmatpush1.bf16.msra.mxu1 %v9985_v51  ;;  %v5631_v51 = vld [vmem:[#allocation4 + $0x890] sm:$0xff] }
 0x7c7   :  { %8980 = vmatpush1.bf16.msra.mxu0 %v9987_v52  ;;  %8817 = vmatprep.subr.bf16.mxu1 %v9994_v61  ;;  %v5635_v52 = vld [vmem:[#allocation4 + $0x8b0] sm:$0xff]  ;;  %v10044_v61 = vcombine.high %v5624_v44, %v5628_v47 }
 0x7c8   :  { %8981 = vmatprep.subr.bf16.mxu0 %v9996_v53  ;;  %v5632_v53 = vld [vmem:[#allocation4 + $0x898] sm:$0xff]  ;;  %v10050_v55 = vcombine.high %v5631_v51, %v5635_v52  ;;  %v10049_v12 = vcombine.low %v5631_v51, %v5635_v52  ;;  %v5679_v44 = vld [vmem:[#allocation4 + $0xa10] sm:$0xff] }
 0x7c9   :  { %v5683_v47 = vld [vmem:[#allocation4 + $0xa30] sm:$0xff] }
 0x7ca   :  { %8818 = vmatpush1.bf16.msra.mxu1 %v9993_v56  ;;  %v10052_v56 = vcombine.high %v5632_v53, %v5636_v54 }
 0x7cb   :  { %8982 = vmatpush1.bf16.msra.mxu0 %v9995_v59  ;;  %8819 = vmatprep.subr.bf16.mxu1 %v10002_v60  ;;  %v5639_v59 = vld [vmem:[#allocation4 + $0x8d0] sm:$0xff] }
 0x7cc   :  { %8983 = vmatprep.subr.bf16.mxu0 %v10004_v2  ;;  %v5643_v60 = vld [vmem:[#allocation4 + $0x8f0] sm:$0xff]  ;;  %v5640_v2 = vld [vmem:[#allocation4 + $0x8d8] sm:$0xff] }
 0x7cd   :  { %v10058_v62 = vcombine.high %v5639_v59, %v5643_v60  ;;  %v10060_v37 = vcombine.high %v5640_v2, %v5644_v0  ;;  %v10059_v7 = vcombine.low %v5640_v2, %v5644_v0  ;;  %v5695_v0 = vld [vmem:[#allocation4 + $0xa90] sm:$0xff] }
 0x7ce   :  { %8820 = vmatpush1.bf16.msra.mxu1 %v10001_v18  ;;  %v5647_v18 = vld [vmem:[#allocation4 + $0x910] sm:$0xff] }
 0x7cf   :  { %8984 = vmatpush1.bf16.msra.mxu0 %v10003_v35  ;;  %8821 = vmatprep.subr.bf16.mxu1 %v10010_v3  ;;  %v5651_v35 = vld [vmem:[#allocation4 + $0x930] sm:$0xff]  ;;  %v5648_v3 = vld [vmem:[#allocation4 + $0x918] sm:$0xff] }
 0x7d0   :  { %8985 = vmatprep.subr.bf16.mxu0 %v10012_v5  ;;  %v5652_v5 = vld [vmem:[#allocation4 + $0x938] sm:$0xff]  ;;  %v10066_v16 = vcombine.high %v5647_v18, %v5651_v35 }
 0x7d1   :  { %v10068_v9 = vcombine.high %v5648_v3, %v5652_v5  ;;  %v10067_v21 = vcombine.low %v5648_v3, %v5652_v5  ;;  %v5703_v5 = vld [vmem:[#allocation4 + $0xad0] sm:$0xff] }
 0x7d2   :  { %8822 = vmatpush1.bf16.msra.mxu1 %v10009_v15  ;;  %v5659_v15 = vld [vmem:[#allocation4 + $0x970] sm:$0xff] }
 0x7d3   :  { %8986 = vmatpush1.bf16.msra.mxu0 %v10011_v17  ;;  %8823 = vmatprep.subr.bf16.mxu1 %v10018_v20  ;;  %v5656_v17 = vld [vmem:[#allocation4 + $0x958] sm:$0xff]  ;;  %v10074_v4 = vcombine.high %v5655_v14, %v5659_v15 }
 0x7d4   :  { %8987 = vmatprep.subr.bf16.mxu0 %v10020_v1  ;;  %v5660_v20 = vld [vmem:[#allocation4 + $0x978] sm:$0xff]  ;;  %v10065_v1 = vcombine.low %v5647_v18, %v5651_v35 }
 0x7d5   :  { %v10076_v22 = vcombine.high %v5656_v17, %v5660_v20  ;;  %v10075_v28 = vcombine.low %v5656_v17, %v5660_v20  ;;  %v5711_v20 = vld [vmem:[#allocation4 + $0xb10] sm:$0xff] }
 0x7d6   :  { %8824 = vmatpush1.bf16.msra.mxu1 %v10017_v27  ;;  %v5667_v27 = vld [vmem:[#allocation4 + $0x9b0] sm:$0xff] }
 0x7d7   :  { %8988 = vmatpush1.bf16.msra.mxu0 %v10019_v13  ;;  %8825 = vmatprep.subr.bf16.mxu1 %v10026_v25  ;;  %v5664_v13 = vld [vmem:[#allocation4 + $0x998] sm:$0xff]  ;;  %v10082_v29 = vcombine.high %v5663_v24, %v5667_v27 }
 0x7d8   :  { %8989 = vmatprep.subr.bf16.mxu0 %v10028_v23  ;;  %v5668_v25 = vld [vmem:[#allocation4 + $0x9b8] sm:$0xff]  ;;  %v10073_v23 = vcombine.low %v5655_v14, %v5659_v15 }
 0x7d9   :  { %v10084_v30 = vcombine.high %v5664_v13, %v5668_v25  ;;  %v10083_v46 = vcombine.low %v5664_v13, %v5668_v25  ;;  %v5719_v25 = vld [vmem:[#allocation4 + $0xb50] sm:$0xff] }
 0x7da   :  { %8826 = vmatpush1.bf16.msra.mxu1 %v10025_v45  ;;  %v5675_v45 = vld [vmem:[#allocation4 + $0x9f0] sm:$0xff] }
 0x7db   :  { %8990 = vmatpush1.bf16.msra.mxu0 %v10027_v31  ;;  %8836 = vmatprep.subr.bf16.mxu1 %v10034_v36  ;;  %v5672_v31 = vld [vmem:[#allocation4 + $0x9d8] sm:$0xff]  ;;  %v10090_v43 = vcombine.high %v5671_v19, %v5675_v45  ;;  %v10089_v51 = vcombine.low %v5671_v19, %v5675_v45 }
 0x7dc   :  { %9000 = vmatprep.subr.bf16.mxu0 %v10036_v33  ;;  %v5676_v36 = vld [vmem:[#allocation4 + $0x9f8] sm:$0xff]  ;;  %v10081_v33 = vcombine.low %v5663_v24, %v5667_v27 }
 0x7dd   :  { %8828 = vmatmul.mubr.bf16.vlgmr.msra.gmra.mrb[32].mxu1 %v11482_v8  ;;  %v10091_v52 = vcombine.low %v5672_v31, %v5676_v36 }
 0x7de   :  { %8992 = vmatmul.mubr.bf16.vlgmr.msra.gmra.mrb[36].mxu0 %v11482_v8  ;;  %8837 = vmatpush1.bf16.msra.mxu1 %v10033_v26  ;;  %v10051_v8 = vcombine.low %v5632_v53, %v5636_v54  ;;  %v10092_v26 = vcombine.high %v5672_v31, %v5676_v36  ;;  %v5687_v54 = vld [vmem:[#allocation4 + $0xa50] sm:$0xff] }
 0x7df   :  { %8868 = vmatprep.mubr.bf16.mxu1 %v11484_v57  ;;  %9001 = vmatpush1.bf16.msra.mxu0 %v10035_v49  ;;  %v5680_v49 = vld [vmem:[#allocation4 + $0xa18] sm:$0xff]  ;;  %v5727_v36 = vld [vmem:[#allocation4 + $0xb90] sm:$0xff] }
 0x7e0   :  { %9032 = vmatprep.mubr.bf16.mxu0 %v11484_v57  ;;  %8838 = vmatprep.subr.bf16.mxu1 %v10042_v50  ;;  %v10057_v57 = vcombine.low %v5639_v59, %v5643_v60  ;;  %v5684_v50 = vld [vmem:[#allocation4 + $0xa38] sm:$0xff] }
 0x7e1   :  { %9002 = vmatprep.subr.bf16.mxu0 %v10044_v61  ;;  %v10098_v61 = vcombine.high %v5679_v44, %v5683_v47  ;;  %v10100_v53 = vcombine.high %v5680_v49, %v5684_v50  ;;  %v10099_v59 = vcombine.low %v5680_v49, %v5684_v50  ;;  %v5735_v50 = vld [vmem:[#allocation4 + $0xbd0] sm:$0xff] }
 0x7e2   :  { %8839 = vmatpush1.bf16.msra.mxu1 %v10041_v48  ;;  %v5691_v48 = vld [vmem:[#allocation4 + $0xa70] sm:$0xff] }
 0x7e3   :  { %9003 = vmatpush1.bf16.msra.mxu0 %v10043_v10  ;;  %8840 = vmatprep.subr.bf16.mxu1 %v10050_v55  ;;  %v5688_v10 = vld [vmem:[#allocation4 + $0xa58] sm:$0xff]  ;;  %v10106_v60 = vcombine.high %v5687_v54, %v5691_v48 }
 0x7e4   :  { %9004 = vmatprep.subr.bf16.mxu0 %v10052_v56  ;;  %v5692_v55 = vld [vmem:[#allocation4 + $0xa78] sm:$0xff]  ;;  %v10097_v56 = vcombine.low %v5679_v44, %v5683_v47 }
 0x7e5   :  { %v10108_v2 = vcombine.high %v5688_v10, %v5692_v55  ;;  %v10107_v18 = vcombine.low %v5688_v10, %v5692_v55  ;;  %v5743_v55 = vld [vmem:[#allocation4 + $0xc10] sm:$0xff] }
 0x7e6   :  { %8841 = vmatpush1.bf16.msra.mxu1 %v10049_v12  ;;  %v5699_v12 = vld [vmem:[#allocation4 + $0xab0] sm:$0xff] }
 0x7e7   :  { %9005 = vmatpush1.bf16.msra.mxu0 %v10051_v8  ;;  %8842 = vmatprep.subr.bf16.mxu1 %v10058_v62  ;;  %v5696_v8 = vld [vmem:[#allocation4 + $0xa98] sm:$0xff]  ;;  %v10114_v35 = vcombine.high %v5695_v0, %v5699_v12 }
 0x7e8   :  { %9006 = vmatprep.subr.bf16.mxu0 %v10060_v37  ;;  %v5700_v62 = vld [vmem:[#allocation4 + $0xab8] sm:$0xff]  ;;  %v10105_v37 = vcombine.low %v5687_v54, %v5691_v48 }
 0x7e9   :  { %v10116_v3 = vcombine.high %v5696_v8, %v5700_v62  ;;  %v10115_v14 = vcombine.low %v5696_v8, %v5700_v62  ;;  %v5751_v62 = vld [vmem:[#allocation4 + $0xc50] sm:$0xff] }
 0x7ea   :  { %8843 = vmatpush1.bf16.msra.mxu1 %v10057_v57  ;;  %v5707_v57 = vld [vmem:[#allocation4 + $0xaf0] sm:$0xff] }
 0x7eb   :  { %9007 = vmatpush1.bf16.msra.mxu0 %v10059_v7  ;;  %8844 = vmatprep.subr.bf16.mxu1 %v10066_v16  ;;  %v5704_v7 = vld [vmem:[#allocation4 + $0xad8] sm:$0xff]  ;;  %v10122_v15 = vcombine.high %v5703_v5, %v5707_v57 }
 0x7ec   :  { %9008 = vmatprep.subr.bf16.mxu0 %v10068_v9  ;;  %v5708_v16 = vld [vmem:[#allocation4 + $0xaf8] sm:$0xff]  ;;  %v10113_v9 = vcombine.low %v5695_v0, %v5699_v12 }
 0x7ed   :  { %v10124_v17 = vcombine.high %v5704_v7, %v5708_v16  ;;  %v10123_v24 = vcombine.low %v5704_v7, %v5708_v16  ;;  %v5759_v7 = vld [vmem:[#allocation4 + $0xc90] sm:$0xff] }
 0x7ee   :  { %8845 = vmatpush1.bf16.msra.mxu1 %v10065_v1  ;;  %v5715_v1 = vld [vmem:[#allocation4 + $0xb30] sm:$0xff] }
 0x7ef   :  { %9009 = vmatpush1.bf16.msra.mxu0 %v10067_v21  ;;  %8846 = vmatprep.subr.bf16.mxu1 %v10074_v4  ;;  %v5712_v21 = vld [vmem:[#allocation4 + $0xb18] sm:$0xff]  ;;  %v10130_v27 = vcombine.high %v5711_v20, %v5715_v1  ;;  %v5763_v16 = vld [vmem:[#allocation4 + $0xcb0] sm:$0xff] }
 0x7f0   :  { %9010 = vmatprep.subr.bf16.mxu0 %v10076_v22  ;;  %v5716_v4 = vld [vmem:[#allocation4 + $0xb38] sm:$0xff]  ;;  %v10121_v22 = vcombine.low %v5703_v5, %v5707_v57 }
 0x7f1   :  { %v10132_v13 = vcombine.high %v5712_v21, %v5716_v4  ;;  %v10131_v19 = vcombine.low %v5712_v21, %v5716_v4  ;;  %v5767_v4 = vld [vmem:[#allocation4 + $0xcd0] sm:$0xff] }
 0x7f2   :  { %8847 = vmatpush1.bf16.msra.mxu1 %v10073_v23  ;;  %v5723_v23 = vld [vmem:[#allocation4 + $0xb70] sm:$0xff] }
 0x7f3   :  { %9011 = vmatpush1.bf16.msra.mxu0 %v10075_v28  ;;  %8848 = vmatprep.subr.bf16.mxu1 %v10082_v29  ;;  %v5720_v28 = vld [vmem:[#allocation4 + $0xb58] sm:$0xff]  ;;  %v10138_v45 = vcombine.high %v5719_v25, %v5723_v23 }
 0x7f4   :  { %9012 = vmatprep.subr.bf16.mxu0 %v10084_v30  ;;  %v5724_v29 = vld [vmem:[#allocation4 + $0xb78] sm:$0xff]  ;;  %v10129_v30 = vcombine.low %v5711_v20, %v5715_v1  ;;  %v10178_v1 = vcombine.high %v5759_v7, %v5763_v16 }
 0x7f5   :  { %v10140_v31 = vcombine.high %v5720_v28, %v5724_v29  ;;  %v10139_v44 = vcombine.low %v5720_v28, %v5724_v29  ;;  %v5775_v28 = vld [vmem:[#allocation4 + $0xd10] sm:$0xff] }
 0x7f6   :  { %8849 = vmatpush1.bf16.msra.mxu1 %v10081_v33  ;;  %v5731_v33 = vld [vmem:[#allocation4 + $0xbb0] sm:$0xff] }
 0x7f7   :  { %9013 = vmatpush1.bf16.msra.mxu0 %v10083_v46  ;;  %8850 = vmatprep.subr.bf16.mxu1 %v10090_v43  ;;  %v5728_v46 = vld [vmem:[#allocation4 + $0xb98] sm:$0xff]  ;;  %v10146_v47 = vcombine.high %v5727_v36, %v5731_v33  ;;  %v5779_v29 = vld [vmem:[#allocation4 + $0xd30] sm:$0xff] }
 0x7f8   :  { %9014 = vmatprep.subr.bf16.mxu0 %v10092_v26  ;;  %v5732_v43 = vld [vmem:[#allocation4 + $0xbb8] sm:$0xff]  ;;  %v10137_v26 = vcombine.low %v5719_v25, %v5723_v23 }
 0x7f9   :  { %v10148_v49 = vcombine.high %v5728_v46, %v5732_v43  ;;  %v10147_v54 = vcombine.low %v5728_v46, %v5732_v43  ;;  %v5787_v46 = vld [vmem:[#allocation4 + $0xd70] sm:$0xff]  ;;  %v5784_v43 = vld [vmem:[#allocation4 + $0xd58] sm:$0xff] }
 0x7fa   :  { %8851 = vmatpush1.bf16.msra.mxu1 %v10089_v51  ;;  %v5739_v51 = vld [vmem:[#allocation4 + $0xbf0] sm:$0xff] }
 0x7fb   :  { %9015 = vmatpush1.bf16.msra.mxu0 %v10091_v52  ;;  %8852 = vmatprep.subr.bf16.mxu1 %v10098_v61  ;;  %v5736_v52 = vld [vmem:[#allocation4 + $0xbd8] sm:$0xff]  ;;  %v10154_v48 = vcombine.high %v5735_v50, %v5739_v51 }
 0x7fc   :  { %9016 = vmatprep.subr.bf16.mxu0 %v10100_v53  ;;  %v5740_v61 = vld [vmem:[#allocation4 + $0xbf8] sm:$0xff]  ;;  %v10145_v53 = vcombine.low %v5727_v36, %v5731_v33  ;;  %v5783_v33 = vld [vmem:[#allocation4 + $0xd50] sm:$0xff] }
 0x7fd   :  { %v10156_v10 = vcombine.high %v5736_v52, %v5740_v61  ;;  %v10155_v0 = vcombine.low %v5736_v52, %v5740_v61  ;;  %v5791_v52 = vld [vmem:[#allocation4 + $0xd90] sm:$0xff] }
 0x7fe   :  { %8853 = vmatpush1.bf16.msra.mxu1 %v10097_v56  ;;  %v5747_v56 = vld [vmem:[#allocation4 + $0xc30] sm:$0xff] }
 0x7ff   :  { %9017 = vmatpush1.bf16.msra.mxu0 %v10099_v59  ;;  %8854 = vmatprep.subr.bf16.mxu1 %v10106_v60  ;;  %v5744_v59 = vld [vmem:[#allocation4 + $0xc18] sm:$0xff]  ;;  %v10162_v12 = vcombine.high %v5743_v55, %v5747_v56  ;;  %v5795_v61 = vld [vmem:[#allocation4 + $0xdb0] sm:$0xff] }
 0x800   :  { %9018 = vmatprep.subr.bf16.mxu0 %v10108_v2  ;;  %v5748_v60 = vld [vmem:[#allocation4 + $0xc38] sm:$0xff]  ;;  %v10153_v2 = vcombine.low %v5735_v50, %v5739_v51  ;;  %v10202_v50 = vcombine.high %v5783_v33, %v5787_v46 }
 0x801   :  { %v10164_v8 = vcombine.high %v5744_v59, %v5748_v60  ;;  %v10163_v5 = vcombine.low %v5744_v59, %v5748_v60 }
 0x802   :  { %8855 = vmatpush1.bf16.msra.mxu1 %v10105_v37  ;;  %v5755_v37 = vld [vmem:[#allocation4 + $0xc70] sm:$0xff] }
 0x803   :  { %9019 = vmatpush1.bf16.msra.mxu0 %v10107_v18  ;;  %8856 = vmatprep.subr.bf16.mxu1 %v10114_v35  ;;  %v10161_v18 = vcombine.low %v5743_v55, %v5747_v56  ;;  %v5752_v35 = vld [vmem:[#allocation4 + $0xc58] sm:$0xff]  ;;  %v10170_v57 = vcombine.high %v5751_v62, %v5755_v37  ;;  %v10201_v56 = vcombine.low %v5783_v33, %v5787_v46 }
 0x804   :  { %9020 = vmatprep.subr.bf16.mxu0 %v10116_v3  ;;  %v5756_v3 = vld [vmem:[#allocation4 + $0xc78] sm:$0xff] }
 0x805   :  { %v10171_v20 = vcombine.low %v5752_v35, %v5756_v3 }
 0x806   :  { %8857 = vmatpush1.bf16.msra.mxu1 %v10113_v9  ;;  %v10172_v9 = vcombine.high %v5752_v35, %v5756_v3  ;;  %v5804_v35 = vld [vmem:[#allocation4 + $0xdf8] sm:$0xff] }
 0x807   :  { %9021 = vmatpush1.bf16.msra.mxu0 %v10115_v14  ;;  %8858 = vmatprep.subr.bf16.mxu1 %v10122_v15  ;;  %v5760_v14 = vld [vmem:[#allocation4 + $0xc98] sm:$0xff] }
 0x808   :  { %9022 = vmatprep.subr.bf16.mxu0 %v10124_v17  ;;  %v5764_v15 = vld [vmem:[#allocation4 + $0xcb8] sm:$0xff]  ;;  %v10169_v17 = vcombine.low %v5751_v62, %v5755_v37 }
 0x809   :  { %v10180_v21 = vcombine.high %v5760_v14, %v5764_v15 }
 0x80a   :  { %8859 = vmatpush1.bf16.msra.mxu1 %v10121_v22  ;;  %v5771_v22 = vld [vmem:[#allocation4 + $0xcf0] sm:$0xff] }
 0x80b   :  { %9023 = vmatpush1.bf16.msra.mxu0 %v10123_v24  ;;  %8860 = vmatprep.subr.bf16.mxu1 %v10130_v27  ;;  %v5768_v24 = vld [vmem:[#allocation4 + $0xcd8] sm:$0xff]  ;;  %v10186_v25 = vcombine.high %v5767_v4, %v5771_v22 }
 0x80c   :  { %9024 = vmatprep.subr.bf16.mxu0 %v10132_v13  ;;  %v5772_v27 = vld [vmem:[#allocation4 + $0xcf8] sm:$0xff]  ;;  %v10179_v13 = vcombine.low %v5760_v14, %v5764_v15 }
 0x80d   :  { %v10188_v23 = vcombine.high %v5768_v24, %v5772_v27 }
 0x80e   :  { %8861 = vmatpush1.bf16.msra.mxu1 %v10129_v30  ;;  %v5776_v30 = vld [vmem:[#allocation4 + $0xd18] sm:$0xff] }
 0x80f   :  { %9025 = vmatpush1.bf16.msra.mxu0 %v10131_v19  ;;  %8862 = vmatprep.subr.bf16.mxu1 %v10138_v45  ;;  %v5780_v19 = vld [vmem:[#allocation4 + $0xd38] sm:$0xff]  ;;  %v10187_v45 = vcombine.low %v5768_v24, %v5772_v27  ;;  %v5811_v24 = vld [vmem:[#allocation4 + $0xe30] sm:$0xff] }
 0x810   :  { %9026 = vmatprep.subr.bf16.mxu0 %v10140_v31  ;;  %v10194_v31 = vcombine.high %v5775_v28, %v5779_v29  ;;  %v10196_v36 = vcombine.high %v5776_v30, %v5780_v19 }
 0x812   :  { %8863 = vmatpush1.bf16.msra.mxu1 %v10137_v26  ;;  %v5788_v26 = vld [vmem:[#allocation4 + $0xd78] sm:$0xff] }
 0x813   :  { %9027 = vmatpush1.bf16.msra.mxu0 %v10139_v44  ;;  %8864 = vmatprep.subr.bf16.mxu1 %v10146_v47  ;;  %v10193_v44 = vcombine.low %v5775_v28, %v5779_v29  ;;  %v11538_v47 = vld [vmem:[%s11602_s15] sm:$0xff]  ;;  %v10204_v51 = vcombine.high %v5784_v43, %v5788_v26  ;;  %v10203_v60 = vcombine.low %v5784_v43, %v5788_v26  ;;  %v5823_v43 = vld [vmem:[#allocation4 + $0xe90] sm:$0xff] }
 0x814   :  { %9028 = vmatprep.subr.bf16.mxu0 %v10148_v49  ;;  %v10195_v49 = vcombine.low %v5776_v30, %v5780_v19  ;;  %v5866_v55 = vrot.slane %v11538_v47, %v10899_v58  ;;  %v5874_v59 = vrot.slane %v11538_v47, %v10907_v63  ;;  %v5815_v30 = vld [vmem:[#allocation4 + $0xe50] sm:$0xff] }
 0x815   :  { %v5819_v19 = vld [vmem:[#allocation4 + $0xe70] sm:$0xff] }
 0x816   :  { %8865 = vmatpush1.bf16.msra.mxu1 %v10145_v53  ;;  %v5862_v53 = vrot.slane %v11538_v47, %v10979_v40  ;;  %v10234_v33 = vcombine.high %v5815_v30, %v5819_v19  ;;  %v5827_v26 = vld [vmem:[#allocation4 + $0xeb0] sm:$0xff] }
 0x817   :  { %9029 = vmatpush1.bf16.msra.mxu0 %v10147_v54  ;;  %8866 = vmatprep.subr.bf16.mxu1 %v10154_v48  ;;  %v5792_v54 = vld [vmem:[#allocation4 + $0xd98] sm:$0xff] }
 0x818   :  { %9030 = vmatprep.subr.bf16.mxu0 %v10156_v10  ;;  %v5796_v48 = vld [vmem:[#allocation4 + $0xdb8] sm:$0xff]  ;;  %v5870_v10 = vrot.slane %v11538_v47, %v10988_v42 }
 0x819   :  { %v10212_v40 = vcombine.high %v5792_v54, %v5796_v48  ;;  %v5800_v42 = vld [vmem:[#allocation4 + $0xdd8] sm:$0xff]  ;;  %v10211_v15 = vcombine.low %v5792_v54, %v5796_v48  ;;  %v5835_v54 = vld [vmem:[#allocation4 + $0xef0] sm:$0xff] }
 0x81a   :  { %8867 = vmatpush1.bf16.msra.mxu1 %v10153_v2  ;;  %v10210_v2 = vcombine.high %v5791_v52, %v5795_v61  ;;  %v5832_v48 = vld [vmem:[#allocation4 + $0xed8] sm:$0xff] }
 0x81b   :  { %9031 = vmatpush1.bf16.msra.mxu0 %v10155_v0  ;;  %8877 = vmatprep.subr.bf16.mxu1 %v10162_v12  ;;  %v5799_v12 = vld [vmem:[#allocation4 + $0xdd0] sm:$0xff] }
 0x81c   :  { %9041 = vmatprep.subr.bf16.mxu0 %v10164_v8  ;;  %v5803_v8 = vld [vmem:[#allocation4 + $0xdf0] sm:$0xff] }
 0x81d   :  { %8869 = vmatmul.mubr.bf16.vlgmr.msra.gmra.mrb[32].mxu1 %v11496_v6 }
 0x81e   :  { %9033 = vmatmul.mubr.bf16.vlgmr.msra.gmra.mrb[36].mxu0 %v11496_v6  ;;  %8878 = vmatpush1.bf16.msra.mxu1 %v10161_v18  ;;  %v10177_v6 = vcombine.low %v5759_v7, %v5763_v16  ;;  %v10209_v7 = vcombine.low %v5791_v52, %v5795_v61  ;;  %v10242_v52 = vcombine.high %v5823_v43, %v5827_v26 }
 0x81f   :  { %10282 = vmatprep.mubr.msk.bf16.mxu1 %vm3143_vm0, %v11498_v11  ;;  %9042 = vmatpush1.bf16.msra.mxu0 %v10163_v5 }
 0x820   :  { %10284 = vmatprep.mubr.msk.bf16.mxu0 %vm3143_vm0, %v11498_v11  ;;  %8879 = vmatprep.subr.bf16.mxu1 %v10170_v57  ;;  %v10185_v11 = vcombine.low %v5767_v4, %v5771_v22  ;;  %v10220_v4 = vcombine.high %v5800_v42, %v5804_v35  ;;  %v5807_v22 = vld [vmem:[#allocation4 + $0xe10] sm:$0xff] }
 0x821   :  { %9043 = vmatprep.subr.bf16.mxu0 %v10172_v9  ;;  %v10226_v28 = vcombine.high %v5807_v22, %v5811_v24 }
 0x822   :  { %8880 = vmatpush1.bf16.msra.mxu1 %v10169_v17  ;;  %v10218_v17 = vcombine.high %v5799_v12, %v5803_v8 }
 0x823   :  { %9044 = vmatpush1.bf16.msra.mxu0 %v10171_v20  ;;  %8881 = vmatprep.subr.bf16.mxu1 %v10178_v1 }
 0x824   :  { %9045 = vmatprep.subr.bf16.mxu0 %v10180_v21 }
 0x826   :  { %8882 = vmatpush1.bf16.msra.mxu1 %v10177_v6  ;;  %v5808_v6 = vld [vmem:[#allocation4 + $0xe18] sm:$0xff] }
 0x827   :  { %9046 = vmatpush1.bf16.msra.mxu0 %v10179_v13  ;;  %8883 = vmatprep.subr.bf16.mxu1 %v10186_v25  ;;  %v5812_v13 = vld [vmem:[#allocation4 + $0xe38] sm:$0xff]  ;;  %v10217_v25 = vcombine.low %v5799_v12, %v5803_v8 }
 0x828   :  { %9047 = vmatprep.subr.bf16.mxu0 %v10188_v23  ;;  %v10219_v23 = vcombine.low %v5800_v42, %v5804_v35  ;;  %v10228_v29 = vcombine.high %v5808_v6, %v5812_v13  ;;  %v5844_v12 = vld [vmem:[#allocation4 + $0xf38] sm:$0xff]  ;;  %v5847_v42 = vld [vmem:[#allocation4 + $0xf50] sm:$0xff] }
 0x829   :  { %v5851_v35 = vld [vmem:[#allocation4 + $0xf70] sm:$0xff] }
 0x82a   :  { %8884 = vmatpush1.bf16.msra.mxu1 %v10185_v11  ;;  %v5816_v11 = vld [vmem:[#allocation4 + $0xe58] sm:$0xff] }
 0x82b   :  { %9048 = vmatpush1.bf16.msra.mxu0 %v10187_v45  ;;  %8885 = vmatprep.subr.bf16.mxu1 %v10194_v31  ;;  %v5820_v45 = vld [vmem:[#allocation4 + $0xe78] sm:$0xff]  ;;  %v10225_v31 = vcombine.low %v5807_v22, %v5811_v24  ;;  %v5878_v24 = vrot.slane %v11538_v47, %v11141_v34 }
 0x82c   :  { %9049 = vmatprep.subr.bf16.mxu0 %v10196_v36  ;;  %v10227_v36 = vcombine.low %v5808_v6, %v5812_v13  ;;  %v10236_v46 = vcombine.high %v5816_v11, %v5820_v45  ;;  %v5882_v6 = vrot.slane %v11538_v47, %v11147_v39  ;;  %v5890_v13 = vrot.slane %v11538_v47, %v11150_v41 }
 0x82e   :  { %8886 = vmatpush1.bf16.msra.mxu1 %v10193_v44  ;;  %v5824_v44 = vld [vmem:[#allocation4 + $0xe98] sm:$0xff] }
 0x82f   :  { %9050 = vmatpush1.bf16.msra.mxu0 %v10195_v49  ;;  %8887 = vmatprep.subr.bf16.mxu1 %v10202_v50  ;;  %v5828_v49 = vld [vmem:[#allocation4 + $0xeb8] sm:$0xff]  ;;  %v10233_v50 = vcombine.low %v5815_v30, %v5819_v19 }
 0x830   :  { %v8583_v0 = vpop.f32.mrb[28].mxu1  ;;  %9051 = vmatprep.subr.bf16.mxu0 %v10204_v51  ;;  %v10235_v51 = vcombine.low %v5816_v11, %v5820_v45  ;;  %v10244_v61 = vcombine.high %v5824_v44, %v5828_v49 }
 0x831   :  { %v10419_v62 = vadd.f32 %v8583_v0, %v5862_v53  ;;  %v8747_v37 = vpop.f32.mrb[32].mxu0  ;;  %v8585_v18 = vpop.f32.mrb[29].mxu1  ;;  %v5831_v53 = vld [vmem:[#allocation4 + $0xed0] sm:$0xff] }
 0x832   :  { %v10421_v3 = vadd.f32 %v8747_v37, %v5870_v10  ;;  %v10420_v58 = vadd.f32 %v8585_v18, %v5866_v55  ;;  %v8749_v5 = vpop.f32.mrb[33].mxu0  ;;  %v8587_v57 = vpop.f32.mrb[30].mxu1  ;;  %8888 = vmatpush1.bf16.msra.mxu1 %v10201_v56  ;;  %v5836_v10 = vld [vmem:[#allocation4 + $0xef8] sm:$0xff]  ;;  %v10241_v55 = vcombine.low %v5823_v43, %v5827_v26  ;;  %v10243_v56 = vcombine.low %v5824_v44, %v5828_v49  ;;  %v5843_v0 = vld [vmem:[#allocation4 + $0xf30] sm:$0xff] }
 0x833   :  { %v9082_v63 = vmax.f32 %v10419_v62, 0.0  ;;  %v10422_v16 = vadd.f32 %v8749_v5, %v5874_v59  ;;  %v8751_v9 = vpop.f32.mrb[34].mxu0  ;;  %9052 = vmatpush1.bf16.msra.mxu0 %v10203_v60  ;;  %v8588_v14 = vpop.f32.mrb[31].mxu1  ;;  %8889 = vmatprep.subr.bf16.mxu1 %v10210_v2  ;;  %v10250_v59 = vcombine.high %v5831_v53, %v5835_v54  ;;  %v10252_v60 = vcombine.high %v5832_v48, %v5836_v10  ;;  %v5839_v2 = vld [vmem:[#allocation4 + $0xf10] sm:$0xff] }
 0x834   :  { %v9084_v20 = vmax.f32 %v10421_v3, 0.0  ;;  %v9083_v1 = vmax.f32 %v10420_v58, 0.0  ;;  %v8752_v21 = vpop.f32.mrb[35].mxu0  ;;  %9053 = vmatprep.subr.bf16.mxu0 %v10212_v40  ;;  %v5840_v40 = vld [vmem:[#allocation4 + $0xf18] sm:$0xff]  ;;  %v10249_v8 = vcombine.low %v5831_v53, %v5835_v54  ;;  %v10251_v62 = vcombine.low %v5832_v48, %v5836_v10 }
 0x835   :  { %9090 = vst [vmem:[%s11616_s8] sm:$0xff] %v9082_v63  ;;  %v9085_v27 = vmax.f32 %v10422_v16, 0.0  ;;  %v10258_v37 = vcombine.high %v5839_v2, %v5843_v0  ;;  %v10260_v18 = vcombine.high %v5840_v40, %v5844_v12  ;;  %v5848_v3 = vld [vmem:[#allocation4 + $0xf58] sm:$0xff]  ;;  %v10257_v5 = vcombine.low %v5839_v2, %v5843_v0  ;;  %v5855_v16 = vld [vmem:[#allocation4 + $0xf90] sm:$0xff] }
 0x836   :  { %9092 = vst [vmem:[%s11616_s8 + $0x10] sm:$0xff] %v9084_v20  ;;  %9091 = vst [vmem:[%s11616_s8 + $0x8] sm:$0xff] %v9083_v1  ;;  %8890 = vmatpush1.bf16.msra.mxu1 %v10209_v7  ;;  %v5852_v58 = vld [vmem:[#allocation4 + $0xf78] sm:$0xff]  ;;  %v10259_v57 = vcombine.low %v5840_v40, %v5844_v12  ;;  %v10266_v7 = vcombine.high %v5847_v42, %v5851_v35  ;;  %v10265_v14 = vcombine.low %v5847_v42, %v5851_v35 }
 0x837   :  { %9093 = vst [vmem:[%s11616_s8 + $0x18] sm:$0xff] %v9085_v27  ;;  %9054 = vmatpush1.bf16.msra.mxu0 %v10211_v15  ;;  %8891 = vmatprep.subr.bf16.mxu1 %v10218_v17  ;;  %v10268_v63 = vcombine.high %v5848_v3, %v5852_v58  ;;  %v5856_v9 = vld [vmem:[#allocation4 + $0xf98] sm:$0xff]  ;;  %v10267_v15 = vcombine.low %v5848_v3, %v5852_v58 }
 0x838   :  { %9055 = vmatprep.subr.bf16.mxu0 %v10220_v4  ;;  %v10274_v17 = vcombine.high %v5855_v16, %v5855_v16  ;;  %v10273_v20 = vcombine.low %v5855_v16, %v5855_v16  ;;  %v10276_v1 = vcombine.high %v5856_v9, %v5856_v9  ;;  %v10275_v21 = vcombine.low %v5856_v9, %v5856_v9 }
 0x839   :  { %v5886_v27 = vrot.slane %v11538_v47, %v11144_v38 }
 0x83a   :  { %8892 = vmatpush1.bf16.msra.mxu1 %v10217_v25  ;;  %v8415_v4 = vsel %vm3147_vm1, %v10273_v20, 0  ;;  %v8421_v22 = vsel %vm3147_vm1, %v10275_v21, 0 }
 0x83b   :  { %9056 = vmatpush1.bf16.msra.mxu0 %v10219_v23  ;;  %8893 = vmatprep.subr.bf16.mxu1 %v10226_v28 }
 0x83c   :  { %9057 = vmatprep.subr.bf16.mxu0 %v10228_v29 }
 0x83e   :  { %8894 = vmatpush1.bf16.msra.mxu1 %v10225_v31 }
 0x83f   :  { %9058 = vmatpush1.bf16.msra.mxu0 %v10227_v36  ;;  %8895 = vmatprep.subr.bf16.mxu1 %v10234_v33 }
 0x840   :  { %9059 = vmatprep.subr.bf16.mxu0 %v10236_v46 }
 0x842   :  { %8896 = vmatpush1.bf16.msra.mxu1 %v10233_v50 }
 0x843   :  { %9060 = vmatpush1.bf16.msra.mxu0 %v10235_v51  ;;  %8897 = vmatprep.subr.bf16.mxu1 %v10242_v52 }
 0x844   :  { %9061 = vmatprep.subr.bf16.mxu0 %v10244_v61 }
 0x846   :  { %8898 = vmatpush1.bf16.msra.mxu1 %v10241_v55 }
 0x847   :  { %9062 = vmatpush1.bf16.msra.mxu0 %v10243_v56  ;;  %8899 = vmatprep.subr.bf16.mxu1 %v10250_v59 }
 0x848   :  { %9063 = vmatprep.subr.bf16.mxu0 %v10252_v60 }
 0x84a   :  { %8900 = vmatpush1.bf16.msra.mxu1 %v10249_v8 }
 0x84b   :  { %9064 = vmatpush1.bf16.msra.mxu0 %v10251_v62  ;;  %8901 = vmatprep.subr.bf16.mxu1 %v10258_v37 }
 0x84c   :  { %9065 = vmatprep.subr.bf16.mxu0 %v10260_v18 }
 0x84e   :  { %8902 = vmatpush1.bf16.msra.mxu1 %v10257_v5 }
 0x84f   :  { %9066 = vmatpush1.bf16.msra.mxu0 %v10259_v57  ;;  %8903 = vmatprep.subr.bf16.mxu1 %v10266_v7 }
 0x850   :  { %9067 = vmatprep.subr.bf16.mxu0 %v10268_v63 }
 0x852   :  { %8904 = vmatpush1.bf16.msra.mxu1 %v10265_v14 }
 0x853   :  { %9068 = vmatpush1.bf16.msra.mxu0 %v10267_v15  ;;  %10281 = vmatprep.subr.msk.bf16.mxu1 %vm3147_vm1, %v10274_v17 }
 0x854   :  { %10283 = vmatprep.subr.msk.bf16.mxu0 %vm3147_vm1, %v10276_v1 }
 0x856   :  { %8906 = vmatpush1.bf16.msra.mxu1 %v8415_v4 }
 0x857   :  { %9070 = vmatpush1.bf16.msra.mxu0 %v8421_v22 }
 0x859   :  { %8910 = vmatmul.mubr.bf16.vlgmr.msra.gmra.mrb[32].mxu1 %v11515_v32 }
 0x85a   :  { %9074 = vmatmul.mubr.bf16.vlgmr.msra.gmra.mrb[36].mxu0 %v11515_v32 }
 0x92c   :  { %v8911_v25 = vpop.f32.mrb[32].mxu1 }
 0x92d   :  { %v10423_v23 = vadd.f32 %v8911_v25, %v5878_v24  ;;  %v9075_v28 = vpop.f32.mrb[36].mxu0  ;;  %v8913_v29 = vpop.f32.mrb[33].mxu1 }
 0x92e   :  { %v10425_v30 = vadd.f32 %v9075_v28, %v5886_v27  ;;  %v10424_v19 = vadd.f32 %v8913_v29, %v5882_v6  ;;  %v9077_v11 = vpop.f32.mrb[37].mxu0  ;;  %v8915_v32 = vpop.f32.mrb[34].mxu1 }
 0x92f   :  { %v9086_v45 = vmax.f32 %v10423_v23, 0.0  ;;  %v10426_v31 = vadd.f32 %v9077_v11, %v5890_v13  ;;  %v9079_v34 = vpop.f32.mrb[38].mxu0  ;;  %v8916_v36 = vpop.f32.mrb[35].mxu1 }
 0x930   :  { %v9088_v33 = vmax.f32 %v10425_v30, 0.0  ;;  %v9087_v38 = vmax.f32 %v10424_v19, 0.0  ;;  %v9080_v46 = vpop.f32.mrb[39].mxu0 }
 0x931   :  { %9094 = vst [vmem:[%s11616_s8 + $0x20] sm:$0xff] %v9086_v45  ;;  %v9089_v39 = vmax.f32 %v10426_v31, 0.0 }
 0x932   :  { %9096 = vst [vmem:[%s11616_s8 + $0x30] sm:$0xff] %v9088_v33  ;;  %9095 = vst [vmem:[%s11616_s8 + $0x28] sm:$0xff] %v9087_v38 }
 0x933   :  { %9097 = vst.msk [vmem:[%s11616_s8 + $0x38] sm:$0xff] %vm3143_vm0, %v9089_v39 }
 0x934   :  { %9110 = vsyncpa [#allocation3], 1 }
 0x935   :  { %9111 = vsyncpa [#allocation5], 1 }

</bundles_post_ra>
